<compile_context>
chip_gen: v7x
topology: tpu7x:2x2x1
jax: 0.10.0
libtpu: 0.0.40
codegen_flags: <defaults>
</compile_context>

<pallas_src>
import functools

import numpy as np

import jax
import jax.numpy as jnp
from jax.experimental import pallas as pl
from jax.experimental.pallas import tpu as pltpu


def _ceil_to(x, m):
    return ((x + m - 1) // m) * m


def _pad_rows(n):
    """Per-image activation row count padded to a sublane-native multiple."""
    return max(8, _ceil_to(n, 8))


# --------------------- one-hot window-gather matrices ---------------------

def _make_select(H, W, k, stride, pad):
    """One-hot row-gather matrices for a k x k / stride / pad window on an
    H x W grid, stacked tap-major: [k*k*Mout_pad, Min_pad] (float32 numpy).

    Row (t*Mout_pad + ho*Wo + wo) selects input row (h*W + w) for tap t=(i,j);
    out-of-bounds taps are all-zero rows (== zero padding).  Rows / columns
    beyond the real Ho*Wo / H*W are always zero, so garbage in padded
    activation rows never propagates."""
    Ho = (H + 2 * pad - k) // stride + 1
    Wo = (W + 2 * pad - k) // stride + 1
    mp_in = _pad_rows(H * W)
    mp_out = _pad_rows(Ho * Wo)
    S = np.zeros((k * k * mp_out, mp_in), np.float32)
    for i in range(k):
        for j in range(k):
            t = i * k + j
            for ho in range(Ho):
                h = stride * ho + i - pad
                if not 0 <= h < H:
                    continue
                for wo in range(Wo):
                    w = stride * wo + j - pad
                    if 0 <= w < W:
                        S[t * mp_out + ho * Wo + wo, h * W + w] = 1.0
    return S, (Ho, Wo), mp_out


# ------------------------------ Pallas kernel ------------------------------

def _backbone_kernel(*refs, plan):
    """One grid step == one image.  Runs stem conv + maxpool + all residual
    blocks; all intermediates live in VMEM / vregs."""
    n_out = len(plan["out_rows"])
    in_refs, out_refs = refs[:-n_out], refs[-n_out:]
    pos = [0]

    def take():
        r = in_refs[pos[0]]
        pos[0] += 1
        return r

    def conv(x_b16, taps, cin, m_out, relu, extra=None):
        """x_b16: [m_in, cin] bf16.  Consumes (S, W, b) refs:
          S: [taps*m_out, m_in] one-hot bf16 (on-chip window gather),
          W: [taps*cin, cout]  bf16 (BN scale folded),
          b: [1, cout]         f32.
        Returns f32 [m_out, cout] with optional residual add + ReLU fused."""
        s_ref, w_ref, b_ref = take(), take(), take()
        # Window gather as an MXU matmul; exact because rows are one-hot.
        gath = jnp.dot(s_ref[...], x_b16, preferred_element_type=jnp.float32)
        gath = gath.astype(jnp.bfloat16)
        acc = None
        for t in range(taps):
            g_t = gath[t * m_out:(t + 1) * m_out, :]
            w_t = w_ref[t * cin:(t + 1) * cin, :]
            part = jnp.dot(g_t, w_t, preferred_element_type=jnp.float32)
            acc = part if acc is None else acc + part
        acc = acc + b_ref[...]
        if extra is not None:
            acc = acc + extra
        if relu:
            acc = jnp.maximum(acc, 0.0)
        return acc

    # ---- stem: 7x7/2 conv (wrapper-side im2col) + BN bias + ReLU ----
    p_ref, w_ref, b_ref = take(), take(), take()
    y = jnp.dot(p_ref[0], w_ref[...], preferred_element_type=jnp.float32)
    y = jnp.maximum(y + b_ref[...], 0.0)
    y = y.astype(jnp.bfloat16)                          # [Ms, C0]

    # ---- fused 3x3/2 maxpool: stacked one-hot gather + running max ----
    # (zero rows for OOB taps are equivalent to -inf padding post-ReLU)
    s_ref = take()
    mpool = plan["pool_rows"]
    gath = jnp.dot(s_ref[...], y, preferred_element_type=jnp.float32)
    pooled = gath[0:mpool, :]
    for t in range(1, 9):
        pooled = jnp.maximum(pooled, gath[t * mpool:(t + 1) * mpool, :])
    x = pooled.astype(jnp.bfloat16)                     # [Mp, C0]

    # ---- the four residual stages ----
    for li, layer in enumerate(plan["layers"]):
        last = None
        for blk in layer:
            y1 = conv(x, 9, blk["cin"], blk["m_out"], relu=True)
            if blk["down"]:
                ident = conv(x, 1, blk["cin"], blk["m_out"], relu=False)
            else:
                ident = x.astype(jnp.float32)
            # conv2 + BN + residual add + ReLU fused.
            y2 = conv(y1.astype(jnp.bfloat16), 9, blk["cout"], blk["m_out"],
                      relu=True, extra=ident)
            x = y2.astype(jnp.bfloat16)
            last = y2
        out_refs[li][0] = last[:plan["out_rows"][li], :]


# ----------------------------- params / model -----------------------------

def make_conv_bn(key, kh, kw, cin, cout):
    k1, k2, k3, k4 = jax.random.split(key, 4)
    fan_in = kh * kw * cin
    w = jax.random.normal(k1, (kh, kw, cin, cout), jnp.float32) / jnp.sqrt(
        jnp.float32(fan_in))
    gamma = 1.0 + 0.1 * jax.random.normal(k2, (cout,), jnp.float32)
    beta = 0.1 * jax.random.normal(k3, (cout,), jnp.float32)
    run_mean = 0.1 * jax.random.normal(k4, (cout,), jnp.float32)
    run_var = jnp.ones((cout,), jnp.float32)
    eps = 1e-5
    scale = gamma / jnp.sqrt(run_var + eps)
    bias = beta - run_mean * scale
    return {"w": w, "scale": scale, "bias": bias}


def make_layer(key, cin, cout, stride, num_blocks=2):
    # Strides are static structural config (not stored in the pytree).
    keys = jax.random.split(key, num_blocks)
    blocks = []
    for b in range(num_blocks):
        s = stride if b == 0 else 1
        ci = cin if b == 0 else cout
        kk = jax.random.split(keys[b], 3)
        blk = {
            "conv1": make_conv_bn(kk[0], 3, 3, ci, cout),
            "conv2": make_conv_bn(kk[1], 3, 3, cout, cout),
        }
        if s != 1 or ci != cout:
            blk["down"] = make_conv_bn(kk[2], 1, 1, ci, cout)
        blocks.append(blk)
    return blocks


def init_params(key, in_ch=3, base=8):
    ks = jax.random.split(key, 5)
    return {
        "conv1": make_conv_bn(ks[0], 7, 7, in_ch, base),
        "layer1": make_layer(ks[1], base, base, stride=1),
        "layer2": make_layer(ks[2], base, 2 * base, stride=2),
        "layer3": make_layer(ks[3], 2 * base, 4 * base, stride=2),
        "layer4": make_layer(ks[4], 4 * base, 8 * base, stride=2),
    }


# Static structural config: (layer name, first-block stride).
_LAYER_CFG = (("layer1", 1), ("layer2", 2), ("layer3", 2), ("layer4", 2))


# ------------------------------ forward pass ------------------------------

def resnet_backbone(x_nchw, params):
    x = jnp.transpose(x_nchw, (0, 2, 3, 1)).astype(jnp.float32)   # NCHW -> NHWC
    N, H, W, cin = x.shape

    inputs, in_specs = [], []

    def add_per_image(arr):
        nd = arr.ndim
        inputs.append(arr)
        in_specs.append(pl.BlockSpec((1,) + arr.shape[1:],
                                     lambda n, nd=nd: (n,) + (0,) * (nd - 1)))

    def add_shared(arr):
        nd = arr.ndim
        inputs.append(arr)
        in_specs.append(pl.BlockSpec(arr.shape,
                                     lambda n, nd=nd: (0,) * nd))

    def fold(p):
        """Fold eval-mode BN scale into the conv weights (free at trace time)."""
        w = p["w"]
        kh_, kw_, ci, co = w.shape
        wf = (w.reshape(kh_ * kw_ * ci, co) *
              p["scale"][None, :]).astype(jnp.bfloat16)
        bf = p["bias"].reshape(1, co).astype(jnp.float32)
        return wf, bf

    # ---- stem conv 7x7 / stride 2 / pad 3 : one-time wrapper-side im2col ----
    kh = kw = 7
    st, pd = 2, 3
    Ho = (H + 2 * pd - kh) // st + 1
    Wo = (W + 2 * pd - kw) // st + 1
    xp = jnp.pad(x, ((0, 0), (pd, pd), (pd, pd), (0, 0)))
    cols = [xp[:, i:i + st * Ho:st, j:j + st * Wo:st, :]
            for i in range(kh) for j in range(kw)]
    patches = jnp.stack(cols, axis=3).reshape(N, Ho * Wo, kh * kw * cin)
    K = kh * kw * cin
    Kp = _ceil_to(K, 16)                       # bf16 sublane packing of K
    patches = jnp.pad(patches, ((0, 0), (0, 0), (0, Kp - K))).astype(jnp.bfloat16)

    stem = params["conv1"]
    c_cur = stem["w"].shape[-1]
    w0 = stem["w"].reshape(K, c_cur) * stem["scale"][None, :]
    w0 = jnp.pad(w0, ((0, Kp - K), (0, 0))).astype(jnp.bfloat16)
    b0 = stem["bias"].reshape(1, c_cur).astype(jnp.float32)
    add_per_image(patches)
    add_shared(w0)
    add_shared(b0)
    H_cur, W_cur = Ho, Wo

    # ---- maxpool 3x3 / stride 2 / pad 1 gather matrices ----
    S_pool, (Hp, Wp), pool_rows = _make_select(H_cur, W_cur, 3, 2, 1)
    add_shared(jnp.asarray(S_pool, jnp.bfloat16))
    H_cur, W_cur = Hp, Wp

    # ---- residual stages ----
    plan_layers, out_rows, out_hw_c = [], [], []
    for name, layer_stride in _LAYER_CFG:
        blocks_plan = []
        for b, blk in enumerate(params[name]):
            s_b = layer_stride if b == 0 else 1
            cout = blk["conv1"]["w"].shape[-1]

            S1, (Hn, Wn), m_out = _make_select(H_cur, W_cur, 3, s_b, 1)
            w1, b1 = fold(blk["conv1"])
            add_shared(jnp.asarray(S1, jnp.bfloat16))
            add_shared(w1)
            add_shared(b1)

            has_down = "down" in blk
            if has_down:
                Sd, _, _ = _make_select(H_cur, W_cur, 1, s_b, 0)
                wd, bd = fold(blk["down"])
                add_shared(jnp.asarray(Sd, jnp.bfloat16))
                add_shared(wd)
                add_shared(bd)

            S2, _, _ = _make_select(Hn, Wn, 3, 1, 1)
            w2, b2 = fold(blk["conv2"])
            add_shared(jnp.asarray(S2, jnp.bfloat16))
            add_shared(w2)
            add_shared(b2)

            blocks_plan.append(dict(cin=c_cur, cout=cout,
                                    m_out=m_out, down=has_down))
            H_cur, W_cur, c_cur = Hn, Wn, cout
        plan_layers.append(blocks_plan)
        out_rows.append(H_cur * W_cur)
        out_hw_c.append((H_cur, W_cur, c_cur))

    plan = {"pool_rows": pool_rows, "layers": plan_layers, "out_rows": out_rows}

    out_shape = tuple(jax.ShapeDtypeStruct((N, h * w, c), jnp.float32)
                      for (h, w, c) in out_hw_c)
    out_specs = tuple(pl.BlockSpec((1, h * w, c), lambda n: (n, 0, 0))
                      for (h, w, c) in out_hw_c)

    kernel = functools.partial(_backbone_kernel, plan=plan)
    feats = pl.pallas_call(
        kernel,
        out_shape=out_shape,
        grid_spec=pltpu.PrefetchScalarGridSpec(
            num_scalar_prefetch=0,
            grid=(N,),                                   # one image per step
            in_specs=in_specs,
            out_specs=out_specs),
        compiler_params=pltpu.CompilerParams(
            dimension_semantics=("parallel",)),          # v7x: 2 TCs, 2 images
    )(*inputs)

    # Return NCHW feature maps like the PyTorch module (OrderedDict '0'..'3').
    result = {}
    for i, (f, (h, w, c)) in enumerate(zip(feats, out_hw_c)):
        result[str(i)] = jnp.transpose(f.reshape(N, h, w, c), (0, 3, 1, 2))
    return result


# ----------------------------- main -----------------------------

if __name__ == "__main__":
    x = jax.random.normal(jax.random.PRNGKey(0), (2, 3, 32, 32), jnp.float32)
    params = init_params(jax.random.PRNGKey(1), in_ch=3, base=8)
    feats = jax.jit(resnet_backbone)(x, params)
    jax.block_until_ready(feats)
    assert feats["0"].shape == (2, 8, 8, 8)
    assert feats["1"].shape == (2, 16, 4, 4)
    assert feats["2"].shape == (2, 32, 2, 2)
    assert feats["3"].shape == (2, 64, 1, 1)
    print("KERNEL_OK")
</pallas_src>

<mosaic_0001>
module attributes {stable_mosaic.version = 11 : i64} {
  func.func @_backbone_kernel(%arg0: i32, %arg1: memref<1x256x160xbf16, #tpu.memory_space<vmem>>, %arg2: memref<160x8xbf16, #tpu.memory_space<vmem>>, %arg3: memref<1x8xf32, #tpu.memory_space<vmem>>, %arg4: memref<576x256xbf16, #tpu.memory_space<vmem>>, %arg5: memref<576x64xbf16, #tpu.memory_space<vmem>>, %arg6: memref<72x8xbf16, #tpu.memory_space<vmem>>, %arg7: memref<1x8xf32, #tpu.memory_space<vmem>>, %arg8: memref<576x64xbf16, #tpu.memory_space<vmem>>, %arg9: memref<72x8xbf16, #tpu.memory_space<vmem>>, %arg10: memref<1x8xf32, #tpu.memory_space<vmem>>, %arg11: memref<576x64xbf16, #tpu.memory_space<vmem>>, %arg12: memref<72x8xbf16, #tpu.memory_space<vmem>>, %arg13: memref<1x8xf32, #tpu.memory_space<vmem>>, %arg14: memref<576x64xbf16, #tpu.memory_space<vmem>>, %arg15: memref<72x8xbf16, #tpu.memory_space<vmem>>, %arg16: memref<1x8xf32, #tpu.memory_space<vmem>>, %arg17: memref<144x64xbf16, #tpu.memory_space<vmem>>, %arg18: memref<72x16xbf16, #tpu.memory_space<vmem>>, %arg19: memref<1x16xf32, #tpu.memory_space<vmem>>, %arg20: memref<16x64xbf16, #tpu.memory_space<vmem>>, %arg21: memref<8x16xbf16, #tpu.memory_space<vmem>>, %arg22: memref<1x16xf32, #tpu.memory_space<vmem>>, %arg23: memref<144x16xbf16, #tpu.memory_space<vmem>>, %arg24: memref<144x16xbf16, #tpu.memory_space<vmem>>, %arg25: memref<1x16xf32, #tpu.memory_space<vmem>>, %arg26: memref<144x16xbf16, #tpu.memory_space<vmem>>, %arg27: memref<144x16xbf16, #tpu.memory_space<vmem>>, %arg28: memref<1x16xf32, #tpu.memory_space<vmem>>, %arg29: memref<144x16xbf16, #tpu.memory_space<vmem>>, %arg30: memref<144x16xbf16, #tpu.memory_space<vmem>>, %arg31: memref<1x16xf32, #tpu.memory_space<vmem>>, %arg32: memref<72x16xbf16, #tpu.memory_space<vmem>>, %arg33: memref<144x32xbf16, #tpu.memory_space<vmem>>, %arg34: memref<1x32xf32, #tpu.memory_space<vmem>>, %arg35: memref<8x16xbf16, #tpu.memory_space<vmem>>, %arg36: memref<16x32xbf16, #tpu.memory_space<vmem>>, %arg37: memref<1x32xf32, #tpu.memory_space<vmem>>, %arg38: memref<72x8xbf16, #tpu.memory_space<vmem>>, %arg39: memref<288x32xbf16, #tpu.memory_space<vmem>>, %arg40: memref<1x32xf32, #tpu.memory_space<vmem>>, %arg41: memref<72x8xbf16, #tpu.memory_space<vmem>>, %arg42: memref<288x32xbf16, #tpu.memory_space<vmem>>, %arg43: memref<1x32xf32, #tpu.memory_space<vmem>>, %arg44: memref<72x8xbf16, #tpu.memory_space<vmem>>, %arg45: memref<288x32xbf16, #tpu.memory_space<vmem>>, %arg46: memref<1x32xf32, #tpu.memory_space<vmem>>, %arg47: memref<72x8xbf16, #tpu.memory_space<vmem>>, %arg48: memref<288x64xbf16, #tpu.memory_space<vmem>>, %arg49: memref<1x64xf32, #tpu.memory_space<vmem>>, %arg50: memref<8x8xbf16, #tpu.memory_space<vmem>>, %arg51: memref<32x64xbf16, #tpu.memory_space<vmem>>, %arg52: memref<1x64xf32, #tpu.memory_space<vmem>>, %arg53: memref<72x8xbf16, #tpu.memory_space<vmem>>, %arg54: memref<576x64xbf16, #tpu.memory_space<vmem>>, %arg55: memref<1x64xf32, #tpu.memory_space<vmem>>, %arg56: memref<72x8xbf16, #tpu.memory_space<vmem>>, %arg57: memref<576x64xbf16, #tpu.memory_space<vmem>>, %arg58: memref<1x64xf32, #tpu.memory_space<vmem>>, %arg59: memref<72x8xbf16, #tpu.memory_space<vmem>>, %arg60: memref<576x64xbf16, #tpu.memory_space<vmem>>, %arg61: memref<1x64xf32, #tpu.memory_space<vmem>>, %arg62: memref<1x64x8xf32, #tpu.memory_space<vmem>>, %arg63: memref<1x16x16xf32, #tpu.memory_space<vmem>>, %arg64: memref<1x4x32xf32, #tpu.memory_space<vmem>>, %arg65: memref<1x1x64xf32, #tpu.memory_space<vmem>>) attributes {dimension_semantics = [#tpu.dimension_semantics<parallel>], iteration_bounds = array<i64: 2>, scalar_prefetch = 0 : i64, scratch_operands = 0 : i64, tpu.core_type = #tpu.core_type<tc>, window_params = [{transform_indices = @transform_0, window_bounds = array<i64: 1, 256, 160>}, {pipeline_mode = #tpu.pipeline_mode<synchronous>, transform_indices = @transform_1, window_bounds = array<i64: 160, 8>}, {pipeline_mode = #tpu.pipeline_mode<synchronous>, transform_indices = @transform_2, window_bounds = array<i64: 1, 8>}, {pipeline_mode = #tpu.pipeline_mode<synchronous>, transform_indices = @transform_3, window_bounds = array<i64: 576, 256>}, {pipeline_mode = #tpu.pipeline_mode<synchronous>, transform_indices = @transform_4, window_bounds = array<i64: 576, 64>}, {pipeline_mode = #tpu.pipeline_mode<synchronous>, transform_indices = @transform_5, window_bounds = array<i64: 72, 8>}, {pipeline_mode = #tpu.pipeline_mode<synchronous>, transform_indices = @transform_6, window_bounds = array<i64: 1, 8>}, {pipeline_mode = #tpu.pipeline_mode<synchronous>, transform_indices = @transform_7, window_bounds = array<i64: 576, 64>}, {pipeline_mode = #tpu.pipeline_mode<synchronous>, transform_indices = @transform_8, window_bounds = array<i64: 72, 8>}, {pipeline_mode = #tpu.pipeline_mode<synchronous>, transform_indices = @transform_9, window_bounds = array<i64: 1, 8>}, {pipeline_mode = #tpu.pipeline_mode<synchronous>, transform_indices = @transform_10, window_bounds = array<i64: 576, 64>}, {pipeline_mode = #tpu.pipeline_mode<synchronous>, transform_indices = @transform_11, window_bounds = array<i64: 72, 8>}, {pipeline_mode = #tpu.pipeline_mode<synchronous>, transform_indices = @transform_12, window_bounds = array<i64: 1, 8>}, {pipeline_mode = #tpu.pipeline_mode<synchronous>, transform_indices = @transform_13, window_bounds = array<i64: 576, 64>}, {pipeline_mode = #tpu.pipeline_mode<synchronous>, transform_indices = @transform_14, window_bounds = array<i64: 72, 8>}, {pipeline_mode = #tpu.pipeline_mode<synchronous>, transform_indices = @transform_15, window_bounds = array<i64: 1, 8>}, {pipeline_mode = #tpu.pipeline_mode<synchronous>, transform_indices = @transform_16, window_bounds = array<i64: 144, 64>}, {pipeline_mode = #tpu.pipeline_mode<synchronous>, transform_indices = @transform_17, window_bounds = array<i64: 72, 16>}, {pipeline_mode = #tpu.pipeline_mode<synchronous>, transform_indices = @transform_18, window_bounds = array<i64: 1, 16>}, {pipeline_mode = #tpu.pipeline_mode<synchronous>, transform_indices = @transform_19, window_bounds = array<i64: 16, 64>}, {pipeline_mode = #tpu.pipeline_mode<synchronous>, transform_indices = @transform_20, window_bounds = array<i64: 8, 16>}, {pipeline_mode = #tpu.pipeline_mode<synchronous>, transform_indices = @transform_21, window_bounds = array<i64: 1, 16>}, {pipeline_mode = #tpu.pipeline_mode<synchronous>, transform_indices = @transform_22, window_bounds = array<i64: 144, 16>}, {pipeline_mode = #tpu.pipeline_mode<synchronous>, transform_indices = @transform_23, window_bounds = array<i64: 144, 16>}, {pipeline_mode = #tpu.pipeline_mode<synchronous>, transform_indices = @transform_24, window_bounds = array<i64: 1, 16>}, {pipeline_mode = #tpu.pipeline_mode<synchronous>, transform_indices = @transform_25, window_bounds = array<i64: 144, 16>}, {pipeline_mode = #tpu.pipeline_mode<synchronous>, transform_indices = @transform_26, window_bounds = array<i64: 144, 16>}, {pipeline_mode = #tpu.pipeline_mode<synchronous>, transform_indices = @transform_27, window_bounds = array<i64: 1, 16>}, {pipeline_mode = #tpu.pipeline_mode<synchronous>, transform_indices = @transform_28, window_bounds = array<i64: 144, 16>}, {pipeline_mode = #tpu.pipeline_mode<synchronous>, transform_indices = @transform_29, window_bounds = array<i64: 144, 16>}, {pipeline_mode = #tpu.pipeline_mode<synchronous>, transform_indices = @transform_30, window_bounds = array<i64: 1, 16>}, {pipeline_mode = #tpu.pipeline_mode<synchronous>, transform_indices = @transform_31, window_bounds = array<i64: 72, 16>}, {pipeline_mode = #tpu.pipeline_mode<synchronous>, transform_indices = @transform_32, window_bounds = array<i64: 144, 32>}, {pipeline_mode = #tpu.pipeline_mode<synchronous>, transform_indices = @transform_33, window_bounds = array<i64: 1, 32>}, {pipeline_mode = #tpu.pipeline_mode<synchronous>, transform_indices = @transform_34, window_bounds = array<i64: 8, 16>}, {pipeline_mode = #tpu.pipeline_mode<synchronous>, transform_indices = @transform_35, window_bounds = array<i64: 16, 32>}, {pipeline_mode = #tpu.pipeline_mode<synchronous>, transform_indices = @transform_36, window_bounds = array<i64: 1, 32>}, {pipeline_mode = #tpu.pipeline_mode<synchronous>, transform_indices = @transform_37, window_bounds = array<i64: 72, 8>}, {pipeline_mode = #tpu.pipeline_mode<synchronous>, transform_indices = @transform_38, window_bounds = array<i64: 288, 32>}, {pipeline_mode = #tpu.pipeline_mode<synchronous>, transform_indices = @transform_39, window_bounds = array<i64: 1, 32>}, {pipeline_mode = #tpu.pipeline_mode<synchronous>, transform_indices = @transform_40, window_bounds = array<i64: 72, 8>}, {pipeline_mode = #tpu.pipeline_mode<synchronous>, transform_indices = @transform_41, window_bounds = array<i64: 288, 32>}, {pipeline_mode = #tpu.pipeline_mode<synchronous>, transform_indices = @transform_42, window_bounds = array<i64: 1, 32>}, {pipeline_mode = #tpu.pipeline_mode<synchronous>, transform_indices = @transform_43, window_bounds = array<i64: 72, 8>}, {pipeline_mode = #tpu.pipeline_mode<synchronous>, transform_indices = @transform_44, window_bounds = array<i64: 288, 32>}, {pipeline_mode = #tpu.pipeline_mode<synchronous>, transform_indices = @transform_45, window_bounds = array<i64: 1, 32>}, {pipeline_mode = #tpu.pipeline_mode<synchronous>, transform_indices = @transform_46, window_bounds = array<i64: 72, 8>}, {pipeline_mode = #tpu.pipeline_mode<synchronous>, transform_indices = @transform_47, window_bounds = array<i64: 288, 64>}, {pipeline_mode = #tpu.pipeline_mode<synchronous>, transform_indices = @transform_48, window_bounds = array<i64: 1, 64>}, {pipeline_mode = #tpu.pipeline_mode<synchronous>, transform_indices = @transform_49, window_bounds = array<i64: 8, 8>}, {pipeline_mode = #tpu.pipeline_mode<synchronous>, transform_indices = @transform_50, window_bounds = array<i64: 32, 64>}, {pipeline_mode = #tpu.pipeline_mode<synchronous>, transform_indices = @transform_51, window_bounds = array<i64: 1, 64>}, {pipeline_mode = #tpu.pipeline_mode<synchronous>, transform_indices = @transform_52, window_bounds = array<i64: 72, 8>}, {pipeline_mode = #tpu.pipeline_mode<synchronous>, transform_indices = @transform_53, window_bounds = array<i64: 576, 64>}, {pipeline_mode = #tpu.pipeline_mode<synchronous>, transform_indices = @transform_54, window_bounds = array<i64: 1, 64>}, {pipeline_mode = #tpu.pipeline_mode<synchronous>, transform_indices = @transform_55, window_bounds = array<i64: 72, 8>}, {pipeline_mode = #tpu.pipeline_mode<synchronous>, transform_indices = @transform_56, window_bounds = array<i64: 576, 64>}, {pipeline_mode = #tpu.pipeline_mode<synchronous>, transform_indices = @transform_57, window_bounds = array<i64: 1, 64>}, {pipeline_mode = #tpu.pipeline_mode<synchronous>, transform_indices = @transform_58, window_bounds = array<i64: 72, 8>}, {pipeline_mode = #tpu.pipeline_mode<synchronous>, transform_indices = @transform_59, window_bounds = array<i64: 576, 64>}, {pipeline_mode = #tpu.pipeline_mode<synchronous>, transform_indices = @transform_60, window_bounds = array<i64: 1, 64>}, {transform_indices = @transform_61, window_bounds = array<i64: 1, 64, 8>}, {transform_indices = @transform_62, window_bounds = array<i64: 1, 16, 16>}, {transform_indices = @transform_63, window_bounds = array<i64: 1, 4, 32>}, {transform_indices = @transform_64, window_bounds = array<i64: 1, 1, 64>}]} {
    %c0 = arith.constant 0 : index
    %c0_0 = arith.constant 0 : index
    %c0_1 = arith.constant 0 : index
    %0 = vector.load %arg1[%c0, %c0_0, %c0_1] : memref<1x256x160xbf16, #tpu.memory_space<vmem>>, vector<1x256x160xbf16>
    %1 = vector.shape_cast %0 : vector<1x256x160xbf16> to vector<256x160xbf16>
    %c0_2 = arith.constant 0 : index
    %c0_3 = arith.constant 0 : index
    %2 = vector.load %arg2[%c0_2, %c0_3] : memref<160x8xbf16, #tpu.memory_space<vmem>>, vector<160x8xbf16>
    %cst = arith.constant dense<0.000000e+00> : vector<256x8xf32>
    %3 = tpu.matmul %1, %2, %cst {dimension_numbers = #tpu.dot_dimension_numbers<[1], [0], [0], [1], [0, 0, 1, 1], [], []>} : vector<256x160xbf16>, vector<160x8xbf16>, vector<256x8xf32> -> vector<256x8xf32>
    %c0_4 = arith.constant 0 : index
    %c0_5 = arith.constant 0 : index
    %4 = vector.load %arg3[%c0_4, %c0_5] : memref<1x8xf32, #tpu.memory_space<vmem>>, vector<1x8xf32>
    %5 = vector.broadcast %4 : vector<1x8xf32> to vector<256x8xf32>
    %6 = arith.addf %3, %5 : vector<256x8xf32>
    %cst_6 = arith.constant 0.000000e+00 : f32
    %7 = vector.broadcast %cst_6 : f32 to vector<256x8xf32>
    %8 = arith.maximumf %6, %7 : vector<256x8xf32>
    %9 = arith.truncf %8 : vector<256x8xf32> to vector<256x8xbf16>
    %c0_7 = arith.constant 0 : index
    %c0_8 = arith.constant 0 : index
    %10 = vector.load %arg4[%c0_7, %c0_8] : memref<576x256xbf16, #tpu.memory_space<vmem>>, vector<576x256xbf16>
    %cst_9 = arith.constant dense<0.000000e+00> : vector<576x8xf32>
    %11 = tpu.matmul %10, %9, %cst_9 {dimension_numbers = #tpu.dot_dimension_numbers<[1], [0], [0], [1], [0, 0, 1, 1], [], []>} : vector<576x256xbf16>, vector<256x8xbf16>, vector<576x8xf32> -> vector<576x8xf32>
    %12 = vector.extract_strided_slice %11 {offsets = [0, 0], sizes = [64, 8], strides = [1, 1]} : vector<576x8xf32> to vector<64x8xf32>
    %13 = vector.extract_strided_slice %11 {offsets = [64, 0], sizes = [64, 8], strides = [1, 1]} : vector<576x8xf32> to vector<64x8xf32>
    %14 = arith.maximumf %12, %13 : vector<64x8xf32>
    %15 = vector.extract_strided_slice %11 {offsets = [128, 0], sizes = [64, 8], strides = [1, 1]} : vector<576x8xf32> to vector<64x8xf32>
    %16 = arith.maximumf %14, %15 : vector<64x8xf32>
    %17 = vector.extract_strided_slice %11 {offsets = [192, 0], sizes = [64, 8], strides = [1, 1]} : vector<576x8xf32> to vector<64x8xf32>
    %18 = arith.maximumf %16, %17 : vector<64x8xf32>
    %19 = vector.extract_strided_slice %11 {offsets = [256, 0], sizes = [64, 8], strides = [1, 1]} : vector<576x8xf32> to vector<64x8xf32>
    %20 = arith.maximumf %18, %19 : vector<64x8xf32>
    %21 = vector.extract_strided_slice %11 {offsets = [320, 0], sizes = [64, 8], strides = [1, 1]} : vector<576x8xf32> to vector<64x8xf32>
    %22 = arith.maximumf %20, %21 : vector<64x8xf32>
    %23 = vector.extract_strided_slice %11 {offsets = [384, 0], sizes = [64, 8], strides = [1, 1]} : vector<576x8xf32> to vector<64x8xf32>
    %24 = arith.maximumf %22, %23 : vector<64x8xf32>
    %25 = vector.extract_strided_slice %11 {offsets = [448, 0], sizes = [64, 8], strides = [1, 1]} : vector<576x8xf32> to vector<64x8xf32>
    %26 = arith.maximumf %24, %25 : vector<64x8xf32>
    %27 = vector.extract_strided_slice %11 {offsets = [512, 0], sizes = [64, 8], strides = [1, 1]} : vector<576x8xf32> to vector<64x8xf32>
    %28 = arith.maximumf %26, %27 : vector<64x8xf32>
    %29 = arith.truncf %28 : vector<64x8xf32> to vector<64x8xbf16>
    %c0_10 = arith.constant 0 : index
    %c0_11 = arith.constant 0 : index
    %30 = vector.load %arg5[%c0_10, %c0_11] : memref<576x64xbf16, #tpu.memory_space<vmem>>, vector<576x64xbf16>
    %cst_12 = arith.constant dense<0.000000e+00> : vector<576x8xf32>
    %31 = tpu.matmul %30, %29, %cst_12 {dimension_numbers = #tpu.dot_dimension_numbers<[1], [0], [0], [1], [0, 0, 1, 1], [], []>} : vector<576x64xbf16>, vector<64x8xbf16>, vector<576x8xf32> -> vector<576x8xf32>
    %32 = arith.truncf %31 : vector<576x8xf32> to vector<576x8xbf16>
    %33 = vector.extract_strided_slice %32 {offsets = [0, 0], sizes = [64, 8], strides = [1, 1]} : vector<576x8xbf16> to vector<64x8xbf16>
    %c0_13 = arith.constant 0 : index
    %c0_14 = arith.constant 0 : index
    %34 = vector.load %arg6[%c0_13, %c0_14] : memref<72x8xbf16, #tpu.memory_space<vmem>>, vector<8x8xbf16>
    %cst_15 = arith.constant dense<0.000000e+00> : vector<64x8xf32>
    %35 = tpu.matmul %33, %34, %cst_15 {dimension_numbers = #tpu.dot_dimension_numbers<[1], [0], [0], [1], [0, 0, 1, 1], [], []>} : vector<64x8xbf16>, vector<8x8xbf16>, vector<64x8xf32> -> vector<64x8xf32>
    %36 = vector.extract_strided_slice %32 {offsets = [64, 0], sizes = [64, 8], strides = [1, 1]} : vector<576x8xbf16> to vector<64x8xbf16>
    %c8 = arith.constant 8 : index
    %c0_16 = arith.constant 0 : index
    %37 = vector.load %arg6[%c8, %c0_16] : memref<72x8xbf16, #tpu.memory_space<vmem>>, vector<8x8xbf16>
    %cst_17 = arith.constant dense<0.000000e+00> : vector<64x8xf32>
    %38 = tpu.matmul %36, %37, %cst_17 {dimension_numbers = #tpu.dot_dimension_numbers<[1], [0], [0], [1], [0, 0, 1, 1], [], []>} : vector<64x8xbf16>, vector<8x8xbf16>, vector<64x8xf32> -> vector<64x8xf32>
    %39 = arith.addf %35, %38 : vector<64x8xf32>
    %40 = vector.extract_strided_slice %32 {offsets = [128, 0], sizes = [64, 8], strides = [1, 1]} : vector<576x8xbf16> to vector<64x8xbf16>
    %c16 = arith.constant 16 : index
    %c0_18 = arith.constant 0 : index
    %41 = vector.load %arg6[%c16, %c0_18] : memref<72x8xbf16, #tpu.memory_space<vmem>>, vector<8x8xbf16>
    %cst_19 = arith.constant dense<0.000000e+00> : vector<64x8xf32>
    %42 = tpu.matmul %40, %41, %cst_19 {dimension_numbers = #tpu.dot_dimension_numbers<[1], [0], [0], [1], [0, 0, 1, 1], [], []>} : vector<64x8xbf16>, vector<8x8xbf16>, vector<64x8xf32> -> vector<64x8xf32>
    %43 = arith.addf %39, %42 : vector<64x8xf32>
    %44 = vector.extract_strided_slice %32 {offsets = [192, 0], sizes = [64, 8], strides = [1, 1]} : vector<576x8xbf16> to vector<64x8xbf16>
    %c24 = arith.constant 24 : index
    %c0_20 = arith.constant 0 : index
    %45 = vector.load %arg6[%c24, %c0_20] : memref<72x8xbf16, #tpu.memory_space<vmem>>, vector<8x8xbf16>
    %cst_21 = arith.constant dense<0.000000e+00> : vector<64x8xf32>
    %46 = tpu.matmul %44, %45, %cst_21 {dimension_numbers = #tpu.dot_dimension_numbers<[1], [0], [0], [1], [0, 0, 1, 1], [], []>} : vector<64x8xbf16>, vector<8x8xbf16>, vector<64x8xf32> -> vector<64x8xf32>
    %47 = arith.addf %43, %46 : vector<64x8xf32>
    %48 = vector.extract_strided_slice %32 {offsets = [256, 0], sizes = [64, 8], strides = [1, 1]} : vector<576x8xbf16> to vector<64x8xbf16>
    %c32 = arith.constant 32 : index
    %c0_22 = arith.constant 0 : index
    %49 = vector.load %arg6[%c32, %c0_22] : memref<72x8xbf16, #tpu.memory_space<vmem>>, vector<8x8xbf16>
    %cst_23 = arith.constant dense<0.000000e+00> : vector<64x8xf32>
    %50 = tpu.matmul %48, %49, %cst_23 {dimension_numbers = #tpu.dot_dimension_numbers<[1], [0], [0], [1], [0, 0, 1, 1], [], []>} : vector<64x8xbf16>, vector<8x8xbf16>, vector<64x8xf32> -> vector<64x8xf32>
    %51 = arith.addf %47, %50 : vector<64x8xf32>
    %52 = vector.extract_strided_slice %32 {offsets = [320, 0], sizes = [64, 8], strides = [1, 1]} : vector<576x8xbf16> to vector<64x8xbf16>
    %c40 = arith.constant 40 : index
    %c0_24 = arith.constant 0 : index
    %53 = vector.load %arg6[%c40, %c0_24] : memref<72x8xbf16, #tpu.memory_space<vmem>>, vector<8x8xbf16>
    %cst_25 = arith.constant dense<0.000000e+00> : vector<64x8xf32>
    %54 = tpu.matmul %52, %53, %cst_25 {dimension_numbers = #tpu.dot_dimension_numbers<[1], [0], [0], [1], [0, 0, 1, 1], [], []>} : vector<64x8xbf16>, vector<8x8xbf16>, vector<64x8xf32> -> vector<64x8xf32>
    %55 = arith.addf %51, %54 : vector<64x8xf32>
    %56 = vector.extract_strided_slice %32 {offsets = [384, 0], sizes = [64, 8], strides = [1, 1]} : vector<576x8xbf16> to vector<64x8xbf16>
    %c48 = arith.constant 48 : index
    %c0_26 = arith.constant 0 : index
    %57 = vector.load %arg6[%c48, %c0_26] : memref<72x8xbf16, #tpu.memory_space<vmem>>, vector<8x8xbf16>
    %cst_27 = arith.constant dense<0.000000e+00> : vector<64x8xf32>
    %58 = tpu.matmul %56, %57, %cst_27 {dimension_numbers = #tpu.dot_dimension_numbers<[1], [0], [0], [1], [0, 0, 1, 1], [], []>} : vector<64x8xbf16>, vector<8x8xbf16>, vector<64x8xf32> -> vector<64x8xf32>
    %59 = arith.addf %55, %58 : vector<64x8xf32>
    %60 = vector.extract_strided_slice %32 {offsets = [448, 0], sizes = [64, 8], strides = [1, 1]} : vector<576x8xbf16> to vector<64x8xbf16>
    %c56 = arith.constant 56 : index
    %c0_28 = arith.constant 0 : index
    %61 = vector.load %arg6[%c56, %c0_28] : memref<72x8xbf16, #tpu.memory_space<vmem>>, vector<8x8xbf16>
    %cst_29 = arith.constant dense<0.000000e+00> : vector<64x8xf32>
    %62 = tpu.matmul %60, %61, %cst_29 {dimension_numbers = #tpu.dot_dimension_numbers<[1], [0], [0], [1], [0, 0, 1, 1], [], []>} : vector<64x8xbf16>, vector<8x8xbf16>, vector<64x8xf32> -> vector<64x8xf32>
    %63 = arith.addf %59, %62 : vector<64x8xf32>
    %64 = vector.extract_strided_slice %32 {offsets = [512, 0], sizes = [64, 8], strides = [1, 1]} : vector<576x8xbf16> to vector<64x8xbf16>
    %c64 = arith.constant 64 : index
    %c0_30 = arith.constant 0 : index
    %65 = vector.load %arg6[%c64, %c0_30] : memref<72x8xbf16, #tpu.memory_space<vmem>>, vector<8x8xbf16>
    %cst_31 = arith.constant dense<0.000000e+00> : vector<64x8xf32>
    %66 = tpu.matmul %64, %65, %cst_31 {dimension_numbers = #tpu.dot_dimension_numbers<[1], [0], [0], [1], [0, 0, 1, 1], [], []>} : vector<64x8xbf16>, vector<8x8xbf16>, vector<64x8xf32> -> vector<64x8xf32>
    %67 = arith.addf %63, %66 : vector<64x8xf32>
    %c0_32 = arith.constant 0 : index
    %c0_33 = arith.constant 0 : index
    %68 = vector.load %arg7[%c0_32, %c0_33] : memref<1x8xf32, #tpu.memory_space<vmem>>, vector<1x8xf32>
    %69 = vector.broadcast %68 : vector<1x8xf32> to vector<64x8xf32>
    %70 = arith.addf %67, %69 : vector<64x8xf32>
    %cst_34 = arith.constant 0.000000e+00 : f32
    %71 = vector.broadcast %cst_34 : f32 to vector<64x8xf32>
    %72 = arith.maximumf %70, %71 : vector<64x8xf32>
    %73 = arith.extf %29 : vector<64x8xbf16> to vector<64x8xf32>
    %74 = arith.truncf %72 : vector<64x8xf32> to vector<64x8xbf16>
    %c0_35 = arith.constant 0 : index
    %c0_36 = arith.constant 0 : index
    %75 = vector.load %arg8[%c0_35, %c0_36] : memref<576x64xbf16, #tpu.memory_space<vmem>>, vector<576x64xbf16>
    %cst_37 = arith.constant dense<0.000000e+00> : vector<576x8xf32>
    %76 = tpu.matmul %75, %74, %cst_37 {dimension_numbers = #tpu.dot_dimension_numbers<[1], [0], [0], [1], [0, 0, 1, 1], [], []>} : vector<576x64xbf16>, vector<64x8xbf16>, vector<576x8xf32> -> vector<576x8xf32>
    %77 = arith.truncf %76 : vector<576x8xf32> to vector<576x8xbf16>
    %78 = vector.extract_strided_slice %77 {offsets = [0, 0], sizes = [64, 8], strides = [1, 1]} : vector<576x8xbf16> to vector<64x8xbf16>
    %c0_38 = arith.constant 0 : index
    %c0_39 = arith.constant 0 : index
    %79 = vector.load %arg9[%c0_38, %c0_39] : memref<72x8xbf16, #tpu.memory_space<vmem>>, vector<8x8xbf16>
    %cst_40 = arith.constant dense<0.000000e+00> : vector<64x8xf32>
    %80 = tpu.matmul %78, %79, %cst_40 {dimension_numbers = #tpu.dot_dimension_numbers<[1], [0], [0], [1], [0, 0, 1, 1], [], []>} : vector<64x8xbf16>, vector<8x8xbf16>, vector<64x8xf32> -> vector<64x8xf32>
    %81 = vector.extract_strided_slice %77 {offsets = [64, 0], sizes = [64, 8], strides = [1, 1]} : vector<576x8xbf16> to vector<64x8xbf16>
    %c8_41 = arith.constant 8 : index
    %c0_42 = arith.constant 0 : index
    %82 = vector.load %arg9[%c8_41, %c0_42] : memref<72x8xbf16, #tpu.memory_space<vmem>>, vector<8x8xbf16>
    %cst_43 = arith.constant dense<0.000000e+00> : vector<64x8xf32>
    %83 = tpu.matmul %81, %82, %cst_43 {dimension_numbers = #tpu.dot_dimension_numbers<[1], [0], [0], [1], [0, 0, 1, 1], [], []>} : vector<64x8xbf16>, vector<8x8xbf16>, vector<64x8xf32> -> vector<64x8xf32>
    %84 = arith.addf %80, %83 : vector<64x8xf32>
    %85 = vector.extract_strided_slice %77 {offsets = [128, 0], sizes = [64, 8], strides = [1, 1]} : vector<576x8xbf16> to vector<64x8xbf16>
    %c16_44 = arith.constant 16 : index
    %c0_45 = arith.constant 0 : index
    %86 = vector.load %arg9[%c16_44, %c0_45] : memref<72x8xbf16, #tpu.memory_space<vmem>>, vector<8x8xbf16>
    %cst_46 = arith.constant dense<0.000000e+00> : vector<64x8xf32>
    %87 = tpu.matmul %85, %86, %cst_46 {dimension_numbers = #tpu.dot_dimension_numbers<[1], [0], [0], [1], [0, 0, 1, 1], [], []>} : vector<64x8xbf16>, vector<8x8xbf16>, vector<64x8xf32> -> vector<64x8xf32>
    %88 = arith.addf %84, %87 : vector<64x8xf32>
    %89 = vector.extract_strided_slice %77 {offsets = [192, 0], sizes = [64, 8], strides = [1, 1]} : vector<576x8xbf16> to vector<64x8xbf16>
    %c24_47 = arith.constant 24 : index
    %c0_48 = arith.constant 0 : index
    %90 = vector.load %arg9[%c24_47, %c0_48] : memref<72x8xbf16, #tpu.memory_space<vmem>>, vector<8x8xbf16>
    %cst_49 = arith.constant dense<0.000000e+00> : vector<64x8xf32>
    %91 = tpu.matmul %89, %90, %cst_49 {dimension_numbers = #tpu.dot_dimension_numbers<[1], [0], [0], [1], [0, 0, 1, 1], [], []>} : vector<64x8xbf16>, vector<8x8xbf16>, vector<64x8xf32> -> vector<64x8xf32>
    %92 = arith.addf %88, %91 : vector<64x8xf32>
    %93 = vector.extract_strided_slice %77 {offsets = [256, 0], sizes = [64, 8], strides = [1, 1]} : vector<576x8xbf16> to vector<64x8xbf16>
    %c32_50 = arith.constant 32 : index
    %c0_51 = arith.constant 0 : index
    %94 = vector.load %arg9[%c32_50, %c0_51] : memref<72x8xbf16, #tpu.memory_space<vmem>>, vector<8x8xbf16>
    %cst_52 = arith.constant dense<0.000000e+00> : vector<64x8xf32>
    %95 = tpu.matmul %93, %94, %cst_52 {dimension_numbers = #tpu.dot_dimension_numbers<[1], [0], [0], [1], [0, 0, 1, 1], [], []>} : vector<64x8xbf16>, vector<8x8xbf16>, vector<64x8xf32> -> vector<64x8xf32>
    %96 = arith.addf %92, %95 : vector<64x8xf32>
    %97 = vector.extract_strided_slice %77 {offsets = [320, 0], sizes = [64, 8], strides = [1, 1]} : vector<576x8xbf16> to vector<64x8xbf16>
    %c40_53 = arith.constant 40 : index
    %c0_54 = arith.constant 0 : index
    %98 = vector.load %arg9[%c40_53, %c0_54] : memref<72x8xbf16, #tpu.memory_space<vmem>>, vector<8x8xbf16>
    %cst_55 = arith.constant dense<0.000000e+00> : vector<64x8xf32>
    %99 = tpu.matmul %97, %98, %cst_55 {dimension_numbers = #tpu.dot_dimension_numbers<[1], [0], [0], [1], [0, 0, 1, 1], [], []>} : vector<64x8xbf16>, vector<8x8xbf16>, vector<64x8xf32> -> vector<64x8xf32>
    %100 = arith.addf %96, %99 : vector<64x8xf32>
    %101 = vector.extract_strided_slice %77 {offsets = [384, 0], sizes = [64, 8], strides = [1, 1]} : vector<576x8xbf16> to vector<64x8xbf16>
    %c48_56 = arith.constant 48 : index
    %c0_57 = arith.constant 0 : index
    %102 = vector.load %arg9[%c48_56, %c0_57] : memref<72x8xbf16, #tpu.memory_space<vmem>>, vector<8x8xbf16>
    %cst_58 = arith.constant dense<0.000000e+00> : vector<64x8xf32>
    %103 = tpu.matmul %101, %102, %cst_58 {dimension_numbers = #tpu.dot_dimension_numbers<[1], [0], [0], [1], [0, 0, 1, 1], [], []>} : vector<64x8xbf16>, vector<8x8xbf16>, vector<64x8xf32> -> vector<64x8xf32>
    %104 = arith.addf %100, %103 : vector<64x8xf32>
    %105 = vector.extract_strided_slice %77 {offsets = [448, 0], sizes = [64, 8], strides = [1, 1]} : vector<576x8xbf16> to vector<64x8xbf16>
    %c56_59 = arith.constant 56 : index
    %c0_60 = arith.constant 0 : index
    %106 = vector.load %arg9[%c56_59, %c0_60] : memref<72x8xbf16, #tpu.memory_space<vmem>>, vector<8x8xbf16>
    %cst_61 = arith.constant dense<0.000000e+00> : vector<64x8xf32>
    %107 = tpu.matmul %105, %106, %cst_61 {dimension_numbers = #tpu.dot_dimension_numbers<[1], [0], [0], [1], [0, 0, 1, 1], [], []>} : vector<64x8xbf16>, vector<8x8xbf16>, vector<64x8xf32> -> vector<64x8xf32>
    %108 = arith.addf %104, %107 : vector<64x8xf32>
    %109 = vector.extract_strided_slice %77 {offsets = [512, 0], sizes = [64, 8], strides = [1, 1]} : vector<576x8xbf16> to vector<64x8xbf16>
    %c64_62 = arith.constant 64 : index
    %c0_63 = arith.constant 0 : index
    %110 = vector.load %arg9[%c64_62, %c0_63] : memref<72x8xbf16, #tpu.memory_space<vmem>>, vector<8x8xbf16>
    %cst_64 = arith.constant dense<0.000000e+00> : vector<64x8xf32>
    %111 = tpu.matmul %109, %110, %cst_64 {dimension_numbers = #tpu.dot_dimension_numbers<[1], [0], [0], [1], [0, 0, 1, 1], [], []>} : vector<64x8xbf16>, vector<8x8xbf16>, vector<64x8xf32> -> vector<64x8xf32>
    %112 = arith.addf %108, %111 : vector<64x8xf32>
    %c0_65 = arith.constant 0 : index
    %c0_66 = arith.constant 0 : index
    %113 = vector.load %arg10[%c0_65, %c0_66] : memref<1x8xf32, #tpu.memory_space<vmem>>, vector<1x8xf32>
    %114 = vector.broadcast %113 : vector<1x8xf32> to vector<64x8xf32>
    %115 = arith.addf %112, %114 : vector<64x8xf32>
    %116 = arith.addf %115, %73 : vector<64x8xf32>
    %cst_67 = arith.constant 0.000000e+00 : f32
    %117 = vector.broadcast %cst_67 : f32 to vector<64x8xf32>
    %118 = arith.maximumf %116, %117 : vector<64x8xf32>
    %119 = arith.truncf %118 : vector<64x8xf32> to vector<64x8xbf16>
    %c0_68 = arith.constant 0 : index
    %c0_69 = arith.constant 0 : index
    %120 = vector.load %arg11[%c0_68, %c0_69] : memref<576x64xbf16, #tpu.memory_space<vmem>>, vector<576x64xbf16>
    %cst_70 = arith.constant dense<0.000000e+00> : vector<576x8xf32>
    %121 = tpu.matmul %120, %119, %cst_70 {dimension_numbers = #tpu.dot_dimension_numbers<[1], [0], [0], [1], [0, 0, 1, 1], [], []>} : vector<576x64xbf16>, vector<64x8xbf16>, vector<576x8xf32> -> vector<576x8xf32>
    %122 = arith.truncf %121 : vector<576x8xf32> to vector<576x8xbf16>
    %123 = vector.extract_strided_slice %122 {offsets = [0, 0], sizes = [64, 8], strides = [1, 1]} : vector<576x8xbf16> to vector<64x8xbf16>
    %c0_71 = arith.constant 0 : index
    %c0_72 = arith.constant 0 : index
    %124 = vector.load %arg12[%c0_71, %c0_72] : memref<72x8xbf16, #tpu.memory_space<vmem>>, vector<8x8xbf16>
    %cst_73 = arith.constant dense<0.000000e+00> : vector<64x8xf32>
    %125 = tpu.matmul %123, %124, %cst_73 {dimension_numbers = #tpu.dot_dimension_numbers<[1], [0], [0], [1], [0, 0, 1, 1], [], []>} : vector<64x8xbf16>, vector<8x8xbf16>, vector<64x8xf32> -> vector<64x8xf32>
    %126 = vector.extract_strided_slice %122 {offsets = [64, 0], sizes = [64, 8], strides = [1, 1]} : vector<576x8xbf16> to vector<64x8xbf16>
    %c8_74 = arith.constant 8 : index
    %c0_75 = arith.constant 0 : index
    %127 = vector.load %arg12[%c8_74, %c0_75] : memref<72x8xbf16, #tpu.memory_space<vmem>>, vector<8x8xbf16>
    %cst_76 = arith.constant dense<0.000000e+00> : vector<64x8xf32>
    %128 = tpu.matmul %126, %127, %cst_76 {dimension_numbers = #tpu.dot_dimension_numbers<[1], [0], [0], [1], [0, 0, 1, 1], [], []>} : vector<64x8xbf16>, vector<8x8xbf16>, vector<64x8xf32> -> vector<64x8xf32>
    %129 = arith.addf %125, %128 : vector<64x8xf32>
    %130 = vector.extract_strided_slice %122 {offsets = [128, 0], sizes = [64, 8], strides = [1, 1]} : vector<576x8xbf16> to vector<64x8xbf16>
    %c16_77 = arith.constant 16 : index
    %c0_78 = arith.constant 0 : index
    %131 = vector.load %arg12[%c16_77, %c0_78] : memref<72x8xbf16, #tpu.memory_space<vmem>>, vector<8x8xbf16>
    %cst_79 = arith.constant dense<0.000000e+00> : vector<64x8xf32>
    %132 = tpu.matmul %130, %131, %cst_79 {dimension_numbers = #tpu.dot_dimension_numbers<[1], [0], [0], [1], [0, 0, 1, 1], [], []>} : vector<64x8xbf16>, vector<8x8xbf16>, vector<64x8xf32> -> vector<64x8xf32>
    %133 = arith.addf %129, %132 : vector<64x8xf32>
    %134 = vector.extract_strided_slice %122 {offsets = [192, 0], sizes = [64, 8], strides = [1, 1]} : vector<576x8xbf16> to vector<64x8xbf16>
    %c24_80 = arith.constant 24 : index
    %c0_81 = arith.constant 0 : index
    %135 = vector.load %arg12[%c24_80, %c0_81] : memref<72x8xbf16, #tpu.memory_space<vmem>>, vector<8x8xbf16>
    %cst_82 = arith.constant dense<0.000000e+00> : vector<64x8xf32>
    %136 = tpu.matmul %134, %135, %cst_82 {dimension_numbers = #tpu.dot_dimension_numbers<[1], [0], [0], [1], [0, 0, 1, 1], [], []>} : vector<64x8xbf16>, vector<8x8xbf16>, vector<64x8xf32> -> vector<64x8xf32>
    %137 = arith.addf %133, %136 : vector<64x8xf32>
    %138 = vector.extract_strided_slice %122 {offsets = [256, 0], sizes = [64, 8], strides = [1, 1]} : vector<576x8xbf16> to vector<64x8xbf16>
    %c32_83 = arith.constant 32 : index
    %c0_84 = arith.constant 0 : index
    %139 = vector.load %arg12[%c32_83, %c0_84] : memref<72x8xbf16, #tpu.memory_space<vmem>>, vector<8x8xbf16>
    %cst_85 = arith.constant dense<0.000000e+00> : vector<64x8xf32>
    %140 = tpu.matmul %138, %139, %cst_85 {dimension_numbers = #tpu.dot_dimension_numbers<[1], [0], [0], [1], [0, 0, 1, 1], [], []>} : vector<64x8xbf16>, vector<8x8xbf16>, vector<64x8xf32> -> vector<64x8xf32>
    %141 = arith.addf %137, %140 : vector<64x8xf32>
    %142 = vector.extract_strided_slice %122 {offsets = [320, 0], sizes = [64, 8], strides = [1, 1]} : vector<576x8xbf16> to vector<64x8xbf16>
    %c40_86 = arith.constant 40 : index
    %c0_87 = arith.constant 0 : index
    %143 = vector.load %arg12[%c40_86, %c0_87] : memref<72x8xbf16, #tpu.memory_space<vmem>>, vector<8x8xbf16>
    %cst_88 = arith.constant dense<0.000000e+00> : vector<64x8xf32>
    %144 = tpu.matmul %142, %143, %cst_88 {dimension_numbers = #tpu.dot_dimension_numbers<[1], [0], [0], [1], [0, 0, 1, 1], [], []>} : vector<64x8xbf16>, vector<8x8xbf16>, vector<64x8xf32> -> vector<64x8xf32>
    %145 = arith.addf %141, %144 : vector<64x8xf32>
    %146 = vector.extract_strided_slice %122 {offsets = [384, 0], sizes = [64, 8], strides = [1, 1]} : vector<576x8xbf16> to vector<64x8xbf16>
    %c48_89 = arith.constant 48 : index
    %c0_90 = arith.constant 0 : index
    %147 = vector.load %arg12[%c48_89, %c0_90] : memref<72x8xbf16, #tpu.memory_space<vmem>>, vector<8x8xbf16>
    %cst_91 = arith.constant dense<0.000000e+00> : vector<64x8xf32>
    %148 = tpu.matmul %146, %147, %cst_91 {dimension_numbers = #tpu.dot_dimension_numbers<[1], [0], [0], [1], [0, 0, 1, 1], [], []>} : vector<64x8xbf16>, vector<8x8xbf16>, vector<64x8xf32> -> vector<64x8xf32>
    %149 = arith.addf %145, %148 : vector<64x8xf32>
    %150 = vector.extract_strided_slice %122 {offsets = [448, 0], sizes = [64, 8], strides = [1, 1]} : vector<576x8xbf16> to vector<64x8xbf16>
    %c56_92 = arith.constant 56 : index
    %c0_93 = arith.constant 0 : index
    %151 = vector.load %arg12[%c56_92, %c0_93] : memref<72x8xbf16, #tpu.memory_space<vmem>>, vector<8x8xbf16>
    %cst_94 = arith.constant dense<0.000000e+00> : vector<64x8xf32>
    %152 = tpu.matmul %150, %151, %cst_94 {dimension_numbers = #tpu.dot_dimension_numbers<[1], [0], [0], [1], [0, 0, 1, 1], [], []>} : vector<64x8xbf16>, vector<8x8xbf16>, vector<64x8xf32> -> vector<64x8xf32>
    %153 = arith.addf %149, %152 : vector<64x8xf32>
    %154 = vector.extract_strided_slice %122 {offsets = [512, 0], sizes = [64, 8], strides = [1, 1]} : vector<576x8xbf16> to vector<64x8xbf16>
    %c64_95 = arith.constant 64 : index
    %c0_96 = arith.constant 0 : index
    %155 = vector.load %arg12[%c64_95, %c0_96] : memref<72x8xbf16, #tpu.memory_space<vmem>>, vector<8x8xbf16>
    %cst_97 = arith.constant dense<0.000000e+00> : vector<64x8xf32>
    %156 = tpu.matmul %154, %155, %cst_97 {dimension_numbers = #tpu.dot_dimension_numbers<[1], [0], [0], [1], [0, 0, 1, 1], [], []>} : vector<64x8xbf16>, vector<8x8xbf16>, vector<64x8xf32> -> vector<64x8xf32>
    %157 = arith.addf %153, %156 : vector<64x8xf32>
    %c0_98 = arith.constant 0 : index
    %c0_99 = arith.constant 0 : index
    %158 = vector.load %arg13[%c0_98, %c0_99] : memref<1x8xf32, #tpu.memory_space<vmem>>, vector<1x8xf32>
    %159 = vector.broadcast %158 : vector<1x8xf32> to vector<64x8xf32>
    %160 = arith.addf %157, %159 : vector<64x8xf32>
    %cst_100 = arith.constant 0.000000e+00 : f32
    %161 = vector.broadcast %cst_100 : f32 to vector<64x8xf32>
    %162 = arith.maximumf %160, %161 : vector<64x8xf32>
    %163 = arith.extf %119 : vector<64x8xbf16> to vector<64x8xf32>
    %164 = arith.truncf %162 : vector<64x8xf32> to vector<64x8xbf16>
    %c0_101 = arith.constant 0 : index
    %c0_102 = arith.constant 0 : index
    %165 = vector.load %arg14[%c0_101, %c0_102] : memref<576x64xbf16, #tpu.memory_space<vmem>>, vector<576x64xbf16>
    %cst_103 = arith.constant dense<0.000000e+00> : vector<576x8xf32>
    %166 = tpu.matmul %165, %164, %cst_103 {dimension_numbers = #tpu.dot_dimension_numbers<[1], [0], [0], [1], [0, 0, 1, 1], [], []>} : vector<576x64xbf16>, vector<64x8xbf16>, vector<576x8xf32> -> vector<576x8xf32>
    %167 = arith.truncf %166 : vector<576x8xf32> to vector<576x8xbf16>
    %168 = vector.extract_strided_slice %167 {offsets = [0, 0], sizes = [64, 8], strides = [1, 1]} : vector<576x8xbf16> to vector<64x8xbf16>
    %c0_104 = arith.constant 0 : index
    %c0_105 = arith.constant 0 : index
    %169 = vector.load %arg15[%c0_104, %c0_105] : memref<72x8xbf16, #tpu.memory_space<vmem>>, vector<8x8xbf16>
    %cst_106 = arith.constant dense<0.000000e+00> : vector<64x8xf32>
    %170 = tpu.matmul %168, %169, %cst_106 {dimension_numbers = #tpu.dot_dimension_numbers<[1], [0], [0], [1], [0, 0, 1, 1], [], []>} : vector<64x8xbf16>, vector<8x8xbf16>, vector<64x8xf32> -> vector<64x8xf32>
    %171 = vector.extract_strided_slice %167 {offsets = [64, 0], sizes = [64, 8], strides = [1, 1]} : vector<576x8xbf16> to vector<64x8xbf16>
    %c8_107 = arith.constant 8 : index
    %c0_108 = arith.constant 0 : index
    %172 = vector.load %arg15[%c8_107, %c0_108] : memref<72x8xbf16, #tpu.memory_space<vmem>>, vector<8x8xbf16>
    %cst_109 = arith.constant dense<0.000000e+00> : vector<64x8xf32>
    %173 = tpu.matmul %171, %172, %cst_109 {dimension_numbers = #tpu.dot_dimension_numbers<[1], [0], [0], [1], [0, 0, 1, 1], [], []>} : vector<64x8xbf16>, vector<8x8xbf16>, vector<64x8xf32> -> vector<64x8xf32>
    %174 = arith.addf %170, %173 : vector<64x8xf32>
    %175 = vector.extract_strided_slice %167 {offsets = [128, 0], sizes = [64, 8], strides = [1, 1]} : vector<576x8xbf16> to vector<64x8xbf16>
    %c16_110 = arith.constant 16 : index
    %c0_111 = arith.constant 0 : index
    %176 = vector.load %arg15[%c16_110, %c0_111] : memref<72x8xbf16, #tpu.memory_space<vmem>>, vector<8x8xbf16>
    %cst_112 = arith.constant dense<0.000000e+00> : vector<64x8xf32>
    %177 = tpu.matmul %175, %176, %cst_112 {dimension_numbers = #tpu.dot_dimension_numbers<[1], [0], [0], [1], [0, 0, 1, 1], [], []>} : vector<64x8xbf16>, vector<8x8xbf16>, vector<64x8xf32> -> vector<64x8xf32>
    %178 = arith.addf %174, %177 : vector<64x8xf32>
    %179 = vector.extract_strided_slice %167 {offsets = [192, 0], sizes = [64, 8], strides = [1, 1]} : vector<576x8xbf16> to vector<64x8xbf16>
    %c24_113 = arith.constant 24 : index
    %c0_114 = arith.constant 0 : index
    %180 = vector.load %arg15[%c24_113, %c0_114] : memref<72x8xbf16, #tpu.memory_space<vmem>>, vector<8x8xbf16>
    %cst_115 = arith.constant dense<0.000000e+00> : vector<64x8xf32>
    %181 = tpu.matmul %179, %180, %cst_115 {dimension_numbers = #tpu.dot_dimension_numbers<[1], [0], [0], [1], [0, 0, 1, 1], [], []>} : vector<64x8xbf16>, vector<8x8xbf16>, vector<64x8xf32> -> vector<64x8xf32>
    %182 = arith.addf %178, %181 : vector<64x8xf32>
    %183 = vector.extract_strided_slice %167 {offsets = [256, 0], sizes = [64, 8], strides = [1, 1]} : vector<576x8xbf16> to vector<64x8xbf16>
    %c32_116 = arith.constant 32 : index
    %c0_117 = arith.constant 0 : index
    %184 = vector.load %arg15[%c32_116, %c0_117] : memref<72x8xbf16, #tpu.memory_space<vmem>>, vector<8x8xbf16>
    %cst_118 = arith.constant dense<0.000000e+00> : vector<64x8xf32>
    %185 = tpu.matmul %183, %184, %cst_118 {dimension_numbers = #tpu.dot_dimension_numbers<[1], [0], [0], [1], [0, 0, 1, 1], [], []>} : vector<64x8xbf16>, vector<8x8xbf16>, vector<64x8xf32> -> vector<64x8xf32>
    %186 = arith.addf %182, %185 : vector<64x8xf32>
    %187 = vector.extract_strided_slice %167 {offsets = [320, 0], sizes = [64, 8], strides = [1, 1]} : vector<576x8xbf16> to vector<64x8xbf16>
    %c40_119 = arith.constant 40 : index
    %c0_120 = arith.constant 0 : index
    %188 = vector.load %arg15[%c40_119, %c0_120] : memref<72x8xbf16, #tpu.memory_space<vmem>>, vector<8x8xbf16>
    %cst_121 = arith.constant dense<0.000000e+00> : vector<64x8xf32>
    %189 = tpu.matmul %187, %188, %cst_121 {dimension_numbers = #tpu.dot_dimension_numbers<[1], [0], [0], [1], [0, 0, 1, 1], [], []>} : vector<64x8xbf16>, vector<8x8xbf16>, vector<64x8xf32> -> vector<64x8xf32>
    %190 = arith.addf %186, %189 : vector<64x8xf32>
    %191 = vector.extract_strided_slice %167 {offsets = [384, 0], sizes = [64, 8], strides = [1, 1]} : vector<576x8xbf16> to vector<64x8xbf16>
    %c48_122 = arith.constant 48 : index
    %c0_123 = arith.constant 0 : index
    %192 = vector.load %arg15[%c48_122, %c0_123] : memref<72x8xbf16, #tpu.memory_space<vmem>>, vector<8x8xbf16>
    %cst_124 = arith.constant dense<0.000000e+00> : vector<64x8xf32>
    %193 = tpu.matmul %191, %192, %cst_124 {dimension_numbers = #tpu.dot_dimension_numbers<[1], [0], [0], [1], [0, 0, 1, 1], [], []>} : vector<64x8xbf16>, vector<8x8xbf16>, vector<64x8xf32> -> vector<64x8xf32>
    %194 = arith.addf %190, %193 : vector<64x8xf32>
    %195 = vector.extract_strided_slice %167 {offsets = [448, 0], sizes = [64, 8], strides = [1, 1]} : vector<576x8xbf16> to vector<64x8xbf16>
    %c56_125 = arith.constant 56 : index
    %c0_126 = arith.constant 0 : index
    %196 = vector.load %arg15[%c56_125, %c0_126] : memref<72x8xbf16, #tpu.memory_space<vmem>>, vector<8x8xbf16>
    %cst_127 = arith.constant dense<0.000000e+00> : vector<64x8xf32>
    %197 = tpu.matmul %195, %196, %cst_127 {dimension_numbers = #tpu.dot_dimension_numbers<[1], [0], [0], [1], [0, 0, 1, 1], [], []>} : vector<64x8xbf16>, vector<8x8xbf16>, vector<64x8xf32> -> vector<64x8xf32>
    %198 = arith.addf %194, %197 : vector<64x8xf32>
    %199 = vector.extract_strided_slice %167 {offsets = [512, 0], sizes = [64, 8], strides = [1, 1]} : vector<576x8xbf16> to vector<64x8xbf16>
    %c64_128 = arith.constant 64 : index
    %c0_129 = arith.constant 0 : index
    %200 = vector.load %arg15[%c64_128, %c0_129] : memref<72x8xbf16, #tpu.memory_space<vmem>>, vector<8x8xbf16>
    %cst_130 = arith.constant dense<0.000000e+00> : vector<64x8xf32>
    %201 = tpu.matmul %199, %200, %cst_130 {dimension_numbers = #tpu.dot_dimension_numbers<[1], [0], [0], [1], [0, 0, 1, 1], [], []>} : vector<64x8xbf16>, vector<8x8xbf16>, vector<64x8xf32> -> vector<64x8xf32>
    %202 = arith.addf %198, %201 : vector<64x8xf32>
    %c0_131 = arith.constant 0 : index
    %c0_132 = arith.constant 0 : index
    %203 = vector.load %arg16[%c0_131, %c0_132] : memref<1x8xf32, #tpu.memory_space<vmem>>, vector<1x8xf32>
    %204 = vector.broadcast %203 : vector<1x8xf32> to vector<64x8xf32>
    %205 = arith.addf %202, %204 : vector<64x8xf32>
    %206 = arith.addf %205, %163 : vector<64x8xf32>
    %cst_133 = arith.constant 0.000000e+00 : f32
    %207 = vector.broadcast %cst_133 : f32 to vector<64x8xf32>
    %208 = arith.maximumf %206, %207 : vector<64x8xf32>
    %209 = arith.truncf %208 : vector<64x8xf32> to vector<64x8xbf16>
    %c0_134 = arith.constant 0 : index
    %c0_135 = arith.constant 0 : index
    %c0_136 = arith.constant 0 : index
    %210 = vector.load %arg62[%c0_134, %c0_135, %c0_136] : memref<1x64x8xf32, #tpu.memory_space<vmem>>, vector<1x64x8xf32>
    %211 = vector.shape_cast %210 : vector<1x64x8xf32> to vector<64x8xf32>
    %212 = vector.shape_cast %208 : vector<64x8xf32> to vector<1x64x8xf32>
    tpu.vector_store %arg62[%c0_134, %c0_135, %c0_136], %212 {strides = array<i32>} : memref<1x64x8xf32, #tpu.memory_space<vmem>>, vector<1x64x8xf32>,
    %c0_137 = arith.constant 0 : index
    %c0_138 = arith.constant 0 : index
    %213 = vector.load %arg17[%c0_137, %c0_138] : memref<144x64xbf16, #tpu.memory_space<vmem>>, vector<144x64xbf16>
    %cst_139 = arith.constant dense<0.000000e+00> : vector<144x8xf32>
    %214 = tpu.matmul %213, %209, %cst_139 {dimension_numbers = #tpu.dot_dimension_numbers<[1], [0], [0], [1], [0, 0, 1, 1], [], []>} : vector<144x64xbf16>, vector<64x8xbf16>, vector<144x8xf32> -> vector<144x8xf32>
    %215 = arith.truncf %214 : vector<144x8xf32> to vector<144x8xbf16>
    %216 = vector.extract_strided_slice %215 {offsets = [0, 0], sizes = [16, 8], strides = [1, 1]} : vector<144x8xbf16> to vector<16x8xbf16>
    %c0_140 = arith.constant 0 : index
    %c0_141 = arith.constant 0 : index
    %217 = vector.load %arg18[%c0_140, %c0_141] : memref<72x16xbf16, #tpu.memory_space<vmem>>, vector<8x16xbf16>
    %cst_142 = arith.constant dense<0.000000e+00> : vector<16x16xf32>
    %218 = tpu.matmul %216, %217, %cst_142 {dimension_numbers = #tpu.dot_dimension_numbers<[1], [0], [0], [1], [0, 0, 1, 1], [], []>} : vector<16x8xbf16>, vector<8x16xbf16>, vector<16x16xf32> -> vector<16x16xf32>
    %219 = vector.extract_strided_slice %215 {offsets = [16, 0], sizes = [16, 8], strides = [1, 1]} : vector<144x8xbf16> to vector<16x8xbf16>
    %c8_143 = arith.constant 8 : index
    %c0_144 = arith.constant 0 : index
    %220 = vector.load %arg18[%c8_143, %c0_144] : memref<72x16xbf16, #tpu.memory_space<vmem>>, vector<8x16xbf16>
    %cst_145 = arith.constant dense<0.000000e+00> : vector<16x16xf32>
    %221 = tpu.matmul %219, %220, %cst_145 {dimension_numbers = #tpu.dot_dimension_numbers<[1], [0], [0], [1], [0, 0, 1, 1], [], []>} : vector<16x8xbf16>, vector<8x16xbf16>, vector<16x16xf32> -> vector<16x16xf32>
    %222 = arith.addf %218, %221 : vector<16x16xf32>
    %223 = vector.extract_strided_slice %215 {offsets = [32, 0], sizes = [16, 8], strides = [1, 1]} : vector<144x8xbf16> to vector<16x8xbf16>
    %c16_146 = arith.constant 16 : index
    %c0_147 = arith.constant 0 : index
    %224 = vector.load %arg18[%c16_146, %c0_147] : memref<72x16xbf16, #tpu.memory_space<vmem>>, vector<8x16xbf16>
    %cst_148 = arith.constant dense<0.000000e+00> : vector<16x16xf32>
    %225 = tpu.matmul %223, %224, %cst_148 {dimension_numbers = #tpu.dot_dimension_numbers<[1], [0], [0], [1], [0, 0, 1, 1], [], []>} : vector<16x8xbf16>, vector<8x16xbf16>, vector<16x16xf32> -> vector<16x16xf32>
    %226 = arith.addf %222, %225 : vector<16x16xf32>
    %227 = vector.extract_strided_slice %215 {offsets = [48, 0], sizes = [16, 8], strides = [1, 1]} : vector<144x8xbf16> to vector<16x8xbf16>
    %c24_149 = arith.constant 24 : index
    %c0_150 = arith.constant 0 : index
    %228 = vector.load %arg18[%c24_149, %c0_150] : memref<72x16xbf16, #tpu.memory_space<vmem>>, vector<8x16xbf16>
    %cst_151 = arith.constant dense<0.000000e+00> : vector<16x16xf32>
    %229 = tpu.matmul %227, %228, %cst_151 {dimension_numbers = #tpu.dot_dimension_numbers<[1], [0], [0], [1], [0, 0, 1, 1], [], []>} : vector<16x8xbf16>, vector<8x16xbf16>, vector<16x16xf32> -> vector<16x16xf32>
    %230 = arith.addf %226, %229 : vector<16x16xf32>
    %231 = vector.extract_strided_slice %215 {offsets = [64, 0], sizes = [16, 8], strides = [1, 1]} : vector<144x8xbf16> to vector<16x8xbf16>
    %c32_152 = arith.constant 32 : index
    %c0_153 = arith.constant 0 : index
    %232 = vector.load %arg18[%c32_152, %c0_153] : memref<72x16xbf16, #tpu.memory_space<vmem>>, vector<8x16xbf16>
    %cst_154 = arith.constant dense<0.000000e+00> : vector<16x16xf32>
    %233 = tpu.matmul %231, %232, %cst_154 {dimension_numbers = #tpu.dot_dimension_numbers<[1], [0], [0], [1], [0, 0, 1, 1], [], []>} : vector<16x8xbf16>, vector<8x16xbf16>, vector<16x16xf32> -> vector<16x16xf32>
    %234 = arith.addf %230, %233 : vector<16x16xf32>
    %235 = vector.extract_strided_slice %215 {offsets = [80, 0], sizes = [16, 8], strides = [1, 1]} : vector<144x8xbf16> to vector<16x8xbf16>
    %c40_155 = arith.constant 40 : index
    %c0_156 = arith.constant 0 : index
    %236 = vector.load %arg18[%c40_155, %c0_156] : memref<72x16xbf16, #tpu.memory_space<vmem>>, vector<8x16xbf16>
    %cst_157 = arith.constant dense<0.000000e+00> : vector<16x16xf32>
    %237 = tpu.matmul %235, %236, %cst_157 {dimension_numbers = #tpu.dot_dimension_numbers<[1], [0], [0], [1], [0, 0, 1, 1], [], []>} : vector<16x8xbf16>, vector<8x16xbf16>, vector<16x16xf32> -> vector<16x16xf32>
    %238 = arith.addf %234, %237 : vector<16x16xf32>
    %239 = vector.extract_strided_slice %215 {offsets = [96, 0], sizes = [16, 8], strides = [1, 1]} : vector<144x8xbf16> to vector<16x8xbf16>
    %c48_158 = arith.constant 48 : index
    %c0_159 = arith.constant 0 : index
    %240 = vector.load %arg18[%c48_158, %c0_159] : memref<72x16xbf16, #tpu.memory_space<vmem>>, vector<8x16xbf16>
    %cst_160 = arith.constant dense<0.000000e+00> : vector<16x16xf32>
    %241 = tpu.matmul %239, %240, %cst_160 {dimension_numbers = #tpu.dot_dimension_numbers<[1], [0], [0], [1], [0, 0, 1, 1], [], []>} : vector<16x8xbf16>, vector<8x16xbf16>, vector<16x16xf32> -> vector<16x16xf32>
    %242 = arith.addf %238, %241 : vector<16x16xf32>
    %243 = vector.extract_strided_slice %215 {offsets = [112, 0], sizes = [16, 8], strides = [1, 1]} : vector<144x8xbf16> to vector<16x8xbf16>
    %c56_161 = arith.constant 56 : index
    %c0_162 = arith.constant 0 : index
    %244 = vector.load %arg18[%c56_161, %c0_162] : memref<72x16xbf16, #tpu.memory_space<vmem>>, vector<8x16xbf16>
    %cst_163 = arith.constant dense<0.000000e+00> : vector<16x16xf32>
    %245 = tpu.matmul %243, %244, %cst_163 {dimension_numbers = #tpu.dot_dimension_numbers<[1], [0], [0], [1], [0, 0, 1, 1], [], []>} : vector<16x8xbf16>, vector<8x16xbf16>, vector<16x16xf32> -> vector<16x16xf32>
    %246 = arith.addf %242, %245 : vector<16x16xf32>
    %247 = vector.extract_strided_slice %215 {offsets = [128, 0], sizes = [16, 8], strides = [1, 1]} : vector<144x8xbf16> to vector<16x8xbf16>
    %c64_164 = arith.constant 64 : index
    %c0_165 = arith.constant 0 : index
    %248 = vector.load %arg18[%c64_164, %c0_165] : memref<72x16xbf16, #tpu.memory_space<vmem>>, vector<8x16xbf16>
    %cst_166 = arith.constant dense<0.000000e+00> : vector<16x16xf32>
    %249 = tpu.matmul %247, %248, %cst_166 {dimension_numbers = #tpu.dot_dimension_numbers<[1], [0], [0], [1], [0, 0, 1, 1], [], []>} : vector<16x8xbf16>, vector<8x16xbf16>, vector<16x16xf32> -> vector<16x16xf32>
    %250 = arith.addf %246, %249 : vector<16x16xf32>
    %c0_167 = arith.constant 0 : index
    %c0_168 = arith.constant 0 : index
    %251 = vector.load %arg19[%c0_167, %c0_168] : memref<1x16xf32, #tpu.memory_space<vmem>>, vector<1x16xf32>
    %252 = vector.broadcast %251 : vector<1x16xf32> to vector<16x16xf32>
    %253 = arith.addf %250, %252 : vector<16x16xf32>
    %cst_169 = arith.constant 0.000000e+00 : f32
    %254 = vector.broadcast %cst_169 : f32 to vector<16x16xf32>
    %255 = arith.maximumf %253, %254 : vector<16x16xf32>
    %c0_170 = arith.constant 0 : index
    %c0_171 = arith.constant 0 : index
    %256 = vector.load %arg20[%c0_170, %c0_171] : memref<16x64xbf16, #tpu.memory_space<vmem>>, vector<16x64xbf16>
    %cst_172 = arith.constant dense<0.000000e+00> : vector<16x8xf32>
    %257 = tpu.matmul %256, %209, %cst_172 {dimension_numbers = #tpu.dot_dimension_numbers<[1], [0], [0], [1], [0, 0, 1, 1], [], []>} : vector<16x64xbf16>, vector<64x8xbf16>, vector<16x8xf32> -> vector<16x8xf32>
    %258 = arith.truncf %257 : vector<16x8xf32> to vector<16x8xbf16>
    %c0_173 = arith.constant 0 : index
    %c0_174 = arith.constant 0 : index
    %259 = vector.load %arg21[%c0_173, %c0_174] : memref<8x16xbf16, #tpu.memory_space<vmem>>, vector<8x16xbf16>
    %cst_175 = arith.constant dense<0.000000e+00> : vector<16x16xf32>
    %260 = tpu.matmul %258, %259, %cst_175 {dimension_numbers = #tpu.dot_dimension_numbers<[1], [0], [0], [1], [0, 0, 1, 1], [], []>} : vector<16x8xbf16>, vector<8x16xbf16>, vector<16x16xf32> -> vector<16x16xf32>
    %c0_176 = arith.constant 0 : index
    %c0_177 = arith.constant 0 : index
    %261 = vector.load %arg22[%c0_176, %c0_177] : memref<1x16xf32, #tpu.memory_space<vmem>>, vector<1x16xf32>
    %262 = vector.broadcast %261 : vector<1x16xf32> to vector<16x16xf32>
    %263 = arith.addf %260, %262 : vector<16x16xf32>
    %264 = arith.truncf %255 : vector<16x16xf32> to vector<16x16xbf16>
    %c0_178 = arith.constant 0 : index
    %c0_179 = arith.constant 0 : index
    %265 = vector.load %arg23[%c0_178, %c0_179] : memref<144x16xbf16, #tpu.memory_space<vmem>>, vector<144x16xbf16>
    %cst_180 = arith.constant dense<0.000000e+00> : vector<144x16xf32>
    %266 = tpu.matmul %265, %264, %cst_180 {dimension_numbers = #tpu.dot_dimension_numbers<[1], [0], [0], [1], [0, 0, 1, 1], [], []>} : vector<144x16xbf16>, vector<16x16xbf16>, vector<144x16xf32> -> vector<144x16xf32>
    %267 = arith.truncf %266 : vector<144x16xf32> to vector<144x16xbf16>
    %268 = vector.extract_strided_slice %267 {offsets = [0, 0], sizes = [16, 16], strides = [1, 1]} : vector<144x16xbf16> to vector<16x16xbf16>
    %c0_181 = arith.constant 0 : index
    %c0_182 = arith.constant 0 : index
    %269 = vector.load %arg24[%c0_181, %c0_182] : memref<144x16xbf16, #tpu.memory_space<vmem>>, vector<16x16xbf16>
    %cst_183 = arith.constant dense<0.000000e+00> : vector<16x16xf32>
    %270 = tpu.matmul %268, %269, %cst_183 {dimension_numbers = #tpu.dot_dimension_numbers<[1], [0], [0], [1], [0, 0, 1, 1], [], []>} : vector<16x16xbf16>, vector<16x16xbf16>, vector<16x16xf32> -> vector<16x16xf32>
    %271 = vector.extract_strided_slice %267 {offsets = [16, 0], sizes = [16, 16], strides = [1, 1]} : vector<144x16xbf16> to vector<16x16xbf16>
    %c16_184 = arith.constant 16 : index
    %c0_185 = arith.constant 0 : index
    %272 = vector.load %arg24[%c16_184, %c0_185] : memref<144x16xbf16, #tpu.memory_space<vmem>>, vector<16x16xbf16>
    %cst_186 = arith.constant dense<0.000000e+00> : vector<16x16xf32>
    %273 = tpu.matmul %271, %272, %cst_186 {dimension_numbers = #tpu.dot_dimension_numbers<[1], [0], [0], [1], [0, 0, 1, 1], [], []>} : vector<16x16xbf16>, vector<16x16xbf16>, vector<16x16xf32> -> vector<16x16xf32>
    %274 = arith.addf %270, %273 : vector<16x16xf32>
    %275 = vector.extract_strided_slice %267 {offsets = [32, 0], sizes = [16, 16], strides = [1, 1]} : vector<144x16xbf16> to vector<16x16xbf16>
    %c32_187 = arith.constant 32 : index
    %c0_188 = arith.constant 0 : index
    %276 = vector.load %arg24[%c32_187, %c0_188] : memref<144x16xbf16, #tpu.memory_space<vmem>>, vector<16x16xbf16>
    %cst_189 = arith.constant dense<0.000000e+00> : vector<16x16xf32>
    %277 = tpu.matmul %275, %276, %cst_189 {dimension_numbers = #tpu.dot_dimension_numbers<[1], [0], [0], [1], [0, 0, 1, 1], [], []>} : vector<16x16xbf16>, vector<16x16xbf16>, vector<16x16xf32> -> vector<16x16xf32>
    %278 = arith.addf %274, %277 : vector<16x16xf32>
    %279 = vector.extract_strided_slice %267 {offsets = [48, 0], sizes = [16, 16], strides = [1, 1]} : vector<144x16xbf16> to vector<16x16xbf16>
    %c48_190 = arith.constant 48 : index
    %c0_191 = arith.constant 0 : index
    %280 = vector.load %arg24[%c48_190, %c0_191] : memref<144x16xbf16, #tpu.memory_space<vmem>>, vector<16x16xbf16>
    %cst_192 = arith.constant dense<0.000000e+00> : vector<16x16xf32>
    %281 = tpu.matmul %279, %280, %cst_192 {dimension_numbers = #tpu.dot_dimension_numbers<[1], [0], [0], [1], [0, 0, 1, 1], [], []>} : vector<16x16xbf16>, vector<16x16xbf16>, vector<16x16xf32> -> vector<16x16xf32>
    %282 = arith.addf %278, %281 : vector<16x16xf32>
    %283 = vector.extract_strided_slice %267 {offsets = [64, 0], sizes = [16, 16], strides = [1, 1]} : vector<144x16xbf16> to vector<16x16xbf16>
    %c64_193 = arith.constant 64 : index
    %c0_194 = arith.constant 0 : index
    %284 = vector.load %arg24[%c64_193, %c0_194] : memref<144x16xbf16, #tpu.memory_space<vmem>>, vector<16x16xbf16>
    %cst_195 = arith.constant dense<0.000000e+00> : vector<16x16xf32>
    %285 = tpu.matmul %283, %284, %cst_195 {dimension_numbers = #tpu.dot_dimension_numbers<[1], [0], [0], [1], [0, 0, 1, 1], [], []>} : vector<16x16xbf16>, vector<16x16xbf16>, vector<16x16xf32> -> vector<16x16xf32>
    %286 = arith.addf %282, %285 : vector<16x16xf32>
    %287 = vector.extract_strided_slice %267 {offsets = [80, 0], sizes = [16, 16], strides = [1, 1]} : vector<144x16xbf16> to vector<16x16xbf16>
    %c80 = arith.constant 80 : index
    %c0_196 = arith.constant 0 : index
    %288 = vector.load %arg24[%c80, %c0_196] : memref<144x16xbf16, #tpu.memory_space<vmem>>, vector<16x16xbf16>
    %cst_197 = arith.constant dense<0.000000e+00> : vector<16x16xf32>
    %289 = tpu.matmul %287, %288, %cst_197 {dimension_numbers = #tpu.dot_dimension_numbers<[1], [0], [0], [1], [0, 0, 1, 1], [], []>} : vector<16x16xbf16>, vector<16x16xbf16>, vector<16x16xf32> -> vector<16x16xf32>
    %290 = arith.addf %286, %289 : vector<16x16xf32>
    %291 = vector.extract_strided_slice %267 {offsets = [96, 0], sizes = [16, 16], strides = [1, 1]} : vector<144x16xbf16> to vector<16x16xbf16>
    %c96 = arith.constant 96 : index
    %c0_198 = arith.constant 0 : index
    %292 = vector.load %arg24[%c96, %c0_198] : memref<144x16xbf16, #tpu.memory_space<vmem>>, vector<16x16xbf16>
    %cst_199 = arith.constant dense<0.000000e+00> : vector<16x16xf32>
    %293 = tpu.matmul %291, %292, %cst_199 {dimension_numbers = #tpu.dot_dimension_numbers<[1], [0], [0], [1], [0, 0, 1, 1], [], []>} : vector<16x16xbf16>, vector<16x16xbf16>, vector<16x16xf32> -> vector<16x16xf32>
    %294 = arith.addf %290, %293 : vector<16x16xf32>
    %295 = vector.extract_strided_slice %267 {offsets = [112, 0], sizes = [16, 16], strides = [1, 1]} : vector<144x16xbf16> to vector<16x16xbf16>
    %c112 = arith.constant 112 : index
    %c0_200 = arith.constant 0 : index
    %296 = vector.load %arg24[%c112, %c0_200] : memref<144x16xbf16, #tpu.memory_space<vmem>>, vector<16x16xbf16>
    %cst_201 = arith.constant dense<0.000000e+00> : vector<16x16xf32>
    %297 = tpu.matmul %295, %296, %cst_201 {dimension_numbers = #tpu.dot_dimension_numbers<[1], [0], [0], [1], [0, 0, 1, 1], [], []>} : vector<16x16xbf16>, vector<16x16xbf16>, vector<16x16xf32> -> vector<16x16xf32>
    %298 = arith.addf %294, %297 : vector<16x16xf32>
    %299 = vector.extract_strided_slice %267 {offsets = [128, 0], sizes = [16, 16], strides = [1, 1]} : vector<144x16xbf16> to vector<16x16xbf16>
    %c128 = arith.constant 128 : index
    %c0_202 = arith.constant 0 : index
    %300 = vector.load %arg24[%c128, %c0_202] : memref<144x16xbf16, #tpu.memory_space<vmem>>, vector<16x16xbf16>
    %cst_203 = arith.constant dense<0.000000e+00> : vector<16x16xf32>
    %301 = tpu.matmul %299, %300, %cst_203 {dimension_numbers = #tpu.dot_dimension_numbers<[1], [0], [0], [1], [0, 0, 1, 1], [], []>} : vector<16x16xbf16>, vector<16x16xbf16>, vector<16x16xf32> -> vector<16x16xf32>
    %302 = arith.addf %298, %301 : vector<16x16xf32>
    %c0_204 = arith.constant 0 : index
    %c0_205 = arith.constant 0 : index
    %303 = vector.load %arg25[%c0_204, %c0_205] : memref<1x16xf32, #tpu.memory_space<vmem>>, vector<1x16xf32>
    %304 = vector.broadcast %303 : vector<1x16xf32> to vector<16x16xf32>
    %305 = arith.addf %302, %304 : vector<16x16xf32>
    %306 = arith.addf %305, %263 : vector<16x16xf32>
    %cst_206 = arith.constant 0.000000e+00 : f32
    %307 = vector.broadcast %cst_206 : f32 to vector<16x16xf32>
    %308 = arith.maximumf %306, %307 : vector<16x16xf32>
    %309 = arith.truncf %308 : vector<16x16xf32> to vector<16x16xbf16>
    %c0_207 = arith.constant 0 : index
    %c0_208 = arith.constant 0 : index
    %310 = vector.load %arg26[%c0_207, %c0_208] : memref<144x16xbf16, #tpu.memory_space<vmem>>, vector<144x16xbf16>
    %cst_209 = arith.constant dense<0.000000e+00> : vector<144x16xf32>
    %311 = tpu.matmul %310, %309, %cst_209 {dimension_numbers = #tpu.dot_dimension_numbers<[1], [0], [0], [1], [0, 0, 1, 1], [], []>} : vector<144x16xbf16>, vector<16x16xbf16>, vector<144x16xf32> -> vector<144x16xf32>
    %312 = arith.truncf %311 : vector<144x16xf32> to vector<144x16xbf16>
    %313 = vector.extract_strided_slice %312 {offsets = [0, 0], sizes = [16, 16], strides = [1, 1]} : vector<144x16xbf16> to vector<16x16xbf16>
    %c0_210 = arith.constant 0 : index
    %c0_211 = arith.constant 0 : index
    %314 = vector.load %arg27[%c0_210, %c0_211] : memref<144x16xbf16, #tpu.memory_space<vmem>>, vector<16x16xbf16>
    %cst_212 = arith.constant dense<0.000000e+00> : vector<16x16xf32>
    %315 = tpu.matmul %313, %314, %cst_212 {dimension_numbers = #tpu.dot_dimension_numbers<[1], [0], [0], [1], [0, 0, 1, 1], [], []>} : vector<16x16xbf16>, vector<16x16xbf16>, vector<16x16xf32> -> vector<16x16xf32>
    %316 = vector.extract_strided_slice %312 {offsets = [16, 0], sizes = [16, 16], strides = [1, 1]} : vector<144x16xbf16> to vector<16x16xbf16>
    %c16_213 = arith.constant 16 : index
    %c0_214 = arith.constant 0 : index
    %317 = vector.load %arg27[%c16_213, %c0_214] : memref<144x16xbf16, #tpu.memory_space<vmem>>, vector<16x16xbf16>
    %cst_215 = arith.constant dense<0.000000e+00> : vector<16x16xf32>
    %318 = tpu.matmul %316, %317, %cst_215 {dimension_numbers = #tpu.dot_dimension_numbers<[1], [0], [0], [1], [0, 0, 1, 1], [], []>} : vector<16x16xbf16>, vector<16x16xbf16>, vector<16x16xf32> -> vector<16x16xf32>
    %319 = arith.addf %315, %318 : vector<16x16xf32>
    %320 = vector.extract_strided_slice %312 {offsets = [32, 0], sizes = [16, 16], strides = [1, 1]} : vector<144x16xbf16> to vector<16x16xbf16>
    %c32_216 = arith.constant 32 : index
    %c0_217 = arith.constant 0 : index
    %321 = vector.load %arg27[%c32_216, %c0_217] : memref<144x16xbf16, #tpu.memory_space<vmem>>, vector<16x16xbf16>
    %cst_218 = arith.constant dense<0.000000e+00> : vector<16x16xf32>
    %322 = tpu.matmul %320, %321, %cst_218 {dimension_numbers = #tpu.dot_dimension_numbers<[1], [0], [0], [1], [0, 0, 1, 1], [], []>} : vector<16x16xbf16>, vector<16x16xbf16>, vector<16x16xf32> -> vector<16x16xf32>
    %323 = arith.addf %319, %322 : vector<16x16xf32>
    %324 = vector.extract_strided_slice %312 {offsets = [48, 0], sizes = [16, 16], strides = [1, 1]} : vector<144x16xbf16> to vector<16x16xbf16>
    %c48_219 = arith.constant 48 : index
    %c0_220 = arith.constant 0 : index
    %325 = vector.load %arg27[%c48_219, %c0_220] : memref<144x16xbf16, #tpu.memory_space<vmem>>, vector<16x16xbf16>
    %cst_221 = arith.constant dense<0.000000e+00> : vector<16x16xf32>
    %326 = tpu.matmul %324, %325, %cst_221 {dimension_numbers = #tpu.dot_dimension_numbers<[1], [0], [0], [1], [0, 0, 1, 1], [], []>} : vector<16x16xbf16>, vector<16x16xbf16>, vector<16x16xf32> -> vector<16x16xf32>
    %327 = arith.addf %323, %326 : vector<16x16xf32>
    %328 = vector.extract_strided_slice %312 {offsets = [64, 0], sizes = [16, 16], strides = [1, 1]} : vector<144x16xbf16> to vector<16x16xbf16>
    %c64_222 = arith.constant 64 : index
    %c0_223 = arith.constant 0 : index
    %329 = vector.load %arg27[%c64_222, %c0_223] : memref<144x16xbf16, #tpu.memory_space<vmem>>, vector<16x16xbf16>
    %cst_224 = arith.constant dense<0.000000e+00> : vector<16x16xf32>
    %330 = tpu.matmul %328, %329, %cst_224 {dimension_numbers = #tpu.dot_dimension_numbers<[1], [0], [0], [1], [0, 0, 1, 1], [], []>} : vector<16x16xbf16>, vector<16x16xbf16>, vector<16x16xf32> -> vector<16x16xf32>
    %331 = arith.addf %327, %330 : vector<16x16xf32>
    %332 = vector.extract_strided_slice %312 {offsets = [80, 0], sizes = [16, 16], strides = [1, 1]} : vector<144x16xbf16> to vector<16x16xbf16>
    %c80_225 = arith.constant 80 : index
    %c0_226 = arith.constant 0 : index
    %333 = vector.load %arg27[%c80_225, %c0_226] : memref<144x16xbf16, #tpu.memory_space<vmem>>, vector<16x16xbf16>
    %cst_227 = arith.constant dense<0.000000e+00> : vector<16x16xf32>
    %334 = tpu.matmul %332, %333, %cst_227 {dimension_numbers = #tpu.dot_dimension_numbers<[1], [0], [0], [1], [0, 0, 1, 1], [], []>} : vector<16x16xbf16>, vector<16x16xbf16>, vector<16x16xf32> -> vector<16x16xf32>
    %335 = arith.addf %331, %334 : vector<16x16xf32>
    %336 = vector.extract_strided_slice %312 {offsets = [96, 0], sizes = [16, 16], strides = [1, 1]} : vector<144x16xbf16> to vector<16x16xbf16>
    %c96_228 = arith.constant 96 : index
    %c0_229 = arith.constant 0 : index
    %337 = vector.load %arg27[%c96_228, %c0_229] : memref<144x16xbf16, #tpu.memory_space<vmem>>, vector<16x16xbf16>
    %cst_230 = arith.constant dense<0.000000e+00> : vector<16x16xf32>
    %338 = tpu.matmul %336, %337, %cst_230 {dimension_numbers = #tpu.dot_dimension_numbers<[1], [0], [0], [1], [0, 0, 1, 1], [], []>} : vector<16x16xbf16>, vector<16x16xbf16>, vector<16x16xf32> -> vector<16x16xf32>
    %339 = arith.addf %335, %338 : vector<16x16xf32>
    %340 = vector.extract_strided_slice %312 {offsets = [112, 0], sizes = [16, 16], strides = [1, 1]} : vector<144x16xbf16> to vector<16x16xbf16>
    %c112_231 = arith.constant 112 : index
    %c0_232 = arith.constant 0 : index
    %341 = vector.load %arg27[%c112_231, %c0_232] : memref<144x16xbf16, #tpu.memory_space<vmem>>, vector<16x16xbf16>
    %cst_233 = arith.constant dense<0.000000e+00> : vector<16x16xf32>
    %342 = tpu.matmul %340, %341, %cst_233 {dimension_numbers = #tpu.dot_dimension_numbers<[1], [0], [0], [1], [0, 0, 1, 1], [], []>} : vector<16x16xbf16>, vector<16x16xbf16>, vector<16x16xf32> -> vector<16x16xf32>
    %343 = arith.addf %339, %342 : vector<16x16xf32>
    %344 = vector.extract_strided_slice %312 {offsets = [128, 0], sizes = [16, 16], strides = [1, 1]} : vector<144x16xbf16> to vector<16x16xbf16>
    %c128_234 = arith.constant 128 : index
    %c0_235 = arith.constant 0 : index
    %345 = vector.load %arg27[%c128_234, %c0_235] : memref<144x16xbf16, #tpu.memory_space<vmem>>, vector<16x16xbf16>
    %cst_236 = arith.constant dense<0.000000e+00> : vector<16x16xf32>
    %346 = tpu.matmul %344, %345, %cst_236 {dimension_numbers = #tpu.dot_dimension_numbers<[1], [0], [0], [1], [0, 0, 1, 1], [], []>} : vector<16x16xbf16>, vector<16x16xbf16>, vector<16x16xf32> -> vector<16x16xf32>
    %347 = arith.addf %343, %346 : vector<16x16xf32>
    %c0_237 = arith.constant 0 : index
    %c0_238 = arith.constant 0 : index
    %348 = vector.load %arg28[%c0_237, %c0_238] : memref<1x16xf32, #tpu.memory_space<vmem>>, vector<1x16xf32>
    %349 = vector.broadcast %348 : vector<1x16xf32> to vector<16x16xf32>
    %350 = arith.addf %347, %349 : vector<16x16xf32>
    %cst_239 = arith.constant 0.000000e+00 : f32
    %351 = vector.broadcast %cst_239 : f32 to vector<16x16xf32>
    %352 = arith.maximumf %350, %351 : vector<16x16xf32>
    %353 = arith.extf %309 : vector<16x16xbf16> to vector<16x16xf32>
    %354 = arith.truncf %352 : vector<16x16xf32> to vector<16x16xbf16>
    %c0_240 = arith.constant 0 : index
    %c0_241 = arith.constant 0 : index
    %355 = vector.load %arg29[%c0_240, %c0_241] : memref<144x16xbf16, #tpu.memory_space<vmem>>, vector<144x16xbf16>
    %cst_242 = arith.constant dense<0.000000e+00> : vector<144x16xf32>
    %356 = tpu.matmul %355, %354, %cst_242 {dimension_numbers = #tpu.dot_dimension_numbers<[1], [0], [0], [1], [0, 0, 1, 1], [], []>} : vector<144x16xbf16>, vector<16x16xbf16>, vector<144x16xf32> -> vector<144x16xf32>
    %357 = arith.truncf %356 : vector<144x16xf32> to vector<144x16xbf16>
    %358 = vector.extract_strided_slice %357 {offsets = [0, 0], sizes = [16, 16], strides = [1, 1]} : vector<144x16xbf16> to vector<16x16xbf16>
    %c0_243 = arith.constant 0 : index
    %c0_244 = arith.constant 0 : index
    %359 = vector.load %arg30[%c0_243, %c0_244] : memref<144x16xbf16, #tpu.memory_space<vmem>>, vector<16x16xbf16>
    %cst_245 = arith.constant dense<0.000000e+00> : vector<16x16xf32>
    %360 = tpu.matmul %358, %359, %cst_245 {dimension_numbers = #tpu.dot_dimension_numbers<[1], [0], [0], [1], [0, 0, 1, 1], [], []>} : vector<16x16xbf16>, vector<16x16xbf16>, vector<16x16xf32> -> vector<16x16xf32>
    %361 = vector.extract_strided_slice %357 {offsets = [16, 0], sizes = [16, 16], strides = [1, 1]} : vector<144x16xbf16> to vector<16x16xbf16>
    %c16_246 = arith.constant 16 : index
    %c0_247 = arith.constant 0 : index
    %362 = vector.load %arg30[%c16_246, %c0_247] : memref<144x16xbf16, #tpu.memory_space<vmem>>, vector<16x16xbf16>
    %cst_248 = arith.constant dense<0.000000e+00> : vector<16x16xf32>
    %363 = tpu.matmul %361, %362, %cst_248 {dimension_numbers = #tpu.dot_dimension_numbers<[1], [0], [0], [1], [0, 0, 1, 1], [], []>} : vector<16x16xbf16>, vector<16x16xbf16>, vector<16x16xf32> -> vector<16x16xf32>
    %364 = arith.addf %360, %363 : vector<16x16xf32>
    %365 = vector.extract_strided_slice %357 {offsets = [32, 0], sizes = [16, 16], strides = [1, 1]} : vector<144x16xbf16> to vector<16x16xbf16>
    %c32_249 = arith.constant 32 : index
    %c0_250 = arith.constant 0 : index
    %366 = vector.load %arg30[%c32_249, %c0_250] : memref<144x16xbf16, #tpu.memory_space<vmem>>, vector<16x16xbf16>
    %cst_251 = arith.constant dense<0.000000e+00> : vector<16x16xf32>
    %367 = tpu.matmul %365, %366, %cst_251 {dimension_numbers = #tpu.dot_dimension_numbers<[1], [0], [0], [1], [0, 0, 1, 1], [], []>} : vector<16x16xbf16>, vector<16x16xbf16>, vector<16x16xf32> -> vector<16x16xf32>
    %368 = arith.addf %364, %367 : vector<16x16xf32>
    %369 = vector.extract_strided_slice %357 {offsets = [48, 0], sizes = [16, 16], strides = [1, 1]} : vector<144x16xbf16> to vector<16x16xbf16>
    %c48_252 = arith.constant 48 : index
    %c0_253 = arith.constant 0 : index
    %370 = vector.load %arg30[%c48_252, %c0_253] : memref<144x16xbf16, #tpu.memory_space<vmem>>, vector<16x16xbf16>
    %cst_254 = arith.constant dense<0.000000e+00> : vector<16x16xf32>
    %371 = tpu.matmul %369, %370, %cst_254 {dimension_numbers = #tpu.dot_dimension_numbers<[1], [0], [0], [1], [0, 0, 1, 1], [], []>} : vector<16x16xbf16>, vector<16x16xbf16>, vector<16x16xf32> -> vector<16x16xf32>
    %372 = arith.addf %368, %371 : vector<16x16xf32>
    %373 = vector.extract_strided_slice %357 {offsets = [64, 0], sizes = [16, 16], strides = [1, 1]} : vector<144x16xbf16> to vector<16x16xbf16>
    %c64_255 = arith.constant 64 : index
    %c0_256 = arith.constant 0 : index
    %374 = vector.load %arg30[%c64_255, %c0_256] : memref<144x16xbf16, #tpu.memory_space<vmem>>, vector<16x16xbf16>
    %cst_257 = arith.constant dense<0.000000e+00> : vector<16x16xf32>
    %375 = tpu.matmul %373, %374, %cst_257 {dimension_numbers = #tpu.dot_dimension_numbers<[1], [0], [0], [1], [0, 0, 1, 1], [], []>} : vector<16x16xbf16>, vector<16x16xbf16>, vector<16x16xf32> -> vector<16x16xf32>
    %376 = arith.addf %372, %375 : vector<16x16xf32>
    %377 = vector.extract_strided_slice %357 {offsets = [80, 0], sizes = [16, 16], strides = [1, 1]} : vector<144x16xbf16> to vector<16x16xbf16>
    %c80_258 = arith.constant 80 : index
    %c0_259 = arith.constant 0 : index
    %378 = vector.load %arg30[%c80_258, %c0_259] : memref<144x16xbf16, #tpu.memory_space<vmem>>, vector<16x16xbf16>
    %cst_260 = arith.constant dense<0.000000e+00> : vector<16x16xf32>
    %379 = tpu.matmul %377, %378, %cst_260 {dimension_numbers = #tpu.dot_dimension_numbers<[1], [0], [0], [1], [0, 0, 1, 1], [], []>} : vector<16x16xbf16>, vector<16x16xbf16>, vector<16x16xf32> -> vector<16x16xf32>
    %380 = arith.addf %376, %379 : vector<16x16xf32>
    %381 = vector.extract_strided_slice %357 {offsets = [96, 0], sizes = [16, 16], strides = [1, 1]} : vector<144x16xbf16> to vector<16x16xbf16>
    %c96_261 = arith.constant 96 : index
    %c0_262 = arith.constant 0 : index
    %382 = vector.load %arg30[%c96_261, %c0_262] : memref<144x16xbf16, #tpu.memory_space<vmem>>, vector<16x16xbf16>
    %cst_263 = arith.constant dense<0.000000e+00> : vector<16x16xf32>
    %383 = tpu.matmul %381, %382, %cst_263 {dimension_numbers = #tpu.dot_dimension_numbers<[1], [0], [0], [1], [0, 0, 1, 1], [], []>} : vector<16x16xbf16>, vector<16x16xbf16>, vector<16x16xf32> -> vector<16x16xf32>
    %384 = arith.addf %380, %383 : vector<16x16xf32>
    %385 = vector.extract_strided_slice %357 {offsets = [112, 0], sizes = [16, 16], strides = [1, 1]} : vector<144x16xbf16> to vector<16x16xbf16>
    %c112_264 = arith.constant 112 : index
    %c0_265 = arith.constant 0 : index
    %386 = vector.load %arg30[%c112_264, %c0_265] : memref<144x16xbf16, #tpu.memory_space<vmem>>, vector<16x16xbf16>
    %cst_266 = arith.constant dense<0.000000e+00> : vector<16x16xf32>
    %387 = tpu.matmul %385, %386, %cst_266 {dimension_numbers = #tpu.dot_dimension_numbers<[1], [0], [0], [1], [0, 0, 1, 1], [], []>} : vector<16x16xbf16>, vector<16x16xbf16>, vector<16x16xf32> -> vector<16x16xf32>
    %388 = arith.addf %384, %387 : vector<16x16xf32>
    %389 = vector.extract_strided_slice %357 {offsets = [128, 0], sizes = [16, 16], strides = [1, 1]} : vector<144x16xbf16> to vector<16x16xbf16>
    %c128_267 = arith.constant 128 : index
    %c0_268 = arith.constant 0 : index
    %390 = vector.load %arg30[%c128_267, %c0_268] : memref<144x16xbf16, #tpu.memory_space<vmem>>, vector<16x16xbf16>
    %cst_269 = arith.constant dense<0.000000e+00> : vector<16x16xf32>
    %391 = tpu.matmul %389, %390, %cst_269 {dimension_numbers = #tpu.dot_dimension_numbers<[1], [0], [0], [1], [0, 0, 1, 1], [], []>} : vector<16x16xbf16>, vector<16x16xbf16>, vector<16x16xf32> -> vector<16x16xf32>
    %392 = arith.addf %388, %391 : vector<16x16xf32>
    %c0_270 = arith.constant 0 : index
    %c0_271 = arith.constant 0 : index
    %393 = vector.load %arg31[%c0_270, %c0_271] : memref<1x16xf32, #tpu.memory_space<vmem>>, vector<1x16xf32>
    %394 = vector.broadcast %393 : vector<1x16xf32> to vector<16x16xf32>
    %395 = arith.addf %392, %394 : vector<16x16xf32>
    %396 = arith.addf %395, %353 : vector<16x16xf32>
    %cst_272 = arith.constant 0.000000e+00 : f32
    %397 = vector.broadcast %cst_272 : f32 to vector<16x16xf32>
    %398 = arith.maximumf %396, %397 : vector<16x16xf32>
    %399 = arith.truncf %398 : vector<16x16xf32> to vector<16x16xbf16>
    %c0_273 = arith.constant 0 : index
    %c0_274 = arith.constant 0 : index
    %c0_275 = arith.constant 0 : index
    %400 = vector.load %arg63[%c0_273, %c0_274, %c0_275] : memref<1x16x16xf32, #tpu.memory_space<vmem>>, vector<1x16x16xf32>
    %401 = vector.shape_cast %400 : vector<1x16x16xf32> to vector<16x16xf32>
    %402 = vector.shape_cast %398 : vector<16x16xf32> to vector<1x16x16xf32>
    tpu.vector_store %arg63[%c0_273, %c0_274, %c0_275], %402 {strides = array<i32>} : memref<1x16x16xf32, #tpu.memory_space<vmem>>, vector<1x16x16xf32>,
    %c0_276 = arith.constant 0 : index
    %c0_277 = arith.constant 0 : index
    %403 = vector.load %arg32[%c0_276, %c0_277] : memref<72x16xbf16, #tpu.memory_space<vmem>>, vector<72x16xbf16>
    %cst_278 = arith.constant dense<0.000000e+00> : vector<72x16xf32>
    %404 = tpu.matmul %403, %399, %cst_278 {dimension_numbers = #tpu.dot_dimension_numbers<[1], [0], [0], [1], [0, 0, 1, 1], [], []>} : vector<72x16xbf16>, vector<16x16xbf16>, vector<72x16xf32> -> vector<72x16xf32>
    %405 = arith.truncf %404 : vector<72x16xf32> to vector<72x16xbf16>
    %406 = vector.extract_strided_slice %405 {offsets = [0, 0], sizes = [8, 16], strides = [1, 1]} : vector<72x16xbf16> to vector<8x16xbf16>
    %c0_279 = arith.constant 0 : index
    %c0_280 = arith.constant 0 : index
    %407 = vector.load %arg33[%c0_279, %c0_280] : memref<144x32xbf16, #tpu.memory_space<vmem>>, vector<16x32xbf16>
    %cst_281 = arith.constant dense<0.000000e+00> : vector<8x32xf32>
    %408 = tpu.matmul %406, %407, %cst_281 {dimension_numbers = #tpu.dot_dimension_numbers<[1], [0], [0], [1], [0, 0, 1, 1], [], []>} : vector<8x16xbf16>, vector<16x32xbf16>, vector<8x32xf32> -> vector<8x32xf32>
    %409 = vector.extract_strided_slice %405 {offsets = [8, 0], sizes = [8, 16], strides = [1, 1]} : vector<72x16xbf16> to vector<8x16xbf16>
    %c16_282 = arith.constant 16 : index
    %c0_283 = arith.constant 0 : index
    %410 = vector.load %arg33[%c16_282, %c0_283] : memref<144x32xbf16, #tpu.memory_space<vmem>>, vector<16x32xbf16>
    %cst_284 = arith.constant dense<0.000000e+00> : vector<8x32xf32>
    %411 = tpu.matmul %409, %410, %cst_284 {dimension_numbers = #tpu.dot_dimension_numbers<[1], [0], [0], [1], [0, 0, 1, 1], [], []>} : vector<8x16xbf16>, vector<16x32xbf16>, vector<8x32xf32> -> vector<8x32xf32>
    %412 = arith.addf %408, %411 : vector<8x32xf32>
    %413 = vector.extract_strided_slice %405 {offsets = [16, 0], sizes = [8, 16], strides = [1, 1]} : vector<72x16xbf16> to vector<8x16xbf16>
    %c32_285 = arith.constant 32 : index
    %c0_286 = arith.constant 0 : index
    %414 = vector.load %arg33[%c32_285, %c0_286] : memref<144x32xbf16, #tpu.memory_space<vmem>>, vector<16x32xbf16>
    %cst_287 = arith.constant dense<0.000000e+00> : vector<8x32xf32>
    %415 = tpu.matmul %413, %414, %cst_287 {dimension_numbers = #tpu.dot_dimension_numbers<[1], [0], [0], [1], [0, 0, 1, 1], [], []>} : vector<8x16xbf16>, vector<16x32xbf16>, vector<8x32xf32> -> vector<8x32xf32>
    %416 = arith.addf %412, %415 : vector<8x32xf32>
    %417 = vector.extract_strided_slice %405 {offsets = [24, 0], sizes = [8, 16], strides = [1, 1]} : vector<72x16xbf16> to vector<8x16xbf16>
    %c48_288 = arith.constant 48 : index
    %c0_289 = arith.constant 0 : index
    %418 = vector.load %arg33[%c48_288, %c0_289] : memref<144x32xbf16, #tpu.memory_space<vmem>>, vector<16x32xbf16>
    %cst_290 = arith.constant dense<0.000000e+00> : vector<8x32xf32>
    %419 = tpu.matmul %417, %418, %cst_290 {dimension_numbers = #tpu.dot_dimension_numbers<[1], [0], [0], [1], [0, 0, 1, 1], [], []>} : vector<8x16xbf16>, vector<16x32xbf16>, vector<8x32xf32> -> vector<8x32xf32>
    %420 = arith.addf %416, %419 : vector<8x32xf32>
    %421 = vector.extract_strided_slice %405 {offsets = [32, 0], sizes = [8, 16], strides = [1, 1]} : vector<72x16xbf16> to vector<8x16xbf16>
    %c64_291 = arith.constant 64 : index
    %c0_292 = arith.constant 0 : index
    %422 = vector.load %arg33[%c64_291, %c0_292] : memref<144x32xbf16, #tpu.memory_space<vmem>>, vector<16x32xbf16>
    %cst_293 = arith.constant dense<0.000000e+00> : vector<8x32xf32>
    %423 = tpu.matmul %421, %422, %cst_293 {dimension_numbers = #tpu.dot_dimension_numbers<[1], [0], [0], [1], [0, 0, 1, 1], [], []>} : vector<8x16xbf16>, vector<16x32xbf16>, vector<8x32xf32> -> vector<8x32xf32>
    %424 = arith.addf %420, %423 : vector<8x32xf32>
    %425 = vector.extract_strided_slice %405 {offsets = [40, 0], sizes = [8, 16], strides = [1, 1]} : vector<72x16xbf16> to vector<8x16xbf16>
    %c80_294 = arith.constant 80 : index
    %c0_295 = arith.constant 0 : index
    %426 = vector.load %arg33[%c80_294, %c0_295] : memref<144x32xbf16, #tpu.memory_space<vmem>>, vector<16x32xbf16>
    %cst_296 = arith.constant dense<0.000000e+00> : vector<8x32xf32>
    %427 = tpu.matmul %425, %426, %cst_296 {dimension_numbers = #tpu.dot_dimension_numbers<[1], [0], [0], [1], [0, 0, 1, 1], [], []>} : vector<8x16xbf16>, vector<16x32xbf16>, vector<8x32xf32> -> vector<8x32xf32>
    %428 = arith.addf %424, %427 : vector<8x32xf32>
    %429 = vector.extract_strided_slice %405 {offsets = [48, 0], sizes = [8, 16], strides = [1, 1]} : vector<72x16xbf16> to vector<8x16xbf16>
    %c96_297 = arith.constant 96 : index
    %c0_298 = arith.constant 0 : index
    %430 = vector.load %arg33[%c96_297, %c0_298] : memref<144x32xbf16, #tpu.memory_space<vmem>>, vector<16x32xbf16>
    %cst_299 = arith.constant dense<0.000000e+00> : vector<8x32xf32>
    %431 = tpu.matmul %429, %430, %cst_299 {dimension_numbers = #tpu.dot_dimension_numbers<[1], [0], [0], [1], [0, 0, 1, 1], [], []>} : vector<8x16xbf16>, vector<16x32xbf16>, vector<8x32xf32> -> vector<8x32xf32>
    %432 = arith.addf %428, %431 : vector<8x32xf32>
    %433 = vector.extract_strided_slice %405 {offsets = [56, 0], sizes = [8, 16], strides = [1, 1]} : vector<72x16xbf16> to vector<8x16xbf16>
    %c112_300 = arith.constant 112 : index
    %c0_301 = arith.constant 0 : index
    %434 = vector.load %arg33[%c112_300, %c0_301] : memref<144x32xbf16, #tpu.memory_space<vmem>>, vector<16x32xbf16>
    %cst_302 = arith.constant dense<0.000000e+00> : vector<8x32xf32>
    %435 = tpu.matmul %433, %434, %cst_302 {dimension_numbers = #tpu.dot_dimension_numbers<[1], [0], [0], [1], [0, 0, 1, 1], [], []>} : vector<8x16xbf16>, vector<16x32xbf16>, vector<8x32xf32> -> vector<8x32xf32>
    %436 = arith.addf %432, %435 : vector<8x32xf32>
    %437 = vector.extract_strided_slice %405 {offsets = [64, 0], sizes = [8, 16], strides = [1, 1]} : vector<72x16xbf16> to vector<8x16xbf16>
    %c128_303 = arith.constant 128 : index
    %c0_304 = arith.constant 0 : index
    %438 = vector.load %arg33[%c128_303, %c0_304] : memref<144x32xbf16, #tpu.memory_space<vmem>>, vector<16x32xbf16>
    %cst_305 = arith.constant dense<0.000000e+00> : vector<8x32xf32>
    %439 = tpu.matmul %437, %438, %cst_305 {dimension_numbers = #tpu.dot_dimension_numbers<[1], [0], [0], [1], [0, 0, 1, 1], [], []>} : vector<8x16xbf16>, vector<16x32xbf16>, vector<8x32xf32> -> vector<8x32xf32>
    %440 = arith.addf %436, %439 : vector<8x32xf32>
    %c0_306 = arith.constant 0 : index
    %c0_307 = arith.constant 0 : index
    %441 = vector.load %arg34[%c0_306, %c0_307] : memref<1x32xf32, #tpu.memory_space<vmem>>, vector<1x32xf32>
    %442 = vector.broadcast %441 : vector<1x32xf32> to vector<8x32xf32>
    %443 = arith.addf %440, %442 : vector<8x32xf32>
    %cst_308 = arith.constant 0.000000e+00 : f32
    %444 = vector.broadcast %cst_308 : f32 to vector<8x32xf32>
    %445 = arith.maximumf %443, %444 : vector<8x32xf32>
    %c0_309 = arith.constant 0 : index
    %c0_310 = arith.constant 0 : index
    %446 = vector.load %arg35[%c0_309, %c0_310] : memref<8x16xbf16, #tpu.memory_space<vmem>>, vector<8x16xbf16>
    %cst_311 = arith.constant dense<0.000000e+00> : vector<8x16xf32>
    %447 = tpu.matmul %446, %399, %cst_311 {dimension_numbers = #tpu.dot_dimension_numbers<[1], [0], [0], [1], [0, 0, 1, 1], [], []>} : vector<8x16xbf16>, vector<16x16xbf16>, vector<8x16xf32> -> vector<8x16xf32>
    %448 = arith.truncf %447 : vector<8x16xf32> to vector<8x16xbf16>
    %c0_312 = arith.constant 0 : index
    %c0_313 = arith.constant 0 : index
    %449 = vector.load %arg36[%c0_312, %c0_313] : memref<16x32xbf16, #tpu.memory_space<vmem>>, vector<16x32xbf16>
    %cst_314 = arith.constant dense<0.000000e+00> : vector<8x32xf32>
    %450 = tpu.matmul %448, %449, %cst_314 {dimension_numbers = #tpu.dot_dimension_numbers<[1], [0], [0], [1], [0, 0, 1, 1], [], []>} : vector<8x16xbf16>, vector<16x32xbf16>, vector<8x32xf32> -> vector<8x32xf32>
    %c0_315 = arith.constant 0 : index
    %c0_316 = arith.constant 0 : index
    %451 = vector.load %arg37[%c0_315, %c0_316] : memref<1x32xf32, #tpu.memory_space<vmem>>, vector<1x32xf32>
    %452 = vector.broadcast %451 : vector<1x32xf32> to vector<8x32xf32>
    %453 = arith.addf %450, %452 : vector<8x32xf32>
    %454 = arith.truncf %445 : vector<8x32xf32> to vector<8x32xbf16>
    %c0_317 = arith.constant 0 : index
    %c0_318 = arith.constant 0 : index
    %455 = vector.load %arg38[%c0_317, %c0_318] : memref<72x8xbf16, #tpu.memory_space<vmem>>, vector<72x8xbf16>
    %cst_319 = arith.constant dense<0.000000e+00> : vector<72x32xf32>
    %456 = tpu.matmul %455, %454, %cst_319 {dimension_numbers = #tpu.dot_dimension_numbers<[1], [0], [0], [1], [0, 0, 1, 1], [], []>} : vector<72x8xbf16>, vector<8x32xbf16>, vector<72x32xf32> -> vector<72x32xf32>
    %457 = arith.truncf %456 : vector<72x32xf32> to vector<72x32xbf16>
    %458 = vector.extract_strided_slice %457 {offsets = [0, 0], sizes = [8, 32], strides = [1, 1]} : vector<72x32xbf16> to vector<8x32xbf16>
    %c0_320 = arith.constant 0 : index
    %c0_321 = arith.constant 0 : index
    %459 = vector.load %arg39[%c0_320, %c0_321] : memref<288x32xbf16, #tpu.memory_space<vmem>>, vector<32x32xbf16>
    %cst_322 = arith.constant dense<0.000000e+00> : vector<8x32xf32>
    %460 = tpu.matmul %458, %459, %cst_322 {dimension_numbers = #tpu.dot_dimension_numbers<[1], [0], [0], [1], [0, 0, 1, 1], [], []>} : vector<8x32xbf16>, vector<32x32xbf16>, vector<8x32xf32> -> vector<8x32xf32>
    %461 = vector.extract_strided_slice %457 {offsets = [8, 0], sizes = [8, 32], strides = [1, 1]} : vector<72x32xbf16> to vector<8x32xbf16>
    %c32_323 = arith.constant 32 : index
    %c0_324 = arith.constant 0 : index
    %462 = vector.load %arg39[%c32_323, %c0_324] : memref<288x32xbf16, #tpu.memory_space<vmem>>, vector<32x32xbf16>
    %cst_325 = arith.constant dense<0.000000e+00> : vector<8x32xf32>
    %463 = tpu.matmul %461, %462, %cst_325 {dimension_numbers = #tpu.dot_dimension_numbers<[1], [0], [0], [1], [0, 0, 1, 1], [], []>} : vector<8x32xbf16>, vector<32x32xbf16>, vector<8x32xf32> -> vector<8x32xf32>
    %464 = arith.addf %460, %463 : vector<8x32xf32>
    %465 = vector.extract_strided_slice %457 {offsets = [16, 0], sizes = [8, 32], strides = [1, 1]} : vector<72x32xbf16> to vector<8x32xbf16>
    %c64_326 = arith.constant 64 : index
    %c0_327 = arith.constant 0 : index
    %466 = vector.load %arg39[%c64_326, %c0_327] : memref<288x32xbf16, #tpu.memory_space<vmem>>, vector<32x32xbf16>
    %cst_328 = arith.constant dense<0.000000e+00> : vector<8x32xf32>
    %467 = tpu.matmul %465, %466, %cst_328 {dimension_numbers = #tpu.dot_dimension_numbers<[1], [0], [0], [1], [0, 0, 1, 1], [], []>} : vector<8x32xbf16>, vector<32x32xbf16>, vector<8x32xf32> -> vector<8x32xf32>
    %468 = arith.addf %464, %467 : vector<8x32xf32>
    %469 = vector.extract_strided_slice %457 {offsets = [24, 0], sizes = [8, 32], strides = [1, 1]} : vector<72x32xbf16> to vector<8x32xbf16>
    %c96_329 = arith.constant 96 : index
    %c0_330 = arith.constant 0 : index
    %470 = vector.load %arg39[%c96_329, %c0_330] : memref<288x32xbf16, #tpu.memory_space<vmem>>, vector<32x32xbf16>
    %cst_331 = arith.constant dense<0.000000e+00> : vector<8x32xf32>
    %471 = tpu.matmul %469, %470, %cst_331 {dimension_numbers = #tpu.dot_dimension_numbers<[1], [0], [0], [1], [0, 0, 1, 1], [], []>} : vector<8x32xbf16>, vector<32x32xbf16>, vector<8x32xf32> -> vector<8x32xf32>
    %472 = arith.addf %468, %471 : vector<8x32xf32>
    %473 = vector.extract_strided_slice %457 {offsets = [32, 0], sizes = [8, 32], strides = [1, 1]} : vector<72x32xbf16> to vector<8x32xbf16>
    %c128_332 = arith.constant 128 : index
    %c0_333 = arith.constant 0 : index
    %474 = vector.load %arg39[%c128_332, %c0_333] : memref<288x32xbf16, #tpu.memory_space<vmem>>, vector<32x32xbf16>
    %cst_334 = arith.constant dense<0.000000e+00> : vector<8x32xf32>
    %475 = tpu.matmul %473, %474, %cst_334 {dimension_numbers = #tpu.dot_dimension_numbers<[1], [0], [0], [1], [0, 0, 1, 1], [], []>} : vector<8x32xbf16>, vector<32x32xbf16>, vector<8x32xf32> -> vector<8x32xf32>
    %476 = arith.addf %472, %475 : vector<8x32xf32>
    %477 = vector.extract_strided_slice %457 {offsets = [40, 0], sizes = [8, 32], strides = [1, 1]} : vector<72x32xbf16> to vector<8x32xbf16>
    %c160 = arith.constant 160 : index
    %c0_335 = arith.constant 0 : index
    %478 = vector.load %arg39[%c160, %c0_335] : memref<288x32xbf16, #tpu.memory_space<vmem>>, vector<32x32xbf16>
    %cst_336 = arith.constant dense<0.000000e+00> : vector<8x32xf32>
    %479 = tpu.matmul %477, %478, %cst_336 {dimension_numbers = #tpu.dot_dimension_numbers<[1], [0], [0], [1], [0, 0, 1, 1], [], []>} : vector<8x32xbf16>, vector<32x32xbf16>, vector<8x32xf32> -> vector<8x32xf32>
    %480 = arith.addf %476, %479 : vector<8x32xf32>
    %481 = vector.extract_strided_slice %457 {offsets = [48, 0], sizes = [8, 32], strides = [1, 1]} : vector<72x32xbf16> to vector<8x32xbf16>
    %c192 = arith.constant 192 : index
    %c0_337 = arith.constant 0 : index
    %482 = vector.load %arg39[%c192, %c0_337] : memref<288x32xbf16, #tpu.memory_space<vmem>>, vector<32x32xbf16>
    %cst_338 = arith.constant dense<0.000000e+00> : vector<8x32xf32>
    %483 = tpu.matmul %481, %482, %cst_338 {dimension_numbers = #tpu.dot_dimension_numbers<[1], [0], [0], [1], [0, 0, 1, 1], [], []>} : vector<8x32xbf16>, vector<32x32xbf16>, vector<8x32xf32> -> vector<8x32xf32>
    %484 = arith.addf %480, %483 : vector<8x32xf32>
    %485 = vector.extract_strided_slice %457 {offsets = [56, 0], sizes = [8, 32], strides = [1, 1]} : vector<72x32xbf16> to vector<8x32xbf16>
    %c224 = arith.constant 224 : index
    %c0_339 = arith.constant 0 : index
    %486 = vector.load %arg39[%c224, %c0_339] : memref<288x32xbf16, #tpu.memory_space<vmem>>, vector<32x32xbf16>
    %cst_340 = arith.constant dense<0.000000e+00> : vector<8x32xf32>
    %487 = tpu.matmul %485, %486, %cst_340 {dimension_numbers = #tpu.dot_dimension_numbers<[1], [0], [0], [1], [0, 0, 1, 1], [], []>} : vector<8x32xbf16>, vector<32x32xbf16>, vector<8x32xf32> -> vector<8x32xf32>
    %488 = arith.addf %484, %487 : vector<8x32xf32>
    %489 = vector.extract_strided_slice %457 {offsets = [64, 0], sizes = [8, 32], strides = [1, 1]} : vector<72x32xbf16> to vector<8x32xbf16>
    %c256 = arith.constant 256 : index
    %c0_341 = arith.constant 0 : index
    %490 = vector.load %arg39[%c256, %c0_341] : memref<288x32xbf16, #tpu.memory_space<vmem>>, vector<32x32xbf16>
    %cst_342 = arith.constant dense<0.000000e+00> : vector<8x32xf32>
    %491 = tpu.matmul %489, %490, %cst_342 {dimension_numbers = #tpu.dot_dimension_numbers<[1], [0], [0], [1], [0, 0, 1, 1], [], []>} : vector<8x32xbf16>, vector<32x32xbf16>, vector<8x32xf32> -> vector<8x32xf32>
    %492 = arith.addf %488, %491 : vector<8x32xf32>
    %c0_343 = arith.constant 0 : index
    %c0_344 = arith.constant 0 : index
    %493 = vector.load %arg40[%c0_343, %c0_344] : memref<1x32xf32, #tpu.memory_space<vmem>>, vector<1x32xf32>
    %494 = vector.broadcast %493 : vector<1x32xf32> to vector<8x32xf32>
    %495 = arith.addf %492, %494 : vector<8x32xf32>
    %496 = arith.addf %495, %453 : vector<8x32xf32>
    %cst_345 = arith.constant 0.000000e+00 : f32
    %497 = vector.broadcast %cst_345 : f32 to vector<8x32xf32>
    %498 = arith.maximumf %496, %497 : vector<8x32xf32>
    %499 = arith.truncf %498 : vector<8x32xf32> to vector<8x32xbf16>
    %c0_346 = arith.constant 0 : index
    %c0_347 = arith.constant 0 : index
    %500 = vector.load %arg41[%c0_346, %c0_347] : memref<72x8xbf16, #tpu.memory_space<vmem>>, vector<72x8xbf16>
    %cst_348 = arith.constant dense<0.000000e+00> : vector<72x32xf32>
    %501 = tpu.matmul %500, %499, %cst_348 {dimension_numbers = #tpu.dot_dimension_numbers<[1], [0], [0], [1], [0, 0, 1, 1], [], []>} : vector<72x8xbf16>, vector<8x32xbf16>, vector<72x32xf32> -> vector<72x32xf32>
    %502 = arith.truncf %501 : vector<72x32xf32> to vector<72x32xbf16>
    %503 = vector.extract_strided_slice %502 {offsets = [0, 0], sizes = [8, 32], strides = [1, 1]} : vector<72x32xbf16> to vector<8x32xbf16>
    %c0_349 = arith.constant 0 : index
    %c0_350 = arith.constant 0 : index
    %504 = vector.load %arg42[%c0_349, %c0_350] : memref<288x32xbf16, #tpu.memory_space<vmem>>, vector<32x32xbf16>
    %cst_351 = arith.constant dense<0.000000e+00> : vector<8x32xf32>
    %505 = tpu.matmul %503, %504, %cst_351 {dimension_numbers = #tpu.dot_dimension_numbers<[1], [0], [0], [1], [0, 0, 1, 1], [], []>} : vector<8x32xbf16>, vector<32x32xbf16>, vector<8x32xf32> -> vector<8x32xf32>
    %506 = vector.extract_strided_slice %502 {offsets = [8, 0], sizes = [8, 32], strides = [1, 1]} : vector<72x32xbf16> to vector<8x32xbf16>
    %c32_352 = arith.constant 32 : index
    %c0_353 = arith.constant 0 : index
    %507 = vector.load %arg42[%c32_352, %c0_353] : memref<288x32xbf16, #tpu.memory_space<vmem>>, vector<32x32xbf16>
    %cst_354 = arith.constant dense<0.000000e+00> : vector<8x32xf32>
    %508 = tpu.matmul %506, %507, %cst_354 {dimension_numbers = #tpu.dot_dimension_numbers<[1], [0], [0], [1], [0, 0, 1, 1], [], []>} : vector<8x32xbf16>, vector<32x32xbf16>, vector<8x32xf32> -> vector<8x32xf32>
    %509 = arith.addf %505, %508 : vector<8x32xf32>
    %510 = vector.extract_strided_slice %502 {offsets = [16, 0], sizes = [8, 32], strides = [1, 1]} : vector<72x32xbf16> to vector<8x32xbf16>
    %c64_355 = arith.constant 64 : index
    %c0_356 = arith.constant 0 : index
    %511 = vector.load %arg42[%c64_355, %c0_356] : memref<288x32xbf16, #tpu.memory_space<vmem>>, vector<32x32xbf16>
    %cst_357 = arith.constant dense<0.000000e+00> : vector<8x32xf32>
    %512 = tpu.matmul %510, %511, %cst_357 {dimension_numbers = #tpu.dot_dimension_numbers<[1], [0], [0], [1], [0, 0, 1, 1], [], []>} : vector<8x32xbf16>, vector<32x32xbf16>, vector<8x32xf32> -> vector<8x32xf32>
    %513 = arith.addf %509, %512 : vector<8x32xf32>
    %514 = vector.extract_strided_slice %502 {offsets = [24, 0], sizes = [8, 32], strides = [1, 1]} : vector<72x32xbf16> to vector<8x32xbf16>
    %c96_358 = arith.constant 96 : index
    %c0_359 = arith.constant 0 : index
    %515 = vector.load %arg42[%c96_358, %c0_359] : memref<288x32xbf16, #tpu.memory_space<vmem>>, vector<32x32xbf16>
    %cst_360 = arith.constant dense<0.000000e+00> : vector<8x32xf32>
    %516 = tpu.matmul %514, %515, %cst_360 {dimension_numbers = #tpu.dot_dimension_numbers<[1], [0], [0], [1], [0, 0, 1, 1], [], []>} : vector<8x32xbf16>, vector<32x32xbf16>, vector<8x32xf32> -> vector<8x32xf32>
    %517 = arith.addf %513, %516 : vector<8x32xf32>
    %518 = vector.extract_strided_slice %502 {offsets = [32, 0], sizes = [8, 32], strides = [1, 1]} : vector<72x32xbf16> to vector<8x32xbf16>
    %c128_361 = arith.constant 128 : index
    %c0_362 = arith.constant 0 : index
    %519 = vector.load %arg42[%c128_361, %c0_362] : memref<288x32xbf16, #tpu.memory_space<vmem>>, vector<32x32xbf16>
    %cst_363 = arith.constant dense<0.000000e+00> : vector<8x32xf32>
    %520 = tpu.matmul %518, %519, %cst_363 {dimension_numbers = #tpu.dot_dimension_numbers<[1], [0], [0], [1], [0, 0, 1, 1], [], []>} : vector<8x32xbf16>, vector<32x32xbf16>, vector<8x32xf32> -> vector<8x32xf32>
    %521 = arith.addf %517, %520 : vector<8x32xf32>
    %522 = vector.extract_strided_slice %502 {offsets = [40, 0], sizes = [8, 32], strides = [1, 1]} : vector<72x32xbf16> to vector<8x32xbf16>
    %c160_364 = arith.constant 160 : index
    %c0_365 = arith.constant 0 : index
    %523 = vector.load %arg42[%c160_364, %c0_365] : memref<288x32xbf16, #tpu.memory_space<vmem>>, vector<32x32xbf16>
    %cst_366 = arith.constant dense<0.000000e+00> : vector<8x32xf32>
    %524 = tpu.matmul %522, %523, %cst_366 {dimension_numbers = #tpu.dot_dimension_numbers<[1], [0], [0], [1], [0, 0, 1, 1], [], []>} : vector<8x32xbf16>, vector<32x32xbf16>, vector<8x32xf32> -> vector<8x32xf32>
    %525 = arith.addf %521, %524 : vector<8x32xf32>
    %526 = vector.extract_strided_slice %502 {offsets = [48, 0], sizes = [8, 32], strides = [1, 1]} : vector<72x32xbf16> to vector<8x32xbf16>
    %c192_367 = arith.constant 192 : index
    %c0_368 = arith.constant 0 : index
    %527 = vector.load %arg42[%c192_367, %c0_368] : memref<288x32xbf16, #tpu.memory_space<vmem>>, vector<32x32xbf16>
    %cst_369 = arith.constant dense<0.000000e+00> : vector<8x32xf32>
    %528 = tpu.matmul %526, %527, %cst_369 {dimension_numbers = #tpu.dot_dimension_numbers<[1], [0], [0], [1], [0, 0, 1, 1], [], []>} : vector<8x32xbf16>, vector<32x32xbf16>, vector<8x32xf32> -> vector<8x32xf32>
    %529 = arith.addf %525, %528 : vector<8x32xf32>
    %530 = vector.extract_strided_slice %502 {offsets = [56, 0], sizes = [8, 32], strides = [1, 1]} : vector<72x32xbf16> to vector<8x32xbf16>
    %c224_370 = arith.constant 224 : index
    %c0_371 = arith.constant 0 : index
    %531 = vector.load %arg42[%c224_370, %c0_371] : memref<288x32xbf16, #tpu.memory_space<vmem>>, vector<32x32xbf16>
    %cst_372 = arith.constant dense<0.000000e+00> : vector<8x32xf32>
    %532 = tpu.matmul %530, %531, %cst_372 {dimension_numbers = #tpu.dot_dimension_numbers<[1], [0], [0], [1], [0, 0, 1, 1], [], []>} : vector<8x32xbf16>, vector<32x32xbf16>, vector<8x32xf32> -> vector<8x32xf32>
    %533 = arith.addf %529, %532 : vector<8x32xf32>
    %534 = vector.extract_strided_slice %502 {offsets = [64, 0], sizes = [8, 32], strides = [1, 1]} : vector<72x32xbf16> to vector<8x32xbf16>
    %c256_373 = arith.constant 256 : index
    %c0_374 = arith.constant 0 : index
    %535 = vector.load %arg42[%c256_373, %c0_374] : memref<288x32xbf16, #tpu.memory_space<vmem>>, vector<32x32xbf16>
    %cst_375 = arith.constant dense<0.000000e+00> : vector<8x32xf32>
    %536 = tpu.matmul %534, %535, %cst_375 {dimension_numbers = #tpu.dot_dimension_numbers<[1], [0], [0], [1], [0, 0, 1, 1], [], []>} : vector<8x32xbf16>, vector<32x32xbf16>, vector<8x32xf32> -> vector<8x32xf32>
    %537 = arith.addf %533, %536 : vector<8x32xf32>
    %c0_376 = arith.constant 0 : index
    %c0_377 = arith.constant 0 : index
    %538 = vector.load %arg43[%c0_376, %c0_377] : memref<1x32xf32, #tpu.memory_space<vmem>>, vector<1x32xf32>
    %539 = vector.broadcast %538 : vector<1x32xf32> to vector<8x32xf32>
    %540 = arith.addf %537, %539 : vector<8x32xf32>
    %cst_378 = arith.constant 0.000000e+00 : f32
    %541 = vector.broadcast %cst_378 : f32 to vector<8x32xf32>
    %542 = arith.maximumf %540, %541 : vector<8x32xf32>
    %543 = arith.extf %499 : vector<8x32xbf16> to vector<8x32xf32>
    %544 = arith.truncf %542 : vector<8x32xf32> to vector<8x32xbf16>
    %c0_379 = arith.constant 0 : index
    %c0_380 = arith.constant 0 : index
    %545 = vector.load %arg44[%c0_379, %c0_380] : memref<72x8xbf16, #tpu.memory_space<vmem>>, vector<72x8xbf16>
    %cst_381 = arith.constant dense<0.000000e+00> : vector<72x32xf32>
    %546 = tpu.matmul %545, %544, %cst_381 {dimension_numbers = #tpu.dot_dimension_numbers<[1], [0], [0], [1], [0, 0, 1, 1], [], []>} : vector<72x8xbf16>, vector<8x32xbf16>, vector<72x32xf32> -> vector<72x32xf32>
    %547 = arith.truncf %546 : vector<72x32xf32> to vector<72x32xbf16>
    %548 = vector.extract_strided_slice %547 {offsets = [0, 0], sizes = [8, 32], strides = [1, 1]} : vector<72x32xbf16> to vector<8x32xbf16>
    %c0_382 = arith.constant 0 : index
    %c0_383 = arith.constant 0 : index
    %549 = vector.load %arg45[%c0_382, %c0_383] : memref<288x32xbf16, #tpu.memory_space<vmem>>, vector<32x32xbf16>
    %cst_384 = arith.constant dense<0.000000e+00> : vector<8x32xf32>
    %550 = tpu.matmul %548, %549, %cst_384 {dimension_numbers = #tpu.dot_dimension_numbers<[1], [0], [0], [1], [0, 0, 1, 1], [], []>} : vector<8x32xbf16>, vector<32x32xbf16>, vector<8x32xf32> -> vector<8x32xf32>
    %551 = vector.extract_strided_slice %547 {offsets = [8, 0], sizes = [8, 32], strides = [1, 1]} : vector<72x32xbf16> to vector<8x32xbf16>
    %c32_385 = arith.constant 32 : index
    %c0_386 = arith.constant 0 : index
    %552 = vector.load %arg45[%c32_385, %c0_386] : memref<288x32xbf16, #tpu.memory_space<vmem>>, vector<32x32xbf16>
    %cst_387 = arith.constant dense<0.000000e+00> : vector<8x32xf32>
    %553 = tpu.matmul %551, %552, %cst_387 {dimension_numbers = #tpu.dot_dimension_numbers<[1], [0], [0], [1], [0, 0, 1, 1], [], []>} : vector<8x32xbf16>, vector<32x32xbf16>, vector<8x32xf32> -> vector<8x32xf32>
    %554 = arith.addf %550, %553 : vector<8x32xf32>
    %555 = vector.extract_strided_slice %547 {offsets = [16, 0], sizes = [8, 32], strides = [1, 1]} : vector<72x32xbf16> to vector<8x32xbf16>
    %c64_388 = arith.constant 64 : index
    %c0_389 = arith.constant 0 : index
    %556 = vector.load %arg45[%c64_388, %c0_389] : memref<288x32xbf16, #tpu.memory_space<vmem>>, vector<32x32xbf16>
    %cst_390 = arith.constant dense<0.000000e+00> : vector<8x32xf32>
    %557 = tpu.matmul %555, %556, %cst_390 {dimension_numbers = #tpu.dot_dimension_numbers<[1], [0], [0], [1], [0, 0, 1, 1], [], []>} : vector<8x32xbf16>, vector<32x32xbf16>, vector<8x32xf32> -> vector<8x32xf32>
    %558 = arith.addf %554, %557 : vector<8x32xf32>
    %559 = vector.extract_strided_slice %547 {offsets = [24, 0], sizes = [8, 32], strides = [1, 1]} : vector<72x32xbf16> to vector<8x32xbf16>
    %c96_391 = arith.constant 96 : index
    %c0_392 = arith.constant 0 : index
    %560 = vector.load %arg45[%c96_391, %c0_392] : memref<288x32xbf16, #tpu.memory_space<vmem>>, vector<32x32xbf16>
    %cst_393 = arith.constant dense<0.000000e+00> : vector<8x32xf32>
    %561 = tpu.matmul %559, %560, %cst_393 {dimension_numbers = #tpu.dot_dimension_numbers<[1], [0], [0], [1], [0, 0, 1, 1], [], []>} : vector<8x32xbf16>, vector<32x32xbf16>, vector<8x32xf32> -> vector<8x32xf32>
    %562 = arith.addf %558, %561 : vector<8x32xf32>
    %563 = vector.extract_strided_slice %547 {offsets = [32, 0], sizes = [8, 32], strides = [1, 1]} : vector<72x32xbf16> to vector<8x32xbf16>
    %c128_394 = arith.constant 128 : index
    %c0_395 = arith.constant 0 : index
    %564 = vector.load %arg45[%c128_394, %c0_395] : memref<288x32xbf16, #tpu.memory_space<vmem>>, vector<32x32xbf16>
    %cst_396 = arith.constant dense<0.000000e+00> : vector<8x32xf32>
    %565 = tpu.matmul %563, %564, %cst_396 {dimension_numbers = #tpu.dot_dimension_numbers<[1], [0], [0], [1], [0, 0, 1, 1], [], []>} : vector<8x32xbf16>, vector<32x32xbf16>, vector<8x32xf32> -> vector<8x32xf32>
    %566 = arith.addf %562, %565 : vector<8x32xf32>
    %567 = vector.extract_strided_slice %547 {offsets = [40, 0], sizes = [8, 32], strides = [1, 1]} : vector<72x32xbf16> to vector<8x32xbf16>
    %c160_397 = arith.constant 160 : index
    %c0_398 = arith.constant 0 : index
    %568 = vector.load %arg45[%c160_397, %c0_398] : memref<288x32xbf16, #tpu.memory_space<vmem>>, vector<32x32xbf16>
    %cst_399 = arith.constant dense<0.000000e+00> : vector<8x32xf32>
    %569 = tpu.matmul %567, %568, %cst_399 {dimension_numbers = #tpu.dot_dimension_numbers<[1], [0], [0], [1], [0, 0, 1, 1], [], []>} : vector<8x32xbf16>, vector<32x32xbf16>, vector<8x32xf32> -> vector<8x32xf32>
    %570 = arith.addf %566, %569 : vector<8x32xf32>
    %571 = vector.extract_strided_slice %547 {offsets = [48, 0], sizes = [8, 32], strides = [1, 1]} : vector<72x32xbf16> to vector<8x32xbf16>
    %c192_400 = arith.constant 192 : index
    %c0_401 = arith.constant 0 : index
    %572 = vector.load %arg45[%c192_400, %c0_401] : memref<288x32xbf16, #tpu.memory_space<vmem>>, vector<32x32xbf16>
    %cst_402 = arith.constant dense<0.000000e+00> : vector<8x32xf32>
    %573 = tpu.matmul %571, %572, %cst_402 {dimension_numbers = #tpu.dot_dimension_numbers<[1], [0], [0], [1], [0, 0, 1, 1], [], []>} : vector<8x32xbf16>, vector<32x32xbf16>, vector<8x32xf32> -> vector<8x32xf32>
    %574 = arith.addf %570, %573 : vector<8x32xf32>
    %575 = vector.extract_strided_slice %547 {offsets = [56, 0], sizes = [8, 32], strides = [1, 1]} : vector<72x32xbf16> to vector<8x32xbf16>
    %c224_403 = arith.constant 224 : index
    %c0_404 = arith.constant 0 : index
    %576 = vector.load %arg45[%c224_403, %c0_404] : memref<288x32xbf16, #tpu.memory_space<vmem>>, vector<32x32xbf16>
    %cst_405 = arith.constant dense<0.000000e+00> : vector<8x32xf32>
    %577 = tpu.matmul %575, %576, %cst_405 {dimension_numbers = #tpu.dot_dimension_numbers<[1], [0], [0], [1], [0, 0, 1, 1], [], []>} : vector<8x32xbf16>, vector<32x32xbf16>, vector<8x32xf32> -> vector<8x32xf32>
    %578 = arith.addf %574, %577 : vector<8x32xf32>
    %579 = vector.extract_strided_slice %547 {offsets = [64, 0], sizes = [8, 32], strides = [1, 1]} : vector<72x32xbf16> to vector<8x32xbf16>
    %c256_406 = arith.constant 256 : index
    %c0_407 = arith.constant 0 : index
    %580 = vector.load %arg45[%c256_406, %c0_407] : memref<288x32xbf16, #tpu.memory_space<vmem>>, vector<32x32xbf16>
    %cst_408 = arith.constant dense<0.000000e+00> : vector<8x32xf32>
    %581 = tpu.matmul %579, %580, %cst_408 {dimension_numbers = #tpu.dot_dimension_numbers<[1], [0], [0], [1], [0, 0, 1, 1], [], []>} : vector<8x32xbf16>, vector<32x32xbf16>, vector<8x32xf32> -> vector<8x32xf32>
    %582 = arith.addf %578, %581 : vector<8x32xf32>
    %c0_409 = arith.constant 0 : index
    %c0_410 = arith.constant 0 : index
    %583 = vector.load %arg46[%c0_409, %c0_410] : memref<1x32xf32, #tpu.memory_space<vmem>>, vector<1x32xf32>
    %584 = vector.broadcast %583 : vector<1x32xf32> to vector<8x32xf32>
    %585 = arith.addf %582, %584 : vector<8x32xf32>
    %586 = arith.addf %585, %543 : vector<8x32xf32>
    %cst_411 = arith.constant 0.000000e+00 : f32
    %587 = vector.broadcast %cst_411 : f32 to vector<8x32xf32>
    %588 = arith.maximumf %586, %587 : vector<8x32xf32>
    %589 = arith.truncf %588 : vector<8x32xf32> to vector<8x32xbf16>
    %590 = vector.extract_strided_slice %588 {offsets = [0, 0], sizes = [4, 32], strides = [1, 1]} : vector<8x32xf32> to vector<4x32xf32>
    %c0_412 = arith.constant 0 : index
    %c0_413 = arith.constant 0 : index
    %c0_414 = arith.constant 0 : index
    %591 = vector.load %arg64[%c0_412, %c0_413, %c0_414] : memref<1x4x32xf32, #tpu.memory_space<vmem>>, vector<1x4x32xf32>
    %592 = vector.shape_cast %591 : vector<1x4x32xf32> to vector<4x32xf32>
    %593 = vector.shape_cast %590 : vector<4x32xf32> to vector<1x4x32xf32>
    tpu.vector_store %arg64[%c0_412, %c0_413, %c0_414], %593 {strides = array<i32>} : memref<1x4x32xf32, #tpu.memory_space<vmem>>, vector<1x4x32xf32>,
    %c0_415 = arith.constant 0 : index
    %c0_416 = arith.constant 0 : index
    %594 = vector.load %arg47[%c0_415, %c0_416] : memref<72x8xbf16, #tpu.memory_space<vmem>>, vector<72x8xbf16>
    %cst_417 = arith.constant dense<0.000000e+00> : vector<72x32xf32>
    %595 = tpu.matmul %594, %589, %cst_417 {dimension_numbers = #tpu.dot_dimension_numbers<[1], [0], [0], [1], [0, 0, 1, 1], [], []>} : vector<72x8xbf16>, vector<8x32xbf16>, vector<72x32xf32> -> vector<72x32xf32>
    %596 = arith.truncf %595 : vector<72x32xf32> to vector<72x32xbf16>
    %597 = vector.extract_strided_slice %596 {offsets = [0, 0], sizes = [8, 32], strides = [1, 1]} : vector<72x32xbf16> to vector<8x32xbf16>
    %c0_418 = arith.constant 0 : index
    %c0_419 = arith.constant 0 : index
    %598 = vector.load %arg48[%c0_418, %c0_419] : memref<288x64xbf16, #tpu.memory_space<vmem>>, vector<32x64xbf16>
    %cst_420 = arith.constant dense<0.000000e+00> : vector<8x64xf32>
    %599 = tpu.matmul %597, %598, %cst_420 {dimension_numbers = #tpu.dot_dimension_numbers<[1], [0], [0], [1], [0, 0, 1, 1], [], []>} : vector<8x32xbf16>, vector<32x64xbf16>, vector<8x64xf32> -> vector<8x64xf32>
    %600 = vector.extract_strided_slice %596 {offsets = [8, 0], sizes = [8, 32], strides = [1, 1]} : vector<72x32xbf16> to vector<8x32xbf16>
    %c32_421 = arith.constant 32 : index
    %c0_422 = arith.constant 0 : index
    %601 = vector.load %arg48[%c32_421, %c0_422] : memref<288x64xbf16, #tpu.memory_space<vmem>>, vector<32x64xbf16>
    %cst_423 = arith.constant dense<0.000000e+00> : vector<8x64xf32>
    %602 = tpu.matmul %600, %601, %cst_423 {dimension_numbers = #tpu.dot_dimension_numbers<[1], [0], [0], [1], [0, 0, 1, 1], [], []>} : vector<8x32xbf16>, vector<32x64xbf16>, vector<8x64xf32> -> vector<8x64xf32>
    %603 = arith.addf %599, %602 : vector<8x64xf32>
    %604 = vector.extract_strided_slice %596 {offsets = [16, 0], sizes = [8, 32], strides = [1, 1]} : vector<72x32xbf16> to vector<8x32xbf16>
    %c64_424 = arith.constant 64 : index
    %c0_425 = arith.constant 0 : index
    %605 = vector.load %arg48[%c64_424, %c0_425] : memref<288x64xbf16, #tpu.memory_space<vmem>>, vector<32x64xbf16>
    %cst_426 = arith.constant dense<0.000000e+00> : vector<8x64xf32>
    %606 = tpu.matmul %604, %605, %cst_426 {dimension_numbers = #tpu.dot_dimension_numbers<[1], [0], [0], [1], [0, 0, 1, 1], [], []>} : vector<8x32xbf16>, vector<32x64xbf16>, vector<8x64xf32> -> vector<8x64xf32>
    %607 = arith.addf %603, %606 : vector<8x64xf32>
    %608 = vector.extract_strided_slice %596 {offsets = [24, 0], sizes = [8, 32], strides = [1, 1]} : vector<72x32xbf16> to vector<8x32xbf16>
    %c96_427 = arith.constant 96 : index
    %c0_428 = arith.constant 0 : index
    %609 = vector.load %arg48[%c96_427, %c0_428] : memref<288x64xbf16, #tpu.memory_space<vmem>>, vector<32x64xbf16>
    %cst_429 = arith.constant dense<0.000000e+00> : vector<8x64xf32>
    %610 = tpu.matmul %608, %609, %cst_429 {dimension_numbers = #tpu.dot_dimension_numbers<[1], [0], [0], [1], [0, 0, 1, 1], [], []>} : vector<8x32xbf16>, vector<32x64xbf16>, vector<8x64xf32> -> vector<8x64xf32>
    %611 = arith.addf %607, %610 : vector<8x64xf32>
    %612 = vector.extract_strided_slice %596 {offsets = [32, 0], sizes = [8, 32], strides = [1, 1]} : vector<72x32xbf16> to vector<8x32xbf16>
    %c128_430 = arith.constant 128 : index
    %c0_431 = arith.constant 0 : index
    %613 = vector.load %arg48[%c128_430, %c0_431] : memref<288x64xbf16, #tpu.memory_space<vmem>>, vector<32x64xbf16>
    %cst_432 = arith.constant dense<0.000000e+00> : vector<8x64xf32>
    %614 = tpu.matmul %612, %613, %cst_432 {dimension_numbers = #tpu.dot_dimension_numbers<[1], [0], [0], [1], [0, 0, 1, 1], [], []>} : vector<8x32xbf16>, vector<32x64xbf16>, vector<8x64xf32> -> vector<8x64xf32>
    %615 = arith.addf %611, %614 : vector<8x64xf32>
    %616 = vector.extract_strided_slice %596 {offsets = [40, 0], sizes = [8, 32], strides = [1, 1]} : vector<72x32xbf16> to vector<8x32xbf16>
    %c160_433 = arith.constant 160 : index
    %c0_434 = arith.constant 0 : index
    %617 = vector.load %arg48[%c160_433, %c0_434] : memref<288x64xbf16, #tpu.memory_space<vmem>>, vector<32x64xbf16>
    %cst_435 = arith.constant dense<0.000000e+00> : vector<8x64xf32>
    %618 = tpu.matmul %616, %617, %cst_435 {dimension_numbers = #tpu.dot_dimension_numbers<[1], [0], [0], [1], [0, 0, 1, 1], [], []>} : vector<8x32xbf16>, vector<32x64xbf16>, vector<8x64xf32> -> vector<8x64xf32>
    %619 = arith.addf %615, %618 : vector<8x64xf32>
    %620 = vector.extract_strided_slice %596 {offsets = [48, 0], sizes = [8, 32], strides = [1, 1]} : vector<72x32xbf16> to vector<8x32xbf16>
    %c192_436 = arith.constant 192 : index
    %c0_437 = arith.constant 0 : index
    %621 = vector.load %arg48[%c192_436, %c0_437] : memref<288x64xbf16, #tpu.memory_space<vmem>>, vector<32x64xbf16>
    %cst_438 = arith.constant dense<0.000000e+00> : vector<8x64xf32>
    %622 = tpu.matmul %620, %621, %cst_438 {dimension_numbers = #tpu.dot_dimension_numbers<[1], [0], [0], [1], [0, 0, 1, 1], [], []>} : vector<8x32xbf16>, vector<32x64xbf16>, vector<8x64xf32> -> vector<8x64xf32>
    %623 = arith.addf %619, %622 : vector<8x64xf32>
    %624 = vector.extract_strided_slice %596 {offsets = [56, 0], sizes = [8, 32], strides = [1, 1]} : vector<72x32xbf16> to vector<8x32xbf16>
    %c224_439 = arith.constant 224 : index
    %c0_440 = arith.constant 0 : index
    %625 = vector.load %arg48[%c224_439, %c0_440] : memref<288x64xbf16, #tpu.memory_space<vmem>>, vector<32x64xbf16>
    %cst_441 = arith.constant dense<0.000000e+00> : vector<8x64xf32>
    %626 = tpu.matmul %624, %625, %cst_441 {dimension_numbers = #tpu.dot_dimension_numbers<[1], [0], [0], [1], [0, 0, 1, 1], [], []>} : vector<8x32xbf16>, vector<32x64xbf16>, vector<8x64xf32> -> vector<8x64xf32>
    %627 = arith.addf %623, %626 : vector<8x64xf32>
    %628 = vector.extract_strided_slice %596 {offsets = [64, 0], sizes = [8, 32], strides = [1, 1]} : vector<72x32xbf16> to vector<8x32xbf16>
    %c256_442 = arith.constant 256 : index
    %c0_443 = arith.constant 0 : index
    %629 = vector.load %arg48[%c256_442, %c0_443] : memref<288x64xbf16, #tpu.memory_space<vmem>>, vector<32x64xbf16>
    %cst_444 = arith.constant dense<0.000000e+00> : vector<8x64xf32>
    %630 = tpu.matmul %628, %629, %cst_444 {dimension_numbers = #tpu.dot_dimension_numbers<[1], [0], [0], [1], [0, 0, 1, 1], [], []>} : vector<8x32xbf16>, vector<32x64xbf16>, vector<8x64xf32> -> vector<8x64xf32>
    %631 = arith.addf %627, %630 : vector<8x64xf32>
    %c0_445 = arith.constant 0 : index
    %c0_446 = arith.constant 0 : index
    %632 = vector.load %arg49[%c0_445, %c0_446] : memref<1x64xf32, #tpu.memory_space<vmem>>, vector<1x64xf32>
    %633 = vector.broadcast %632 : vector<1x64xf32> to vector<8x64xf32>
    %634 = arith.addf %631, %633 : vector<8x64xf32>
    %cst_447 = arith.constant 0.000000e+00 : f32
    %635 = vector.broadcast %cst_447 : f32 to vector<8x64xf32>
    %636 = arith.maximumf %634, %635 : vector<8x64xf32>
    %c0_448 = arith.constant 0 : index
    %c0_449 = arith.constant 0 : index
    %637 = vector.load %arg50[%c0_448, %c0_449] : memref<8x8xbf16, #tpu.memory_space<vmem>>, vector<8x8xbf16>
    %cst_450 = arith.constant dense<0.000000e+00> : vector<8x32xf32>
    %638 = tpu.matmul %637, %589, %cst_450 {dimension_numbers = #tpu.dot_dimension_numbers<[1], [0], [0], [1], [0, 0, 1, 1], [], []>} : vector<8x8xbf16>, vector<8x32xbf16>, vector<8x32xf32> -> vector<8x32xf32>
    %639 = arith.truncf %638 : vector<8x32xf32> to vector<8x32xbf16>
    %c0_451 = arith.constant 0 : index
    %c0_452 = arith.constant 0 : index
    %640 = vector.load %arg51[%c0_451, %c0_452] : memref<32x64xbf16, #tpu.memory_space<vmem>>, vector<32x64xbf16>
    %cst_453 = arith.constant dense<0.000000e+00> : vector<8x64xf32>
    %641 = tpu.matmul %639, %640, %cst_453 {dimension_numbers = #tpu.dot_dimension_numbers<[1], [0], [0], [1], [0, 0, 1, 1], [], []>} : vector<8x32xbf16>, vector<32x64xbf16>, vector<8x64xf32> -> vector<8x64xf32>
    %c0_454 = arith.constant 0 : index
    %c0_455 = arith.constant 0 : index
    %642 = vector.load %arg52[%c0_454, %c0_455] : memref<1x64xf32, #tpu.memory_space<vmem>>, vector<1x64xf32>
    %643 = vector.broadcast %642 : vector<1x64xf32> to vector<8x64xf32>
    %644 = arith.addf %641, %643 : vector<8x64xf32>
    %645 = arith.truncf %636 : vector<8x64xf32> to vector<8x64xbf16>
    %c0_456 = arith.constant 0 : index
    %c0_457 = arith.constant 0 : index
    %646 = vector.load %arg53[%c0_456, %c0_457] : memref<72x8xbf16, #tpu.memory_space<vmem>>, vector<72x8xbf16>
    %cst_458 = arith.constant dense<0.000000e+00> : vector<72x64xf32>
    %647 = tpu.matmul %646, %645, %cst_458 {dimension_numbers = #tpu.dot_dimension_numbers<[1], [0], [0], [1], [0, 0, 1, 1], [], []>} : vector<72x8xbf16>, vector<8x64xbf16>, vector<72x64xf32> -> vector<72x64xf32>
    %648 = arith.truncf %647 : vector<72x64xf32> to vector<72x64xbf16>
    %649 = vector.extract_strided_slice %648 {offsets = [0, 0], sizes = [8, 64], strides = [1, 1]} : vector<72x64xbf16> to vector<8x64xbf16>
    %c0_459 = arith.constant 0 : index
    %c0_460 = arith.constant 0 : index
    %650 = vector.load %arg54[%c0_459, %c0_460] : memref<576x64xbf16, #tpu.memory_space<vmem>>, vector<64x64xbf16>
    %cst_461 = arith.constant dense<0.000000e+00> : vector<8x64xf32>
    %651 = tpu.matmul %649, %650, %cst_461 {dimension_numbers = #tpu.dot_dimension_numbers<[1], [0], [0], [1], [0, 0, 1, 1], [], []>} : vector<8x64xbf16>, vector<64x64xbf16>, vector<8x64xf32> -> vector<8x64xf32>
    %652 = vector.extract_strided_slice %648 {offsets = [8, 0], sizes = [8, 64], strides = [1, 1]} : vector<72x64xbf16> to vector<8x64xbf16>
    %c64_462 = arith.constant 64 : index
    %c0_463 = arith.constant 0 : index
    %653 = vector.load %arg54[%c64_462, %c0_463] : memref<576x64xbf16, #tpu.memory_space<vmem>>, vector<64x64xbf16>
    %cst_464 = arith.constant dense<0.000000e+00> : vector<8x64xf32>
    %654 = tpu.matmul %652, %653, %cst_464 {dimension_numbers = #tpu.dot_dimension_numbers<[1], [0], [0], [1], [0, 0, 1, 1], [], []>} : vector<8x64xbf16>, vector<64x64xbf16>, vector<8x64xf32> -> vector<8x64xf32>
    %655 = arith.addf %651, %654 : vector<8x64xf32>
    %656 = vector.extract_strided_slice %648 {offsets = [16, 0], sizes = [8, 64], strides = [1, 1]} : vector<72x64xbf16> to vector<8x64xbf16>
    %c128_465 = arith.constant 128 : index
    %c0_466 = arith.constant 0 : index
    %657 = vector.load %arg54[%c128_465, %c0_466] : memref<576x64xbf16, #tpu.memory_space<vmem>>, vector<64x64xbf16>
    %cst_467 = arith.constant dense<0.000000e+00> : vector<8x64xf32>
    %658 = tpu.matmul %656, %657, %cst_467 {dimension_numbers = #tpu.dot_dimension_numbers<[1], [0], [0], [1], [0, 0, 1, 1], [], []>} : vector<8x64xbf16>, vector<64x64xbf16>, vector<8x64xf32> -> vector<8x64xf32>
    %659 = arith.addf %655, %658 : vector<8x64xf32>
    %660 = vector.extract_strided_slice %648 {offsets = [24, 0], sizes = [8, 64], strides = [1, 1]} : vector<72x64xbf16> to vector<8x64xbf16>
    %c192_468 = arith.constant 192 : index
    %c0_469 = arith.constant 0 : index
    %661 = vector.load %arg54[%c192_468, %c0_469] : memref<576x64xbf16, #tpu.memory_space<vmem>>, vector<64x64xbf16>
    %cst_470 = arith.constant dense<0.000000e+00> : vector<8x64xf32>
    %662 = tpu.matmul %660, %661, %cst_470 {dimension_numbers = #tpu.dot_dimension_numbers<[1], [0], [0], [1], [0, 0, 1, 1], [], []>} : vector<8x64xbf16>, vector<64x64xbf16>, vector<8x64xf32> -> vector<8x64xf32>
    %663 = arith.addf %659, %662 : vector<8x64xf32>
    %664 = vector.extract_strided_slice %648 {offsets = [32, 0], sizes = [8, 64], strides = [1, 1]} : vector<72x64xbf16> to vector<8x64xbf16>
    %c256_471 = arith.constant 256 : index
    %c0_472 = arith.constant 0 : index
    %665 = vector.load %arg54[%c256_471, %c0_472] : memref<576x64xbf16, #tpu.memory_space<vmem>>, vector<64x64xbf16>
    %cst_473 = arith.constant dense<0.000000e+00> : vector<8x64xf32>
    %666 = tpu.matmul %664, %665, %cst_473 {dimension_numbers = #tpu.dot_dimension_numbers<[1], [0], [0], [1], [0, 0, 1, 1], [], []>} : vector<8x64xbf16>, vector<64x64xbf16>, vector<8x64xf32> -> vector<8x64xf32>
    %667 = arith.addf %663, %666 : vector<8x64xf32>
    %668 = vector.extract_strided_slice %648 {offsets = [40, 0], sizes = [8, 64], strides = [1, 1]} : vector<72x64xbf16> to vector<8x64xbf16>
    %c320 = arith.constant 320 : index
    %c0_474 = arith.constant 0 : index
    %669 = vector.load %arg54[%c320, %c0_474] : memref<576x64xbf16, #tpu.memory_space<vmem>>, vector<64x64xbf16>
    %cst_475 = arith.constant dense<0.000000e+00> : vector<8x64xf32>
    %670 = tpu.matmul %668, %669, %cst_475 {dimension_numbers = #tpu.dot_dimension_numbers<[1], [0], [0], [1], [0, 0, 1, 1], [], []>} : vector<8x64xbf16>, vector<64x64xbf16>, vector<8x64xf32> -> vector<8x64xf32>
    %671 = arith.addf %667, %670 : vector<8x64xf32>
    %672 = vector.extract_strided_slice %648 {offsets = [48, 0], sizes = [8, 64], strides = [1, 1]} : vector<72x64xbf16> to vector<8x64xbf16>
    %c384 = arith.constant 384 : index
    %c0_476 = arith.constant 0 : index
    %673 = vector.load %arg54[%c384, %c0_476] : memref<576x64xbf16, #tpu.memory_space<vmem>>, vector<64x64xbf16>
    %cst_477 = arith.constant dense<0.000000e+00> : vector<8x64xf32>
    %674 = tpu.matmul %672, %673, %cst_477 {dimension_numbers = #tpu.dot_dimension_numbers<[1], [0], [0], [1], [0, 0, 1, 1], [], []>} : vector<8x64xbf16>, vector<64x64xbf16>, vector<8x64xf32> -> vector<8x64xf32>
    %675 = arith.addf %671, %674 : vector<8x64xf32>
    %676 = vector.extract_strided_slice %648 {offsets = [56, 0], sizes = [8, 64], strides = [1, 1]} : vector<72x64xbf16> to vector<8x64xbf16>
    %c448 = arith.constant 448 : index
    %c0_478 = arith.constant 0 : index
    %677 = vector.load %arg54[%c448, %c0_478] : memref<576x64xbf16, #tpu.memory_space<vmem>>, vector<64x64xbf16>
    %cst_479 = arith.constant dense<0.000000e+00> : vector<8x64xf32>
    %678 = tpu.matmul %676, %677, %cst_479 {dimension_numbers = #tpu.dot_dimension_numbers<[1], [0], [0], [1], [0, 0, 1, 1], [], []>} : vector<8x64xbf16>, vector<64x64xbf16>, vector<8x64xf32> -> vector<8x64xf32>
    %679 = arith.addf %675, %678 : vector<8x64xf32>
    %680 = vector.extract_strided_slice %648 {offsets = [64, 0], sizes = [8, 64], strides = [1, 1]} : vector<72x64xbf16> to vector<8x64xbf16>
    %c512 = arith.constant 512 : index
    %c0_480 = arith.constant 0 : index
    %681 = vector.load %arg54[%c512, %c0_480] : memref<576x64xbf16, #tpu.memory_space<vmem>>, vector<64x64xbf16>
    %cst_481 = arith.constant dense<0.000000e+00> : vector<8x64xf32>
    %682 = tpu.matmul %680, %681, %cst_481 {dimension_numbers = #tpu.dot_dimension_numbers<[1], [0], [0], [1], [0, 0, 1, 1], [], []>} : vector<8x64xbf16>, vector<64x64xbf16>, vector<8x64xf32> -> vector<8x64xf32>
    %683 = arith.addf %679, %682 : vector<8x64xf32>
    %c0_482 = arith.constant 0 : index
    %c0_483 = arith.constant 0 : index
    %684 = vector.load %arg55[%c0_482, %c0_483] : memref<1x64xf32, #tpu.memory_space<vmem>>, vector<1x64xf32>
    %685 = vector.broadcast %684 : vector<1x64xf32> to vector<8x64xf32>
    %686 = arith.addf %683, %685 : vector<8x64xf32>
    %687 = arith.addf %686, %644 : vector<8x64xf32>
    %cst_484 = arith.constant 0.000000e+00 : f32
    %688 = vector.broadcast %cst_484 : f32 to vector<8x64xf32>
    %689 = arith.maximumf %687, %688 : vector<8x64xf32>
    %690 = arith.truncf %689 : vector<8x64xf32> to vector<8x64xbf16>
    %c0_485 = arith.constant 0 : index
    %c0_486 = arith.constant 0 : index
    %691 = vector.load %arg56[%c0_485, %c0_486] : memref<72x8xbf16, #tpu.memory_space<vmem>>, vector<72x8xbf16>
    %cst_487 = arith.constant dense<0.000000e+00> : vector<72x64xf32>
    %692 = tpu.matmul %691, %690, %cst_487 {dimension_numbers = #tpu.dot_dimension_numbers<[1], [0], [0], [1], [0, 0, 1, 1], [], []>} : vector<72x8xbf16>, vector<8x64xbf16>, vector<72x64xf32> -> vector<72x64xf32>
    %693 = arith.truncf %692 : vector<72x64xf32> to vector<72x64xbf16>
    %694 = vector.extract_strided_slice %693 {offsets = [0, 0], sizes = [8, 64], strides = [1, 1]} : vector<72x64xbf16> to vector<8x64xbf16>
    %c0_488 = arith.constant 0 : index
    %c0_489 = arith.constant 0 : index
    %695 = vector.load %arg57[%c0_488, %c0_489] : memref<576x64xbf16, #tpu.memory_space<vmem>>, vector<64x64xbf16>
    %cst_490 = arith.constant dense<0.000000e+00> : vector<8x64xf32>
    %696 = tpu.matmul %694, %695, %cst_490 {dimension_numbers = #tpu.dot_dimension_numbers<[1], [0], [0], [1], [0, 0, 1, 1], [], []>} : vector<8x64xbf16>, vector<64x64xbf16>, vector<8x64xf32> -> vector<8x64xf32>
    %697 = vector.extract_strided_slice %693 {offsets = [8, 0], sizes = [8, 64], strides = [1, 1]} : vector<72x64xbf16> to vector<8x64xbf16>
    %c64_491 = arith.constant 64 : index
    %c0_492 = arith.constant 0 : index
    %698 = vector.load %arg57[%c64_491, %c0_492] : memref<576x64xbf16, #tpu.memory_space<vmem>>, vector<64x64xbf16>
    %cst_493 = arith.constant dense<0.000000e+00> : vector<8x64xf32>
    %699 = tpu.matmul %697, %698, %cst_493 {dimension_numbers = #tpu.dot_dimension_numbers<[1], [0], [0], [1], [0, 0, 1, 1], [], []>} : vector<8x64xbf16>, vector<64x64xbf16>, vector<8x64xf32> -> vector<8x64xf32>
    %700 = arith.addf %696, %699 : vector<8x64xf32>
    %701 = vector.extract_strided_slice %693 {offsets = [16, 0], sizes = [8, 64], strides = [1, 1]} : vector<72x64xbf16> to vector<8x64xbf16>
    %c128_494 = arith.constant 128 : index
    %c0_495 = arith.constant 0 : index
    %702 = vector.load %arg57[%c128_494, %c0_495] : memref<576x64xbf16, #tpu.memory_space<vmem>>, vector<64x64xbf16>
    %cst_496 = arith.constant dense<0.000000e+00> : vector<8x64xf32>
    %703 = tpu.matmul %701, %702, %cst_496 {dimension_numbers = #tpu.dot_dimension_numbers<[1], [0], [0], [1], [0, 0, 1, 1], [], []>} : vector<8x64xbf16>, vector<64x64xbf16>, vector<8x64xf32> -> vector<8x64xf32>
    %704 = arith.addf %700, %703 : vector<8x64xf32>
    %705 = vector.extract_strided_slice %693 {offsets = [24, 0], sizes = [8, 64], strides = [1, 1]} : vector<72x64xbf16> to vector<8x64xbf16>
    %c192_497 = arith.constant 192 : index
    %c0_498 = arith.constant 0 : index
    %706 = vector.load %arg57[%c192_497, %c0_498] : memref<576x64xbf16, #tpu.memory_space<vmem>>, vector<64x64xbf16>
    %cst_499 = arith.constant dense<0.000000e+00> : vector<8x64xf32>
    %707 = tpu.matmul %705, %706, %cst_499 {dimension_numbers = #tpu.dot_dimension_numbers<[1], [0], [0], [1], [0, 0, 1, 1], [], []>} : vector<8x64xbf16>, vector<64x64xbf16>, vector<8x64xf32> -> vector<8x64xf32>
    %708 = arith.addf %704, %707 : vector<8x64xf32>
    %709 = vector.extract_strided_slice %693 {offsets = [32, 0], sizes = [8, 64], strides = [1, 1]} : vector<72x64xbf16> to vector<8x64xbf16>
    %c256_500 = arith.constant 256 : index
    %c0_501 = arith.constant 0 : index
    %710 = vector.load %arg57[%c256_500, %c0_501] : memref<576x64xbf16, #tpu.memory_space<vmem>>, vector<64x64xbf16>
    %cst_502 = arith.constant dense<0.000000e+00> : vector<8x64xf32>
    %711 = tpu.matmul %709, %710, %cst_502 {dimension_numbers = #tpu.dot_dimension_numbers<[1], [0], [0], [1], [0, 0, 1, 1], [], []>} : vector<8x64xbf16>, vector<64x64xbf16>, vector<8x64xf32> -> vector<8x64xf32>
    %712 = arith.addf %708, %711 : vector<8x64xf32>
    %713 = vector.extract_strided_slice %693 {offsets = [40, 0], sizes = [8, 64], strides = [1, 1]} : vector<72x64xbf16> to vector<8x64xbf16>
    %c320_503 = arith.constant 320 : index
    %c0_504 = arith.constant 0 : index
    %714 = vector.load %arg57[%c320_503, %c0_504] : memref<576x64xbf16, #tpu.memory_space<vmem>>, vector<64x64xbf16>
    %cst_505 = arith.constant dense<0.000000e+00> : vector<8x64xf32>
    %715 = tpu.matmul %713, %714, %cst_505 {dimension_numbers = #tpu.dot_dimension_numbers<[1], [0], [0], [1], [0, 0, 1, 1], [], []>} : vector<8x64xbf16>, vector<64x64xbf16>, vector<8x64xf32> -> vector<8x64xf32>
    %716 = arith.addf %712, %715 : vector<8x64xf32>
    %717 = vector.extract_strided_slice %693 {offsets = [48, 0], sizes = [8, 64], strides = [1, 1]} : vector<72x64xbf16> to vector<8x64xbf16>
    %c384_506 = arith.constant 384 : index
    %c0_507 = arith.constant 0 : index
    %718 = vector.load %arg57[%c384_506, %c0_507] : memref<576x64xbf16, #tpu.memory_space<vmem>>, vector<64x64xbf16>
    %cst_508 = arith.constant dense<0.000000e+00> : vector<8x64xf32>
    %719 = tpu.matmul %717, %718, %cst_508 {dimension_numbers = #tpu.dot_dimension_numbers<[1], [0], [0], [1], [0, 0, 1, 1], [], []>} : vector<8x64xbf16>, vector<64x64xbf16>, vector<8x64xf32> -> vector<8x64xf32>
    %720 = arith.addf %716, %719 : vector<8x64xf32>
    %721 = vector.extract_strided_slice %693 {offsets = [56, 0], sizes = [8, 64], strides = [1, 1]} : vector<72x64xbf16> to vector<8x64xbf16>
    %c448_509 = arith.constant 448 : index
    %c0_510 = arith.constant 0 : index
    %722 = vector.load %arg57[%c448_509, %c0_510] : memref<576x64xbf16, #tpu.memory_space<vmem>>, vector<64x64xbf16>
    %cst_511 = arith.constant dense<0.000000e+00> : vector<8x64xf32>
    %723 = tpu.matmul %721, %722, %cst_511 {dimension_numbers = #tpu.dot_dimension_numbers<[1], [0], [0], [1], [0, 0, 1, 1], [], []>} : vector<8x64xbf16>, vector<64x64xbf16>, vector<8x64xf32> -> vector<8x64xf32>
    %724 = arith.addf %720, %723 : vector<8x64xf32>
    %725 = vector.extract_strided_slice %693 {offsets = [64, 0], sizes = [8, 64], strides = [1, 1]} : vector<72x64xbf16> to vector<8x64xbf16>
    %c512_512 = arith.constant 512 : index
    %c0_513 = arith.constant 0 : index
    %726 = vector.load %arg57[%c512_512, %c0_513] : memref<576x64xbf16, #tpu.memory_space<vmem>>, vector<64x64xbf16>
    %cst_514 = arith.constant dense<0.000000e+00> : vector<8x64xf32>
    %727 = tpu.matmul %725, %726, %cst_514 {dimension_numbers = #tpu.dot_dimension_numbers<[1], [0], [0], [1], [0, 0, 1, 1], [], []>} : vector<8x64xbf16>, vector<64x64xbf16>, vector<8x64xf32> -> vector<8x64xf32>
    %728 = arith.addf %724, %727 : vector<8x64xf32>
    %c0_515 = arith.constant 0 : index
    %c0_516 = arith.constant 0 : index
    %729 = vector.load %arg58[%c0_515, %c0_516] : memref<1x64xf32, #tpu.memory_space<vmem>>, vector<1x64xf32>
    %730 = vector.broadcast %729 : vector<1x64xf32> to vector<8x64xf32>
    %731 = arith.addf %728, %730 : vector<8x64xf32>
    %cst_517 = arith.constant 0.000000e+00 : f32
    %732 = vector.broadcast %cst_517 : f32 to vector<8x64xf32>
    %733 = arith.maximumf %731, %732 : vector<8x64xf32>
    %734 = arith.extf %690 : vector<8x64xbf16> to vector<8x64xf32>
    %735 = arith.truncf %733 : vector<8x64xf32> to vector<8x64xbf16>
    %c0_518 = arith.constant 0 : index
    %c0_519 = arith.constant 0 : index
    %736 = vector.load %arg59[%c0_518, %c0_519] : memref<72x8xbf16, #tpu.memory_space<vmem>>, vector<72x8xbf16>
    %cst_520 = arith.constant dense<0.000000e+00> : vector<72x64xf32>
    %737 = tpu.matmul %736, %735, %cst_520 {dimension_numbers = #tpu.dot_dimension_numbers<[1], [0], [0], [1], [0, 0, 1, 1], [], []>} : vector<72x8xbf16>, vector<8x64xbf16>, vector<72x64xf32> -> vector<72x64xf32>
    %738 = arith.truncf %737 : vector<72x64xf32> to vector<72x64xbf16>
    %739 = vector.extract_strided_slice %738 {offsets = [0, 0], sizes = [8, 64], strides = [1, 1]} : vector<72x64xbf16> to vector<8x64xbf16>
    %c0_521 = arith.constant 0 : index
    %c0_522 = arith.constant 0 : index
    %740 = vector.load %arg60[%c0_521, %c0_522] : memref<576x64xbf16, #tpu.memory_space<vmem>>, vector<64x64xbf16>
    %cst_523 = arith.constant dense<0.000000e+00> : vector<8x64xf32>
    %741 = tpu.matmul %739, %740, %cst_523 {dimension_numbers = #tpu.dot_dimension_numbers<[1], [0], [0], [1], [0, 0, 1, 1], [], []>} : vector<8x64xbf16>, vector<64x64xbf16>, vector<8x64xf32> -> vector<8x64xf32>
    %742 = vector.extract_strided_slice %738 {offsets = [8, 0], sizes = [8, 64], strides = [1, 1]} : vector<72x64xbf16> to vector<8x64xbf16>
    %c64_524 = arith.constant 64 : index
    %c0_525 = arith.constant 0 : index
    %743 = vector.load %arg60[%c64_524, %c0_525] : memref<576x64xbf16, #tpu.memory_space<vmem>>, vector<64x64xbf16>
    %cst_526 = arith.constant dense<0.000000e+00> : vector<8x64xf32>
    %744 = tpu.matmul %742, %743, %cst_526 {dimension_numbers = #tpu.dot_dimension_numbers<[1], [0], [0], [1], [0, 0, 1, 1], [], []>} : vector<8x64xbf16>, vector<64x64xbf16>, vector<8x64xf32> -> vector<8x64xf32>
    %745 = arith.addf %741, %744 : vector<8x64xf32>
    %746 = vector.extract_strided_slice %738 {offsets = [16, 0], sizes = [8, 64], strides = [1, 1]} : vector<72x64xbf16> to vector<8x64xbf16>
    %c128_527 = arith.constant 128 : index
    %c0_528 = arith.constant 0 : index
    %747 = vector.load %arg60[%c128_527, %c0_528] : memref<576x64xbf16, #tpu.memory_space<vmem>>, vector<64x64xbf16>
    %cst_529 = arith.constant dense<0.000000e+00> : vector<8x64xf32>
    %748 = tpu.matmul %746, %747, %cst_529 {dimension_numbers = #tpu.dot_dimension_numbers<[1], [0], [0], [1], [0, 0, 1, 1], [], []>} : vector<8x64xbf16>, vector<64x64xbf16>, vector<8x64xf32> -> vector<8x64xf32>
    %749 = arith.addf %745, %748 : vector<8x64xf32>
    %750 = vector.extract_strided_slice %738 {offsets = [24, 0], sizes = [8, 64], strides = [1, 1]} : vector<72x64xbf16> to vector<8x64xbf16>
    %c192_530 = arith.constant 192 : index
    %c0_531 = arith.constant 0 : index
    %751 = vector.load %arg60[%c192_530, %c0_531] : memref<576x64xbf16, #tpu.memory_space<vmem>>, vector<64x64xbf16>
    %cst_532 = arith.constant dense<0.000000e+00> : vector<8x64xf32>
    %752 = tpu.matmul %750, %751, %cst_532 {dimension_numbers = #tpu.dot_dimension_numbers<[1], [0], [0], [1], [0, 0, 1, 1], [], []>} : vector<8x64xbf16>, vector<64x64xbf16>, vector<8x64xf32> -> vector<8x64xf32>
    %753 = arith.addf %749, %752 : vector<8x64xf32>
    %754 = vector.extract_strided_slice %738 {offsets = [32, 0], sizes = [8, 64], strides = [1, 1]} : vector<72x64xbf16> to vector<8x64xbf16>
    %c256_533 = arith.constant 256 : index
    %c0_534 = arith.constant 0 : index
    %755 = vector.load %arg60[%c256_533, %c0_534] : memref<576x64xbf16, #tpu.memory_space<vmem>>, vector<64x64xbf16>
    %cst_535 = arith.constant dense<0.000000e+00> : vector<8x64xf32>
    %756 = tpu.matmul %754, %755, %cst_535 {dimension_numbers = #tpu.dot_dimension_numbers<[1], [0], [0], [1], [0, 0, 1, 1], [], []>} : vector<8x64xbf16>, vector<64x64xbf16>, vector<8x64xf32> -> vector<8x64xf32>
    %757 = arith.addf %753, %756 : vector<8x64xf32>
    %758 = vector.extract_strided_slice %738 {offsets = [40, 0], sizes = [8, 64], strides = [1, 1]} : vector<72x64xbf16> to vector<8x64xbf16>
    %c320_536 = arith.constant 320 : index
    %c0_537 = arith.constant 0 : index
    %759 = vector.load %arg60[%c320_536, %c0_537] : memref<576x64xbf16, #tpu.memory_space<vmem>>, vector<64x64xbf16>
    %cst_538 = arith.constant dense<0.000000e+00> : vector<8x64xf32>
    %760 = tpu.matmul %758, %759, %cst_538 {dimension_numbers = #tpu.dot_dimension_numbers<[1], [0], [0], [1], [0, 0, 1, 1], [], []>} : vector<8x64xbf16>, vector<64x64xbf16>, vector<8x64xf32> -> vector<8x64xf32>
    %761 = arith.addf %757, %760 : vector<8x64xf32>
    %762 = vector.extract_strided_slice %738 {offsets = [48, 0], sizes = [8, 64], strides = [1, 1]} : vector<72x64xbf16> to vector<8x64xbf16>
    %c384_539 = arith.constant 384 : index
    %c0_540 = arith.constant 0 : index
    %763 = vector.load %arg60[%c384_539, %c0_540] : memref<576x64xbf16, #tpu.memory_space<vmem>>, vector<64x64xbf16>
    %cst_541 = arith.constant dense<0.000000e+00> : vector<8x64xf32>
    %764 = tpu.matmul %762, %763, %cst_541 {dimension_numbers = #tpu.dot_dimension_numbers<[1], [0], [0], [1], [0, 0, 1, 1], [], []>} : vector<8x64xbf16>, vector<64x64xbf16>, vector<8x64xf32> -> vector<8x64xf32>
    %765 = arith.addf %761, %764 : vector<8x64xf32>
    %766 = vector.extract_strided_slice %738 {offsets = [56, 0], sizes = [8, 64], strides = [1, 1]} : vector<72x64xbf16> to vector<8x64xbf16>
    %c448_542 = arith.constant 448 : index
    %c0_543 = arith.constant 0 : index
    %767 = vector.load %arg60[%c448_542, %c0_543] : memref<576x64xbf16, #tpu.memory_space<vmem>>, vector<64x64xbf16>
    %cst_544 = arith.constant dense<0.000000e+00> : vector<8x64xf32>
    %768 = tpu.matmul %766, %767, %cst_544 {dimension_numbers = #tpu.dot_dimension_numbers<[1], [0], [0], [1], [0, 0, 1, 1], [], []>} : vector<8x64xbf16>, vector<64x64xbf16>, vector<8x64xf32> -> vector<8x64xf32>
    %769 = arith.addf %765, %768 : vector<8x64xf32>
    %770 = vector.extract_strided_slice %738 {offsets = [64, 0], sizes = [8, 64], strides = [1, 1]} : vector<72x64xbf16> to vector<8x64xbf16>
    %c512_545 = arith.constant 512 : index
    %c0_546 = arith.constant 0 : index
    %771 = vector.load %arg60[%c512_545, %c0_546] : memref<576x64xbf16, #tpu.memory_space<vmem>>, vector<64x64xbf16>
    %cst_547 = arith.constant dense<0.000000e+00> : vector<8x64xf32>
    %772 = tpu.matmul %770, %771, %cst_547 {dimension_numbers = #tpu.dot_dimension_numbers<[1], [0], [0], [1], [0, 0, 1, 1], [], []>} : vector<8x64xbf16>, vector<64x64xbf16>, vector<8x64xf32> -> vector<8x64xf32>
    %773 = arith.addf %769, %772 : vector<8x64xf32>
    %c0_548 = arith.constant 0 : index
    %c0_549 = arith.constant 0 : index
    %774 = vector.load %arg61[%c0_548, %c0_549] : memref<1x64xf32, #tpu.memory_space<vmem>>, vector<1x64xf32>
    %775 = vector.broadcast %774 : vector<1x64xf32> to vector<8x64xf32>
    %776 = arith.addf %773, %775 : vector<8x64xf32>
    %777 = arith.addf %776, %734 : vector<8x64xf32>
    %cst_550 = arith.constant 0.000000e+00 : f32
    %778 = vector.broadcast %cst_550 : f32 to vector<8x64xf32>
    %779 = arith.maximumf %777, %778 : vector<8x64xf32>
    %780 = vector.extract_strided_slice %779 {offsets = [0, 0], sizes = [1, 64], strides = [1, 1]} : vector<8x64xf32> to vector<1x64xf32>
    %c0_551 = arith.constant 0 : index
    %c0_552 = arith.constant 0 : index
    %c0_553 = arith.constant 0 : index
    %781 = vector.load %arg65[%c0_551, %c0_552, %c0_553] : memref<1x1x64xf32, #tpu.memory_space<vmem>>, vector<1x1x64xf32>
    %782 = vector.shape_cast %781 : vector<1x1x64xf32> to vector<1x64xf32>
    %783 = vector.shape_cast %780 : vector<1x64xf32> to vector<1x1x64xf32>
    tpu.vector_store %arg65[%c0_551, %c0_552, %c0_553], %783 {strides = array<i32>} : memref<1x1x64xf32, #tpu.memory_space<vmem>>, vector<1x1x64xf32>,
    return
  }
  func.func @transform_0(%arg0: i32) -> (i32, i32, i32) {
    %c0_i32 = arith.constant 0 : i32
    %c0_i32_0 = arith.constant 0 : i32
    %c0_i32_1 = arith.constant 0 : i32
    return %arg0, %c0_i32, %c0_i32_0 : i32, i32, i32
  }
  func.func @transform_1(%arg0: i32) -> (i32, i32) {
    %c0_i32 = arith.constant 0 : i32
    %c0_i32_0 = arith.constant 0 : i32
    %c0_i32_1 = arith.constant 0 : i32
    return %c0_i32, %c0_i32_0 : i32, i32
  }
  func.func @transform_2(%arg0: i32) -> (i32, i32) {
    %c0_i32 = arith.constant 0 : i32
    %c0_i32_0 = arith.constant 0 : i32
    %c0_i32_1 = arith.constant 0 : i32
    return %c0_i32, %c0_i32_0 : i32, i32
  }
  func.func @transform_3(%arg0: i32) -> (i32, i32) {
    %c0_i32 = arith.constant 0 : i32
    %c0_i32_0 = arith.constant 0 : i32
    %c0_i32_1 = arith.constant 0 : i32
    return %c0_i32, %c0_i32_0 : i32, i32
  }
  func.func @transform_4(%arg0: i32) -> (i32, i32) {
    %c0_i32 = arith.constant 0 : i32
    %c0_i32_0 = arith.constant 0 : i32
    %c0_i32_1 = arith.constant 0 : i32
    return %c0_i32, %c0_i32_0 : i32, i32
  }
  func.func @transform_5(%arg0: i32) -> (i32, i32) {
    %c0_i32 = arith.constant 0 : i32
    %c0_i32_0 = arith.constant 0 : i32
    %c0_i32_1 = arith.constant 0 : i32
    return %c0_i32, %c0_i32_0 : i32, i32
  }
  func.func @transform_6(%arg0: i32) -> (i32, i32) {
    %c0_i32 = arith.constant 0 : i32
    %c0_i32_0 = arith.constant 0 : i32
    %c0_i32_1 = arith.constant 0 : i32
    return %c0_i32, %c0_i32_0 : i32, i32
  }
  func.func @transform_7(%arg0: i32) -> (i32, i32) {
    %c0_i32 = arith.constant 0 : i32
    %c0_i32_0 = arith.constant 0 : i32
    %c0_i32_1 = arith.constant 0 : i32
    return %c0_i32, %c0_i32_0 : i32, i32
  }
  func.func @transform_8(%arg0: i32) -> (i32, i32) {
    %c0_i32 = arith.constant 0 : i32
    %c0_i32_0 = arith.constant 0 : i32
    %c0_i32_1 = arith.constant 0 : i32
    return %c0_i32, %c0_i32_0 : i32, i32
  }
  func.func @transform_9(%arg0: i32) -> (i32, i32) {
    %c0_i32 = arith.constant 0 : i32
    %c0_i32_0 = arith.constant 0 : i32
    %c0_i32_1 = arith.constant 0 : i32
    return %c0_i32, %c0_i32_0 : i32, i32
  }
  func.func @transform_10(%arg0: i32) -> (i32, i32) {
    %c0_i32 = arith.constant 0 : i32
    %c0_i32_0 = arith.constant 0 : i32
    %c0_i32_1 = arith.constant 0 : i32
    return %c0_i32, %c0_i32_0 : i32, i32
  }
  func.func @transform_11(%arg0: i32) -> (i32, i32) {
    %c0_i32 = arith.constant 0 : i32
    %c0_i32_0 = arith.constant 0 : i32
    %c0_i32_1 = arith.constant 0 : i32
    return %c0_i32, %c0_i32_0 : i32, i32
  }
  func.func @transform_12(%arg0: i32) -> (i32, i32) {
    %c0_i32 = arith.constant 0 : i32
    %c0_i32_0 = arith.constant 0 : i32
    %c0_i32_1 = arith.constant 0 : i32
    return %c0_i32, %c0_i32_0 : i32, i32
  }
  func.func @transform_13(%arg0: i32) -> (i32, i32) {
    %c0_i32 = arith.constant 0 : i32
    %c0_i32_0 = arith.constant 0 : i32
    %c0_i32_1 = arith.constant 0 : i32
    return %c0_i32, %c0_i32_0 : i32, i32
  }
  func.func @transform_14(%arg0: i32) -> (i32, i32) {
    %c0_i32 = arith.constant 0 : i32
    %c0_i32_0 = arith.constant 0 : i32
    %c0_i32_1 = arith.constant 0 : i32
    return %c0_i32, %c0_i32_0 : i32, i32
  }
  func.func @transform_15(%arg0: i32) -> (i32, i32) {
    %c0_i32 = arith.constant 0 : i32
    %c0_i32_0 = arith.constant 0 : i32
    %c0_i32_1 = arith.constant 0 : i32
    return %c0_i32, %c0_i32_0 : i32, i32
  }
  func.func @transform_16(%arg0: i32) -> (i32, i32) {
    %c0_i32 = arith.constant 0 : i32
    %c0_i32_0 = arith.constant 0 : i32
    %c0_i32_1 = arith.constant 0 : i32
    return %c0_i32, %c0_i32_0 : i32, i32
  }
  func.func @transform_17(%arg0: i32) -> (i32, i32) {
    %c0_i32 = arith.constant 0 : i32
    %c0_i32_0 = arith.constant 0 : i32
    %c0_i32_1 = arith.constant 0 : i32
    return %c0_i32, %c0_i32_0 : i32, i32
  }
  func.func @transform_18(%arg0: i32) -> (i32, i32) {
    %c0_i32 = arith.constant 0 : i32
    %c0_i32_0 = arith.constant 0 : i32
    %c0_i32_1 = arith.constant 0 : i32
    return %c0_i32, %c0_i32_0 : i32, i32
  }
  func.func @transform_19(%arg0: i32) -> (i32, i32) {
    %c0_i32 = arith.constant 0 : i32
    %c0_i32_0 = arith.constant 0 : i32
    %c0_i32_1 = arith.constant 0 : i32
    return %c0_i32, %c0_i32_0 : i32, i32
  }
  func.func @transform_20(%arg0: i32) -> (i32, i32) {
    %c0_i32 = arith.constant 0 : i32
    %c0_i32_0 = arith.constant 0 : i32
    %c0_i32_1 = arith.constant 0 : i32
    return %c0_i32, %c0_i32_0 : i32, i32
  }
  func.func @transform_21(%arg0: i32) -> (i32, i32) {
    %c0_i32 = arith.constant 0 : i32
    %c0_i32_0 = arith.constant 0 : i32
    %c0_i32_1 = arith.constant 0 : i32
    return %c0_i32, %c0_i32_0 : i32, i32
  }
  func.func @transform_22(%arg0: i32) -> (i32, i32) {
    %c0_i32 = arith.constant 0 : i32
    %c0_i32_0 = arith.constant 0 : i32
    %c0_i32_1 = arith.constant 0 : i32
    return %c0_i32, %c0_i32_0 : i32, i32
  }
  func.func @transform_23(%arg0: i32) -> (i32, i32) {
    %c0_i32 = arith.constant 0 : i32
    %c0_i32_0 = arith.constant 0 : i32
    %c0_i32_1 = arith.constant 0 : i32
    return %c0_i32, %c0_i32_0 : i32, i32
  }
  func.func @transform_24(%arg0: i32) -> (i32, i32) {
    %c0_i32 = arith.constant 0 : i32
    %c0_i32_0 = arith.constant 0 : i32
    %c0_i32_1 = arith.constant 0 : i32
    return %c0_i32, %c0_i32_0 : i32, i32
  }
  func.func @transform_25(%arg0: i32) -> (i32, i32) {
    %c0_i32 = arith.constant 0 : i32
    %c0_i32_0 = arith.constant 0 : i32
    %c0_i32_1 = arith.constant 0 : i32
    return %c0_i32, %c0_i32_0 : i32, i32
  }
  func.func @transform_26(%arg0: i32) -> (i32, i32) {
    %c0_i32 = arith.constant 0 : i32
    %c0_i32_0 = arith.constant 0 : i32
    %c0_i32_1 = arith.constant 0 : i32
    return %c0_i32, %c0_i32_0 : i32, i32
  }
  func.func @transform_27(%arg0: i32) -> (i32, i32) {
    %c0_i32 = arith.constant 0 : i32
    %c0_i32_0 = arith.constant 0 : i32
    %c0_i32_1 = arith.constant 0 : i32
    return %c0_i32, %c0_i32_0 : i32, i32
  }
  func.func @transform_28(%arg0: i32) -> (i32, i32) {
    %c0_i32 = arith.constant 0 : i32
    %c0_i32_0 = arith.constant 0 : i32
    %c0_i32_1 = arith.constant 0 : i32
    return %c0_i32, %c0_i32_0 : i32, i32
  }
  func.func @transform_29(%arg0: i32) -> (i32, i32) {
    %c0_i32 = arith.constant 0 : i32
    %c0_i32_0 = arith.constant 0 : i32
    %c0_i32_1 = arith.constant 0 : i32
    return %c0_i32, %c0_i32_0 : i32, i32
  }
  func.func @transform_30(%arg0: i32) -> (i32, i32) {
    %c0_i32 = arith.constant 0 : i32
    %c0_i32_0 = arith.constant 0 : i32
    %c0_i32_1 = arith.constant 0 : i32
    return %c0_i32, %c0_i32_0 : i32, i32
  }
  func.func @transform_31(%arg0: i32) -> (i32, i32) {
    %c0_i32 = arith.constant 0 : i32
    %c0_i32_0 = arith.constant 0 : i32
    %c0_i32_1 = arith.constant 0 : i32
    return %c0_i32, %c0_i32_0 : i32, i32
  }
  func.func @transform_32(%arg0: i32) -> (i32, i32) {
    %c0_i32 = arith.constant 0 : i32
    %c0_i32_0 = arith.constant 0 : i32
    %c0_i32_1 = arith.constant 0 : i32
    return %c0_i32, %c0_i32_0 : i32, i32
  }
  func.func @transform_33(%arg0: i32) -> (i32, i32) {
    %c0_i32 = arith.constant 0 : i32
    %c0_i32_0 = arith.constant 0 : i32
    %c0_i32_1 = arith.constant 0 : i32
    return %c0_i32, %c0_i32_0 : i32, i32
  }
  func.func @transform_34(%arg0: i32) -> (i32, i32) {
    %c0_i32 = arith.constant 0 : i32
    %c0_i32_0 = arith.constant 0 : i32
    %c0_i32_1 = arith.constant 0 : i32
    return %c0_i32, %c0_i32_0 : i32, i32
  }
  func.func @transform_35(%arg0: i32) -> (i32, i32) {
    %c0_i32 = arith.constant 0 : i32
    %c0_i32_0 = arith.constant 0 : i32
    %c0_i32_1 = arith.constant 0 : i32
    return %c0_i32, %c0_i32_0 : i32, i32
  }
  func.func @transform_36(%arg0: i32) -> (i32, i32) {
    %c0_i32 = arith.constant 0 : i32
    %c0_i32_0 = arith.constant 0 : i32
    %c0_i32_1 = arith.constant 0 : i32
    return %c0_i32, %c0_i32_0 : i32, i32
  }
  func.func @transform_37(%arg0: i32) -> (i32, i32) {
    %c0_i32 = arith.constant 0 : i32
    %c0_i32_0 = arith.constant 0 : i32
    %c0_i32_1 = arith.constant 0 : i32
    return %c0_i32, %c0_i32_0 : i32, i32
  }
  func.func @transform_38(%arg0: i32) -> (i32, i32) {
    %c0_i32 = arith.constant 0 : i32
    %c0_i32_0 = arith.constant 0 : i32
    %c0_i32_1 = arith.constant 0 : i32
    return %c0_i32, %c0_i32_0 : i32, i32
  }
  func.func @transform_39(%arg0: i32) -> (i32, i32) {
    %c0_i32 = arith.constant 0 : i32
    %c0_i32_0 = arith.constant 0 : i32
    %c0_i32_1 = arith.constant 0 : i32
    return %c0_i32, %c0_i32_0 : i32, i32
  }
  func.func @transform_40(%arg0: i32) -> (i32, i32) {
    %c0_i32 = arith.constant 0 : i32
    %c0_i32_0 = arith.constant 0 : i32
    %c0_i32_1 = arith.constant 0 : i32
    return %c0_i32, %c0_i32_0 : i32, i32
  }
  func.func @transform_41(%arg0: i32) -> (i32, i32) {
    %c0_i32 = arith.constant 0 : i32
    %c0_i32_0 = arith.constant 0 : i32
    %c0_i32_1 = arith.constant 0 : i32
    return %c0_i32, %c0_i32_0 : i32, i32
  }
  func.func @transform_42(%arg0: i32) -> (i32, i32) {
    %c0_i32 = arith.constant 0 : i32
    %c0_i32_0 = arith.constant 0 : i32
    %c0_i32_1 = arith.constant 0 : i32
    return %c0_i32, %c0_i32_0 : i32, i32
  }
  func.func @transform_43(%arg0: i32) -> (i32, i32) {
    %c0_i32 = arith.constant 0 : i32
    %c0_i32_0 = arith.constant 0 : i32
    %c0_i32_1 = arith.constant 0 : i32
    return %c0_i32, %c0_i32_0 : i32, i32
  }
  func.func @transform_44(%arg0: i32) -> (i32, i32) {
    %c0_i32 = arith.constant 0 : i32
    %c0_i32_0 = arith.constant 0 : i32
    %c0_i32_1 = arith.constant 0 : i32
    return %c0_i32, %c0_i32_0 : i32, i32
  }
  func.func @transform_45(%arg0: i32) -> (i32, i32) {
    %c0_i32 = arith.constant 0 : i32
    %c0_i32_0 = arith.constant 0 : i32
    %c0_i32_1 = arith.constant 0 : i32
    return %c0_i32, %c0_i32_0 : i32, i32
  }
  func.func @transform_46(%arg0: i32) -> (i32, i32) {
    %c0_i32 = arith.constant 0 : i32
    %c0_i32_0 = arith.constant 0 : i32
    %c0_i32_1 = arith.constant 0 : i32
    return %c0_i32, %c0_i32_0 : i32, i32
  }
  func.func @transform_47(%arg0: i32) -> (i32, i32) {
    %c0_i32 = arith.constant 0 : i32
    %c0_i32_0 = arith.constant 0 : i32
    %c0_i32_1 = arith.constant 0 : i32
    return %c0_i32, %c0_i32_0 : i32, i32
  }
  func.func @transform_48(%arg0: i32) -> (i32, i32) {
    %c0_i32 = arith.constant 0 : i32
    %c0_i32_0 = arith.constant 0 : i32
    %c0_i32_1 = arith.constant 0 : i32
    return %c0_i32, %c0_i32_0 : i32, i32
  }
  func.func @transform_49(%arg0: i32) -> (i32, i32) {
    %c0_i32 = arith.constant 0 : i32
    %c0_i32_0 = arith.constant 0 : i32
    %c0_i32_1 = arith.constant 0 : i32
    return %c0_i32, %c0_i32_0 : i32, i32
  }
  func.func @transform_50(%arg0: i32) -> (i32, i32) {
    %c0_i32 = arith.constant 0 : i32
    %c0_i32_0 = arith.constant 0 : i32
    %c0_i32_1 = arith.constant 0 : i32
    return %c0_i32, %c0_i32_0 : i32, i32
  }
  func.func @transform_51(%arg0: i32) -> (i32, i32) {
    %c0_i32 = arith.constant 0 : i32
    %c0_i32_0 = arith.constant 0 : i32
    %c0_i32_1 = arith.constant 0 : i32
    return %c0_i32, %c0_i32_0 : i32, i32
  }
  func.func @transform_52(%arg0: i32) -> (i32, i32) {
    %c0_i32 = arith.constant 0 : i32
    %c0_i32_0 = arith.constant 0 : i32
    %c0_i32_1 = arith.constant 0 : i32
    return %c0_i32, %c0_i32_0 : i32, i32
  }
  func.func @transform_53(%arg0: i32) -> (i32, i32) {
    %c0_i32 = arith.constant 0 : i32
    %c0_i32_0 = arith.constant 0 : i32
    %c0_i32_1 = arith.constant 0 : i32
    return %c0_i32, %c0_i32_0 : i32, i32
  }
  func.func @transform_54(%arg0: i32) -> (i32, i32) {
    %c0_i32 = arith.constant 0 : i32
    %c0_i32_0 = arith.constant 0 : i32
    %c0_i32_1 = arith.constant 0 : i32
    return %c0_i32, %c0_i32_0 : i32, i32
  }
  func.func @transform_55(%arg0: i32) -> (i32, i32) {
    %c0_i32 = arith.constant 0 : i32
    %c0_i32_0 = arith.constant 0 : i32
    %c0_i32_1 = arith.constant 0 : i32
    return %c0_i32, %c0_i32_0 : i32, i32
  }
  func.func @transform_56(%arg0: i32) -> (i32, i32) {
    %c0_i32 = arith.constant 0 : i32
    %c0_i32_0 = arith.constant 0 : i32
    %c0_i32_1 = arith.constant 0 : i32
    return %c0_i32, %c0_i32_0 : i32, i32
  }
  func.func @transform_57(%arg0: i32) -> (i32, i32) {
    %c0_i32 = arith.constant 0 : i32
    %c0_i32_0 = arith.constant 0 : i32
    %c0_i32_1 = arith.constant 0 : i32
    return %c0_i32, %c0_i32_0 : i32, i32
  }
  func.func @transform_58(%arg0: i32) -> (i32, i32) {
    %c0_i32 = arith.constant 0 : i32
    %c0_i32_0 = arith.constant 0 : i32
    %c0_i32_1 = arith.constant 0 : i32
    return %c0_i32, %c0_i32_0 : i32, i32
  }
  func.func @transform_59(%arg0: i32) -> (i32, i32) {
    %c0_i32 = arith.constant 0 : i32
    %c0_i32_0 = arith.constant 0 : i32
    %c0_i32_1 = arith.constant 0 : i32
    return %c0_i32, %c0_i32_0 : i32, i32
  }
  func.func @transform_60(%arg0: i32) -> (i32, i32) {
    %c0_i32 = arith.constant 0 : i32
    %c0_i32_0 = arith.constant 0 : i32
    %c0_i32_1 = arith.constant 0 : i32
    return %c0_i32, %c0_i32_0 : i32, i32
  }
  func.func @transform_61(%arg0: i32) -> (i32, i32, i32) {
    %c0_i32 = arith.constant 0 : i32
    %c0_i32_0 = arith.constant 0 : i32
    %c0_i32_1 = arith.constant 0 : i32
    return %arg0, %c0_i32, %c0_i32_0 : i32, i32, i32
  }
  func.func @transform_62(%arg0: i32) -> (i32, i32, i32) {
    %c0_i32 = arith.constant 0 : i32
    %c0_i32_0 = arith.constant 0 : i32
    %c0_i32_1 = arith.constant 0 : i32
    return %arg0, %c0_i32, %c0_i32_0 : i32, i32, i32
  }
  func.func @transform_63(%arg0: i32) -> (i32, i32, i32) {
    %c0_i32 = arith.constant 0 : i32
    %c0_i32_0 = arith.constant 0 : i32
    %c0_i32_1 = arith.constant 0 : i32
    return %arg0, %c0_i32, %c0_i32_0 : i32, i32, i32
  }
  func.func @transform_64(%arg0: i32) -> (i32, i32, i32) {
    %c0_i32 = arith.constant 0 : i32
    %c0_i32_0 = arith.constant 0 : i32
    %c0_i32_1 = arith.constant 0 : i32
    return %arg0, %c0_i32, %c0_i32_0 : i32, i32, i32
  }
}

</mosaic_0001>

<bundles_post_ra>
// kernel: resnet_backbone.1
= control target key start
LH: loop header
LB: loop body
LE: loop exit
PB: predicated region body
PF: predicated region fallthrough
CT: control target
= control target key end

     0   :  { %s24179_s6 = smov 1   ;;  %s24180_s10 = smov 2   ;;  %s26949_s0 = inlined_call_operand.smem [shape: u32[65], index: -1, kind: input, shape index: {}] }
   0x1   :  { %s24267_s5 = sld [smem:[%s26949_s0]]   ;;  %s24181_s14 = smov 3  }
   0x2   :  { %s24272_s9 = sld [smem:[%s26949_s0 + %s24179_s6]]   ;;  %s24182_s18 = smov 4  }
   0x3   :  { %s24277_s13 = sld [smem:[%s26949_s0 + %s24180_s10]]   ;;  %s24183_s22 = smov 5  }
   0x4   :  { %s24282_s17 = sld [smem:[%s26949_s0 + %s24181_s14]]   ;;  %s24184_s26 = smov 6  }
   0x5   :  { %s24287_s21 = sld [smem:[%s26949_s0 + %s24182_s18]]   ;;  %s24185_s30 = smov 7  }
   0x6   :  { %s24292_s25 = sld [smem:[%s26949_s0 + %s24183_s22]]   ;;  %s24186_s4 = smov 8  }
   0x7   :  { %27023 = sst [smem:[#allocation27_spill]] %s24267_s5  ;;  %s24187_s10 = smov 9  }
   0x8   :  { %27024 = sst [smem:[#allocation28_spill]] %s24272_s9  ;;  %s24188_s15 = smov 10  }
   0x9   :  { %27025 = sst [smem:[#allocation29_spill]] %s24277_s13  ;;  %s24189_s20 = smov 11  }
   0xa   :  { %s24297_s29 = sld [smem:[%s26949_s0 + %s24184_s26]]   ;;  %s24190_s26 = smov 12  }
   0xb   :  { %s24302_s3 = sld [smem:[%s26949_s0 + %s24185_s30]]   ;;  %s24191_s1 = smov 13  }
   0xc   :  { %s24307_s8 = sld [smem:[%s26949_s0 + %s24186_s4]]   ;;  %s24192_s7 = smov 14  }
   0xd   :  { %s24312_s14 = sld [smem:[%s26949_s0 + %s24187_s10]]   ;;  %s24194_s22 = smov 16  }
   0xe   :  { %s24317_s19 = sld [smem:[%s26949_s0 + %s24188_s15]]   ;;  %s24193_s15 = smov 15  }
   0xf   :  { %s24322_s24 = sld [smem:[%s26949_s0 + %s24189_s20]]   ;;  %s24195_s28 = smov 17  }
  0x10   :  { %27026 = sst [smem:[#allocation30_spill]] %s24297_s29 }
  0x11   :  { %27027 = sst [smem:[#allocation31_spill]] %s24302_s3 }
  0x12   :  { %27028 = sst [smem:[#allocation32_spill]] %s24307_s8 }
  0x13   :  { %27029 = sst [smem:[#allocation33_spill]] %s24312_s14 }
  0x14   :  { %27030 = sst [smem:[#allocation34_spill]] %s24317_s19 }
  0x15   :  { %27031 = sst [smem:[#allocation35_spill]] %s24322_s24 }
  0x16   :  { %s24327_s30 = sld [smem:[%s26949_s0 + %s24190_s26]]  }
  0x17   :  { %s24332_s6 = sld [smem:[%s26949_s0 + %s24191_s1]]  }
  0x18   :  { %s24337_s12 = sld [smem:[%s26949_s0 + %s24192_s7]]   ;;  %s24196_s7 = smov 18  }
  0x19   :  { %s24342_s20 = sld [smem:[%s26949_s0 + %s24193_s15]]   ;;  %s24197_s15 = smov 19  }
  0x1a   :  { %s24347_s27 = sld [smem:[%s26949_s0 + %s24194_s22]]   ;;  %s24198_s22 = smov 20  }
  0x1b   :  { %s24352_s4 = sld [smem:[%s26949_s0 + %s24195_s28]]   ;;  %s24199_s28 = smov 21  }
  0x1c   :  { %27032 = sst [smem:[#allocation36_spill]] %s24327_s30 }
  0x1d   :  { %27033 = sst [smem:[#allocation37_spill]] %s24332_s6 }
  0x1e   :  { %27034 = sst [smem:[#allocation38_spill]] %s24337_s12 }
  0x1f   :  { %27035 = sst [smem:[#allocation39_spill]] %s24342_s20 }
  0x20   :  { %27036 = sst [smem:[#allocation40_spill]] %s24347_s27 }
  0x21   :  { %27037 = sst [smem:[#allocation41_spill]] %s24352_s4 }
  0x22   :  { %s24357_s12 = sld [smem:[%s26949_s0 + %s24196_s7]]   ;;  %s24200_s7 = smov 22  }
  0x23   :  { %s24362_s20 = sld [smem:[%s26949_s0 + %s24197_s15]]   ;;  %s24201_s15 = smov 23  }
  0x24   :  { %s24367_s27 = sld [smem:[%s26949_s0 + %s24198_s22]]   ;;  %s24202_s22 = smov 24  }
  0x25   :  { %s24372_s4 = sld [smem:[%s26949_s0 + %s24199_s28]]   ;;  %s24203_s28 = smov 25  }
  0x28   :  { %27038 = sst [smem:[#allocation42_spill]] %s24357_s12 }
  0x29   :  { %27039 = sst [smem:[#allocation43_spill]] %s24362_s20 }
  0x2a   :  { %27040 = sst [smem:[#allocation44_spill]] %s24367_s27 }
  0x2b   :  { %27041 = sst [smem:[#allocation45_spill]] %s24372_s4 }
  0x2c   :  { %s24377_s12 = sld [smem:[%s26949_s0 + %s24200_s7]]   ;;  %s24204_s7 = smov 26  }
  0x2d   :  { %s24382_s20 = sld [smem:[%s26949_s0 + %s24201_s15]]   ;;  %s24205_s15 = smov 27  }
  0x2e   :  { %s24387_s27 = sld [smem:[%s26949_s0 + %s24202_s22]]   ;;  %s24206_s22 = smov 28  }
  0x2f   :  { %s24392_s4 = sld [smem:[%s26949_s0 + %s24203_s28]]   ;;  %s24207_s28 = smov 29  }
  0x32   :  { %27042 = sst [smem:[#allocation46_spill]] %s24377_s12 }
  0x33   :  { %27043 = sst [smem:[#allocation47_spill]] %s24382_s20 }
  0x34   :  { %27044 = sst [smem:[#allocation48_spill]] %s24387_s27 }
  0x35   :  { %27045 = sst [smem:[#allocation49_spill]] %s24392_s4 }
  0x36   :  { %s24397_s12 = sld [smem:[%s26949_s0 + %s24204_s7]]   ;;  %s24208_s7 = smov 30  }
  0x37   :  { %s24402_s20 = sld [smem:[%s26949_s0 + %s24205_s15]]   ;;  %s24209_s15 = smov 31  }
  0x38   :  { %s24407_s27 = sld [smem:[%s26949_s0 + %s24206_s22]]   ;;  %s24210_s22 = smov 32  }
  0x39   :  { %s24412_s4 = sld [smem:[%s26949_s0 + %s24207_s28]]   ;;  %s24211_s28 = smov 33  }
  0x3c   :  { %27046 = sst [smem:[#allocation50_spill]] %s24397_s12 }
  0x3d   :  { %27047 = sst [smem:[#allocation51_spill]] %s24402_s20 }
  0x3e   :  { %27048 = sst [smem:[#allocation52_spill]] %s24407_s27 }
  0x3f   :  { %27049 = sst [smem:[#allocation53_spill]] %s24412_s4 }
  0x40   :  { %s24417_s12 = sld [smem:[%s26949_s0 + %s24208_s7]]   ;;  %s24212_s7 = smov 34  }
  0x41   :  { %s24422_s20 = sld [smem:[%s26949_s0 + %s24209_s15]]   ;;  %s24213_s15 = smov 35  }
  0x42   :  { %s24427_s27 = sld [smem:[%s26949_s0 + %s24210_s22]]   ;;  %s24214_s22 = smov 36  }
  0x43   :  { %s24432_s4 = sld [smem:[%s26949_s0 + %s24211_s28]]   ;;  %s24215_s28 = smov 37  }
  0x46   :  { %27050 = sst [smem:[#allocation54_spill]] %s24417_s12 }
  0x47   :  { %27051 = sst [smem:[#allocation55_spill]] %s24422_s20 }
  0x48   :  { %27052 = sst [smem:[#allocation56_spill]] %s24427_s27 }
  0x49   :  { %27053 = sst [smem:[#allocation57_spill]] %s24432_s4 }
  0x4a   :  { %s24437_s12 = sld [smem:[%s26949_s0 + %s24212_s7]]   ;;  %s24216_s7 = smov 38  }
  0x4b   :  { %s24442_s20 = sld [smem:[%s26949_s0 + %s24213_s15]]   ;;  %s24217_s15 = smov 39  }
  0x4c   :  { %s24447_s27 = sld [smem:[%s26949_s0 + %s24214_s22]]   ;;  %s24218_s22 = smov 40  }
  0x4d   :  { %s24452_s4 = sld [smem:[%s26949_s0 + %s24215_s28]]   ;;  %s24219_s28 = smov 41  }
  0x50   :  { %27054 = sst [smem:[#allocation58_spill]] %s24437_s12 }
  0x51   :  { %27055 = sst [smem:[#allocation59_spill]] %s24442_s20 }
  0x52   :  { %27056 = sst [smem:[#allocation60_spill]] %s24447_s27 }
  0x53   :  { %27057 = sst [smem:[#allocation61_spill]] %s24452_s4 }
  0x54   :  { %s24457_s12 = sld [smem:[%s26949_s0 + %s24216_s7]]   ;;  %s24220_s7 = smov 42  }
  0x55   :  { %s24462_s20 = sld [smem:[%s26949_s0 + %s24217_s15]]   ;;  %s24221_s15 = smov 43  }
  0x56   :  { %s24467_s27 = sld [smem:[%s26949_s0 + %s24218_s22]]   ;;  %s24222_s22 = smov 44  }
  0x57   :  { %s24472_s4 = sld [smem:[%s26949_s0 + %s24219_s28]]   ;;  %s24223_s28 = smov 45  }
  0x58   :  { %s24482_s30 = sld [smem:[%s26949_s0 + %s24221_s15]]   ;;  %s24225_s15 = smov 47  }
  0x5a   :  { %27058 = sst [smem:[#allocation62_spill]] %s24457_s12 }
  0x5b   :  { %s24477_s12 = sld [smem:[%s26949_s0 + %s24220_s7]]   ;;  %s24224_s7 = smov 46  }
  0x5c   :  { %27059 = sst [smem:[#allocation63_spill]] %s24467_s27 }
  0x5d   :  { %27060 = sst [smem:[#allocation64_spill]] %s24472_s4 }
  0x5e   :  { %27062 = sst [smem:[#allocation66_spill]] %s24482_s30 }
  0x5f   :  { %s24487_s27 = sld [smem:[%s26949_s0 + %s24222_s22]]   ;;  %s24226_s22 = smov 48  }
  0x60   :  { %s24492_s4 = sld [smem:[%s26949_s0 + %s24223_s28]]   ;;  %s24227_s28 = smov 49  }
  0x61   :  { %27061 = sst [smem:[#allocation65_spill]] %s24477_s12 }
  0x62   :  { %s24497_s6 = sld [smem:[%s26949_s0 + %s24224_s7]]   ;;  %s24228_s7 = smov 50  }
  0x63   :  { %s24502_s30 = sld [smem:[%s26949_s0 + %s24225_s15]]   ;;  %s24229_s15 = smov 51  }
  0x64   :  { %s24512_s24 = sld [smem:[%s26949_s0 + %s24227_s28]]   ;;  %s24231_s28 = smov 53  }
  0x65   :  { %27063 = sst [smem:[#allocation67_spill]] %s24487_s27 }
  0x66   :  { %27064 = sst [smem:[#allocation68_spill]] %s24492_s4 }
  0x67   :  { %s24507_s27 = sld [smem:[%s26949_s0 + %s24226_s22]]   ;;  %s24230_s22 = smov 52  }
  0x68   :  { %27065 = sst [smem:[#allocation69_spill]] %s24497_s6 }
  0x69   :  { %27066 = sst [smem:[#allocation70_spill]] %s24502_s30 }
  0x6a   :  { %27068 = sst [smem:[#allocation72_spill]] %s24512_s24 }
  0x6b   :  { %s24517_s6 = sld [smem:[%s26949_s0 + %s24228_s7]]   ;;  %s24232_s7 = smov 54  }
  0x6c   :  { %s24522_s30 = sld [smem:[%s26949_s0 + %s24229_s15]]   ;;  %s24233_s15 = smov 55  }
  0x6d   :  { %27067 = sst [smem:[#allocation71_spill]] %s24507_s27 }
  0x6e   :  { %s24527_s14 = sld [smem:[%s26949_s0 + %s24230_s22]]   ;;  %s24234_s22 = smov 56  }
  0x6f   :  { %s24532_s24 = sld [smem:[%s26949_s0 + %s24231_s28]]   ;;  %s24235_s28 = smov 57  }
  0x70   :  { %s24542_s19 = sld [smem:[%s26949_s0 + %s24233_s15]]   ;;  %s24237_s15 = smov 59  }
  0x71   :  { %27069 = sst [smem:[#allocation73_spill]] %s24517_s6 }
  0x72   :  { %s24537_s6 = sld [smem:[%s26949_s0 + %s24232_s7]]   ;;  %s24236_s7 = smov 58  }
  0x73   :  { %s24557_s8 = sld [smem:[%s26949_s0 + %s24236_s7]]   ;;  %s24240_s7 = smov 62  }
  0x74   :  { %27070 = sst [smem:[#allocation74_spill]] %s24527_s14 }
  0x75   :  { %27071 = sst [smem:[#allocation75_spill]] %s24532_s24 }
  0x76   :  { %27073 = sst [smem:[#allocation77_spill]] %s24542_s19 }
  0x77   :  { %s24547_s14 = sld [smem:[%s26949_s0 + %s24234_s22]]   ;;  %s24238_s22 = smov 60  }
  0x78   :  { %27072 = sst [smem:[#allocation76_spill]] %s24537_s6 }
  0x79   :  { %s24552_s24 = sld [smem:[%s26949_s0 + %s24235_s28]]   ;;  %s24239_s28 = smov 61  }
  0x7a   :  { %27075 = sst [smem:[#allocation79_spill]] %s24557_s8 }
  0x7b   :  { %s24562_s19 = sld [smem:[%s26949_s0 + %s24237_s15]]   ;;  %s24241_s15 = smov 63  }
  0x7c   :  { %s24572_s29 = sld [smem:[%s26949_s0 + %s24239_s28]]  }
  0x7d   :  { %27074 = sst [smem:[#allocation78_spill]] %s24547_s14 }
  0x7e   :  { %s24567_s14 = sld [smem:[%s26949_s0 + %s24238_s22]]   ;;  %s24242_s22 = smov 64  }
  0x7f   :  { %s24577_s8 = sld [smem:[%s26949_s0 + %s24240_s7]]  }
  0x80   :  { %s24587_s3 = sld [smem:[%s26949_s0 + %s24242_s22]]  }
  0x81   :  { %27076 = sst [smem:[#allocation80_spill]] %s24562_s19 }
  0x82   :  { %s24582_s19 = sld [smem:[%s26949_s0 + %s24241_s15]]  }
  0x84   :  { %27077 = sst [smem:[#allocation81_spill]] %s24567_s14 }
  0x85   :  { %135 = vsyncpa [#allocation3], 0 }
  0x86   :  { %136 = vsyncpa [#allocation6], 0 }
  0x87   :  { %137 = vsyncpa [#allocation9], 0 }
  0x88   :  { %138 = vsyncpa [#allocation12], 0 }
  0x89   :  { %139 = vsyncpa [#allocation15], 0 }
  0x8a   :  { %140 = vsyncpa [#allocation4], 0 }
  0x8b   :  { %142 = vsyncpa [#allocation4 + $0x1], 0 }
  0x8c   :  { %143 = vsyncpa [#allocation18], 0 }
  0x8d   :  { %145 = vsyncpa [#allocation18 + $0x1], 0  ;;  %s24589_s28 = smov 0   ;;  %s24591_s1 = smov 0  }
  0x8e   :  { %s24593_s2 = smov 0   ;;  %s24595_s7 = smov 0  }
  0x8f LB: > { %s27078_s14 = sld [smem:[#allocation81_spill]]  ;;  %s27079_s9 = sld [smem:[#allocation28_spill]]  ;;  %s24169_s1 = sphi %s24591_s1, %s27170_s1   ;;  %s24165_s28 = sphi %s24589_s28, %s27169_s28   ;;  %s24177_s7 = sphi %s24595_s7, %s27166_s7   ;;  %s24173_s2 = sphi %s24593_s2, %s27168_s2  }
  0x90   : > { %s27080_s6 = sld [smem:[#allocation76_spill]]  ;;  %s27082_s27 = sld [smem:[#allocation71_spill]] }
  0x91   : > { %s27081_s4 = sld [smem:[#allocation68_spill]]  ;;  %s27083_s12 = sld [smem:[#allocation65_spill]] }
  0x92   : > { %27084 = sst [smem:[#allocation82_spill]] %s24165_s28  ;;  %s24610_s0 = sadd.s32 4294967295, %s24177_s7  }
  0x93   : > { %27085 = sst [smem:[#allocation83_spill]] %s24173_s2  ;;  %s26981_s10 = sadd.s32 4294967294, %s24177_s7  }
  0x94   : > { %s24614_s11 = sadd.s32 1, %s24177_s7   ;;  %s1470_s15 = sadd.s32 1, %s24173_s2 }
  0x95   : > { %27086 = sst [smem:[#allocation84_spill]] %s24614_s11  ;;  %s1467_s16 = ssub.s32 %s24177_s7, %s24614_s11 }
  0x96   : > { %p1480_p0 = scmp.ne.s32.totalorder %s24173_s2, %s24169_s1  ;;  %p1468_p1 = scmp.eq.s32.totalorder %s1467_s16, 0 }
  0x97   : > { %p1481_p2 = scmp.eq.s32.totalorder %s24610_s0, 1  ;;  %p1486_p3 = scmp.ne.s32.totalorder %s24169_s1, %s24165_s28 }
  0x98   : > { %p1487_p4 = scmp.eq.s32.totalorder %s26981_s10, 1  ;;  %p18774_p7 = scmp.ge.s32.totalorder %s24177_s7, 1 }
  0x99   : > { %s24627_s18 = scalar_select %p1468_p1, %s24173_s2, %s1470_s15  }
  0x9a   : > { %p24629_p5 = por %p1481_p2, %p1480_p0  ;;  %p24633_p6 = por %p1487_p4, %p1486_p3 }
  0x9b   : > { %27087 = sst [smem:[#allocation85_spill]] %s24627_s18  ;;  %p1546_p8 = scmp.lt.s32.totalorder %s24177_s7, 3 }
  0x9c   : > { %s27088_s22 = scalar_select %p24629_p5, 1, 0 }
  0x9d   : > { %s27089_s23 = scalar_select %p24633_p6, 1, 0 }
  0x9e   : > { %p26987_p9 = scmp.eq.s32.totalorder %s24610_s0, 0  ;;  %p24640_p10 = pnand %p18774_p7, %p1546_p8 }
  0x9f   : > { %27090 = sst [smem:[#allocation86_spill]] %s27089_s23  ;;  %s24243_s15 = smov [#allocation5]  }
  0xa0   : > { %s27091_s26 = scalar_select %p24640_p10, 1, 0 }
  0xa1   : > { %s1690_s16 = sshll.u32 %s24243_s15, 4  ;;  %p23044_p11 = pneg %p24640_p10  ;;  %s1691_s16 = int_to_ptr.vmem [resolvable:$true] %s1690_s16 }
  0xa2   : > { %s24244_s10 = smov [#allocation8]   ;;  %s24245_s11 = smov [#allocation11]  }
  0xa3   : > { %s1724_s18 = sshll.u32 %s24244_s10, 4  ;;  %p24648_p12 = pnand %p26987_p9, %p23044_p11  ;;  %s24652_s18 = int_to_ptr.vmem [resolvable:$true] %s1724_s18 }
  0xa4   : > { %s1758_s23 = sshll.u32 %s24245_s11, 4  ;;  %s23811_s28 = scalar_lea.hbm %s27083_s12, 16  ;;  %s24654_s23 = int_to_ptr.vmem [resolvable:$true] %s1758_s23 }
  0xa5   : > { %p23812_p13 = scmp.ne.s32.totalorder %s27083_s12, %s23811_s28  ;;  %p24660_p0 = pneg %p24648_p12 }
  0xa6   : > { %p23818_p3 = scmp.lt.u32.totalorder %s23811_s28, %s27083_s12 }
  0xa7   : > { %p23814_p1 = pnand %p24660_p0, %p23812_p13 }
  0xa9   : > { %p23815_p2 = pneg %p23814_p1 }
  0xab   : > { %p23820_p4 = pnand %p23818_p3, %p23815_p2 }
  0xad   : > { %23823 = shalt.err (!%p23820_p4)
}
  0xae   : > { %s23824_s10 = scalar_lea.vmem %s1691_s16, 16  ;;  %s23831_s11 = scalar_lea.vmem %s1691_s16, 32 }
  0xaf   : > { %p23825_p7 = scmp.ne.s32.totalorder %s1691_s16, %s23824_s10  ;;  %p23832_p9 = scmp.lt.s32.totalorder %s1691_s16, %s1691_s16 }
  0xb0   : > { %p23833_p6 = scmp.lt.s32.totalorder %s23831_s11, %s23824_s10 }
  0xb1   : > { %p23827_p8 = pnand %p23825_p7, %p24660_p0 }
  0xb2   : > { %p23834_p5 = por %p23833_p6, %p23832_p9 }
  0xb3   : > { %p23828_p11 = pneg %p23827_p8 }
  0xb5   : > { %p23835_p10 = pnand %p23834_p5, %p23828_p11 }
  0xb7   : > { %23838 = shalt.err (!%p23835_p10)
}
  0xb8   : > { %23050 = dma.hbm_to_vmem [thread:$0]  (!%p24648_p12), %s27083_s12, 16, %s1691_s16, [#allocation6]  }
  0xb9   : > { %s23839_s28 = scalar_lea.hbm %s27082_s27, 16 }
  0xba   : > { %p23840_p13 = scmp.ne.s32.totalorder %s27082_s27, %s23839_s28  ;;  %p23846_p3 = scmp.lt.u32.totalorder %s23839_s28, %s27082_s27 }
  0xbc   : > { %p23842_p1 = pnand %p23840_p13, %p24660_p0 }
  0xbe   : > { %p23843_p2 = pneg %p23842_p1 }
  0xc0   : > { %p23848_p4 = pnand %p23846_p3, %p23843_p2 }
  0xc2   : > { %23851 = shalt.err (!%p23848_p4)
}
  0xc3   : > { %s23852_s10 = scalar_lea.vmem %s24652_s18, 16  ;;  %s23859_s11 = scalar_lea.vmem %s24652_s18, 32 }
  0xc4   : > { %p23853_p5 = scmp.ne.s32.totalorder %s24652_s18, %s23852_s10  ;;  %p23860_p10 = scmp.lt.s32.totalorder %s24652_s18, %s24652_s18 }
  0xc5   : > { %p23861_p7 = scmp.lt.s32.totalorder %s23859_s11, %s23852_s10 }
  0xc6   : > { %p23855_p6 = pnand %p23853_p5, %p24660_p0 }
  0xc7   : > { %p23862_p8 = por %p23861_p7, %p23860_p10 }
  0xc8   : > { %p23856_p9 = pneg %p23855_p6 }
  0xca   : > { %p23863_p11 = pnand %p23862_p8, %p23856_p9 }
  0xcc   : > { %23866 = shalt.err (!%p23863_p11)
}
  0xcd   : > { %23056 = dma.hbm_to_vmem [thread:$0]  (!%p24648_p12), %s27082_s27, 16, %s24652_s18, [#allocation9]  }
  0xce   : > { %s23867_s16 = scalar_lea.hbm %s27080_s6, 16 }
  0xcf   : > { %p23868_p13 = scmp.ne.s32.totalorder %s27080_s6, %s23867_s16  ;;  %p23874_p3 = scmp.lt.u32.totalorder %s23867_s16, %s27080_s6 }
  0xd1   : > { %p23870_p1 = pnand %p23868_p13, %p24660_p0 }
  0xd3   : > { %p23871_p2 = pneg %p23870_p1 }
  0xd5   : > { %p23876_p4 = pnand %p23874_p3, %p23871_p2 }
  0xd7   : > { %23879 = shalt.err (!%p23876_p4)
}
  0xd8   : > { %s23880_s28 = scalar_lea.vmem %s24654_s23, 16  ;;  %s23887_s10 = scalar_lea.vmem %s24654_s23, 32 }
  0xd9   : > { %p23881_p5 = scmp.ne.s32.totalorder %s24654_s23, %s23880_s28  ;;  %p23888_p10 = scmp.lt.s32.totalorder %s24654_s23, %s24654_s23 }
  0xda   : > { %p23889_p7 = scmp.lt.s32.totalorder %s23887_s10, %s23880_s28 }
  0xdb   : > { %p23883_p6 = pnand %p23881_p5, %p24660_p0 }
  0xdc   : > { %p23890_p8 = por %p23889_p7, %p23888_p10 }
  0xdd   : > { %p23884_p9 = pneg %p23883_p6 }
  0xdf   : > { %p23891_p11 = pnand %p23890_p8, %p23884_p9 }
  0xe1   : > { %23894 = shalt.err (!%p23891_p11)
}
  0xe2   : > { %23062 = dma.hbm_to_vmem [thread:$0]  (!%p24648_p12), %s27080_s6, 16, %s24654_s23, [#allocation12]  }
  0xe3   : > { %s24246_s18 = smov [#allocation2]   ;;  %s24247_s16 = smov [#allocation7]  }
  0xe4   : > { %s1673_s11 = sshll.u32 %s24246_s18, 4  ;;  %s1707_s12 = sshll.u32 %s24247_s16, 4  ;;  %s1674_s11 = int_to_ptr.vmem [resolvable:$true] %s1673_s11  ;;  %s1708_s12 = int_to_ptr.vmem [resolvable:$true] %s1707_s12 }
  0xe5   : > { %s23895_s27 = scalar_lea.hbm %s24462_s20, 16 }
  0xe6   : > { %p23896_p13 = scmp.ne.s32.totalorder %s24462_s20, %s23895_s27  ;;  %p23902_p3 = scmp.lt.u32.totalorder %s23895_s27, %s24462_s20 }
  0xe8   : > { %p23898_p1 = pnand %p23896_p13, %p24660_p0 }
  0xea   : > { %p23899_p2 = pneg %p23898_p1 }
  0xec   : > { %p23904_p4 = pnand %p23902_p3, %p23899_p2 }
  0xee   : > { %23907 = shalt.err (!%p23904_p4)
}
  0xef   : > { %s23908_s28 = scalar_lea.vmem %s1674_s11, 16  ;;  %s23915_s23 = scalar_lea.vmem %s1674_s11, 32 }
  0xf0   : > { %p23909_p5 = scmp.ne.s32.totalorder %s1674_s11, %s23908_s28  ;;  %p23916_p10 = scmp.lt.s32.totalorder %s1674_s11, %s1674_s11 }
  0xf1   : > { %p23917_p7 = scmp.lt.s32.totalorder %s23915_s23, %s23908_s28 }
  0xf2   : > { %p23911_p6 = pnand %p23909_p5, %p24660_p0 }
  0xf3   : > { %p23918_p8 = por %p23917_p7, %p23916_p10 }
  0xf4   : > { %p23912_p9 = pneg %p23911_p6 }
  0xf6   : > { %p23919_p11 = pnand %p23918_p8, %p23912_p9 }
  0xf8   : > { %23922 = shalt.err (!%p23919_p11)
}
  0xf9   : > { %23047 = dma.hbm_to_vmem [thread:$0]  (!%p24648_p12), %s24462_s20, 16, %s1674_s11, [#allocation3]  }
  0xfa   : > { %s23923_s27 = scalar_lea.hbm %s27081_s4, 16 }
  0xfb   : > { %p23924_p13 = scmp.ne.s32.totalorder %s27081_s4, %s23923_s27  ;;  %p23930_p3 = scmp.lt.u32.totalorder %s23923_s27, %s27081_s4 }
  0xfd   : > { %p23926_p1 = pnand %p23924_p13, %p24660_p0 }
  0xff   : > { %p23927_p2 = pneg %p23926_p1 }
 0x101   : > { %p23932_p4 = pnand %p23930_p3, %p23927_p2 }
 0x103   : > { %23935 = shalt.err (!%p23932_p4)
}
 0x104   : > { %s23936_s10 = scalar_lea.vmem %s1708_s12, 16  ;;  %s23943_s18 = scalar_lea.vmem %s1708_s12, 32 }
 0x105   : > { %p23937_p5 = scmp.ne.s32.totalorder %s1708_s12, %s23936_s10  ;;  %p23944_p10 = scmp.lt.s32.totalorder %s1708_s12, %s1708_s12 }
 0x106   : > { %p23945_p7 = scmp.lt.s32.totalorder %s23943_s18, %s23936_s10 }
 0x107   : > { %p23939_p6 = pnand %p23937_p5, %p24660_p0 }
 0x108   : > { %p23946_p8 = por %p23945_p7, %p23944_p10 }
 0x109   : > { %p23940_p9 = pneg %p23939_p6 }
 0x10b   : > { %p23947_p11 = pnand %p23946_p8, %p23940_p9 }
 0x10d   : > { %23950 = shalt.err (!%p23947_p11)
}
 0x10e   : > { %23053 = dma.hbm_to_vmem [thread:$0]  (!%p24648_p12), %s27081_s4, 16, %s1708_s12, [#allocation6]  }
 0x10f   : > { %s24248_s11 = smov [#allocation10]   ;;  %s24249_s28 = smov [#allocation13]  }
 0x110   : > { %s1741_s16 = sshll.u32 %s24248_s11, 4  ;;  %s1775_s23 = sshll.u32 %s24249_s28, 4  ;;  %s1742_s16 = int_to_ptr.vmem [resolvable:$true] %s1741_s16  ;;  %s1776_s23 = int_to_ptr.vmem [resolvable:$true] %s1775_s23 }
 0x111   : > { %s23951_s27 = scalar_lea.hbm %s24522_s30, 16 }
 0x112   : > { %p23952_p13 = scmp.ne.s32.totalorder %s24522_s30, %s23951_s27  ;;  %p23958_p3 = scmp.lt.u32.totalorder %s23951_s27, %s24522_s30 }
 0x114   : > { %p23954_p1 = pnand %p23952_p13, %p24660_p0 }
 0x116   : > { %p23955_p2 = pneg %p23954_p1 }
 0x118   : > { %p23960_p4 = pnand %p23958_p3, %p23955_p2 }
 0x11a   : > { %23963 = shalt.err (!%p23960_p4)
}
 0x11b   : > { %s23964_s10 = scalar_lea.vmem %s1742_s16, 16  ;;  %s23971_s12 = scalar_lea.vmem %s1742_s16, 32 }
 0x11c   : > { %p23965_p5 = scmp.ne.s32.totalorder %s1742_s16, %s23964_s10  ;;  %p23972_p10 = scmp.lt.s32.totalorder %s1742_s16, %s1742_s16 }
 0x11d   : > { %p23973_p7 = scmp.lt.s32.totalorder %s23971_s12, %s23964_s10 }
 0x11e   : > { %p23967_p6 = pnand %p23965_p5, %p24660_p0 }
 0x11f   : > { %p23974_p8 = por %p23973_p7, %p23972_p10 }
 0x120   : > { %p23968_p9 = pneg %p23967_p6 }
 0x122   : > { %p23975_p11 = pnand %p23974_p8, %p23968_p9 }
 0x124   : > { %23978 = shalt.err (!%p23975_p11)
}
 0x125   : > { %23059 = dma.hbm_to_vmem [thread:$0]  (!%p24648_p12), %s24522_s30, 16, %s1742_s16, [#allocation9]  }
 0x126   : > { %s23979_s18 = scalar_lea.hbm %s24552_s24, 16 }
 0x127   : > { %p23980_p13 = scmp.ne.s32.totalorder %s24552_s24, %s23979_s18  ;;  %p23986_p3 = scmp.lt.u32.totalorder %s23979_s18, %s24552_s24 }
 0x129   : > { %p23982_p1 = pnand %p23980_p13, %p24660_p0 }
 0x12b   : > { %p23983_p2 = pneg %p23982_p1 }
 0x12d   : > { %p23988_p4 = pnand %p23986_p3, %p23983_p2 }
 0x12f   : > { %23991 = shalt.err (!%p23988_p4)
}
 0x130   : > { %s23992_s11 = scalar_lea.vmem %s1776_s23, 16  ;;  %s23999_s28 = scalar_lea.vmem %s1776_s23, 32 }
 0x131   : > { %p23993_p5 = scmp.ne.s32.totalorder %s1776_s23, %s23992_s11  ;;  %p24000_p10 = scmp.lt.s32.totalorder %s1776_s23, %s1776_s23 }
 0x132   : > { %p24001_p7 = scmp.lt.s32.totalorder %s23999_s28, %s23992_s11 }
 0x133   : > { %p23995_p6 = pnand %p23993_p5, %p24660_p0 }
 0x134   : > { %p24002_p8 = por %p24001_p7, %p24000_p10 }
 0x135   : > { %p23996_p9 = pneg %p23995_p6 }
 0x137   : > { %p24003_p11 = pnand %p24002_p8, %p23996_p9 }
 0x139   : > { %24006 = shalt.err (!%p24003_p11)
}
 0x13a   : > { %23065 = dma.hbm_to_vmem [thread:$0]  (!%p24648_p12), %s24552_s24, 16, %s1776_s23, [#allocation12]  }
 0x13b   : > { %s24250_s16 = smov [#allocation14]   ;;  %s24007_s10 = scalar_lea.hbm %s27078_s14, 16 }
 0x13c   : > { %s1792_s27 = sshll.u32 %s24250_s16, 4  ;;  %p24008_p13 = scmp.ne.s32.totalorder %s27078_s14, %s24007_s10  ;;  %s1793_s27 = int_to_ptr.vmem [resolvable:$true] %s1792_s27 }
 0x13d   : > { %p24014_p3 = scmp.lt.u32.totalorder %s24007_s10, %s27078_s14 }
 0x13e   : > { %p24010_p1 = pnand %p24008_p13, %p24660_p0 }
 0x140   : > { %p24011_p2 = pneg %p24010_p1 }
 0x142   : > { %p24016_p4 = pnand %p24014_p3, %p24011_p2 }
 0x144   : > { %24019 = shalt.err (!%p24016_p4)
}
 0x145   : > { %s24020_s12 = scalar_lea.vmem %s1793_s27, 16  ;;  %s24027_s18 = scalar_lea.vmem %s1793_s27, 32 }
 0x146   : > { %p24021_p5 = scmp.ne.s32.totalorder %s1793_s27, %s24020_s12  ;;  %p24028_p10 = scmp.lt.s32.totalorder %s1793_s27, %s1793_s27 }
 0x147   : > { %p24029_p7 = scmp.lt.s32.totalorder %s24027_s18, %s24020_s12 }
 0x148   : > { %p24023_p6 = pnand %p24021_p5, %p24660_p0 }
 0x149   : > { %p24030_p8 = por %p24029_p7, %p24028_p10 }
 0x14a   : > { %p24024_p9 = pneg %p24023_p6 }
 0x14c   : > { %p24031_p11 = pnand %p24030_p8, %p24024_p9 }
 0x14e   : > { %24034 = shalt.err (!%p24031_p11)
}
 0x14f   : > { %23068 = dma.hbm_to_vmem [thread:$0]  (!%p24648_p12), %s27078_s14, 16, %s1793_s27, [#allocation15]  }
 0x150   : > { %p27094_p13 = scmp.ne.s32.totalorder %s27091_s26, 0 }
 0x151   : > { %p27095_p1 = scmp.eq.s32.totalorder (!%p27094_p13), %s24610_s0, 0 }
 0x152   : > { %1813 = sbr.rel (%p27094_p13) target bundleno = 9838 (0x266e), region = 264 }
 0x159   : > { %24136 = dma.done.wait (%p27095_p1), [#allocation3], 16   ;;  %p27096_p2 = pmov %p27095_p1 }
 0x15a   : > { %p27097_p0 = pmov %p27095_p1 }
 0x15b   : > { %24138 = vsyncadd (%p27096_p2), [#allocation3], 4294967280 }
 0x15c   : > { %24140 = dma.done.wait (%p27097_p0), [#allocation6], 32   ;;  %p27098_p3 = pmov %p27097_p0 }
 0x15d   : > { %p27099_p4 = pmov %p27097_p0 }
 0x15e   : > { %24142 = vsyncadd (%p27098_p3), [#allocation6], 4294967264 }
 0x15f   : > { %24144 = dma.done.wait (%p27099_p4), [#allocation9], 32   ;;  %p27100_p12 = pmov %p27097_p0 }
 0x160   : > { %p27101_p5 = pmov %p27097_p0 }
 0x161   : > { %24146 = vsyncadd (%p27100_p12), [#allocation9], 4294967264 }
 0x162   : > { %24148 = dma.done.wait (%p27101_p5), [#allocation12], 32   ;;  %p27102_p6 = pmov %p27097_p0 }
 0x163   : > { %p27103_p9 = pmov %p27097_p0 }
 0x164   : > { %24150 = vsyncadd (%p27102_p6), [#allocation12], 4294967264 }
 0x165   : > { %24152 = dma.done.wait (%p27103_p9), [#allocation15], 16   ;;  %p27104_p10 = pmov %p27097_p0 }
 0x166   : > { %s27105_s5 = sld [smem:[#allocation27_spill]]  ;;  %v24251_v0 = vmov 0   ;;  %p2001_p7 = scmp.lt.s32.totalorder %s24610_s0, 1  ;;  %v23205_v1 = vld [vmem:[%s27079_s9] sm:$0xff]   ;;  %v23206_v2 = vld [vmem:[%s27079_s9 + $0x8] sm:$0xff]   ;;  %v23207_v3 = vld [vmem:[%s27079_s9 + $0x10] sm:$0xff]  }
 0x167   : > { %24154 = vsyncadd (%p27104_p10), [#allocation15], 4294967280  ;;  %2324 = vmatprep.subr.bf16.mxu0 %v24251_v0  ;;  %2965 = vmatprep.subr.bf16.mxu1 %v24251_v0  ;;  %v23208_v4 = vld [vmem:[%s27079_s9 + $0x18] sm:$0xff]   ;;  %vm2275_vm0 = vcmask 261120   ;;  %v23209_v6 = vld [vmem:[%s27079_s9 + $0x20] sm:$0xff]   ;;  %s27106_s13 = sld [smem:[#allocation29_spill]] }
 0x168   : > { %s24781_s2 = scalar_select %p2001_p7, %s24610_s0, 1  ;;  %2325 = vmatpush1.bf16.msra.mxu0 %v23205_v1  ;;  %v23210_v7 = vld [vmem:[%s27079_s9 + $0x28] sm:$0xff]   ;;  %v23211_v8 = vld [vmem:[%s27079_s9 + $0x30] sm:$0xff]   ;;  %v23212_v9 = vld [vmem:[%s27079_s9 + $0x38] sm:$0xff]   ;;  %vm3606_vm1 = vcmask 523264   ;;  %vm4087_vm2 = vcmask 1043456  }
 0x169   : > { %2326 = vmatprep.subr.bf16.mxu0 %v24251_v0  ;;  %v23213_v10 = vld [vmem:[%s27079_s9 + $0x40] sm:$0xff]   ;;  %v23214_v11 = vld [vmem:[%s27079_s9 + $0x48] sm:$0xff]   ;;  %vm4074_vm3 = vcmask 64512   ;;  %s27107_s23 = sld [smem:[#allocation31_spill]]  ;;  %s27108_s11 = sld [smem:[#allocation30_spill]]  ;;  %vm24253_vm4 = vmmov 0  }
 0x16a   : > { %s19875_s26 = sshll.u32 %s24781_s2, 8  ;;  %v23265_v47 = vld [vmem:[%s24282_s17 + $0x4] ss:$8 sps:$4 sm:$0xff]   ;;  %s27109_s28 = sld [smem:[#allocation32_spill]]  ;;  %vm10345_vm5 = vcmask 130048   ;;  %vm15148_vm6 = vcmask 257024  }
 0x16b   : > { %2997 = vmatprep.mubr.bf16.mxu1 %v23265_v47  ;;  %s27111_s27 = sld [smem:[#allocation34_spill]]  ;;  %s27112_s10 = sld [smem:[#allocation33_spill]] }
 0x16c   : > { %2327 = vmatpush1.bf16.msra.mxu0 %v23206_v2  ;;  %s24789_s15 = scalar_lea.vmem %s27105_s5, %s19875_s26  ;;  %s27113_s12 = sld [smem:[#allocation35_spill]] }
 0x16d   : > { %2328 = vmatprep.subr.bf16.mxu0 %v24251_v0  ;;  %v23217_v5 = vld [vmem:[%s24789_s15 + $0x4] ss:$8 sps:$4 sm:$0xff]   ;;  %v23215_v12 = vld [vmem:[%s24789_s15] ss:$8 sps:$4 sm:$0xff]   ;;  %v23218_v13 = vld [vmem:[%s24789_s15 + $0x14] ss:$8 sps:$4 sm:$0xff]  }
 0x16e   : > { %18842 = vmatprep.mubr.msk.bf16.mxu0 %vm2275_vm0, %v23217_v5  ;;  %v23220_v14 = vld [vmem:[%s24789_s15 + $0x10] ss:$8 sps:$4 sm:$0xff]   ;;  %v23221_v15 = vld [vmem:[%s24789_s15 + $0x24] ss:$8 sps:$4 sm:$0xff]   ;;  %v23223_v16 = vld [vmem:[%s24789_s15 + $0x20] ss:$8 sps:$4 sm:$0xff]  }
 0x16f   : > { %v23224_v17 = vld [vmem:[%s24789_s15 + $0x34] ss:$8 sps:$4 sm:$0xff]   ;;  %v23226_v18 = vld [vmem:[%s24789_s15 + $0x30] ss:$8 sps:$4 sm:$0xff]   ;;  %v23227_v19 = vld [vmem:[%s24789_s15 + $0x44] ss:$8 sps:$4 sm:$0xff]  }
 0x170   : > { %2329 = vmatpush1.bf16.msra.mxu0 %v23207_v3  ;;  %v23229_v20 = vld [vmem:[%s24789_s15 + $0x40] ss:$8 sps:$4 sm:$0xff]   ;;  %v23230_v21 = vld [vmem:[%s24789_s15 + $0x54] ss:$8 sps:$4 sm:$0xff]   ;;  %v23232_v22 = vld [vmem:[%s24789_s15 + $0x50] ss:$8 sps:$4 sm:$0xff]   ;;  %s27110_s16 = smov %s27109_s28 }
 0x171   : > { %2330 = vmatprep.subr.bf16.mxu0 %v24251_v0  ;;  %v23233_v23 = vld [vmem:[%s24789_s15 + $0x64] ss:$8 sps:$4 sm:$0xff]   ;;  %v23235_v24 = vld [vmem:[%s24789_s15 + $0x60] ss:$8 sps:$4 sm:$0xff]   ;;  %v23236_v25 = vld [vmem:[%s24789_s15 + $0x74] ss:$8 sps:$4 sm:$0xff]  }
 0x172   : > { %v23238_v26 = vld [vmem:[%s24789_s15 + $0x70] ss:$8 sps:$4 sm:$0xff]   ;;  %v23239_v27 = vld [vmem:[%s24789_s15 + $0x84] ss:$8 sps:$4 sm:$0xff]   ;;  %v23241_v28 = vld [vmem:[%s24789_s15 + $0x80] ss:$8 sps:$4 sm:$0xff]  }
 0x173   : > { %v23242_v29 = vld [vmem:[%s24789_s15 + $0x94] ss:$8 sps:$4 sm:$0xff]   ;;  %v23244_v30 = vld [vmem:[%s24789_s15 + $0x90] ss:$8 sps:$4 sm:$0xff]   ;;  %v23245_v31 = vld [vmem:[%s24789_s15 + $0xa4] ss:$8 sps:$4 sm:$0xff]  }
 0x174   : > { %2331 = vmatpush1.bf16.msra.mxu0 %v23208_v4  ;;  %v23247_v32 = vld [vmem:[%s24789_s15 + $0xa0] ss:$8 sps:$4 sm:$0xff]   ;;  %v23248_v33 = vld [vmem:[%s24789_s15 + $0xb4] ss:$8 sps:$4 sm:$0xff]   ;;  %v23250_v34 = vld [vmem:[%s24789_s15 + $0xb0] ss:$8 sps:$4 sm:$0xff]  }
 0x175   : > { %2332 = vmatprep.subr.bf16.mxu0 %v24251_v0  ;;  %v23251_v35 = vld [vmem:[%s24789_s15 + $0xc4] ss:$8 sps:$4 sm:$0xff]   ;;  %v23253_v36 = vld [vmem:[%s24789_s15 + $0xc0] ss:$8 sps:$4 sm:$0xff]   ;;  %v23254_v37 = vld [vmem:[%s24789_s15 + $0xd4] ss:$8 sps:$4 sm:$0xff]  }
 0x176   : > { %v23256_v38 = vld [vmem:[%s24789_s15 + $0xd0] ss:$8 sps:$4 sm:$0xff]   ;;  %v23257_v39 = vld [vmem:[%s24789_s15 + $0xe4] ss:$8 sps:$4 sm:$0xff]   ;;  %v23259_v40 = vld [vmem:[%s24789_s15 + $0xe0] ss:$8 sps:$4 sm:$0xff]  }
 0x177   : > { %v23260_v41 = vld [vmem:[%s24789_s15 + $0xf4] ss:$8 sps:$4 sm:$0xff]   ;;  %v23262_v42 = vld [vmem:[%s24789_s15 + $0xf0] ss:$8 sps:$4 sm:$0xff]   ;;  %v24854_v43 = vld [vmem:[%s27106_s13] ss:$0 sm:$0xff] }
 0x178   : > { %2333 = vmatpush1.bf16.msra.mxu0 %v23209_v6  ;;  %s27114_s18 = sld [smem:[#allocation37_spill]]  ;;  %s27115_s26 = sld [smem:[#allocation36_spill]] }
 0x179   : > { %2334 = vmatprep.subr.bf16.mxu0 %v24251_v0  ;;  %s27116_s15 = sld [smem:[#allocation38_spill]]  ;;  %s27130_s5 = sld [smem:[#allocation49_spill]] }
 0x17a   : > { %s27140_s6 = sld [smem:[#allocation56_spill]]  ;;  %s27152_s9 = sld [smem:[#allocation70_spill]] }
 0x17b   : > { %p27161_p11 = scmp.ne.s32.totalorder %s27088_s22, 0  ;;  %s24254_s14 = smov [#allocation17]  }
 0x17c   : > { %2335 = vmatpush1.bf16.msra.mxu0 %v23210_v7 }
 0x17d   : > { %2336 = vmatprep.subr.bf16.mxu0 %v24251_v0 }
 0x180   : > { %2337 = vmatpush1.bf16.msra.mxu0 %v23211_v8 }
 0x181   : > { %2338 = vmatprep.subr.bf16.mxu0 %v24251_v0 }
 0x184   : > { %2339 = vmatpush1.bf16.msra.mxu0 %v23212_v9 }
 0x185   : > { %2340 = vmatprep.subr.bf16.mxu0 %v24251_v0 }
 0x188   : > { %2341 = vmatpush1.bf16.msra.mxu0 %v23213_v10 }
 0x189   : > { %2342 = vmatprep.subr.bf16.mxu0 %v24251_v0 }
 0x18c   : > { %2343 = vmatpush1.bf16.msra.mxu0 %v23214_v11 }
 0x18f   : > { %2357 = vmatmul.mubr.bf16.vlgmr.msra.gmra.mrb[0].mxu0 %v23215_v12 }
 0x190   : > { %18843 = vmatprep.mubr.msk.bf16.mxu0 %vm2275_vm0, %v23218_v13 }
 0x197   : > { %2365 = vmatmul.mubr.bf16.gmra.mrb[4].mxu0 %v23220_v14 }
 0x198   : > { %18844 = vmatprep.mubr.msk.bf16.mxu0 %vm2275_vm0, %v23221_v15 }
 0x19f   : > { %2373 = vmatmul.mubr.bf16.gmra.mrb[8].mxu0 %v23223_v16 }
 0x1a0   : > { %18845 = vmatprep.mubr.msk.bf16.mxu0 %vm2275_vm0, %v23224_v17 }
 0x1a7   : > { %2381 = vmatmul.mubr.bf16.gmra.mrb[12].mxu0 %v23226_v18 }
 0x1a8   : > { %18846 = vmatprep.mubr.msk.bf16.mxu0 %vm2275_vm0, %v23227_v19 }
 0x1af   : > { %2389 = vmatmul.mubr.bf16.gmra.mrb[16].mxu0 %v23229_v20 }
 0x1b0   : > { %18847 = vmatprep.mubr.msk.bf16.mxu0 %vm2275_vm0, %v23230_v21 }
 0x1b7   : > { %2397 = vmatmul.mubr.bf16.gmra.mrb[20].mxu0 %v23232_v22 }
 0x1b8   : > { %18848 = vmatprep.mubr.msk.bf16.mxu0 %vm2275_vm0, %v23233_v23 }
 0x1bf   : > { %2405 = vmatmul.mubr.bf16.gmra.mrb[24].mxu0 %v23235_v24 }
 0x1c0   : > { %18849 = vmatprep.mubr.msk.bf16.mxu0 %vm2275_vm0, %v23236_v25 }
 0x1c7   : > { %2413 = vmatmul.mubr.bf16.gmra.mrb[28].mxu0 %v23238_v26 }
 0x1c8   : > { %18850 = vmatprep.mubr.msk.bf16.mxu0 %vm2275_vm0, %v23239_v27 }
 0x1cf   : > { %2421 = vmatmul.mubr.bf16.gmra.mrb[32].mxu0 %v23241_v28 }
 0x1d0   : > { %18851 = vmatprep.mubr.msk.bf16.mxu0 %vm2275_vm0, %v23242_v29 }
 0x1d7   : > { %2429 = vmatmul.mubr.bf16.gmra.mrb[36].mxu0 %v23244_v30 }
 0x1d8   : > { %18852 = vmatprep.mubr.msk.bf16.mxu0 %vm2275_vm0, %v23245_v31 }
 0x1df   : > { %2437 = vmatmul.mubr.bf16.gmra.mrb[40].mxu0 %v23247_v32 }
 0x1e0   : > { %18853 = vmatprep.mubr.msk.bf16.mxu0 %vm2275_vm0, %v23248_v33 }
 0x1e7   : > { %2445 = vmatmul.mubr.bf16.gmra.mrb[44].mxu0 %v23250_v34 }
 0x1e8   : > { %18854 = vmatprep.mubr.msk.bf16.mxu0 %vm2275_vm0, %v23251_v35 }
 0x1ef   : > { %2453 = vmatmul.mubr.bf16.gmra.mrb[48].mxu0 %v23253_v36 }
 0x1f0   : > { %18855 = vmatprep.mubr.msk.bf16.mxu0 %vm2275_vm0, %v23254_v37 }
 0x1f7   : > { %2461 = vmatmul.mubr.bf16.gmra.mrb[52].mxu0 %v23256_v38 }
 0x1f8   : > { %18856 = vmatprep.mubr.msk.bf16.mxu0 %vm2275_vm0, %v23257_v39 }
 0x1ff   : > { %2469 = vmatmul.mubr.bf16.gmra.mrb[56].mxu0 %v23259_v40 }
 0x200   : > { %18857 = vmatprep.mubr.msk.bf16.mxu0 %vm2275_vm0, %v23260_v41 }
 0x207   : > { %2477 = vmatmul.mubr.bf16.gmra.mrb[60].mxu0 %v23262_v42 }
 0x262   : > { %v2358_v44 = vpop.f32.mrb[0].mxu0 }
 0x263   : > { %v2359_v45 = vadd.f32 %v24854_v43, %v2358_v44  ;;  %v2360_v46 = vpop.f32.mrb[1].mxu0 }
 0x264   : > { %v2361_v48 = vpop.f32.mrb[2].mxu0 }
 0x265   : > { %v2362_v49 = vadd.f32 %v24854_v43, %v2361_v48  ;;  %v2363_v50 = vpop.f32.mrb[3].mxu0  ;;  %v2485_v51 = vmax.f32 %v2359_v45, 0.0 }
 0x267   : > { %v2486_v52 = vmax.f32 %v2362_v49, 0.0 }
 0x269   : > { %v2517_v53 = vpack.c.bf16 %v2486_v52, %v2485_v51 }
 0x26a   : > { %v2366_v54 = vpop.f32.mrb[4].mxu0 }
 0x26b   : > { %v2367_v55 = vadd.f32 %v24854_v43, %v2366_v54  ;;  %v2368_v56 = vpop.f32.mrb[5].mxu0  ;;  %2966 = vmatpush1.bf16.msra.mxu1 %v2517_v53 }
 0x26c   : > { %v2369_v57 = vpop.f32.mrb[6].mxu0  ;;  %2967 = vmatprep.subr.bf16.mxu1 %v24251_v0 }
 0x26d   : > { %v2370_v58 = vadd.f32 %v24854_v43, %v2369_v57  ;;  %v2371_v59 = vpop.f32.mrb[7].mxu0  ;;  %v2487_v60 = vmax.f32 %v2367_v55, 0.0 }
 0x26f   : > { %v2488_v61 = vmax.f32 %v2370_v58, 0.0 }
 0x271   : > { %v2518_v62 = vpack.c.bf16 %v2488_v61, %v2487_v60 }
 0x272   : > { %v2374_v63 = vpop.f32.mrb[8].mxu0 }
 0x273   : > { %v2375_v1 = vadd.f32 %v24854_v43, %v2374_v63  ;;  %v2376_v2 = vpop.f32.mrb[9].mxu0  ;;  %2968 = vmatpush1.bf16.msra.mxu1 %v2518_v62 }
 0x274   : > { %v2377_v3 = vpop.f32.mrb[10].mxu0  ;;  %2969 = vmatprep.subr.bf16.mxu1 %v24251_v0 }
 0x275   : > { %v2378_v4 = vadd.f32 %v24854_v43, %v2377_v3  ;;  %v2379_v5 = vpop.f32.mrb[11].mxu0  ;;  %v2489_v6 = vmax.f32 %v2375_v1, 0.0 }
 0x277   : > { %v2490_v7 = vmax.f32 %v2378_v4, 0.0 }
 0x279   : > { %v2519_v8 = vpack.c.bf16 %v2490_v7, %v2489_v6 }
 0x27a   : > { %v2382_v9 = vpop.f32.mrb[12].mxu0 }
 0x27b   : > { %v2383_v10 = vadd.f32 %v24854_v43, %v2382_v9  ;;  %v2384_v11 = vpop.f32.mrb[13].mxu0  ;;  %2970 = vmatpush1.bf16.msra.mxu1 %v2519_v8 }
 0x27c   : > { %v2385_v12 = vpop.f32.mrb[14].mxu0  ;;  %2971 = vmatprep.subr.bf16.mxu1 %v24251_v0 }
 0x27d   : > { %v2386_v13 = vadd.f32 %v24854_v43, %v2385_v12  ;;  %v2387_v14 = vpop.f32.mrb[15].mxu0  ;;  %v2491_v15 = vmax.f32 %v2383_v10, 0.0 }
 0x27f   : > { %v2492_v16 = vmax.f32 %v2386_v13, 0.0 }
 0x281   : > { %v2520_v17 = vpack.c.bf16 %v2492_v16, %v2491_v15 }
 0x282   : > { %v2390_v18 = vpop.f32.mrb[16].mxu0 }
 0x283   : > { %v2391_v19 = vadd.f32 %v24854_v43, %v2390_v18  ;;  %v2392_v20 = vpop.f32.mrb[17].mxu0  ;;  %2972 = vmatpush1.bf16.msra.mxu1 %v2520_v17 }
 0x284   : > { %v2393_v21 = vpop.f32.mrb[18].mxu0  ;;  %2973 = vmatprep.subr.bf16.mxu1 %v24251_v0 }
 0x285   : > { %v2394_v22 = vadd.f32 %v24854_v43, %v2393_v21  ;;  %v2395_v23 = vpop.f32.mrb[19].mxu0  ;;  %v2493_v24 = vmax.f32 %v2391_v19, 0.0 }
 0x287   : > { %v2494_v25 = vmax.f32 %v2394_v22, 0.0 }
 0x289   : > { %v2521_v26 = vpack.c.bf16 %v2494_v25, %v2493_v24 }
 0x28a   : > { %v2398_v27 = vpop.f32.mrb[20].mxu0 }
 0x28b   : > { %v2399_v28 = vadd.f32 %v24854_v43, %v2398_v27  ;;  %v2400_v29 = vpop.f32.mrb[21].mxu0  ;;  %2974 = vmatpush1.bf16.msra.mxu1 %v2521_v26 }
 0x28c   : > { %v2401_v30 = vpop.f32.mrb[22].mxu0  ;;  %2975 = vmatprep.subr.bf16.mxu1 %v24251_v0 }
 0x28d   : > { %v2402_v31 = vadd.f32 %v24854_v43, %v2401_v30  ;;  %v2403_v32 = vpop.f32.mrb[23].mxu0  ;;  %v2495_v33 = vmax.f32 %v2399_v28, 0.0 }
 0x28f   : > { %v2496_v34 = vmax.f32 %v2402_v31, 0.0 }
 0x291   : > { %v2522_v35 = vpack.c.bf16 %v2496_v34, %v2495_v33 }
 0x292   : > { %v2406_v36 = vpop.f32.mrb[24].mxu0 }
 0x293   : > { %v2407_v37 = vadd.f32 %v24854_v43, %v2406_v36  ;;  %v2408_v38 = vpop.f32.mrb[25].mxu0  ;;  %2976 = vmatpush1.bf16.msra.mxu1 %v2522_v35 }
 0x294   : > { %v2409_v39 = vpop.f32.mrb[26].mxu0  ;;  %2977 = vmatprep.subr.bf16.mxu1 %v24251_v0 }
 0x295   : > { %v2410_v40 = vadd.f32 %v24854_v43, %v2409_v39  ;;  %v2411_v41 = vpop.f32.mrb[27].mxu0  ;;  %v2497_v42 = vmax.f32 %v2407_v37, 0.0 }
 0x297   : > { %v2498_v44 = vmax.f32 %v2410_v40, 0.0 }
 0x299   : > { %v2523_v45 = vpack.c.bf16 %v2498_v44, %v2497_v42 }
 0x29a   : > { %v2414_v46 = vpop.f32.mrb[28].mxu0 }
 0x29b   : > { %v2415_v47 = vadd.f32 %v24854_v43, %v2414_v46  ;;  %v2416_v48 = vpop.f32.mrb[29].mxu0  ;;  %2978 = vmatpush1.bf16.msra.mxu1 %v2523_v45 }
 0x29c   : > { %v2417_v49 = vpop.f32.mrb[30].mxu0  ;;  %2979 = vmatprep.subr.bf16.mxu1 %v24251_v0 }
 0x29d   : > { %v2418_v50 = vadd.f32 %v24854_v43, %v2417_v49  ;;  %v2419_v51 = vpop.f32.mrb[31].mxu0  ;;  %v2499_v52 = vmax.f32 %v2415_v47, 0.0 }
 0x29f   : > { %v2500_v53 = vmax.f32 %v2418_v50, 0.0 }
 0x2a1   : > { %v2524_v54 = vpack.c.bf16 %v2500_v53, %v2499_v52 }
 0x2a2   : > { %v2422_v55 = vpop.f32.mrb[32].mxu0 }
 0x2a3   : > { %v2423_v56 = vadd.f32 %v24854_v43, %v2422_v55  ;;  %v2424_v57 = vpop.f32.mrb[33].mxu0  ;;  %2980 = vmatpush1.bf16.msra.mxu1 %v2524_v54 }
 0x2a4   : > { %v2425_v58 = vpop.f32.mrb[34].mxu0  ;;  %2981 = vmatprep.subr.bf16.mxu1 %v24251_v0 }
 0x2a5   : > { %v2426_v59 = vadd.f32 %v24854_v43, %v2425_v58  ;;  %v2427_v60 = vpop.f32.mrb[35].mxu0  ;;  %v2501_v61 = vmax.f32 %v2423_v56, 0.0 }
 0x2a7   : > { %v2502_v62 = vmax.f32 %v2426_v59, 0.0 }
 0x2a9   : > { %v2525_v63 = vpack.c.bf16 %v2502_v62, %v2501_v61 }
 0x2aa   : > { %v2430_v1 = vpop.f32.mrb[36].mxu0 }
 0x2ab   : > { %v2431_v2 = vadd.f32 %v24854_v43, %v2430_v1  ;;  %v2432_v3 = vpop.f32.mrb[37].mxu0  ;;  %2982 = vmatpush1.bf16.msra.mxu1 %v2525_v63  ;;  %v23263_v1 = vld [vmem:[%s24282_s17] ss:$8 sps:$4 sm:$0xff]  }
 0x2ac   : > { %v2433_v4 = vpop.f32.mrb[38].mxu0  ;;  %2983 = vmatprep.subr.bf16.mxu1 %v24251_v0  ;;  %v23266_v3 = vld [vmem:[%s24282_s17 + $0x14] ss:$8 sps:$4 sm:$0xff]  }
 0x2ad   : > { %v2434_v5 = vadd.f32 %v24854_v43, %v2433_v4  ;;  %v2435_v6 = vpop.f32.mrb[39].mxu0  ;;  %v2503_v7 = vmax.f32 %v2431_v2, 0.0  ;;  %v23268_v4 = vld [vmem:[%s24282_s17 + $0x10] ss:$8 sps:$4 sm:$0xff]  }
 0x2ae   : > { %v23274_v6 = vld [vmem:[%s24282_s17 + $0x30] ss:$8 sps:$4 sm:$0xff]  }
 0x2af   : > { %v2504_v8 = vmax.f32 %v2434_v5, 0.0  ;;  %v23269_v5 = vld [vmem:[%s24282_s17 + $0x24] ss:$8 sps:$4 sm:$0xff]  }
 0x2b1   : > { %v2526_v9 = vpack.c.bf16 %v2504_v8, %v2503_v7  ;;  %v23275_v7 = vld [vmem:[%s24282_s17 + $0x44] ss:$8 sps:$4 sm:$0xff]   ;;  %v23277_v8 = vld [vmem:[%s24282_s17 + $0x40] ss:$8 sps:$4 sm:$0xff]  }
 0x2b2   : > { %v2438_v10 = vpop.f32.mrb[40].mxu0 }
 0x2b3   : > { %v2439_v11 = vadd.f32 %v24854_v43, %v2438_v10  ;;  %v2440_v12 = vpop.f32.mrb[41].mxu0  ;;  %2984 = vmatpush1.bf16.msra.mxu1 %v2526_v9  ;;  %v23278_v9 = vld [vmem:[%s24282_s17 + $0x54] ss:$8 sps:$4 sm:$0xff]   ;;  %v23280_v10 = vld [vmem:[%s24282_s17 + $0x50] ss:$8 sps:$4 sm:$0xff]  }
 0x2b4   : > { %v2441_v13 = vpop.f32.mrb[42].mxu0  ;;  %2985 = vmatprep.subr.bf16.mxu1 %v24251_v0  ;;  %v23283_v12 = vld [vmem:[%s24282_s17 + $0x60] ss:$8 sps:$4 sm:$0xff]  }
 0x2b5   : > { %v2442_v14 = vadd.f32 %v24854_v43, %v2441_v13  ;;  %v2443_v15 = vpop.f32.mrb[43].mxu0  ;;  %v2505_v16 = vmax.f32 %v2439_v11, 0.0  ;;  %v23281_v11 = vld [vmem:[%s24282_s17 + $0x64] ss:$8 sps:$4 sm:$0xff]   ;;  %v23284_v13 = vld [vmem:[%s24282_s17 + $0x74] ss:$8 sps:$4 sm:$0xff]  }
 0x2b6   : > { %v23287_v15 = vld [vmem:[%s24282_s17 + $0x84] ss:$8 sps:$4 sm:$0xff]  }
 0x2b7   : > { %v2506_v17 = vmax.f32 %v2442_v14, 0.0  ;;  %v23286_v14 = vld [vmem:[%s24282_s17 + $0x70] ss:$8 sps:$4 sm:$0xff]  }
 0x2b9   : > { %v2527_v18 = vpack.c.bf16 %v2506_v17, %v2505_v16  ;;  %v23289_v16 = vld [vmem:[%s24282_s17 + $0x80] ss:$8 sps:$4 sm:$0xff]   ;;  %v23290_v17 = vld [vmem:[%s24282_s17 + $0x94] ss:$8 sps:$4 sm:$0xff]  }
 0x2ba   : > { %v2446_v19 = vpop.f32.mrb[44].mxu0 }
 0x2bb   : > { %v2447_v20 = vadd.f32 %v24854_v43, %v2446_v19  ;;  %v2448_v21 = vpop.f32.mrb[45].mxu0  ;;  %2986 = vmatpush1.bf16.msra.mxu1 %v2527_v18  ;;  %v23292_v18 = vld [vmem:[%s24282_s17 + $0x90] ss:$8 sps:$4 sm:$0xff]   ;;  %v23293_v19 = vld [vmem:[%s24282_s17 + $0xa4] ss:$8 sps:$4 sm:$0xff]  }
 0x2bc   : > { %v2449_v22 = vpop.f32.mrb[46].mxu0  ;;  %2987 = vmatprep.subr.bf16.mxu1 %v24251_v0  ;;  %v23296_v21 = vld [vmem:[%s24282_s17 + $0xb4] ss:$8 sps:$4 sm:$0xff]  }
 0x2bd   : > { %v2450_v23 = vadd.f32 %v24854_v43, %v2449_v22  ;;  %v2451_v24 = vpop.f32.mrb[47].mxu0  ;;  %v2507_v25 = vmax.f32 %v2447_v20, 0.0  ;;  %v23295_v20 = vld [vmem:[%s24282_s17 + $0xa0] ss:$8 sps:$4 sm:$0xff]   ;;  %v23298_v22 = vld [vmem:[%s24282_s17 + $0xb0] ss:$8 sps:$4 sm:$0xff]  }
 0x2be   : > { %v23301_v24 = vld [vmem:[%s24282_s17 + $0xc0] ss:$8 sps:$4 sm:$0xff]  }
 0x2bf   : > { %v2508_v26 = vmax.f32 %v2450_v23, 0.0  ;;  %v23299_v23 = vld [vmem:[%s24282_s17 + $0xc4] ss:$8 sps:$4 sm:$0xff]  }
 0x2c1   : > { %v2528_v27 = vpack.c.bf16 %v2508_v26, %v2507_v25  ;;  %v23302_v25 = vld [vmem:[%s24282_s17 + $0xd4] ss:$8 sps:$4 sm:$0xff]   ;;  %v23304_v26 = vld [vmem:[%s24282_s17 + $0xd0] ss:$8 sps:$4 sm:$0xff]  }
 0x2c2   : > { %v2454_v28 = vpop.f32.mrb[48].mxu0 }
 0x2c3   : > { %v2455_v29 = vadd.f32 %v24854_v43, %v2454_v28  ;;  %v2456_v30 = vpop.f32.mrb[49].mxu0  ;;  %2988 = vmatpush1.bf16.msra.mxu1 %v2528_v27  ;;  %v23305_v27 = vld [vmem:[%s24282_s17 + $0xe4] ss:$8 sps:$4 sm:$0xff]   ;;  %v23307_v28 = vld [vmem:[%s24282_s17 + $0xe0] ss:$8 sps:$4 sm:$0xff]  }
 0x2c4   : > { %v2457_v31 = vpop.f32.mrb[50].mxu0  ;;  %2989 = vmatprep.subr.bf16.mxu1 %v24251_v0  ;;  %v23310_v30 = vld [vmem:[%s24282_s17 + $0xf0] ss:$8 sps:$4 sm:$0xff]  }
 0x2c5   : > { %v2458_v32 = vadd.f32 %v24854_v43, %v2457_v31  ;;  %v2459_v33 = vpop.f32.mrb[51].mxu0  ;;  %v2509_v34 = vmax.f32 %v2455_v29, 0.0  ;;  %v23308_v29 = vld [vmem:[%s24282_s17 + $0xf4] ss:$8 sps:$4 sm:$0xff]   ;;  %v23311_v31 = vld [vmem:[%s24282_s17 + $0x104] ss:$8 sps:$4 sm:$0xff]  }
 0x2c6   : > { %v23314_v33 = vld [vmem:[%s24282_s17 + $0x114] ss:$8 sps:$4 sm:$0xff]  }
 0x2c7   : > { %v2510_v35 = vmax.f32 %v2458_v32, 0.0  ;;  %v23313_v32 = vld [vmem:[%s24282_s17 + $0x100] ss:$8 sps:$4 sm:$0xff]  }
 0x2c9   : > { %v2529_v36 = vpack.c.bf16 %v2510_v35, %v2509_v34  ;;  %v23316_v34 = vld [vmem:[%s24282_s17 + $0x110] ss:$8 sps:$4 sm:$0xff]   ;;  %v23317_v35 = vld [vmem:[%s24282_s17 + $0x124] ss:$8 sps:$4 sm:$0xff]  }
 0x2ca   : > { %v2462_v37 = vpop.f32.mrb[52].mxu0 }
 0x2cb   : > { %v2463_v38 = vadd.f32 %v24854_v43, %v2462_v37  ;;  %v2464_v39 = vpop.f32.mrb[53].mxu0  ;;  %2990 = vmatpush1.bf16.msra.mxu1 %v2529_v36  ;;  %v23319_v36 = vld [vmem:[%s24282_s17 + $0x120] ss:$8 sps:$4 sm:$0xff]   ;;  %v23320_v37 = vld [vmem:[%s24282_s17 + $0x134] ss:$8 sps:$4 sm:$0xff]  }
 0x2cc   : > { %v2465_v40 = vpop.f32.mrb[54].mxu0  ;;  %2991 = vmatprep.subr.bf16.mxu1 %v24251_v0  ;;  %v23323_v39 = vld [vmem:[%s24282_s17 + $0x144] ss:$8 sps:$4 sm:$0xff]  }
 0x2cd   : > { %v2466_v41 = vadd.f32 %v24854_v43, %v2465_v40  ;;  %v2467_v42 = vpop.f32.mrb[55].mxu0  ;;  %v2511_v44 = vmax.f32 %v2463_v38, 0.0  ;;  %v23322_v38 = vld [vmem:[%s24282_s17 + $0x130] ss:$8 sps:$4 sm:$0xff]   ;;  %v23325_v40 = vld [vmem:[%s24282_s17 + $0x140] ss:$8 sps:$4 sm:$0xff]  }
 0x2ce   : > { %v23328_v42 = vld [vmem:[%s24282_s17 + $0x150] ss:$8 sps:$4 sm:$0xff]  }
 0x2cf   : > { %v2512_v45 = vmax.f32 %v2466_v41, 0.0  ;;  %v23326_v41 = vld [vmem:[%s24282_s17 + $0x154] ss:$8 sps:$4 sm:$0xff]  }
 0x2d1   : > { %v2530_v46 = vpack.c.bf16 %v2512_v45, %v2511_v44  ;;  %v23329_v44 = vld [vmem:[%s24282_s17 + $0x164] ss:$8 sps:$4 sm:$0xff]   ;;  %v23331_v45 = vld [vmem:[%s24282_s17 + $0x160] ss:$8 sps:$4 sm:$0xff]  }
 0x2d2   : > { %v2470_v47 = vpop.f32.mrb[56].mxu0 }
 0x2d3   : > { %v2471_v48 = vadd.f32 %v24854_v43, %v2470_v47  ;;  %v2472_v49 = vpop.f32.mrb[57].mxu0  ;;  %2992 = vmatpush1.bf16.msra.mxu1 %v2530_v46  ;;  %v23332_v46 = vld [vmem:[%s24282_s17 + $0x174] ss:$8 sps:$4 sm:$0xff]   ;;  %v23334_v47 = vld [vmem:[%s24282_s17 + $0x170] ss:$8 sps:$4 sm:$0xff]  }
 0x2d4   : > { %v2473_v50 = vpop.f32.mrb[58].mxu0  ;;  %2993 = vmatprep.subr.bf16.mxu1 %v24251_v0  ;;  %v23337_v49 = vld [vmem:[%s24282_s17 + $0x180] ss:$8 sps:$4 sm:$0xff]  }
 0x2d5   : > { %v2474_v51 = vadd.f32 %v24854_v43, %v2473_v50  ;;  %v2475_v52 = vpop.f32.mrb[59].mxu0  ;;  %v2513_v53 = vmax.f32 %v2471_v48, 0.0  ;;  %v23335_v48 = vld [vmem:[%s24282_s17 + $0x184] ss:$8 sps:$4 sm:$0xff]   ;;  %v23338_v50 = vld [vmem:[%s24282_s17 + $0x194] ss:$8 sps:$4 sm:$0xff]  }
 0x2d6   : > { %v23341_v52 = vld [vmem:[%s24282_s17 + $0x1a4] ss:$8 sps:$4 sm:$0xff]  }
 0x2d7   : > { %v2514_v54 = vmax.f32 %v2474_v51, 0.0  ;;  %v23340_v51 = vld [vmem:[%s24282_s17 + $0x190] ss:$8 sps:$4 sm:$0xff]  }
 0x2d9   : > { %v2531_v55 = vpack.c.bf16 %v2514_v54, %v2513_v53  ;;  %v23343_v53 = vld [vmem:[%s24282_s17 + $0x1a0] ss:$8 sps:$4 sm:$0xff]   ;;  %v23344_v54 = vld [vmem:[%s24282_s17 + $0x1b4] ss:$8 sps:$4 sm:$0xff]  }
 0x2da   : > { %v2478_v56 = vpop.f32.mrb[60].mxu0 }
 0x2db   : > { %v2479_v57 = vadd.f32 %v24854_v43, %v2478_v56  ;;  %v2480_v58 = vpop.f32.mrb[61].mxu0  ;;  %2994 = vmatpush1.bf16.msra.mxu1 %v2531_v55 }
 0x2dc   : > { %v2481_v59 = vpop.f32.mrb[62].mxu0  ;;  %2995 = vmatprep.subr.bf16.mxu1 %v24251_v0  ;;  %v23271_v0 = vld [vmem:[%s24282_s17 + $0x20] ss:$8 sps:$4 sm:$0xff]  }
 0x2dd   : > { %v2482_v60 = vadd.f32 %v24854_v43, %v2481_v59  ;;  %v2483_v61 = vpop.f32.mrb[63].mxu0  ;;  %v2515_v62 = vmax.f32 %v2479_v57, 0.0  ;;  %v23272_v43 = vld [vmem:[%s24282_s17 + $0x34] ss:$8 sps:$4 sm:$0xff]   ;;  %v23346_v57 = vld [vmem:[%s24282_s17 + $0x1b0] ss:$8 sps:$4 sm:$0xff]  }
 0x2de   : > { %v23347_v59 = vld [vmem:[%s24282_s17 + $0x1c4] ss:$8 sps:$4 sm:$0xff]  }
 0x2df   : > { %v2516_v63 = vmax.f32 %v2482_v60, 0.0 }
 0x2e1   : > { %v2532_v2 = vpack.c.bf16 %v2516_v63, %v2515_v62  ;;  %v23349_v63 = vld [vmem:[%s24282_s17 + $0x1c0] ss:$8 sps:$4 sm:$0xff]  }
 0x2e3   : > { %2996 = vmatpush1.bf16.msra.mxu1 %v2532_v2  ;;  %v23350_v2 = vld [vmem:[%s24282_s17 + $0x1d4] ss:$8 sps:$4 sm:$0xff]  }
 0x2e6   : > { %2998 = vmatmul.mubr.bf16.vlgmr.msra.gmra.mrb[0].mxu1 %v23263_v1 }
 0x2e7   : > { %3005 = vmatprep.mubr.bf16.mxu1 %v23266_v3 }
 0x2ee   : > { %3006 = vmatmul.mubr.bf16.gmra.mrb[4].mxu1 %v23268_v4 }
 0x2ef   : > { %3013 = vmatprep.mubr.bf16.mxu1 %v23269_v5 }
 0x2f6   : > { %3014 = vmatmul.mubr.bf16.gmra.mrb[8].mxu1 %v23271_v0  ;;  %v23352_v0 = vld [vmem:[%s24282_s17 + $0x1d0] ss:$8 sps:$4 sm:$0xff]  }
 0x2f7   : > { %3021 = vmatprep.mubr.bf16.mxu1 %v23272_v43 }
 0x2fe   : > { %3022 = vmatmul.mubr.bf16.gmra.mrb[12].mxu1 %v23274_v6  ;;  %v23353_v6 = vld [vmem:[%s24282_s17 + $0x1e4] ss:$8 sps:$4 sm:$0xff]  }
 0x2ff   : > { %3029 = vmatprep.mubr.bf16.mxu1 %v23275_v7 }
 0x306   : > { %3030 = vmatmul.mubr.bf16.gmra.mrb[16].mxu1 %v23277_v8 }
 0x307   : > { %3037 = vmatprep.mubr.bf16.mxu1 %v23278_v9 }
 0x30e   : > { %3038 = vmatmul.mubr.bf16.gmra.mrb[20].mxu1 %v23280_v10  ;;  %v23355_v10 = vld [vmem:[%s24282_s17 + $0x1e0] ss:$8 sps:$4 sm:$0xff]  }
 0x30f   : > { %3045 = vmatprep.mubr.bf16.mxu1 %v23281_v11 }
 0x316   : > { %3046 = vmatmul.mubr.bf16.gmra.mrb[24].mxu1 %v23283_v12  ;;  %v23356_v12 = vld [vmem:[%s24282_s17 + $0x1f4] ss:$8 sps:$4 sm:$0xff]  }
 0x317   : > { %3053 = vmatprep.mubr.bf16.mxu1 %v23284_v13 }
 0x31e   : > { %3054 = vmatmul.mubr.bf16.gmra.mrb[28].mxu1 %v23286_v14 }
 0x31f   : > { %3061 = vmatprep.mubr.bf16.mxu1 %v23287_v15 }
 0x326   : > { %3062 = vmatmul.mubr.bf16.gmra.mrb[32].mxu1 %v23289_v16 }
 0x327   : > { %3069 = vmatprep.mubr.bf16.mxu1 %v23290_v17  ;;  %v23358_v17 = vld [vmem:[%s24282_s17 + $0x1f0] ss:$8 sps:$4 sm:$0xff]  }
 0x32e   : > { %3070 = vmatmul.mubr.bf16.gmra.mrb[36].mxu1 %v23292_v18 }
 0x32f   : > { %3077 = vmatprep.mubr.bf16.mxu1 %v23293_v19  ;;  %v23359_v19 = vld [vmem:[%s24282_s17 + $0x204] ss:$8 sps:$4 sm:$0xff]  }
 0x336   : > { %3078 = vmatmul.mubr.bf16.gmra.mrb[40].mxu1 %v23295_v20 }
 0x337   : > { %3085 = vmatprep.mubr.bf16.mxu1 %v23296_v21 }
 0x33e   : > { %3086 = vmatmul.mubr.bf16.gmra.mrb[44].mxu1 %v23298_v22 }
 0x33f   : > { %3093 = vmatprep.mubr.bf16.mxu1 %v23299_v23 }
 0x346   : > { %3094 = vmatmul.mubr.bf16.gmra.mrb[48].mxu1 %v23301_v24 }
 0x347   : > { %3101 = vmatprep.mubr.bf16.mxu1 %v23302_v25  ;;  %v23361_v25 = vld [vmem:[%s24282_s17 + $0x200] ss:$8 sps:$4 sm:$0xff]  }
 0x34e   : > { %3102 = vmatmul.mubr.bf16.gmra.mrb[52].mxu1 %v23304_v26 }
 0x34f   : > { %3109 = vmatprep.mubr.bf16.mxu1 %v23305_v27  ;;  %v23362_v27 = vld [vmem:[%s24282_s17 + $0x214] ss:$8 sps:$4 sm:$0xff]  }
 0x356   : > { %3110 = vmatmul.mubr.bf16.gmra.mrb[56].mxu1 %v23307_v28 }
 0x357   : > { %3117 = vmatprep.mubr.bf16.mxu1 %v23308_v29 }
 0x35e   : > { %3118 = vmatmul.mubr.bf16.gmra.mrb[60].mxu1 %v23310_v30 }
 0x35f   : > { %3125 = vmatprep.mubr.bf16.mxu1 %v23311_v31 }
 0x366   : > { %3126 = vmatmul.mubr.bf16.gmra.mrb[64].mxu1 %v23313_v32 }
 0x367   : > { %3133 = vmatprep.mubr.bf16.mxu1 %v23314_v33  ;;  %v23364_v33 = vld [vmem:[%s24282_s17 + $0x210] ss:$8 sps:$4 sm:$0xff]  }
 0x36e   : > { %3134 = vmatmul.mubr.bf16.gmra.mrb[68].mxu1 %v23316_v34 }
 0x36f   : > { %3141 = vmatprep.mubr.bf16.mxu1 %v23317_v35  ;;  %v23365_v35 = vld [vmem:[%s24282_s17 + $0x224] ss:$8 sps:$4 sm:$0xff]  }
 0x376   : > { %3142 = vmatmul.mubr.bf16.gmra.mrb[72].mxu1 %v23319_v36 }
 0x377   : > { %3149 = vmatprep.mubr.bf16.mxu1 %v23320_v37 }
 0x37e   : > { %3150 = vmatmul.mubr.bf16.gmra.mrb[76].mxu1 %v23322_v38 }
 0x37f   : > { %3157 = vmatprep.mubr.bf16.mxu1 %v23323_v39 }
 0x386   : > { %3158 = vmatmul.mubr.bf16.gmra.mrb[80].mxu1 %v23325_v40 }
 0x387   : > { %3165 = vmatprep.mubr.bf16.mxu1 %v23326_v41  ;;  %v23367_v41 = vld [vmem:[%s24282_s17 + $0x220] ss:$8 sps:$4 sm:$0xff]  }
 0x38e   : > { %3166 = vmatmul.mubr.bf16.gmra.mrb[84].mxu1 %v23328_v42 }
 0x38f   : > { %3173 = vmatprep.mubr.bf16.mxu1 %v23329_v44  ;;  %v23368_v44 = vld [vmem:[%s24282_s17 + $0x234] ss:$8 sps:$4 sm:$0xff]  }
 0x396   : > { %3174 = vmatmul.mubr.bf16.gmra.mrb[88].mxu1 %v23331_v45 }
 0x397   : > { %3181 = vmatprep.mubr.bf16.mxu1 %v23332_v46 }
 0x39e   : > { %3182 = vmatmul.mubr.bf16.gmra.mrb[92].mxu1 %v23334_v47 }
 0x39f   : > { %3189 = vmatprep.mubr.bf16.mxu1 %v23335_v48 }
 0x3a6   : > { %3190 = vmatmul.mubr.bf16.gmra.mrb[96].mxu1 %v23337_v49 }
 0x3a7   : > { %3197 = vmatprep.mubr.bf16.mxu1 %v23338_v50  ;;  %v23370_v50 = vld [vmem:[%s24282_s17 + $0x230] ss:$8 sps:$4 sm:$0xff]  }
 0x3ae   : > { %3198 = vmatmul.mubr.bf16.gmra.mrb[100].mxu1 %v23340_v51 }
 0x3af   : > { %3205 = vmatprep.mubr.bf16.mxu1 %v23341_v52 }
 0x3b6   : > { %3206 = vmatmul.mubr.bf16.gmra.mrb[104].mxu1 %v23343_v53 }
 0x3b7   : > { %3213 = vmatprep.mubr.bf16.mxu1 %v23344_v54 }
 0x3b9   : > { %v24958_v55 = vpop.f32.mrb[0].mxu1 }
 0x3ba   : > { %v3001_v56 = vpop.f32.mrb[1].mxu1 }
 0x3bb   : > { %v24961_v58 = vpop.f32.mrb[2].mxu1 }
 0x3bc   : > { %v3004_v60 = vpop.f32.mrb[3].mxu1 }
 0x3be   : > { %3214 = vmatmul.mubr.bf16.gmra.mrb[108].mxu1 %v23346_v57 }
 0x3bf   : > { %3221 = vmatprep.mubr.bf16.mxu1 %v23347_v59 }
 0x3c1   : > { %v24964_v61 = vpop.f32.mrb[4].mxu1 }
 0x3c2   : > { %v3009_v62 = vpop.f32.mrb[5].mxu1 }
 0x3c3   : > { %v24967_v1 = vpop.f32.mrb[6].mxu1 }
 0x3c4   : > { %v3012_v3 = vpop.f32.mrb[7].mxu1 }
 0x3c6   : > { %3222 = vmatmul.mubr.bf16.gmra.mrb[112].mxu1 %v23349_v63 }
 0x3c7   : > { %3229 = vmatprep.mubr.bf16.mxu1 %v23350_v2 }
 0x3c9   : > { %v24970_v4 = vpop.f32.mrb[8].mxu1 }
 0x3ca   : > { %v3017_v5 = vpop.f32.mrb[9].mxu1 }
 0x3cb   : > { %v24973_v43 = vpop.f32.mrb[10].mxu1 }
 0x3cc   : > { %v3020_v7 = vpop.f32.mrb[11].mxu1 }
 0x3ce   : > { %3230 = vmatmul.mubr.bf16.gmra.mrb[116].mxu1 %v23352_v0 }
 0x3cf   : > { %3237 = vmatprep.mubr.bf16.mxu1 %v23353_v6 }
 0x3d1   : > { %v24976_v8 = vpop.f32.mrb[12].mxu1 }
 0x3d2   : > { %v3025_v9 = vpop.f32.mrb[13].mxu1 }
 0x3d3   : > { %v24979_v11 = vpop.f32.mrb[14].mxu1 }
 0x3d4   : > { %v3028_v13 = vpop.f32.mrb[15].mxu1 }
 0x3d6   : > { %3238 = vmatmul.mubr.bf16.gmra.mrb[120].mxu1 %v23355_v10 }
 0x3d7   : > { %3245 = vmatprep.mubr.bf16.mxu1 %v23356_v12 }
 0x3d9   : > { %v3031_v14 = vpop.f32.mrb[16].mxu1 }
 0x3da   : > { %v3286_v15 = vmax.f32 %v24958_v55, %v3031_v14  ;;  %v3033_v16 = vpop.f32.mrb[17].mxu1 }
 0x3db   : > { %v3034_v18 = vpop.f32.mrb[18].mxu1 }
 0x3dc   : > { %v3287_v20 = vmax.f32 %v24961_v58, %v3034_v18  ;;  %v3036_v21 = vpop.f32.mrb[19].mxu1 }
 0x3de   : > { %3246 = vmatmul.mubr.bf16.gmra.mrb[124].mxu1 %v23358_v17 }
 0x3df   : > { %3253 = vmatprep.mubr.bf16.mxu1 %v23359_v19 }
 0x3e1   : > { %v3039_v22 = vpop.f32.mrb[20].mxu1 }
 0x3e2   : > { %v3288_v23 = vmax.f32 %v24964_v61, %v3039_v22  ;;  %v3041_v24 = vpop.f32.mrb[21].mxu1 }
 0x3e3   : > { %v3042_v26 = vpop.f32.mrb[22].mxu1 }
 0x3e4   : > { %v3289_v28 = vmax.f32 %v24967_v1, %v3042_v26  ;;  %v3044_v29 = vpop.f32.mrb[23].mxu1 }
 0x3e6   : > { %3254 = vmatmul.mubr.bf16.gmra.mrb[128].mxu1 %v23361_v25 }
 0x3e7   : > { %3261 = vmatprep.mubr.bf16.mxu1 %v23362_v27 }
 0x3e9   : > { %v3047_v30 = vpop.f32.mrb[24].mxu1 }
 0x3ea   : > { %v3290_v31 = vmax.f32 %v24970_v4, %v3047_v30  ;;  %v3049_v32 = vpop.f32.mrb[25].mxu1 }
 0x3eb   : > { %v3050_v34 = vpop.f32.mrb[26].mxu1 }
 0x3ec   : > { %v3291_v36 = vmax.f32 %v24973_v43, %v3050_v34  ;;  %v3052_v37 = vpop.f32.mrb[27].mxu1 }
 0x3ee   : > { %3262 = vmatmul.mubr.bf16.gmra.mrb[132].mxu1 %v23364_v33 }
 0x3ef   : > { %3269 = vmatprep.mubr.bf16.mxu1 %v23365_v35 }
 0x3f1   : > { %v3055_v38 = vpop.f32.mrb[28].mxu1 }
 0x3f2   : > { %v3292_v39 = vmax.f32 %v24976_v8, %v3055_v38  ;;  %v3057_v40 = vpop.f32.mrb[29].mxu1 }
 0x3f3   : > { %v3058_v42 = vpop.f32.mrb[30].mxu1 }
 0x3f4   : > { %v3293_v45 = vmax.f32 %v24979_v11, %v3058_v42  ;;  %v3060_v46 = vpop.f32.mrb[31].mxu1 }
 0x3f6   : > { %3270 = vmatmul.mubr.bf16.gmra.mrb[136].mxu1 %v23367_v41 }
 0x3f7   : > { %3277 = vmatprep.mubr.bf16.mxu1 %v23368_v44 }
 0x3f9   : > { %v3063_v47 = vpop.f32.mrb[32].mxu1 }
 0x3fa   : > { %v3294_v48 = vmax.f32 %v3286_v15, %v3063_v47  ;;  %v3065_v49 = vpop.f32.mrb[33].mxu1 }
 0x3fb   : > { %v3066_v51 = vpop.f32.mrb[34].mxu1 }
 0x3fc   : > { %v3295_v52 = vmax.f32 %v3287_v20, %v3066_v51  ;;  %v3068_v53 = vpop.f32.mrb[35].mxu1 }
 0x3fe   : > { %3278 = vmatmul.mubr.bf16.gmra.mrb[140].mxu1 %v23370_v50 }
 0x401   : > { %v3071_v54 = vpop.f32.mrb[36].mxu1 }
 0x402   : > { %v3296_v55 = vmax.f32 %v3288_v23, %v3071_v54  ;;  %v3073_v56 = vpop.f32.mrb[37].mxu1 }
 0x403   : > { %v3074_v57 = vpop.f32.mrb[38].mxu1 }
 0x404   : > { %v3297_v58 = vmax.f32 %v3289_v28, %v3074_v57  ;;  %v3076_v59 = vpop.f32.mrb[39].mxu1  ;;  %v23371_v57 = vld [vmem:[%s24287_s21] sm:$0xff]  }
 0x405   : > { %20666 = vmatprep.mubr.msk.bf16.mxu0 %vm3606_vm1, %v23371_v57 }
 0x409   : > { %v3079_v60 = vpop.f32.mrb[40].mxu1 }
 0x40a   : > { %v3298_v61 = vmax.f32 %v3290_v31, %v3079_v60  ;;  %v3081_v62 = vpop.f32.mrb[41].mxu1 }
 0x40b   : > { %v3082_v63 = vpop.f32.mrb[42].mxu1 }
 0x40c   : > { %v3299_v1 = vmax.f32 %v3291_v36, %v3082_v63  ;;  %v3084_v2 = vpop.f32.mrb[43].mxu1 }
 0x411   : > { %v3087_v3 = vpop.f32.mrb[44].mxu1 }
 0x412   : > { %v3300_v4 = vmax.f32 %v3292_v39, %v3087_v3  ;;  %v3089_v5 = vpop.f32.mrb[45].mxu1 }
 0x413   : > { %v3090_v0 = vpop.f32.mrb[46].mxu1 }
 0x414   : > { %v3301_v43 = vmax.f32 %v3293_v45, %v3090_v0  ;;  %v3092_v6 = vpop.f32.mrb[47].mxu1 }
 0x419   : > { %v3095_v7 = vpop.f32.mrb[48].mxu1 }
 0x41a   : > { %v3302_v8 = vmax.f32 %v3294_v48, %v3095_v7  ;;  %v3097_v9 = vpop.f32.mrb[49].mxu1 }
 0x41b   : > { %v3098_v10 = vpop.f32.mrb[50].mxu1 }
 0x41c   : > { %v3303_v11 = vmax.f32 %v3295_v52, %v3098_v10  ;;  %v3100_v12 = vpop.f32.mrb[51].mxu1 }
 0x421   : > { %v3103_v13 = vpop.f32.mrb[52].mxu1 }
 0x422   : > { %v3304_v14 = vmax.f32 %v3296_v55, %v3103_v13  ;;  %v3105_v15 = vpop.f32.mrb[53].mxu1 }
 0x423   : > { %v3106_v16 = vpop.f32.mrb[54].mxu1 }
 0x424   : > { %v3305_v17 = vmax.f32 %v3297_v58, %v3106_v16  ;;  %v3108_v18 = vpop.f32.mrb[55].mxu1 }
 0x429   : > { %v3111_v19 = vpop.f32.mrb[56].mxu1 }
 0x42a   : > { %v3306_v20 = vmax.f32 %v3298_v61, %v3111_v19  ;;  %v3113_v21 = vpop.f32.mrb[57].mxu1 }
 0x42b   : > { %v3114_v22 = vpop.f32.mrb[58].mxu1 }
 0x42c   : > { %v3307_v23 = vmax.f32 %v3299_v1, %v3114_v22  ;;  %v3116_v24 = vpop.f32.mrb[59].mxu1 }
 0x431   : > { %v3119_v25 = vpop.f32.mrb[60].mxu1 }
 0x432   : > { %v3308_v26 = vmax.f32 %v3300_v4, %v3119_v25  ;;  %v3121_v27 = vpop.f32.mrb[61].mxu1 }
 0x433   : > { %v3122_v28 = vpop.f32.mrb[62].mxu1 }
 0x434   : > { %v3309_v29 = vmax.f32 %v3301_v43, %v3122_v28  ;;  %v3124_v30 = vpop.f32.mrb[63].mxu1 }
 0x439   : > { %v3127_v31 = vpop.f32.mrb[64].mxu1 }
 0x43a   : > { %v3310_v32 = vmax.f32 %v3302_v8, %v3127_v31  ;;  %v3129_v33 = vpop.f32.mrb[65].mxu1 }
 0x43b   : > { %v3130_v34 = vpop.f32.mrb[66].mxu1 }
 0x43c   : > { %v3311_v35 = vmax.f32 %v3303_v11, %v3130_v34  ;;  %v3132_v36 = vpop.f32.mrb[67].mxu1 }
 0x441   : > { %v3135_v37 = vpop.f32.mrb[68].mxu1 }
 0x442   : > { %v3312_v38 = vmax.f32 %v3304_v14, %v3135_v37  ;;  %v3137_v39 = vpop.f32.mrb[69].mxu1 }
 0x443   : > { %v3138_v40 = vpop.f32.mrb[70].mxu1 }
 0x444   : > { %v3313_v41 = vmax.f32 %v3305_v17, %v3138_v40  ;;  %v3140_v42 = vpop.f32.mrb[71].mxu1 }
 0x449   : > { %v3143_v44 = vpop.f32.mrb[72].mxu1 }
 0x44a   : > { %v3314_v45 = vmax.f32 %v3306_v20, %v3143_v44  ;;  %v3145_v46 = vpop.f32.mrb[73].mxu1 }
 0x44b   : > { %v3146_v47 = vpop.f32.mrb[74].mxu1 }
 0x44c   : > { %v3315_v48 = vmax.f32 %v3307_v23, %v3146_v47  ;;  %v3148_v49 = vpop.f32.mrb[75].mxu1 }
 0x451   : > { %v3151_v50 = vpop.f32.mrb[76].mxu1 }
 0x452   : > { %v3316_v51 = vmax.f32 %v3308_v26, %v3151_v50  ;;  %v3153_v52 = vpop.f32.mrb[77].mxu1 }
 0x453   : > { %v3154_v53 = vpop.f32.mrb[78].mxu1 }
 0x454   : > { %v3317_v54 = vmax.f32 %v3309_v29, %v3154_v53  ;;  %v3156_v55 = vpop.f32.mrb[79].mxu1 }
 0x459   : > { %v3159_v56 = vpop.f32.mrb[80].mxu1 }
 0x45a   : > { %v3318_v58 = vmax.f32 %v3310_v32, %v3159_v56  ;;  %v3161_v59 = vpop.f32.mrb[81].mxu1 }
 0x45b   : > { %v3162_v60 = vpop.f32.mrb[82].mxu1 }
 0x45c   : > { %v3319_v61 = vmax.f32 %v3311_v35, %v3162_v60  ;;  %v3164_v62 = vpop.f32.mrb[83].mxu1 }
 0x461   : > { %v3167_v63 = vpop.f32.mrb[84].mxu1 }
 0x462   : > { %v3320_v1 = vmax.f32 %v3312_v38, %v3167_v63  ;;  %v3169_v2 = vpop.f32.mrb[85].mxu1 }
 0x463   : > { %v3170_v3 = vpop.f32.mrb[86].mxu1 }
 0x464   : > { %v3321_v4 = vmax.f32 %v3313_v41, %v3170_v3  ;;  %v3172_v5 = vpop.f32.mrb[87].mxu1 }
 0x469   : > { %v3175_v0 = vpop.f32.mrb[88].mxu1 }
 0x46a   : > { %v3322_v43 = vmax.f32 %v3314_v45, %v3175_v0  ;;  %v3177_v6 = vpop.f32.mrb[89].mxu1 }
 0x46b   : > { %v3178_v7 = vpop.f32.mrb[90].mxu1 }
 0x46c   : > { %v3323_v8 = vmax.f32 %v3315_v48, %v3178_v7  ;;  %v3180_v9 = vpop.f32.mrb[91].mxu1 }
 0x471   : > { %v3183_v10 = vpop.f32.mrb[92].mxu1 }
 0x472   : > { %v3324_v11 = vmax.f32 %v3316_v51, %v3183_v10  ;;  %v3185_v12 = vpop.f32.mrb[93].mxu1 }
 0x473   : > { %v3186_v13 = vpop.f32.mrb[94].mxu1 }
 0x474   : > { %v3325_v14 = vmax.f32 %v3317_v54, %v3186_v13  ;;  %v3188_v15 = vpop.f32.mrb[95].mxu1 }
 0x479   : > { %v3191_v16 = vpop.f32.mrb[96].mxu1 }
 0x47a   : > { %v3326_v17 = vmax.f32 %v3318_v58, %v3191_v16  ;;  %v3193_v18 = vpop.f32.mrb[97].mxu1 }
 0x47b   : > { %v3194_v19 = vpop.f32.mrb[98].mxu1 }
 0x47c   : > { %v3327_v20 = vmax.f32 %v3319_v61, %v3194_v19  ;;  %v3196_v21 = vpop.f32.mrb[99].mxu1 }
 0x481   : > { %v3199_v22 = vpop.f32.mrb[100].mxu1 }
 0x482   : > { %v3328_v23 = vmax.f32 %v3320_v1, %v3199_v22  ;;  %v3201_v24 = vpop.f32.mrb[101].mxu1 }
 0x483   : > { %v3202_v25 = vpop.f32.mrb[102].mxu1 }
 0x484   : > { %v3329_v26 = vmax.f32 %v3321_v4, %v3202_v25  ;;  %v3204_v27 = vpop.f32.mrb[103].mxu1 }
 0x489   : > { %v3207_v28 = vpop.f32.mrb[104].mxu1 }
 0x48a   : > { %v3330_v29 = vmax.f32 %v3322_v43, %v3207_v28  ;;  %v3209_v30 = vpop.f32.mrb[105].mxu1  ;;  %v23372_v28 = vld [vmem:[%s24287_s21 + $0x8] sm:$0xff]  }
 0x48b   : > { %v3210_v31 = vpop.f32.mrb[106].mxu1  ;;  %v23374_v30 = vld [vmem:[%s24287_s21 + $0x18] sm:$0xff]  }
 0x48c   : > { %v3331_v32 = vmax.f32 %v3323_v8, %v3210_v31  ;;  %v3212_v33 = vpop.f32.mrb[107].mxu1  ;;  %v23375_v31 = vld [vmem:[%s24287_s21 + $0x20] sm:$0xff]  }
 0x48d   : > { %v23377_v33 = vld [vmem:[%s24287_s21 + $0x30] sm:$0xff]  }
 0x491   : > { %v3215_v34 = vpop.f32.mrb[108].mxu1 }
 0x492   : > { %v3332_v35 = vmax.f32 %v3324_v11, %v3215_v34  ;;  %v3217_v36 = vpop.f32.mrb[109].mxu1  ;;  %v23378_v34 = vld [vmem:[%s24287_s21 + $0x38] sm:$0xff]  }
 0x493   : > { %v3218_v37 = vpop.f32.mrb[110].mxu1  ;;  %v23380_v36 = vld [vmem:[%s24287_s21 + $0x48] sm:$0xff]  }
 0x494   : > { %v3333_v38 = vmax.f32 %v3325_v14, %v3218_v37  ;;  %v3220_v39 = vpop.f32.mrb[111].mxu1  ;;  %v23381_v37 = vld [vmem:[%s24287_s21 + $0x50] sm:$0xff]  }
 0x495   : > { %v23383_v39 = vld [vmem:[%s24287_s21 + $0x60] sm:$0xff]  }
 0x499   : > { %v3223_v40 = vpop.f32.mrb[112].mxu1 }
 0x49a   : > { %v3334_v41 = vmax.f32 %v3326_v17, %v3223_v40  ;;  %v3225_v42 = vpop.f32.mrb[113].mxu1  ;;  %v23384_v40 = vld [vmem:[%s24287_s21 + $0x68] sm:$0xff]  }
 0x49b   : > { %v3226_v44 = vpop.f32.mrb[114].mxu1  ;;  %v23386_v42 = vld [vmem:[%s24287_s21 + $0x78] sm:$0xff]  }
 0x49c   : > { %v3335_v45 = vmax.f32 %v3327_v20, %v3226_v44  ;;  %v3228_v46 = vpop.f32.mrb[115].mxu1  ;;  %v23387_v44 = vld [vmem:[%s24287_s21 + $0x80] sm:$0xff]  }
 0x49d   : > { %v23389_v46 = vld [vmem:[%s24287_s21 + $0x90] sm:$0xff]  }
 0x4a1   : > { %v3231_v47 = vpop.f32.mrb[116].mxu1 }
 0x4a2   : > { %v3336_v48 = vmax.f32 %v3328_v23, %v3231_v47  ;;  %v3233_v49 = vpop.f32.mrb[117].mxu1  ;;  %v23390_v47 = vld [vmem:[%s24287_s21 + $0x98] sm:$0xff]  }
 0x4a3   : > { %v3234_v50 = vpop.f32.mrb[118].mxu1  ;;  %v23392_v49 = vld [vmem:[%s24287_s21 + $0xa8] sm:$0xff]  }
 0x4a4   : > { %v3337_v51 = vmax.f32 %v3329_v26, %v3234_v50  ;;  %v3236_v52 = vpop.f32.mrb[119].mxu1  ;;  %v23393_v50 = vld [vmem:[%s24287_s21 + $0xb0] sm:$0xff]  }
 0x4a5   : > { %v23395_v52 = vld [vmem:[%s24287_s21 + $0xc0] sm:$0xff]  }
 0x4a9   : > { %v3239_v53 = vpop.f32.mrb[120].mxu1 }
 0x4aa   : > { %v3338_v54 = vmax.f32 %v3330_v29, %v3239_v53  ;;  %v3241_v55 = vpop.f32.mrb[121].mxu1  ;;  %v23373_v29 = vld [vmem:[%s24287_s21 + $0x10] sm:$0xff]   ;;  %v23396_v53 = vld [vmem:[%s24287_s21 + $0xc8] sm:$0xff]  }
 0x4ab   : > { %v3242_v56 = vpop.f32.mrb[122].mxu1  ;;  %v23398_v55 = vld [vmem:[%s24287_s21 + $0xd8] sm:$0xff]  }
 0x4ac   : > { %v3339_v57 = vmax.f32 %v3331_v32, %v3242_v56  ;;  %v3244_v58 = vpop.f32.mrb[123].mxu1  ;;  %v23376_v32 = vld [vmem:[%s24287_s21 + $0x28] sm:$0xff]   ;;  %v23399_v56 = vld [vmem:[%s24287_s21 + $0xe0] sm:$0xff]  }
 0x4b1   : > { %v3247_v59 = vpop.f32.mrb[124].mxu1 }
 0x4b2   : > { %v3340_v60 = vmax.f32 %v3332_v35, %v3247_v59  ;;  %v3249_v61 = vpop.f32.mrb[125].mxu1  ;;  %v23379_v35 = vld [vmem:[%s24287_s21 + $0x40] sm:$0xff]   ;;  %v23400_v59 = vld [vmem:[%s24287_s21 + $0xe8] sm:$0xff]  }
 0x4b3   : > { %v3250_v62 = vpop.f32.mrb[126].mxu1  ;;  %v4072_v61 = vld [vmem:[%s24292_s25] sm:$0xf] }
 0x4b4   : > { %v3341_v63 = vmax.f32 %v3333_v38, %v3250_v62  ;;  %v3252_v1 = vpop.f32.mrb[127].mxu1  ;;  %v23382_v38 = vld [vmem:[%s24287_s21 + $0x58] sm:$0xff]  }
 0x4b5   : > { %v23402_v62 = vld [vmem:[%s24287_s21 + $0xf8] sm:$0xff]   ;;  %v23404_v1 = vld [vmem:[%s24287_s21 + $0x108] sm:$0xff]  }
 0x4b9   : > { %v3255_v2 = vpop.f32.mrb[128].mxu1 }
 0x4ba   : > { %v3342_v3 = vmax.f32 %v3334_v41, %v3255_v2  ;;  %v3257_v4 = vpop.f32.mrb[129].mxu1  ;;  %v23385_v41 = vld [vmem:[%s24287_s21 + $0x70] sm:$0xff]  }
 0x4bb   : > { %v3258_v5 = vpop.f32.mrb[130].mxu1  ;;  %v23405_v2 = vld [vmem:[%s24287_s21 + $0x110] sm:$0xff]  }
 0x4bc   : > { %v3343_v0 = vmax.f32 %v3335_v45, %v3258_v5  ;;  %v3260_v43 = vpop.f32.mrb[131].mxu1  ;;  %v23388_v45 = vld [vmem:[%s24287_s21 + $0x88] sm:$0xff]  }
 0x4be   : > { %v25001_v6 = vpack.c.bf16 %v3343_v0, %v3342_v3  ;;  %v23406_v3 = vld [vmem:[%s24287_s21 + $0x118] sm:$0xff]  }
 0x4c0   : > { %20658 = vmatprep.subr.bf16.mxu0 %v25001_v6 }
 0x4c1   : > { %v3263_v7 = vpop.f32.mrb[132].mxu1  ;;  %20659 = vmatpush3.bf16.msra.mxu0 %v25001_v6 }
 0x4c2   : > { %v3344_v8 = vmax.f32 %v3336_v48, %v3263_v7  ;;  %v3265_v9 = vpop.f32.mrb[133].mxu1  ;;  %v23391_v48 = vld [vmem:[%s24287_s21 + $0xa0] sm:$0xff]  }
 0x4c3   : > { %v3266_v10 = vpop.f32.mrb[134].mxu1 }
 0x4c4   : > { %v3345_v11 = vmax.f32 %v3337_v51, %v3266_v10  ;;  %v3268_v12 = vpop.f32.mrb[135].mxu1  ;;  %v23394_v51 = vld [vmem:[%s24287_s21 + $0xb8] sm:$0xff]  }
 0x4c6   : > { %v25005_v13 = vpack.c.bf16 %v3345_v11, %v3344_v8 }
 0x4c8   : > { %20660 = vmatprep.subr.bf16.mxu0 %v25005_v13 }
 0x4c9   : > { %v3271_v14 = vpop.f32.mrb[136].mxu1  ;;  %20661 = vmatpush3.bf16.msra.mxu0 %v25005_v13 }
 0x4ca   : > { %v3346_v15 = vmax.f32 %v3338_v54, %v3271_v14  ;;  %v3273_v16 = vpop.f32.mrb[137].mxu1  ;;  %v23397_v54 = vld [vmem:[%s24287_s21 + $0xd0] sm:$0xff]  }
 0x4cb   : > { %v3274_v17 = vpop.f32.mrb[138].mxu1 }
 0x4cc   : > { %v3347_v18 = vmax.f32 %v3339_v57, %v3274_v17  ;;  %v3276_v19 = vpop.f32.mrb[139].mxu1  ;;  %v4073_v57 = vld [vmem:[%s24292_s25 + $0x4] sm:$0xf] }
 0x4cd   : > { %v4089_v58 = vsel %vm4087_vm2, %v4073_v57, 0 }
 0x4ce   : > { %v25009_v20 = vpack.c.bf16 %v3347_v18, %v3346_v15 }
 0x4d0   : > { %20662 = vmatprep.subr.bf16.mxu0 %v25009_v20 }
 0x4d1   : > { %v3279_v21 = vpop.f32.mrb[140].mxu1  ;;  %20663 = vmatpush3.bf16.msra.mxu0 %v25009_v20 }
 0x4d2   : > { %v3348_v22 = vmax.f32 %v3340_v60, %v3279_v21  ;;  %v3281_v23 = vpop.f32.mrb[141].mxu1  ;;  %v23401_v60 = vld [vmem:[%s24287_s21 + $0xf0] sm:$0xff]  }
 0x4d3   : > { %v3282_v24 = vpop.f32.mrb[142].mxu1  ;;  %v4169_v23 = vsel %vm4087_vm2, %v4072_v61, 0 }
 0x4d4   : > { %v3349_v25 = vmax.f32 %v3341_v63, %v3282_v24  ;;  %v3284_v26 = vpop.f32.mrb[143].mxu1  ;;  %v23403_v63 = vld [vmem:[%s24287_s21 + $0x100] sm:$0xff]   ;;  %v4236_v24 = vld [vmem:[%s24292_s25 + $0x8] sm:$0xf] }
 0x4d6   : > { %v25013_v27 = vpack.c.bf16 %v3349_v25, %v3348_v22 }
 0x4d8   : > { %20664 = vmatprep.subr.bf16.mxu0 %v25013_v27 }
 0x4d9   : > { %20665 = vmatpush3.bf16.msra.mxu0 %v25013_v27 }
 0x4da   : > { %22970 = vmatprep.subr.msk.bf16.mxu0 %vm4087_vm2, %v4073_v57 }
 0x4dc   : > { %20667 = vmatmul.mubr.msk.bf16.vlgmr.msra.gmra.mrb[64].mxu0 %vm3606_vm1, %v23372_v28 }
 0x4dd   : > { %20670 = vmatprep.mubr.msk.bf16.mxu0 %vm3606_vm1, %v23373_v29  ;;  %20739 = vmatpush3.bf16.msra.mxu0 %v4089_v58 }
 0x4de   : > { %22971 = vmatprep.subr.msk.bf16.mxu0 %vm4087_vm2, %v4072_v61 }
 0x4e4   : > { %20671 = vmatmul.mubr.msk.bf16.gmra.mrb[68].mxu0 %vm3606_vm1, %v23374_v30 }
 0x4e5   : > { %20674 = vmatprep.mubr.msk.bf16.mxu0 %vm3606_vm1, %v23375_v31 }
 0x4ec   : > { %20675 = vmatmul.mubr.msk.bf16.gmra.mrb[72].mxu0 %vm3606_vm1, %v23376_v32 }
 0x4ed   : > { %20678 = vmatprep.mubr.msk.bf16.mxu0 %vm3606_vm1, %v23377_v33 }
 0x4f4   : > { %20679 = vmatmul.mubr.msk.bf16.gmra.mrb[76].mxu0 %vm3606_vm1, %v23378_v34 }
 0x4f5   : > { %20682 = vmatprep.mubr.msk.bf16.mxu0 %vm3606_vm1, %v23379_v35 }
 0x4fc   : > { %20683 = vmatmul.mubr.msk.bf16.gmra.mrb[80].mxu0 %vm3606_vm1, %v23380_v36 }
 0x4fd   : > { %20686 = vmatprep.mubr.msk.bf16.mxu0 %vm3606_vm1, %v23381_v37 }
 0x504   : > { %20687 = vmatmul.mubr.msk.bf16.gmra.mrb[84].mxu0 %vm3606_vm1, %v23382_v38  ;;  %v4250_v38 = vsel %vm4087_vm2, %v4236_v24, 0 }
 0x505   : > { %20690 = vmatprep.mubr.msk.bf16.mxu0 %vm3606_vm1, %v23383_v39  ;;  %v4325_v39 = vld [vmem:[%s24292_s25 + $0xc] sm:$0xf] }
 0x50c   : > { %20691 = vmatmul.mubr.msk.bf16.gmra.mrb[88].mxu0 %vm3606_vm1, %v23384_v40 }
 0x50d   : > { %20694 = vmatprep.mubr.msk.bf16.mxu0 %vm3606_vm1, %v23385_v41 }
 0x514   : > { %20695 = vmatmul.mubr.msk.bf16.gmra.mrb[92].mxu0 %vm3606_vm1, %v23386_v42 }
 0x515   : > { %20698 = vmatprep.mubr.msk.bf16.mxu0 %vm3606_vm1, %v23387_v44 }
 0x51c   : > { %20699 = vmatmul.mubr.msk.bf16.gmra.mrb[96].mxu0 %vm3606_vm1, %v23388_v45 }
 0x51d   : > { %20702 = vmatprep.mubr.msk.bf16.mxu0 %vm3606_vm1, %v23389_v46 }
 0x524   : > { %20703 = vmatmul.mubr.msk.bf16.gmra.mrb[100].mxu0 %vm3606_vm1, %v23390_v47 }
 0x525   : > { %20706 = vmatprep.mubr.msk.bf16.mxu0 %vm3606_vm1, %v23391_v48 }
 0x52c   : > { %20707 = vmatmul.mubr.msk.bf16.gmra.mrb[104].mxu0 %vm3606_vm1, %v23392_v49 }
 0x52d   : > { %20710 = vmatprep.mubr.msk.bf16.mxu0 %vm3606_vm1, %v23393_v50 }
 0x534   : > { %20711 = vmatmul.mubr.msk.bf16.gmra.mrb[108].mxu0 %vm3606_vm1, %v23394_v51 }
 0x535   : > { %20714 = vmatprep.mubr.msk.bf16.mxu0 %vm3606_vm1, %v23395_v52 }
 0x53c   : > { %20715 = vmatmul.mubr.msk.bf16.gmra.mrb[112].mxu0 %vm3606_vm1, %v23396_v53  ;;  %v4339_v53 = vsel %vm4087_vm2, %v4325_v39, 0 }
 0x53d   : > { %20718 = vmatprep.mubr.msk.bf16.mxu0 %vm3606_vm1, %v23397_v54  ;;  %v4414_v54 = vld [vmem:[%s24292_s25 + $0x10] sm:$0xf] }
 0x544   : > { %20719 = vmatmul.mubr.msk.bf16.gmra.mrb[116].mxu0 %vm3606_vm1, %v23398_v55 }
 0x545   : > { %20722 = vmatprep.mubr.msk.bf16.mxu0 %vm3606_vm1, %v23399_v56 }
 0x54c   : > { %20723 = vmatmul.mubr.msk.bf16.gmra.mrb[120].mxu0 %vm3606_vm1, %v23400_v59 }
 0x54d   : > { %20726 = vmatprep.mubr.msk.bf16.mxu0 %vm3606_vm1, %v23401_v60 }
 0x554   : > { %20727 = vmatmul.mubr.msk.bf16.gmra.mrb[124].mxu0 %vm3606_vm1, %v23402_v62 }
 0x555   : > { %20730 = vmatprep.mubr.msk.bf16.mxu0 %vm3606_vm1, %v23403_v63 }
 0x55c   : > { %20731 = vmatmul.mubr.msk.bf16.gmra.mrb[128].mxu0 %vm3606_vm1, %v23404_v1 }
 0x55d   : > { %20734 = vmatprep.mubr.msk.bf16.mxu0 %vm3606_vm1, %v23405_v2 }
 0x564   : > { %20735 = vmatmul.mubr.msk.bf16.gmra.mrb[132].mxu0 %vm3606_vm1, %v23406_v3 }
 0x5af   : > { %v20668_v4 = vpop.f32.mrb[64].mxu0 }
 0x5b0   : > { %v3749_v5 = vpop.f32.mrb[65].mxu0 }
 0x5b1   : > { %v20669_v0 = vpop.f32.mrb[66].mxu0 }
 0x5b2   : > { %v4037_v43 = vpack.c.bf16 %v20669_v0, %v20668_v4  ;;  %v3752_v7 = vpop.f32.mrb[67].mxu0  ;;  %v4428_v4 = vsel %vm4087_vm2, %v4414_v54, 0 }
 0x5b3   : > { %v4036_v8 = vpack.c.bf16 %v3752_v7, %v3749_v5  ;;  %v4503_v5 = vld [vmem:[%s24292_s25 + $0x14] sm:$0xf] }
 0x5b7   : > { %v20672_v9 = vpop.f32.mrb[68].mxu0 }
 0x5b8   : > { %v3765_v10 = vpop.f32.mrb[69].mxu0 }
 0x5b9   : > { %v20673_v11 = vpop.f32.mrb[70].mxu0 }
 0x5ba   : > { %v4039_v12 = vpack.c.bf16 %v20673_v11, %v20672_v9  ;;  %v3768_v14 = vpop.f32.mrb[71].mxu0 }
 0x5bb   : > { %v4038_v15 = vpack.c.bf16 %v3768_v14, %v3765_v10 }
 0x5bf   : > { %v20676_v16 = vpop.f32.mrb[72].mxu0 }
 0x5c0   : > { %v3781_v17 = vpop.f32.mrb[73].mxu0 }
 0x5c1   : > { %v20677_v18 = vpop.f32.mrb[74].mxu0 }
 0x5c2   : > { %v4041_v19 = vpack.c.bf16 %v20677_v18, %v20676_v16  ;;  %v3784_v21 = vpop.f32.mrb[75].mxu0  ;;  %v4517_v18 = vsel %vm4087_vm2, %v4503_v5, 0 }
 0x5c3   : > { %v4040_v22 = vpack.c.bf16 %v3784_v21, %v3781_v17 }
 0x5c5   : > { %20740 = vmatprep.mubr.msk.bf16.mxu0 %vm4074_vm3, %v4040_v22 }
 0x5c6   : > { %20741 = vmatmul.mubr.msk.bf16.vlgmr.msra.gmra.mrb[136].mxu0 %vm4074_vm3, %v4041_v19  ;;  %v4592_v19 = vld [vmem:[%s24292_s25 + $0x18] sm:$0xf] }
 0x5c7   : > { %v20680_v25 = vpop.f32.mrb[76].mxu0  ;;  %20749 = vmatpush3.bf16.msra.mxu0 %v4169_v23 }
 0x5c8   : > { %v3797_v26 = vpop.f32.mrb[77].mxu0  ;;  %22972 = vmatprep.subr.msk.bf16.mxu0 %vm4087_vm2, %v4236_v24 }
 0x5c9   : > { %v20681_v28 = vpop.f32.mrb[78].mxu0 }
 0x5ca   : > { %v4043_v29 = vpack.c.bf16 %v20681_v28, %v20680_v25  ;;  %v3800_v30 = vpop.f32.mrb[79].mxu0 }
 0x5cb   : > { %v4042_v31 = vpack.c.bf16 %v3800_v30, %v3797_v26 }
 0x5cd   : > { %20744 = vmatprep.mubr.msk.bf16.mxu0 %vm4074_vm3, %v4042_v31 }
 0x5ce   : > { %20745 = vmatmul.mubr.msk.bf16.gmra.mrb[140].mxu0 %vm4074_vm3, %v4043_v29 }
 0x5cf   : > { %20750 = vmatprep.mubr.msk.bf16.mxu0 %vm4074_vm3, %v4036_v8  ;;  %v20684_v32 = vpop.f32.mrb[80].mxu0 }
 0x5d0   : > { %v3813_v33 = vpop.f32.mrb[81].mxu0 }
 0x5d1   : > { %v20685_v34 = vpop.f32.mrb[82].mxu0 }
 0x5d2   : > { %v4045_v35 = vpack.c.bf16 %v20685_v34, %v20684_v32  ;;  %v3816_v36 = vpop.f32.mrb[83].mxu0  ;;  %v4606_v34 = vsel %vm4087_vm2, %v4592_v19, 0 }
 0x5d3   : > { %v4044_v37 = vpack.c.bf16 %v3816_v36, %v3813_v33 }
 0x5d6   : > { %20751 = vmatmul.mubr.msk.bf16.vlgmr.msra.gmra.mrb[136].mxu0 %vm4074_vm3, %v4037_v43 }
 0x5d7   : > { %20754 = vmatprep.mubr.msk.bf16.mxu0 %vm4074_vm3, %v4038_v15  ;;  %20759 = vmatpush3.bf16.msra.mxu0 %v4250_v38  ;;  %v20688_v40 = vpop.f32.mrb[84].mxu0 }
 0x5d8   : > { %v3829_v41 = vpop.f32.mrb[85].mxu0  ;;  %22973 = vmatprep.subr.msk.bf16.mxu0 %vm4087_vm2, %v4325_v39 }
 0x5d9   : > { %v20689_v42 = vpop.f32.mrb[86].mxu0 }
 0x5da   : > { %v4047_v44 = vpack.c.bf16 %v20689_v42, %v20688_v40  ;;  %v3832_v45 = vpop.f32.mrb[87].mxu0 }
 0x5db   : > { %v4046_v46 = vpack.c.bf16 %v3832_v45, %v3829_v41 }
 0x5de   : > { %20755 = vmatmul.mubr.msk.bf16.gmra.mrb[140].mxu0 %vm4074_vm3, %v4039_v12 }
 0x5df   : > { %20760 = vmatprep.mubr.msk.bf16.mxu0 %vm4074_vm3, %v4044_v37  ;;  %v20692_v47 = vpop.f32.mrb[88].mxu0 }
 0x5e0   : > { %v3845_v48 = vpop.f32.mrb[89].mxu0 }
 0x5e1   : > { %v20693_v49 = vpop.f32.mrb[90].mxu0 }
 0x5e2   : > { %v4049_v50 = vpack.c.bf16 %v20693_v49, %v20692_v47  ;;  %v3848_v51 = vpop.f32.mrb[91].mxu0 }
 0x5e3   : > { %v4048_v52 = vpack.c.bf16 %v3848_v51, %v3845_v48 }
 0x5e6   : > { %20761 = vmatmul.mubr.msk.bf16.vlgmr.msra.gmra.mrb[136].mxu0 %vm4074_vm3, %v4045_v35  ;;  %v4681_v35 = vld [vmem:[%s24292_s25 + $0x1c] sm:$0xf] }
 0x5e7   : > { %20764 = vmatprep.mubr.msk.bf16.mxu0 %vm4074_vm3, %v4046_v46  ;;  %20769 = vmatpush3.bf16.msra.mxu0 %v4339_v53  ;;  %v20696_v55 = vpop.f32.mrb[92].mxu0  ;;  %v4695_v49 = vsel %vm4087_vm2, %v4681_v35, 0 }
 0x5e8   : > { %v3861_v56 = vpop.f32.mrb[93].mxu0  ;;  %22974 = vmatprep.subr.msk.bf16.mxu0 %vm4087_vm2, %v4414_v54 }
 0x5e9   : > { %v20697_v57 = vpop.f32.mrb[94].mxu0 }
 0x5ea   : > { %v4051_v58 = vpack.c.bf16 %v20697_v57, %v20696_v55  ;;  %v3864_v59 = vpop.f32.mrb[95].mxu0 }
 0x5eb   : > { %v4050_v60 = vpack.c.bf16 %v3864_v59, %v3861_v56 }
 0x5ee   : > { %20765 = vmatmul.mubr.msk.bf16.gmra.mrb[140].mxu0 %vm4074_vm3, %v4047_v44 }
 0x5ef   : > { %20770 = vmatprep.mubr.msk.bf16.mxu0 %vm4074_vm3, %v4048_v52  ;;  %v20700_v61 = vpop.f32.mrb[96].mxu0 }
 0x5f0   : > { %v3877_v62 = vpop.f32.mrb[97].mxu0 }
 0x5f1   : > { %v20701_v63 = vpop.f32.mrb[98].mxu0 }
 0x5f2   : > { %v4053_v1 = vpack.c.bf16 %v20701_v63, %v20700_v61  ;;  %v3880_v2 = vpop.f32.mrb[99].mxu0 }
 0x5f3   : > { %v4052_v3 = vpack.c.bf16 %v3880_v2, %v3877_v62 }
 0x5f6   : > { %20771 = vmatmul.mubr.msk.bf16.vlgmr.msra.gmra.mrb[136].mxu0 %vm4074_vm3, %v4049_v50  ;;  %v4770_v50 = vld [vmem:[%s24292_s25 + $0x20] sm:$0xf] }
 0x5f7   : > { %20774 = vmatprep.mubr.msk.bf16.mxu0 %vm4074_vm3, %v4050_v60  ;;  %20779 = vmatpush3.bf16.msra.mxu0 %v4428_v4  ;;  %v20704_v0 = vpop.f32.mrb[100].mxu0  ;;  %v4784_v63 = vsel %vm4087_vm2, %v4770_v50, 0 }
 0x5f8   : > { %v3893_v43 = vpop.f32.mrb[101].mxu0  ;;  %22975 = vmatprep.subr.msk.bf16.mxu0 %vm4087_vm2, %v4503_v5 }
 0x5f9   : > { %v20705_v7 = vpop.f32.mrb[102].mxu0 }
 0x5fa   : > { %v4055_v8 = vpack.c.bf16 %v20705_v7, %v20704_v0  ;;  %v3896_v9 = vpop.f32.mrb[103].mxu0  ;;  %v19038_v7 = vld [vmem:[%s27108_s11] ss:$0 sm:$0xff]  ;;  %s27117_s11 = sld [smem:[#allocation39_spill]] }
 0x5fb   : > { %v4054_v10 = vpack.c.bf16 %v3896_v9, %v3893_v43  ;;  %v23407_v43 = vld [vmem:[%s27107_s23] sm:$0xff]  }
 0x5fc   : > { %20836 = vmatprep.mubr.msk.bf16.mxu1 %vm3606_vm1, %v23407_v43  ;;  %v23436_v43 = vld [vmem:[%s27107_s23 + $0xe8] sm:$0xff]  }
 0x5fe   : > { %20775 = vmatmul.mubr.msk.bf16.gmra.mrb[140].mxu0 %vm4074_vm3, %v4051_v58 }
 0x5ff   : > { %20780 = vmatprep.mubr.msk.bf16.mxu0 %vm4074_vm3, %v4052_v3  ;;  %v20708_v11 = vpop.f32.mrb[104].mxu0 }
 0x600   : > { %v3909_v12 = vpop.f32.mrb[105].mxu0 }
 0x601   : > { %v20709_v14 = vpop.f32.mrb[106].mxu0 }
 0x602   : > { %v4057_v15 = vpack.c.bf16 %v20709_v14, %v20708_v11  ;;  %v3912_v16 = vpop.f32.mrb[107].mxu0 }
 0x603   : > { %v4056_v17 = vpack.c.bf16 %v3912_v16, %v3909_v12 }
 0x606   : > { %20781 = vmatmul.mubr.msk.bf16.vlgmr.msra.gmra.mrb[136].mxu0 %vm4074_vm3, %v4053_v1 }
 0x607   : > { %20784 = vmatprep.mubr.msk.bf16.mxu0 %vm4074_vm3, %v4054_v10  ;;  %20789 = vmatpush3.bf16.msra.mxu0 %v4517_v18  ;;  %v20712_v21 = vpop.f32.mrb[108].mxu0 }
 0x608   : > { %v3925_v22 = vpop.f32.mrb[109].mxu0  ;;  %22976 = vmatprep.subr.msk.bf16.mxu0 %vm4087_vm2, %v4592_v19 }
 0x609   : > { %v20713_v23 = vpop.f32.mrb[110].mxu0 }
 0x60a   : > { %v4059_v24 = vpack.c.bf16 %v20713_v23, %v20712_v21  ;;  %v3928_v25 = vpop.f32.mrb[111].mxu0 }
 0x60b   : > { %v4058_v26 = vpack.c.bf16 %v3928_v25, %v3925_v22 }
 0x60e   : > { %20785 = vmatmul.mubr.msk.bf16.gmra.mrb[140].mxu0 %vm4074_vm3, %v4055_v8 }
 0x60f   : > { %20790 = vmatprep.mubr.msk.bf16.mxu0 %vm4074_vm3, %v4056_v17  ;;  %v20716_v28 = vpop.f32.mrb[112].mxu0 }
 0x610   : > { %v3941_v29 = vpop.f32.mrb[113].mxu0 }
 0x611   : > { %v20717_v30 = vpop.f32.mrb[114].mxu0 }
 0x612   : > { %v4061_v31 = vpack.c.bf16 %v20717_v30, %v20716_v28  ;;  %v3944_v32 = vpop.f32.mrb[115].mxu0 }
 0x613   : > { %v4060_v33 = vpack.c.bf16 %v3944_v32, %v3941_v29 }
 0x616   : > { %20791 = vmatmul.mubr.msk.bf16.vlgmr.msra.gmra.mrb[136].mxu0 %vm4074_vm3, %v4057_v15 }
 0x617   : > { %20794 = vmatprep.mubr.msk.bf16.mxu0 %vm4074_vm3, %v4058_v26  ;;  %20799 = vmatpush3.bf16.msra.mxu0 %v4606_v34  ;;  %v20720_v36 = vpop.f32.mrb[116].mxu0 }
 0x618   : > { %v3957_v37 = vpop.f32.mrb[117].mxu0  ;;  %22977 = vmatprep.subr.msk.bf16.mxu0 %vm4087_vm2, %v4681_v35 }
 0x619   : > { %v20721_v38 = vpop.f32.mrb[118].mxu0 }
 0x61a   : > { %v4063_v39 = vpack.c.bf16 %v20721_v38, %v20720_v36  ;;  %v3960_v40 = vpop.f32.mrb[119].mxu0 }
 0x61b   : > { %v4062_v41 = vpack.c.bf16 %v3960_v40, %v3957_v37  ;;  %v23409_v40 = vld [vmem:[%s27107_s23 + $0x10] sm:$0xff]  }
 0x61e   : > { %20795 = vmatmul.mubr.msk.bf16.gmra.mrb[140].mxu0 %vm4074_vm3, %v4059_v24 }
 0x61f   : > { %20800 = vmatprep.mubr.msk.bf16.mxu0 %vm4074_vm3, %v4060_v33  ;;  %v20724_v42 = vpop.f32.mrb[120].mxu0 }
 0x620   : > { %v3973_v44 = vpop.f32.mrb[121].mxu0 }
 0x621   : > { %v20725_v45 = vpop.f32.mrb[122].mxu0 }
 0x622   : > { %v4065_v46 = vpack.c.bf16 %v20725_v45, %v20724_v42  ;;  %v3976_v47 = vpop.f32.mrb[123].mxu0  ;;  %v23411_v42 = vld [vmem:[%s27107_s23 + $0x20] sm:$0xff]   ;;  %v23413_v45 = vld [vmem:[%s27107_s23 + $0x30] sm:$0xff]  }
 0x623   : > { %v4064_v48 = vpack.c.bf16 %v3976_v47, %v3973_v44  ;;  %v23412_v44 = vld [vmem:[%s27107_s23 + $0x28] sm:$0xff]   ;;  %v23415_v47 = vld [vmem:[%s27107_s23 + $0x40] sm:$0xff]  }
 0x626   : > { %20801 = vmatmul.mubr.msk.bf16.vlgmr.msra.gmra.mrb[136].mxu0 %vm4074_vm3, %v4061_v31 }
 0x627   : > { %20804 = vmatprep.mubr.msk.bf16.mxu0 %vm4074_vm3, %v4062_v41  ;;  %20809 = vmatpush3.bf16.msra.mxu0 %v4695_v49  ;;  %v20728_v51 = vpop.f32.mrb[124].mxu0  ;;  %v23410_v41 = vld [vmem:[%s27107_s23 + $0x18] sm:$0xff]   ;;  %v23417_v49 = vld [vmem:[%s27107_s23 + $0x50] sm:$0xff]  }
 0x628   : > { %v3989_v52 = vpop.f32.mrb[125].mxu0  ;;  %22978 = vmatprep.subr.msk.bf16.mxu0 %vm4087_vm2, %v4770_v50  ;;  %v23418_v50 = vld [vmem:[%s27107_s23 + $0x58] sm:$0xff]  }
 0x629   : > { %v20729_v53 = vpop.f32.mrb[126].mxu0 }
 0x62a   : > { %v4067_v54 = vpack.c.bf16 %v20729_v53, %v20728_v51  ;;  %v3992_v55 = vpop.f32.mrb[127].mxu0  ;;  %v23419_v51 = vld [vmem:[%s27107_s23 + $0x60] sm:$0xff]   ;;  %v23421_v53 = vld [vmem:[%s27107_s23 + $0x70] sm:$0xff]  }
 0x62b   : > { %v4066_v56 = vpack.c.bf16 %v3992_v55, %v3989_v52  ;;  %v23420_v52 = vld [vmem:[%s27107_s23 + $0x68] sm:$0xff]   ;;  %v23423_v55 = vld [vmem:[%s27107_s23 + $0x80] sm:$0xff]  }
 0x62e   : > { %20805 = vmatmul.mubr.msk.bf16.gmra.mrb[140].mxu0 %vm4074_vm3, %v4063_v39  ;;  %v23408_v39 = vld [vmem:[%s27107_s23 + $0x8] sm:$0xff]  }
 0x62f   : > { %20810 = vmatprep.mubr.msk.bf16.mxu0 %vm4074_vm3, %v4064_v48  ;;  %v20732_v57 = vpop.f32.mrb[128].mxu0  ;;  %v23416_v48 = vld [vmem:[%s27107_s23 + $0x48] sm:$0xff]  }
 0x630   : > { %v4005_v58 = vpop.f32.mrb[129].mxu0 }
 0x631   : > { %v20733_v59 = vpop.f32.mrb[130].mxu0 }
 0x632   : > { %v4069_v60 = vpack.c.bf16 %v20733_v59, %v20732_v57  ;;  %v4008_v61 = vpop.f32.mrb[131].mxu0  ;;  %v23425_v57 = vld [vmem:[%s27107_s23 + $0x90] sm:$0xff]   ;;  %v23427_v59 = vld [vmem:[%s27107_s23 + $0xa0] sm:$0xff]  }
 0x633   : > { %v4068_v62 = vpack.c.bf16 %v4008_v61, %v4005_v58  ;;  %v23426_v58 = vld [vmem:[%s27107_s23 + $0x98] sm:$0xff]   ;;  %v23429_v61 = vld [vmem:[%s27107_s23 + $0xb0] sm:$0xff]  }
 0x636   : > { %20811 = vmatmul.mubr.msk.bf16.vlgmr.msra.gmra.mrb[136].mxu0 %vm4074_vm3, %v4065_v46  ;;  %v23414_v46 = vld [vmem:[%s27107_s23 + $0x38] sm:$0xff]  }
 0x637   : > { %20814 = vmatprep.mubr.msk.bf16.mxu0 %vm4074_vm3, %v4066_v56  ;;  %20819 = vmatpush3.bf16.msra.mxu0 %v4784_v63  ;;  %v20736_v1 = vpop.f32.mrb[132].mxu0  ;;  %v23424_v56 = vld [vmem:[%s27107_s23 + $0x88] sm:$0xff]   ;;  %v23431_v63 = vld [vmem:[%s27107_s23 + $0xc0] sm:$0xff]  }
 0x638   : > { %v4021_v2 = vpop.f32.mrb[133].mxu0 }
 0x639   : > { %v20737_v3 = vpop.f32.mrb[134].mxu0 }
 0x63a   : > { %v4071_v4 = vpack.c.bf16 %v20737_v3, %v20736_v1  ;;  %v4024_v5 = vpop.f32.mrb[135].mxu0  ;;  %v23432_v1 = vld [vmem:[%s27107_s23 + $0xc8] sm:$0xff]   ;;  %v23434_v3 = vld [vmem:[%s27107_s23 + $0xd8] sm:$0xff]  }
 0x63b   : > { %v4070_v0 = vpack.c.bf16 %v4024_v5, %v4021_v2  ;;  %v23433_v2 = vld [vmem:[%s27107_s23 + $0xd0] sm:$0xff]   ;;  %v5612_v5 = vld [vmem:[%s27109_s28 + $0x4] sm:$0xf]  ;;  %s19876_s28 = sshll.u32 %s24781_s2, 6  ;;  %s27118_s2 = sld [smem:[#allocation40_spill]] }
 0x63c   : > { %22979 = vmatprep.subr.msk.bf16.mxu0 %vm4087_vm2, %v5612_v5 }
 0x63e   : > { %20815 = vmatmul.mubr.msk.bf16.gmra.mrb[140].mxu0 %vm4074_vm3, %v4067_v54  ;;  %v23422_v54 = vld [vmem:[%s27107_s23 + $0x78] sm:$0xff]  }
 0x63f   : > { %20820 = vmatprep.mubr.msk.bf16.mxu0 %vm4074_vm3, %v4068_v62  ;;  %v23430_v62 = vld [vmem:[%s27107_s23 + $0xb8] sm:$0xff]  }
 0x646   : > { %20821 = vmatmul.mubr.msk.bf16.vlgmr.msra.gmra.mrb[136].mxu0 %vm4074_vm3, %v4069_v60  ;;  %v23428_v60 = vld [vmem:[%s27107_s23 + $0xa8] sm:$0xff]  }
 0x647   : > { %20824 = vmatprep.mubr.msk.bf16.mxu0 %vm4074_vm3, %v4070_v0  ;;  %v5626_v0 = vsel %vm4087_vm2, %v5612_v5, 0 }
 0x648   : > { %20909 = vmatpush3.bf16.msra.mxu0 %v5626_v0 }
 0x64e   : > { %20825 = vmatmul.mubr.msk.bf16.gmra.mrb[140].mxu0 %vm4074_vm3, %v4071_v4  ;;  %v23435_v4 = vld [vmem:[%s27107_s23 + $0xe0] sm:$0xff]  }
 0x719   : > { %v20822_v8 = vpop.f32.mrb[136].mxu0 }
 0x71a   : > { %v4868_v9 = vadd.f32 %v20822_v8, %v19038_v7  ;;  %v4820_v10 = vpop.f32.mrb[137].mxu0  ;;  %v5611_v8 = vld [vmem:[%s27110_s16] sm:$0xf] }
 0x71b   : > { %v4866_v11 = vadd.f32 %v19038_v7, %v4820_v10  ;;  %v20823_v12 = vpop.f32.mrb[138].mxu0  ;;  %22980 = vmatprep.subr.msk.bf16.mxu0 %vm4087_vm2, %v5611_v8  ;;  %v23439_v10 = vld [vmem:[%s27107_s23 + $0x100] sm:$0xff]  }
 0x71c   : > { %v4869_v14 = vadd.f32 %v20823_v12, %v19038_v7  ;;  %v4823_v15 = vpop.f32.mrb[139].mxu0  ;;  %v4876_v17 = vmax.f32 %v4868_v9, 0.0  ;;  %v23438_v9 = vld [vmem:[%s27107_s23 + $0xf8] sm:$0xff]   ;;  %v23441_v12 = vld [vmem:[%s27107_s23 + $0x110] sm:$0xff]  }
 0x71d   : > { %v4867_v16 = vadd.f32 %v19038_v7, %v4823_v15  ;;  %v4874_v19 = vmax.f32 %v4866_v11, 0.0  ;;  %v23440_v11 = vld [vmem:[%s27107_s23 + $0x108] sm:$0xff]  }
 0x71e   : > { %v4877_v18 = vmax.f32 %v4869_v14, 0.0  ;;  %v23442_v14 = vld [vmem:[%s27107_s23 + $0x118] sm:$0xff]  }
 0x71f   : > { %v4875_v21 = vmax.f32 %v4867_v16, 0.0 }
 0x720   : > { %v4891_v22 = vpack.c.bf16 %v4877_v18, %v4876_v17 }
 0x721   : > { %v20826_v23 = vpop.f32.mrb[140].mxu0  ;;  %v4890_v24 = vpack.c.bf16 %v4875_v21, %v4874_v19 }
 0x722   : > { %v4872_v25 = vadd.f32 %v20826_v23, %v19038_v7  ;;  %v4836_v26 = vpop.f32.mrb[141].mxu0 }
 0x723   : > { %v4870_v28 = vadd.f32 %v19038_v7, %v4836_v26  ;;  %v20827_v29 = vpop.f32.mrb[142].mxu0  ;;  %20828 = vmatprep.subr.bf16.mxu1 %v4890_v24 }
 0x724   : > { %v4873_v30 = vadd.f32 %v20827_v29, %v19038_v7  ;;  %v4839_v31 = vpop.f32.mrb[143].mxu0  ;;  %20829 = vmatpush3.bf16.msra.mxu1 %v4890_v24  ;;  %v4880_v33 = vmax.f32 %v4872_v25, 0.0 }
 0x725   : > { %v4871_v32 = vadd.f32 %v19038_v7, %v4839_v31  ;;  %20830 = vmatprep.subr.bf16.mxu1 %v4891_v22  ;;  %v4878_v35 = vmax.f32 %v4870_v28, 0.0  ;;  %v23437_v7 = vld [vmem:[%s27107_s23 + $0xf0] sm:$0xff]  }
 0x726   : > { %v4881_v34 = vmax.f32 %v4873_v30, 0.0 }
 0x727   : > { %v4879_v36 = vmax.f32 %v4871_v32, 0.0 }
 0x728   : > { %20831 = vmatpush3.bf16.msra.mxu1 %v4891_v22  ;;  %v4893_v37 = vpack.c.bf16 %v4881_v34, %v4880_v33 }
 0x729   : > { %v4892_v38 = vpack.c.bf16 %v4879_v36, %v4878_v35  ;;  %v5706_v35 = vsel %vm4087_vm2, %v5611_v8, 0  ;;  %v5773_v36 = vld [vmem:[%s27110_s16 + $0x8] sm:$0xf] }
 0x72b   : > { %20832 = vmatprep.subr.bf16.mxu1 %v4892_v38 }
 0x72c   : > { %20833 = vmatpush3.bf16.msra.mxu1 %v4892_v38 }
 0x72d   : > { %20834 = vmatprep.subr.bf16.mxu1 %v4893_v37 }
 0x730   : > { %20835 = vmatpush3.bf16.msra.mxu1 %v4893_v37 }
 0x733   : > { %20837 = vmatmul.mubr.msk.bf16.vlgmr.msra.gmra.mrb[144].mxu1 %vm3606_vm1, %v23408_v39 }
 0x734   : > { %20840 = vmatprep.mubr.msk.bf16.mxu1 %vm3606_vm1, %v23409_v40 }
 0x73b   : > { %20841 = vmatmul.mubr.msk.bf16.gmra.mrb[148].mxu1 %vm3606_vm1, %v23410_v41 }
 0x73c   : > { %20844 = vmatprep.mubr.msk.bf16.mxu1 %vm3606_vm1, %v23411_v42 }
 0x743   : > { %20845 = vmatmul.mubr.msk.bf16.gmra.mrb[152].mxu1 %vm3606_vm1, %v23412_v44 }
 0x744   : > { %20848 = vmatprep.mubr.msk.bf16.mxu1 %vm3606_vm1, %v23413_v45 }
 0x74b   : > { %20849 = vmatmul.mubr.msk.bf16.gmra.mrb[156].mxu1 %vm3606_vm1, %v23414_v46 }
 0x74c   : > { %20852 = vmatprep.mubr.msk.bf16.mxu1 %vm3606_vm1, %v23415_v47 }
 0x753   : > { %20853 = vmatmul.mubr.msk.bf16.gmra.mrb[160].mxu1 %vm3606_vm1, %v23416_v48 }
 0x754   : > { %20856 = vmatprep.mubr.msk.bf16.mxu1 %vm3606_vm1, %v23417_v49 }
 0x75b   : > { %20857 = vmatmul.mubr.msk.bf16.gmra.mrb[164].mxu1 %vm3606_vm1, %v23418_v50  ;;  %v5787_v50 = vsel %vm4087_vm2, %v5773_v36, 0 }
 0x75c   : > { %20860 = vmatprep.mubr.msk.bf16.mxu1 %vm3606_vm1, %v23419_v51  ;;  %v5862_v51 = vld [vmem:[%s27110_s16 + $0xc] sm:$0xf] }
 0x763   : > { %20861 = vmatmul.mubr.msk.bf16.gmra.mrb[168].mxu1 %vm3606_vm1, %v23420_v52 }
 0x764   : > { %20864 = vmatprep.mubr.msk.bf16.mxu1 %vm3606_vm1, %v23421_v53 }
 0x76b   : > { %20865 = vmatmul.mubr.msk.bf16.gmra.mrb[172].mxu1 %vm3606_vm1, %v23422_v54 }
 0x76c   : > { %20868 = vmatprep.mubr.msk.bf16.mxu1 %vm3606_vm1, %v23423_v55 }
 0x773   : > { %20869 = vmatmul.mubr.msk.bf16.gmra.mrb[176].mxu1 %vm3606_vm1, %v23424_v56 }
 0x774   : > { %20872 = vmatprep.mubr.msk.bf16.mxu1 %vm3606_vm1, %v23425_v57 }
 0x77b   : > { %20873 = vmatmul.mubr.msk.bf16.gmra.mrb[180].mxu1 %vm3606_vm1, %v23426_v58 }
 0x77c   : > { %20876 = vmatprep.mubr.msk.bf16.mxu1 %vm3606_vm1, %v23427_v59 }
 0x783   : > { %20877 = vmatmul.mubr.msk.bf16.gmra.mrb[184].mxu1 %vm3606_vm1, %v23428_v60 }
 0x784   : > { %20880 = vmatprep.mubr.msk.bf16.mxu1 %vm3606_vm1, %v23429_v61 }
 0x78b   : > { %20881 = vmatmul.mubr.msk.bf16.gmra.mrb[188].mxu1 %vm3606_vm1, %v23430_v62 }
 0x78c   : > { %20884 = vmatprep.mubr.msk.bf16.mxu1 %vm3606_vm1, %v23431_v63 }
 0x793   : > { %20885 = vmatmul.mubr.msk.bf16.gmra.mrb[192].mxu1 %vm3606_vm1, %v23432_v1  ;;  %v5876_v1 = vsel %vm4087_vm2, %v5862_v51, 0 }
 0x794   : > { %20888 = vmatprep.mubr.msk.bf16.mxu1 %vm3606_vm1, %v23433_v2  ;;  %v5951_v2 = vld [vmem:[%s27110_s16 + $0x10] sm:$0xf] }
 0x79b   : > { %20889 = vmatmul.mubr.msk.bf16.gmra.mrb[196].mxu1 %vm3606_vm1, %v23434_v3 }
 0x79c   : > { %20892 = vmatprep.mubr.msk.bf16.mxu1 %vm3606_vm1, %v23435_v4 }
 0x7a3   : > { %20893 = vmatmul.mubr.msk.bf16.gmra.mrb[200].mxu1 %vm3606_vm1, %v23436_v43 }
 0x7a4   : > { %20896 = vmatprep.mubr.msk.bf16.mxu1 %vm3606_vm1, %v23437_v7 }
 0x7ab   : > { %20897 = vmatmul.mubr.msk.bf16.gmra.mrb[204].mxu1 %vm3606_vm1, %v23438_v9 }
 0x7ac   : > { %20900 = vmatprep.mubr.msk.bf16.mxu1 %vm3606_vm1, %v23439_v10 }
 0x7b3   : > { %20901 = vmatmul.mubr.msk.bf16.gmra.mrb[208].mxu1 %vm3606_vm1, %v23440_v11 }
 0x7b4   : > { %20904 = vmatprep.mubr.msk.bf16.mxu1 %vm3606_vm1, %v23441_v12 }
 0x7bb   : > { %20905 = vmatmul.mubr.msk.bf16.gmra.mrb[212].mxu1 %vm3606_vm1, %v23442_v14 }
 0x806   : > { %v20838_v15 = vpop.f32.mrb[144].mxu1 }
 0x807   : > { %v5288_v16 = vpop.f32.mrb[145].mxu1 }
 0x808   : > { %v20839_v17 = vpop.f32.mrb[146].mxu1 }
 0x809   : > { %v5576_v18 = vpack.c.bf16 %v20839_v17, %v20838_v15  ;;  %v5291_v19 = vpop.f32.mrb[147].mxu1  ;;  %v5965_v15 = vsel %vm4087_vm2, %v5951_v2, 0 }
 0x80a   : > { %v5575_v21 = vpack.c.bf16 %v5291_v19, %v5288_v16  ;;  %v6040_v16 = vld [vmem:[%s27110_s16 + $0x14] sm:$0xf] }
 0x80e   : > { %v20842_v22 = vpop.f32.mrb[148].mxu1 }
 0x80f   : > { %v5304_v23 = vpop.f32.mrb[149].mxu1 }
 0x810   : > { %v20843_v24 = vpop.f32.mrb[150].mxu1 }
 0x811   : > { %v5578_v25 = vpack.c.bf16 %v20843_v24, %v20842_v22  ;;  %v5307_v26 = vpop.f32.mrb[151].mxu1 }
 0x812   : > { %v5577_v28 = vpack.c.bf16 %v5307_v26, %v5304_v23 }
 0x816   : > { %v20846_v29 = vpop.f32.mrb[152].mxu1 }
 0x817   : > { %v5320_v30 = vpop.f32.mrb[153].mxu1 }
 0x818   : > { %v20847_v31 = vpop.f32.mrb[154].mxu1 }
 0x819   : > { %v5580_v32 = vpack.c.bf16 %v20847_v31, %v20846_v29  ;;  %v5323_v33 = vpop.f32.mrb[155].mxu1  ;;  %v6054_v31 = vsel %vm4087_vm2, %v6040_v16, 0 }
 0x81a   : > { %v5579_v34 = vpack.c.bf16 %v5323_v33, %v5320_v30 }
 0x81c   : > { %20910 = vmatprep.mubr.msk.bf16.mxu0 %vm4074_vm3, %v5579_v34 }
 0x81d   : > { %20911 = vmatmul.mubr.msk.bf16.vlgmr.msra.gmra.mrb[144].mxu0 %vm4074_vm3, %v5580_v32  ;;  %v6129_v32 = vld [vmem:[%s27110_s16 + $0x18] sm:$0xf] }
 0x81e   : > { %v20850_v37 = vpop.f32.mrb[156].mxu1  ;;  %20919 = vmatpush3.bf16.msra.mxu0 %v5706_v35 }
 0x81f   : > { %v5336_v38 = vpop.f32.mrb[157].mxu1  ;;  %22981 = vmatprep.subr.msk.bf16.mxu0 %vm4087_vm2, %v5773_v36 }
 0x820   : > { %v20851_v39 = vpop.f32.mrb[158].mxu1 }
 0x821   : > { %v5582_v40 = vpack.c.bf16 %v20851_v39, %v20850_v37  ;;  %v5339_v41 = vpop.f32.mrb[159].mxu1 }
 0x822   : > { %v5581_v42 = vpack.c.bf16 %v5339_v41, %v5336_v38 }
 0x824   : > { %20914 = vmatprep.mubr.msk.bf16.mxu0 %vm4074_vm3, %v5581_v42 }
 0x825   : > { %20915 = vmatmul.mubr.msk.bf16.gmra.mrb[148].mxu0 %vm4074_vm3, %v5582_v40 }
 0x826   : > { %20920 = vmatprep.mubr.msk.bf16.mxu0 %vm4074_vm3, %v5575_v21  ;;  %v20854_v44 = vpop.f32.mrb[160].mxu1 }
 0x827   : > { %v5352_v45 = vpop.f32.mrb[161].mxu1 }
 0x828   : > { %v20855_v46 = vpop.f32.mrb[162].mxu1 }
 0x829   : > { %v5584_v47 = vpack.c.bf16 %v20855_v46, %v20854_v44  ;;  %v5355_v48 = vpop.f32.mrb[163].mxu1  ;;  %v6143_v46 = vsel %vm4087_vm2, %v6129_v32, 0 }
 0x82a   : > { %v5583_v49 = vpack.c.bf16 %v5355_v48, %v5352_v45 }
 0x82d   : > { %20921 = vmatmul.mubr.msk.bf16.vlgmr.msra.gmra.mrb[144].mxu0 %vm4074_vm3, %v5576_v18 }
 0x82e   : > { %20924 = vmatprep.mubr.msk.bf16.mxu0 %vm4074_vm3, %v5577_v28  ;;  %20929 = vmatpush3.bf16.msra.mxu0 %v5787_v50  ;;  %v20858_v52 = vpop.f32.mrb[164].mxu1 }
 0x82f   : > { %v5368_v53 = vpop.f32.mrb[165].mxu1  ;;  %22982 = vmatprep.subr.msk.bf16.mxu0 %vm4087_vm2, %v5862_v51 }
 0x830   : > { %v20859_v54 = vpop.f32.mrb[166].mxu1 }
 0x831   : > { %v5586_v55 = vpack.c.bf16 %v20859_v54, %v20858_v52  ;;  %v5371_v56 = vpop.f32.mrb[167].mxu1 }
 0x832   : > { %v5585_v57 = vpack.c.bf16 %v5371_v56, %v5368_v53 }
 0x835   : > { %20925 = vmatmul.mubr.msk.bf16.gmra.mrb[148].mxu0 %vm4074_vm3, %v5578_v25 }
 0x836   : > { %20930 = vmatprep.mubr.msk.bf16.mxu0 %vm4074_vm3, %v5583_v49  ;;  %v20862_v58 = vpop.f32.mrb[168].mxu1 }
 0x837   : > { %v5384_v59 = vpop.f32.mrb[169].mxu1 }
 0x838   : > { %v20863_v60 = vpop.f32.mrb[170].mxu1 }
 0x839   : > { %v5588_v61 = vpack.c.bf16 %v20863_v60, %v20862_v58  ;;  %v5387_v62 = vpop.f32.mrb[171].mxu1 }
 0x83a   : > { %v5587_v63 = vpack.c.bf16 %v5387_v62, %v5384_v59 }
 0x83d   : > { %20931 = vmatmul.mubr.msk.bf16.vlgmr.msra.gmra.mrb[144].mxu0 %vm4074_vm3, %v5584_v47  ;;  %v6218_v47 = vld [vmem:[%s27110_s16 + $0x1c] sm:$0xf] }
 0x83e   : > { %20934 = vmatprep.mubr.msk.bf16.mxu0 %vm4074_vm3, %v5585_v57  ;;  %20939 = vmatpush3.bf16.msra.mxu0 %v5876_v1  ;;  %v20866_v3 = vpop.f32.mrb[172].mxu1  ;;  %v6232_v60 = vsel %vm4087_vm2, %v6218_v47, 0 }
 0x83f   : > { %v5400_v4 = vpop.f32.mrb[173].mxu1  ;;  %22983 = vmatprep.subr.msk.bf16.mxu0 %vm4087_vm2, %v5951_v2 }
 0x840   : > { %v20867_v5 = vpop.f32.mrb[174].mxu1 }
 0x841   : > { %v5590_v0 = vpack.c.bf16 %v20867_v5, %v20866_v3  ;;  %v5403_v43 = vpop.f32.mrb[175].mxu1 }
 0x842   : > { %v5589_v7 = vpack.c.bf16 %v5403_v43, %v5400_v4 }
 0x845   : > { %20935 = vmatmul.mubr.msk.bf16.gmra.mrb[148].mxu0 %vm4074_vm3, %v5586_v55 }
 0x846   : > { %20940 = vmatprep.mubr.msk.bf16.mxu0 %vm4074_vm3, %v5587_v63  ;;  %v20870_v8 = vpop.f32.mrb[176].mxu1 }
 0x847   : > { %v5416_v9 = vpop.f32.mrb[177].mxu1 }
 0x848   : > { %v20871_v10 = vpop.f32.mrb[178].mxu1 }
 0x849   : > { %v5592_v11 = vpack.c.bf16 %v20871_v10, %v20870_v8  ;;  %v5419_v12 = vpop.f32.mrb[179].mxu1 }
 0x84a   : > { %v5591_v14 = vpack.c.bf16 %v5419_v12, %v5416_v9 }
 0x84d   : > { %20941 = vmatmul.mubr.msk.bf16.vlgmr.msra.gmra.mrb[144].mxu0 %vm4074_vm3, %v5588_v61  ;;  %v6307_v61 = vld [vmem:[%s27110_s16 + $0x20] sm:$0xf] }
 0x84e   : > { %20944 = vmatprep.mubr.msk.bf16.mxu0 %vm4074_vm3, %v5589_v7  ;;  %20949 = vmatpush3.bf16.msra.mxu0 %v5965_v15  ;;  %v20874_v17 = vpop.f32.mrb[180].mxu1  ;;  %v6321_v10 = vsel %vm4087_vm2, %v6307_v61, 0 }
 0x84f   : > { %v5432_v18 = vpop.f32.mrb[181].mxu1  ;;  %22984 = vmatprep.subr.msk.bf16.mxu0 %vm4087_vm2, %v6040_v16 }
 0x850   : > { %v20875_v19 = vpop.f32.mrb[182].mxu1 }
 0x851   : > { %v5594_v21 = vpack.c.bf16 %v20875_v19, %v20874_v17  ;;  %v5435_v22 = vpop.f32.mrb[183].mxu1  ;;  %v19147_v19 = vld [vmem:[%s27112_s10] ss:$0 sm:$0xff]  ;;  %s25594_s10 = scalar_lea.vmem %s24572_s29, %s19876_s28  ;;  %s27121_s28 = sld [smem:[#allocation43_spill]] }
 0x852   : > { %v5593_v23 = vpack.c.bf16 %v5435_v22, %v5432_v18  ;;  %v23443_v18 = vld [vmem:[%s27111_s27] sm:$0xff]   ;;  %v4884_v22 = vunpack.c.l.bf16 %v25005_v13 }
 0x853   : > { %21006 = vmatprep.mubr.msk.bf16.mxu1 %vm3606_vm1, %v23443_v18  ;;  %v23462_v18 = vld [vmem:[%s27111_s27 + $0x98] sm:$0xff]  }
 0x855   : > { %20945 = vmatmul.mubr.msk.bf16.gmra.mrb[148].mxu0 %vm4074_vm3, %v5590_v0 }
 0x856   : > { %20950 = vmatprep.mubr.msk.bf16.mxu0 %vm4074_vm3, %v5591_v14  ;;  %v20878_v24 = vpop.f32.mrb[184].mxu1 }
 0x857   : > { %v5448_v25 = vpop.f32.mrb[185].mxu1 }
 0x858   : > { %v20879_v26 = vpop.f32.mrb[186].mxu1 }
 0x859   : > { %v5596_v28 = vpack.c.bf16 %v20879_v26, %v20878_v24  ;;  %v5451_v29 = vpop.f32.mrb[187].mxu1 }
 0x85a   : > { %v5595_v30 = vpack.c.bf16 %v5451_v29, %v5448_v25  ;;  %v4882_v25 = vunpack.c.l.bf16 %v25001_v6 }
 0x85d   : > { %20951 = vmatmul.mubr.msk.bf16.vlgmr.msra.gmra.mrb[144].mxu0 %vm4074_vm3, %v5592_v11 }
 0x85e   : > { %20954 = vmatprep.mubr.msk.bf16.mxu0 %vm4074_vm3, %v5593_v23  ;;  %20959 = vmatpush3.bf16.msra.mxu0 %v6054_v31  ;;  %v20882_v33 = vpop.f32.mrb[188].mxu1 }
 0x85f   : > { %v5464_v34 = vpop.f32.mrb[189].mxu1  ;;  %22985 = vmatprep.subr.msk.bf16.mxu0 %vm4087_vm2, %v6129_v32 }
 0x860   : > { %v20883_v35 = vpop.f32.mrb[190].mxu1 }
 0x861   : > { %v5598_v36 = vpack.c.bf16 %v20883_v35, %v20882_v33  ;;  %v5467_v37 = vpop.f32.mrb[191].mxu1 }
 0x862   : > { %v5597_v38 = vpack.c.bf16 %v5467_v37, %v5464_v34  ;;  %v4883_v34 = vunpack.c.h.bf16 %v25001_v6 }
 0x865   : > { %20955 = vmatmul.mubr.msk.bf16.gmra.mrb[148].mxu0 %vm4074_vm3, %v5594_v21 }
 0x866   : > { %20960 = vmatprep.mubr.msk.bf16.mxu0 %vm4074_vm3, %v5595_v30  ;;  %v20886_v39 = vpop.f32.mrb[192].mxu1  ;;  %v4885_v30 = vunpack.c.h.bf16 %v25005_v13  ;;  %v4886_v13 = vunpack.c.l.bf16 %v25009_v20 }
 0x867   : > { %v5480_v40 = vpop.f32.mrb[193].mxu1 }
 0x868   : > { %v20887_v41 = vpop.f32.mrb[194].mxu1 }
 0x869   : > { %v5600_v42 = vpack.c.bf16 %v20887_v41, %v20886_v39  ;;  %v5483_v44 = vpop.f32.mrb[195].mxu1 }
 0x86a   : > { %v5599_v45 = vpack.c.bf16 %v5483_v44, %v5480_v40  ;;  %v4888_v44 = vunpack.c.l.bf16 %v25013_v27 }
 0x86d   : > { %20961 = vmatmul.mubr.msk.bf16.vlgmr.msra.gmra.mrb[144].mxu0 %vm4074_vm3, %v5596_v28 }
 0x86e   : > { %20964 = vmatprep.mubr.msk.bf16.mxu0 %vm4074_vm3, %v5597_v38  ;;  %20969 = vmatpush3.bf16.msra.mxu0 %v6143_v46  ;;  %v20890_v48 = vpop.f32.mrb[196].mxu1 }
 0x86f   : > { %v5496_v49 = vpop.f32.mrb[197].mxu1  ;;  %22986 = vmatprep.subr.msk.bf16.mxu0 %vm4087_vm2, %v6218_v47 }
 0x870   : > { %v20891_v50 = vpop.f32.mrb[198].mxu1 }
 0x871   : > { %v5602_v51 = vpack.c.bf16 %v20891_v50, %v20890_v48  ;;  %v5499_v52 = vpop.f32.mrb[199].mxu1 }
 0x872   : > { %v5601_v53 = vpack.c.bf16 %v5499_v52, %v5496_v49 }
 0x875   : > { %20965 = vmatmul.mubr.msk.bf16.gmra.mrb[148].mxu0 %vm4074_vm3, %v5598_v36 }
 0x876   : > { %20970 = vmatprep.mubr.msk.bf16.mxu0 %vm4074_vm3, %v5599_v45  ;;  %v20894_v54 = vpop.f32.mrb[200].mxu1 }
 0x877   : > { %v5512_v55 = vpop.f32.mrb[201].mxu1 }
 0x878   : > { %v20895_v56 = vpop.f32.mrb[202].mxu1 }
 0x879   : > { %v5604_v57 = vpack.c.bf16 %v20895_v56, %v20894_v54  ;;  %v5515_v58 = vpop.f32.mrb[203].mxu1 }
 0x87a   : > { %v5603_v59 = vpack.c.bf16 %v5515_v58, %v5512_v55  ;;  %v4887_v55 = vunpack.c.h.bf16 %v25009_v20 }
 0x87d   : > { %20971 = vmatmul.mubr.msk.bf16.vlgmr.msra.gmra.mrb[144].mxu0 %vm4074_vm3, %v5600_v42 }
 0x87e   : > { %20974 = vmatprep.mubr.msk.bf16.mxu0 %vm4074_vm3, %v5601_v53  ;;  %20979 = vmatpush3.bf16.msra.mxu0 %v6232_v60  ;;  %v20898_v62 = vpop.f32.mrb[204].mxu1 }
 0x87f   : > { %v5528_v63 = vpop.f32.mrb[205].mxu1  ;;  %22987 = vmatprep.subr.msk.bf16.mxu0 %vm4087_vm2, %v6307_v61 }
 0x880   : > { %v20899_v1 = vpop.f32.mrb[206].mxu1 }
 0x881   : > { %v5606_v2 = vpack.c.bf16 %v20899_v1, %v20898_v62  ;;  %v5531_v3 = vpop.f32.mrb[207].mxu1  ;;  %v23445_v1 = vld [vmem:[%s27111_s27 + $0x10] sm:$0xff]  }
 0x882   : > { %v5605_v4 = vpack.c.bf16 %v5531_v3, %v5528_v63  ;;  %v23444_v63 = vld [vmem:[%s27111_s27 + $0x8] sm:$0xff]   ;;  %v23447_v3 = vld [vmem:[%s27111_s27 + $0x20] sm:$0xff]  }
 0x885   : > { %20975 = vmatmul.mubr.msk.bf16.gmra.mrb[148].mxu0 %vm4074_vm3, %v5602_v51  ;;  %v4889_v51 = vunpack.c.h.bf16 %v25013_v27 }
 0x886   : > { %20980 = vmatprep.mubr.msk.bf16.mxu0 %vm4074_vm3, %v5603_v59  ;;  %v20902_v5 = vpop.f32.mrb[208].mxu1 }
 0x887   : > { %v5544_v0 = vpop.f32.mrb[209].mxu1 }
 0x888   : > { %v20903_v43 = vpop.f32.mrb[210].mxu1 }
 0x889   : > { %v5608_v7 = vpack.c.bf16 %v20903_v43, %v20902_v5  ;;  %v5547_v8 = vpop.f32.mrb[211].mxu1  ;;  %v23449_v5 = vld [vmem:[%s27111_s27 + $0x30] sm:$0xff]   ;;  %v23451_v43 = vld [vmem:[%s27111_s27 + $0x40] sm:$0xff]  }
 0x88a   : > { %v5607_v9 = vpack.c.bf16 %v5547_v8, %v5544_v0  ;;  %v23450_v0 = vld [vmem:[%s27111_s27 + $0x38] sm:$0xff]   ;;  %v23453_v8 = vld [vmem:[%s27111_s27 + $0x50] sm:$0xff]  }
 0x88d   : > { %20981 = vmatmul.mubr.msk.bf16.vlgmr.msra.gmra.mrb[144].mxu0 %vm4074_vm3, %v5604_v57 }
 0x88e   : > { %20984 = vmatprep.mubr.msk.bf16.mxu0 %vm4074_vm3, %v5605_v4  ;;  %20989 = vmatpush3.bf16.msra.mxu0 %v6321_v10  ;;  %v20906_v11 = vpop.f32.mrb[212].mxu1  ;;  %v23448_v4 = vld [vmem:[%s27111_s27 + $0x28] sm:$0xff]   ;;  %v23455_v10 = vld [vmem:[%s27111_s27 + $0x60] sm:$0xff]  }
 0x88f   : > { %v5560_v12 = vpop.f32.mrb[213].mxu1 }
 0x890   : > { %v20907_v14 = vpop.f32.mrb[214].mxu1 }
 0x891   : > { %v5610_v15 = vpack.c.bf16 %v20907_v14, %v20906_v11  ;;  %v5563_v16 = vpop.f32.mrb[215].mxu1  ;;  %v23456_v11 = vld [vmem:[%s27111_s27 + $0x68] sm:$0xff]   ;;  %v23458_v14 = vld [vmem:[%s27111_s27 + $0x78] sm:$0xff]  }
 0x892   : > { %v5609_v17 = vpack.c.bf16 %v5563_v16, %v5560_v12  ;;  %v23457_v12 = vld [vmem:[%s27111_s27 + $0x70] sm:$0xff]   ;;  %v23460_v16 = vld [vmem:[%s27111_s27 + $0x88] sm:$0xff]  }
 0x895   : > { %20985 = vmatmul.mubr.msk.bf16.gmra.mrb[148].mxu0 %vm4074_vm3, %v5606_v2  ;;  %v23446_v2 = vld [vmem:[%s27111_s27 + $0x18] sm:$0xff]  }
 0x896   : > { %20990 = vmatprep.mubr.msk.bf16.mxu0 %vm4074_vm3, %v5607_v9  ;;  %v23454_v9 = vld [vmem:[%s27111_s27 + $0x58] sm:$0xff]  }
 0x89d   : > { %20991 = vmatmul.mubr.msk.bf16.vlgmr.msra.gmra.mrb[144].mxu0 %vm4074_vm3, %v5608_v7  ;;  %v23452_v7 = vld [vmem:[%s27111_s27 + $0x48] sm:$0xff]  }
 0x89e   : > { %20994 = vmatprep.mubr.msk.bf16.mxu0 %vm4074_vm3, %v5609_v17  ;;  %v23461_v17 = vld [vmem:[%s27111_s27 + $0x90] sm:$0xff]  }
 0x8a5   : > { %20995 = vmatmul.mubr.msk.bf16.gmra.mrb[148].mxu0 %vm4074_vm3, %v5610_v15  ;;  %v23459_v15 = vld [vmem:[%s27111_s27 + $0x80] sm:$0xff]  }
 0x970   : > { %v20992_v21 = vpop.f32.mrb[144].mxu0 }
 0x971   : > { %v6405_v23 = vadd.f32 %v20992_v21, %v19147_v19  ;;  %v6357_v24 = vpop.f32.mrb[145].mxu0  ;;  %v23464_v21 = vld [vmem:[%s27111_s27 + $0xa8] sm:$0xff]  }
 0x972   : > { %v6403_v26 = vadd.f32 %v19147_v19, %v6357_v24  ;;  %v20993_v28 = vpop.f32.mrb[146].mxu0  ;;  %v23467_v24 = vld [vmem:[%s27111_s27 + $0xc0] sm:$0xff]  }
 0x973   : > { %v6413_v29 = vadd.f32 %v6405_v23, %v4884_v22  ;;  %v6406_v31 = vadd.f32 %v20993_v28, %v19147_v19  ;;  %v6360_v32 = vpop.f32.mrb[147].mxu0  ;;  %v23465_v22 = vld [vmem:[%s27111_s27 + $0xb0] sm:$0xff]   ;;  %v23466_v23 = vld [vmem:[%s27111_s27 + $0xb8] sm:$0xff]  }
 0x974   : > { %v6411_v33 = vadd.f32 %v6403_v26, %v4882_v25  ;;  %v6404_v35 = vadd.f32 %v19147_v19, %v6360_v32  ;;  %v23468_v25 = vld [vmem:[%s27111_s27 + $0xc8] sm:$0xff]   ;;  %v23469_v26 = vld [vmem:[%s27111_s27 + $0xd0] sm:$0xff]   ;;  %v23470_v28 = vld [vmem:[%s27111_s27 + $0xd8] sm:$0xff]  }
 0x975   : > { %v6414_v36 = vadd.f32 %v6406_v31, %v4885_v30  ;;  %v6421_v38 = vmax.f32 %v6413_v29, 0.0  ;;  %v23471_v29 = vld [vmem:[%s27111_s27 + $0xe0] sm:$0xff]   ;;  %v23472_v32 = vld [vmem:[%s27111_s27 + $0xe8] sm:$0xff]  }
 0x976   : > { %v6412_v37 = vadd.f32 %v6404_v35, %v4883_v34  ;;  %v6419_v40 = vmax.f32 %v6411_v33, 0.0  ;;  %v7149_v30 = vld [vmem:[%s27113_s12 + $0x4] sm:$0xf]  ;;  %v23473_v33 = vld [vmem:[%s27111_s27 + $0xf0] sm:$0xff]   ;;  %v7148_v34 = vld [vmem:[%s27113_s12] sm:$0xf] }
 0x977   : > { %v6422_v39 = vmax.f32 %v6414_v36, 0.0  ;;  %22988 = vmatprep.subr.msk.bf16.mxu0 %vm4087_vm2, %v7149_v30  ;;  %v7163_v31 = vsel %vm4087_vm2, %v7149_v30, 0  ;;  %v23474_v35 = vld [vmem:[%s27111_s27 + $0xf8] sm:$0xff]   ;;  %v23475_v36 = vld [vmem:[%s27111_s27 + $0x100] sm:$0xff]  }
 0x978   : > { %v6420_v41 = vmax.f32 %v6412_v37, 0.0  ;;  %v20996_v42 = vpop.f32.mrb[148].mxu0  ;;  %21079 = vmatpush3.bf16.msra.mxu0 %v7163_v31  ;;  %v23476_v37 = vld [vmem:[%s27111_s27 + $0x108] sm:$0xff]  }
 0x979   : > { %v6409_v45 = vadd.f32 %v20996_v42, %v19147_v19  ;;  %v6373_v46 = vpop.f32.mrb[149].mxu0  ;;  %v25294_v47 = vpack.c.bf16 %v6422_v39, %v6421_v38  ;;  %22989 = vmatprep.subr.msk.bf16.mxu0 %vm4087_vm2, %v7148_v34  ;;  %v23477_v38 = vld [vmem:[%s27111_s27 + $0x110] sm:$0xff]   ;;  %v23478_v39 = vld [vmem:[%s27111_s27 + $0x118] sm:$0xff]  }
 0x97a   : > { %v6407_v48 = vadd.f32 %v19147_v19, %v6373_v46  ;;  %v20997_v49 = vpop.f32.mrb[150].mxu0  ;;  %v25297_v50 = vpack.c.bf16 %v6420_v41, %v6419_v40 }
 0x97b   : > { %v6417_v6 = vadd.f32 %v6409_v45, %v4888_v44  ;;  %v6410_v52 = vadd.f32 %v20997_v49, %v19147_v19  ;;  %v6376_v53 = vpop.f32.mrb[151].mxu0 }
 0x97c   : > { %v6415_v54 = vadd.f32 %v6407_v48, %v4886_v13  ;;  %v6408_v56 = vadd.f32 %v19147_v19, %v6376_v53  ;;  %20998 = vmatprep.subr.bf16.mxu1 %v25297_v50  ;;  %v23463_v19 = vld [vmem:[%s27111_s27 + $0xa0] sm:$0xff]  }
 0x97d   : > { %v6418_v57 = vadd.f32 %v6410_v52, %v4889_v51  ;;  %20999 = vmatpush3.bf16.msra.mxu1 %v25297_v50  ;;  %v6425_v59 = vmax.f32 %v6417_v6, 0.0 }
 0x97e   : > { %v6416_v58 = vadd.f32 %v6408_v56, %v4887_v55  ;;  %21000 = vmatprep.subr.bf16.mxu1 %v25294_v47  ;;  %v6423_v60 = vmax.f32 %v6415_v54, 0.0 }
 0x97f   : > { %v6426_v27 = vmax.f32 %v6418_v57, 0.0 }
 0x980   : > { %v6424_v61 = vmax.f32 %v6416_v58, 0.0 }
 0x981   : > { %21001 = vmatpush3.bf16.msra.mxu1 %v25294_v47  ;;  %v25305_v20 = vpack.c.bf16 %v6426_v27, %v6425_v59  ;;  %v7243_v59 = vsel %vm4087_vm2, %v7148_v34, 0  ;;  %v7310_v27 = vld [vmem:[%s27113_s12 + $0x8] sm:$0xf] }
 0x982   : > { %v25307_v62 = vpack.c.bf16 %v6424_v61, %v6423_v60 }
 0x984   : > { %21002 = vmatprep.subr.bf16.mxu1 %v25307_v62 }
 0x985   : > { %21003 = vmatpush3.bf16.msra.mxu1 %v25307_v62 }
 0x986   : > { %21004 = vmatprep.subr.bf16.mxu1 %v25305_v20 }
 0x989   : > { %21005 = vmatpush3.bf16.msra.mxu1 %v25305_v20 }
 0x98c   : > { %21007 = vmatmul.mubr.msk.bf16.vlgmr.msra.gmra.mrb[216].mxu1 %vm3606_vm1, %v23444_v63 }
 0x98d   : > { %21010 = vmatprep.mubr.msk.bf16.mxu1 %vm3606_vm1, %v23445_v1 }
 0x994   : > { %21011 = vmatmul.mubr.msk.bf16.gmra.mrb[220].mxu1 %vm3606_vm1, %v23446_v2 }
 0x995   : > { %21014 = vmatprep.mubr.msk.bf16.mxu1 %vm3606_vm1, %v23447_v3 }
 0x99c   : > { %21015 = vmatmul.mubr.msk.bf16.gmra.mrb[224].mxu1 %vm3606_vm1, %v23448_v4 }
 0x99d   : > { %21018 = vmatprep.mubr.msk.bf16.mxu1 %vm3606_vm1, %v23449_v5 }
 0x9a4   : > { %21019 = vmatmul.mubr.msk.bf16.gmra.mrb[228].mxu1 %vm3606_vm1, %v23450_v0 }
 0x9a5   : > { %21022 = vmatprep.mubr.msk.bf16.mxu1 %vm3606_vm1, %v23451_v43 }
 0x9ac   : > { %21023 = vmatmul.mubr.msk.bf16.gmra.mrb[232].mxu1 %vm3606_vm1, %v23452_v7 }
 0x9ad   : > { %21026 = vmatprep.mubr.msk.bf16.mxu1 %vm3606_vm1, %v23453_v8 }
 0x9b4   : > { %21027 = vmatmul.mubr.msk.bf16.gmra.mrb[236].mxu1 %vm3606_vm1, %v23454_v9  ;;  %v7324_v9 = vsel %vm4087_vm2, %v7310_v27, 0 }
 0x9b5   : > { %21030 = vmatprep.mubr.msk.bf16.mxu1 %vm3606_vm1, %v23455_v10  ;;  %v7399_v10 = vld [vmem:[%s27113_s12 + $0xc] sm:$0xf] }
 0x9bc   : > { %21031 = vmatmul.mubr.msk.bf16.gmra.mrb[240].mxu1 %vm3606_vm1, %v23456_v11 }
 0x9bd   : > { %21034 = vmatprep.mubr.msk.bf16.mxu1 %vm3606_vm1, %v23457_v12 }
 0x9c4   : > { %21035 = vmatmul.mubr.msk.bf16.gmra.mrb[244].mxu1 %vm3606_vm1, %v23458_v14 }
 0x9c5   : > { %21038 = vmatprep.mubr.msk.bf16.mxu1 %vm3606_vm1, %v23459_v15 }
 0x9cc   : > { %21039 = vmatmul.mubr.msk.bf16.gmra.mrb[248].mxu1 %vm3606_vm1, %v23460_v16 }
 0x9cd   : > { %21042 = vmatprep.mubr.msk.bf16.mxu1 %vm3606_vm1, %v23461_v17 }
 0x9d4   : > { %21043 = vmatmul.mubr.msk.bf16.gmra.mrb[252].mxu1 %vm3606_vm1, %v23462_v18 }
 0x9d5   : > { %21046 = vmatprep.mubr.msk.bf16.mxu1 %vm3606_vm1, %v23463_v19 }
 0x9dc   : > { %21047 = vmatmul.mubr.msk.bf16.gmra.mrb[0].mxu1 %vm3606_vm1, %v23464_v21 }
 0x9dd   : > { %21050 = vmatprep.mubr.msk.bf16.mxu1 %vm3606_vm1, %v23465_v22 }
 0x9e4   : > { %21051 = vmatmul.mubr.msk.bf16.gmra.mrb[4].mxu1 %vm3606_vm1, %v23466_v23 }
 0x9e5   : > { %21054 = vmatprep.mubr.msk.bf16.mxu1 %vm3606_vm1, %v23467_v24 }
 0x9ec   : > { %21055 = vmatmul.mubr.msk.bf16.gmra.mrb[8].mxu1 %vm3606_vm1, %v23468_v25  ;;  %v7413_v25 = vsel %vm4087_vm2, %v7399_v10, 0 }
 0x9ed   : > { %21058 = vmatprep.mubr.msk.bf16.mxu1 %vm3606_vm1, %v23469_v26  ;;  %v7488_v26 = vld [vmem:[%s27113_s12 + $0x10] sm:$0xf] }
 0x9f4   : > { %21059 = vmatmul.mubr.msk.bf16.gmra.mrb[12].mxu1 %vm3606_vm1, %v23470_v28 }
 0x9f5   : > { %21062 = vmatprep.mubr.msk.bf16.mxu1 %vm3606_vm1, %v23471_v29 }
 0x9fc   : > { %21063 = vmatmul.mubr.msk.bf16.gmra.mrb[16].mxu1 %vm3606_vm1, %v23472_v32 }
 0x9fd   : > { %21066 = vmatprep.mubr.msk.bf16.mxu1 %vm3606_vm1, %v23473_v33 }
 0xa04   : > { %21067 = vmatmul.mubr.msk.bf16.gmra.mrb[20].mxu1 %vm3606_vm1, %v23474_v35 }
 0xa05   : > { %21070 = vmatprep.mubr.msk.bf16.mxu1 %vm3606_vm1, %v23475_v36 }
 0xa0c   : > { %21071 = vmatmul.mubr.msk.bf16.gmra.mrb[24].mxu1 %vm3606_vm1, %v23476_v37 }
 0xa0d   : > { %21074 = vmatprep.mubr.msk.bf16.mxu1 %vm3606_vm1, %v23477_v38 }
 0xa14   : > { %21075 = vmatmul.mubr.msk.bf16.gmra.mrb[28].mxu1 %vm3606_vm1, %v23478_v39 }
 0xa5f   : > { %v21008_v40 = vpop.f32.mrb[216].mxu1 }
 0xa60   : > { %v6825_v41 = vpop.f32.mrb[217].mxu1 }
 0xa61   : > { %v21009_v42 = vpop.f32.mrb[218].mxu1 }
 0xa62   : > { %v7113_v44 = vpack.c.bf16 %v21009_v42, %v21008_v40  ;;  %v6828_v45 = vpop.f32.mrb[219].mxu1  ;;  %v7502_v40 = vsel %vm4087_vm2, %v7488_v26, 0 }
 0xa63   : > { %v7112_v46 = vpack.c.bf16 %v6828_v45, %v6825_v41  ;;  %v7577_v41 = vld [vmem:[%s27113_s12 + $0x14] sm:$0xf] }
 0xa67   : > { %v21012_v13 = vpop.f32.mrb[220].mxu1 }
 0xa68   : > { %v6841_v48 = vpop.f32.mrb[221].mxu1 }
 0xa69   : > { %v21013_v49 = vpop.f32.mrb[222].mxu1 }
 0xa6a   : > { %v7115_v6 = vpack.c.bf16 %v21013_v49, %v21012_v13  ;;  %v6844_v51 = vpop.f32.mrb[223].mxu1 }
 0xa6b   : > { %v7114_v52 = vpack.c.bf16 %v6844_v51, %v6841_v48 }
 0xa6f   : > { %v21016_v53 = vpop.f32.mrb[224].mxu1 }
 0xa70   : > { %v6857_v54 = vpop.f32.mrb[225].mxu1 }
 0xa71   : > { %v21017_v55 = vpop.f32.mrb[226].mxu1 }
 0xa72   : > { %v7117_v56 = vpack.c.bf16 %v21017_v55, %v21016_v53  ;;  %v6860_v57 = vpop.f32.mrb[227].mxu1  ;;  %v7591_v55 = vsel %vm4087_vm2, %v7577_v41, 0 }
 0xa73   : > { %v7116_v58 = vpack.c.bf16 %v6860_v57, %v6857_v54 }
 0xa75   : > { %21080 = vmatprep.mubr.msk.bf16.mxu0 %vm4074_vm3, %v7116_v58 }
 0xa76   : > { %21081 = vmatmul.mubr.msk.bf16.vlgmr.msra.gmra.mrb[152].mxu0 %vm4074_vm3, %v7117_v56  ;;  %v7666_v56 = vld [vmem:[%s27113_s12 + $0x18] sm:$0xf] }
 0xa77   : > { %v21020_v60 = vpop.f32.mrb[228].mxu1  ;;  %21089 = vmatpush3.bf16.msra.mxu0 %v7243_v59 }
 0xa78   : > { %v6873_v61 = vpop.f32.mrb[229].mxu1  ;;  %22990 = vmatprep.subr.msk.bf16.mxu0 %vm4087_vm2, %v7310_v27 }
 0xa79   : > { %v21021_v63 = vpop.f32.mrb[230].mxu1 }
 0xa7a   : > { %v7119_v1 = vpack.c.bf16 %v21021_v63, %v21020_v60  ;;  %v6876_v2 = vpop.f32.mrb[231].mxu1 }
 0xa7b   : > { %v7118_v3 = vpack.c.bf16 %v6876_v2, %v6873_v61 }
 0xa7d   : > { %21084 = vmatprep.mubr.msk.bf16.mxu0 %vm4074_vm3, %v7118_v3 }
 0xa7e   : > { %21085 = vmatmul.mubr.msk.bf16.gmra.mrb[156].mxu0 %vm4074_vm3, %v7119_v1 }
 0xa7f   : > { %21090 = vmatprep.mubr.msk.bf16.mxu0 %vm4074_vm3, %v7112_v46  ;;  %v21024_v4 = vpop.f32.mrb[232].mxu1 }
 0xa80   : > { %v6889_v5 = vpop.f32.mrb[233].mxu1 }
 0xa81   : > { %v21025_v0 = vpop.f32.mrb[234].mxu1 }
 0xa82   : > { %v7121_v43 = vpack.c.bf16 %v21025_v0, %v21024_v4  ;;  %v6892_v7 = vpop.f32.mrb[235].mxu1  ;;  %v7680_v0 = vsel %vm4087_vm2, %v7666_v56, 0 }
 0xa83   : > { %v7120_v8 = vpack.c.bf16 %v6892_v7, %v6889_v5 }
 0xa86   : > { %21091 = vmatmul.mubr.msk.bf16.vlgmr.msra.gmra.mrb[152].mxu0 %vm4074_vm3, %v7113_v44 }
 0xa87   : > { %21094 = vmatprep.mubr.msk.bf16.mxu0 %vm4074_vm3, %v7114_v52  ;;  %21099 = vmatpush3.bf16.msra.mxu0 %v7324_v9  ;;  %v21028_v11 = vpop.f32.mrb[236].mxu1 }
 0xa88   : > { %v6905_v12 = vpop.f32.mrb[237].mxu1  ;;  %22991 = vmatprep.subr.msk.bf16.mxu0 %vm4087_vm2, %v7399_v10 }
 0xa89   : > { %v21029_v14 = vpop.f32.mrb[238].mxu1 }
 0xa8a   : > { %v7123_v15 = vpack.c.bf16 %v21029_v14, %v21028_v11  ;;  %v6908_v16 = vpop.f32.mrb[239].mxu1 }
 0xa8b   : > { %v7122_v17 = vpack.c.bf16 %v6908_v16, %v6905_v12 }
 0xa8e   : > { %21095 = vmatmul.mubr.msk.bf16.gmra.mrb[156].mxu0 %vm4074_vm3, %v7115_v6 }
 0xa8f   : > { %21100 = vmatprep.mubr.msk.bf16.mxu0 %vm4074_vm3, %v7120_v8  ;;  %v21032_v18 = vpop.f32.mrb[240].mxu1 }
 0xa90   : > { %v6921_v19 = vpop.f32.mrb[241].mxu1 }
 0xa91   : > { %v21033_v21 = vpop.f32.mrb[242].mxu1 }
 0xa92   : > { %v7125_v22 = vpack.c.bf16 %v21033_v21, %v21032_v18  ;;  %v6924_v23 = vpop.f32.mrb[243].mxu1 }
 0xa93   : > { %v7124_v24 = vpack.c.bf16 %v6924_v23, %v6921_v19 }
 0xa96   : > { %21101 = vmatmul.mubr.msk.bf16.vlgmr.msra.gmra.mrb[152].mxu0 %vm4074_vm3, %v7121_v43  ;;  %v7755_v43 = vld [vmem:[%s27113_s12 + $0x1c] sm:$0xf] }
 0xa97   : > { %21104 = vmatprep.mubr.msk.bf16.mxu0 %vm4074_vm3, %v7122_v17  ;;  %21109 = vmatpush3.bf16.msra.mxu0 %v7413_v25  ;;  %v21036_v28 = vpop.f32.mrb[244].mxu1  ;;  %v7769_v21 = vsel %vm4087_vm2, %v7755_v43, 0 }
 0xa98   : > { %v6937_v29 = vpop.f32.mrb[245].mxu1  ;;  %22992 = vmatprep.subr.msk.bf16.mxu0 %vm4087_vm2, %v7488_v26 }
 0xa99   : > { %v21037_v30 = vpop.f32.mrb[246].mxu1 }
 0xa9a   : > { %v7127_v31 = vpack.c.bf16 %v21037_v30, %v21036_v28  ;;  %v6940_v32 = vpop.f32.mrb[247].mxu1 }
 0xa9b   : > { %v7126_v33 = vpack.c.bf16 %v6940_v32, %v6937_v29 }
 0xa9e   : > { %21105 = vmatmul.mubr.msk.bf16.gmra.mrb[156].mxu0 %vm4074_vm3, %v7123_v15 }
 0xa9f   : > { %21110 = vmatprep.mubr.msk.bf16.mxu0 %vm4074_vm3, %v7124_v24  ;;  %v21040_v34 = vpop.f32.mrb[248].mxu1 }
 0xaa0   : > { %v6953_v35 = vpop.f32.mrb[249].mxu1 }
 0xaa1   : > { %v21041_v36 = vpop.f32.mrb[250].mxu1 }
 0xaa2   : > { %v7129_v37 = vpack.c.bf16 %v21041_v36, %v21040_v34  ;;  %v6956_v38 = vpop.f32.mrb[251].mxu1 }
 0xaa3   : > { %v7128_v39 = vpack.c.bf16 %v6956_v38, %v6953_v35 }
 0xaa6   : > { %21111 = vmatmul.mubr.msk.bf16.vlgmr.msra.gmra.mrb[152].mxu0 %vm4074_vm3, %v7125_v22  ;;  %v7844_v22 = vld [vmem:[%s27113_s12 + $0x20] sm:$0xf]  ;;  %s19877_s12 = sshll.u32 %s24610_s0, 8 }
 0xaa7   : > { %21114 = vmatprep.mubr.msk.bf16.mxu0 %vm4074_vm3, %v7126_v33  ;;  %21119 = vmatpush3.bf16.msra.mxu0 %v7502_v40  ;;  %v21044_v42 = vpop.f32.mrb[252].mxu1  ;;  %v7858_v36 = vsel %vm4087_vm2, %v7844_v22, 0 }
 0xaa8   : > { %v6969_v44 = vpop.f32.mrb[253].mxu1  ;;  %22993 = vmatprep.subr.msk.bf16.mxu0 %vm4087_vm2, %v7577_v41 }
 0xaa9   : > { %v21045_v45 = vpop.f32.mrb[254].mxu1 }
 0xaaa   : > { %v7131_v46 = vpack.c.bf16 %v21045_v45, %v21044_v42  ;;  %v6972_v13 = vpop.f32.mrb[255].mxu1  ;;  %v19256_v45 = vld [vmem:[%s27115_s26] ss:$0 sm:$0xff]  ;;  %s27119_s26 = smov %s27118_s2 }
 0xaab   : > { %v7130_v48 = vpack.c.bf16 %v6972_v13, %v6969_v44  ;;  %v23479_v44 = vld [vmem:[%s27114_s18] sm:$0xff]  }
 0xaac   : > { %21176 = vmatprep.mubr.msk.bf16.mxu1 %vm3606_vm1, %v23479_v44  ;;  %v23508_v44 = vld [vmem:[%s27114_s18 + $0xe8] sm:$0xff]  }
 0xaae   : > { %21115 = vmatmul.mubr.msk.bf16.gmra.mrb[156].mxu0 %vm4074_vm3, %v7127_v31 }
 0xaaf   : > { %21120 = vmatprep.mubr.msk.bf16.mxu0 %vm4074_vm3, %v7128_v39  ;;  %v21048_v49 = vpop.f32.mrb[0].mxu1 }
 0xab0   : > { %v6985_v6 = vpop.f32.mrb[1].mxu1 }
 0xab1   : > { %v21049_v51 = vpop.f32.mrb[2].mxu1 }
 0xab2   : > { %v7133_v52 = vpack.c.bf16 %v21049_v51, %v21048_v49  ;;  %v6988_v53 = vpop.f32.mrb[3].mxu1 }
 0xab3   : > { %v7132_v54 = vpack.c.bf16 %v6988_v53, %v6985_v6 }
 0xab6   : > { %21121 = vmatmul.mubr.msk.bf16.vlgmr.msra.gmra.mrb[152].mxu0 %vm4074_vm3, %v7129_v37 }
 0xab7   : > { %21124 = vmatprep.mubr.msk.bf16.mxu0 %vm4074_vm3, %v7130_v48  ;;  %21129 = vmatpush3.bf16.msra.mxu0 %v7591_v55  ;;  %v21052_v57 = vpop.f32.mrb[4].mxu1 }
 0xab8   : > { %v7001_v58 = vpop.f32.mrb[5].mxu1  ;;  %22994 = vmatprep.subr.msk.bf16.mxu0 %vm4087_vm2, %v7666_v56 }
 0xab9   : > { %v21053_v59 = vpop.f32.mrb[6].mxu1 }
 0xaba   : > { %v7135_v27 = vpack.c.bf16 %v21053_v59, %v21052_v57  ;;  %v7004_v60 = vpop.f32.mrb[7].mxu1 }
 0xabb   : > { %v7134_v61 = vpack.c.bf16 %v7004_v60, %v7001_v58 }
 0xabe   : > { %21125 = vmatmul.mubr.msk.bf16.gmra.mrb[156].mxu0 %vm4074_vm3, %v7131_v46 }
 0xabf   : > { %21130 = vmatprep.mubr.msk.bf16.mxu0 %vm4074_vm3, %v7132_v54  ;;  %v21056_v63 = vpop.f32.mrb[8].mxu1 }
 0xac0   : > { %v7017_v1 = vpop.f32.mrb[9].mxu1 }
 0xac1   : > { %v21057_v2 = vpop.f32.mrb[10].mxu1 }
 0xac2   : > { %v7137_v3 = vpack.c.bf16 %v21057_v2, %v21056_v63  ;;  %v7020_v4 = vpop.f32.mrb[11].mxu1 }
 0xac3   : > { %v7136_v5 = vpack.c.bf16 %v7020_v4, %v7017_v1 }
 0xac6   : > { %21131 = vmatmul.mubr.msk.bf16.vlgmr.msra.gmra.mrb[152].mxu0 %vm4074_vm3, %v7133_v52 }
 0xac7   : > { %21134 = vmatprep.mubr.msk.bf16.mxu0 %vm4074_vm3, %v7134_v61  ;;  %21139 = vmatpush3.bf16.msra.mxu0 %v7680_v0  ;;  %v21060_v7 = vpop.f32.mrb[12].mxu1 }
 0xac8   : > { %v7033_v8 = vpop.f32.mrb[13].mxu1  ;;  %22995 = vmatprep.subr.msk.bf16.mxu0 %vm4087_vm2, %v7755_v43 }
 0xac9   : > { %v21061_v9 = vpop.f32.mrb[14].mxu1 }
 0xaca   : > { %v7139_v10 = vpack.c.bf16 %v21061_v9, %v21060_v7  ;;  %v7036_v11 = vpop.f32.mrb[15].mxu1 }
 0xacb   : > { %v7138_v12 = vpack.c.bf16 %v7036_v11, %v7033_v8  ;;  %v23481_v11 = vld [vmem:[%s27114_s18 + $0x10] sm:$0xff]  }
 0xace   : > { %21135 = vmatmul.mubr.msk.bf16.gmra.mrb[156].mxu0 %vm4074_vm3, %v7135_v27 }
 0xacf   : > { %21140 = vmatprep.mubr.msk.bf16.mxu0 %vm4074_vm3, %v7136_v5  ;;  %v21064_v14 = vpop.f32.mrb[16].mxu1 }
 0xad0   : > { %v7049_v15 = vpop.f32.mrb[17].mxu1 }
 0xad1   : > { %v21065_v16 = vpop.f32.mrb[18].mxu1 }
 0xad2   : > { %v7141_v17 = vpack.c.bf16 %v21065_v16, %v21064_v14  ;;  %v7052_v18 = vpop.f32.mrb[19].mxu1  ;;  %v23483_v14 = vld [vmem:[%s27114_s18 + $0x20] sm:$0xff]   ;;  %v23485_v16 = vld [vmem:[%s27114_s18 + $0x30] sm:$0xff]  }
 0xad3   : > { %v7140_v19 = vpack.c.bf16 %v7052_v18, %v7049_v15  ;;  %v23484_v15 = vld [vmem:[%s27114_s18 + $0x28] sm:$0xff]   ;;  %v23487_v18 = vld [vmem:[%s27114_s18 + $0x40] sm:$0xff]  }
 0xad6   : > { %21141 = vmatmul.mubr.msk.bf16.vlgmr.msra.gmra.mrb[152].mxu0 %vm4074_vm3, %v7137_v3 }
 0xad7   : > { %21144 = vmatprep.mubr.msk.bf16.mxu0 %vm4074_vm3, %v7138_v12  ;;  %21149 = vmatpush3.bf16.msra.mxu0 %v7769_v21  ;;  %v21068_v23 = vpop.f32.mrb[20].mxu1  ;;  %v23482_v12 = vld [vmem:[%s27114_s18 + $0x18] sm:$0xff]   ;;  %v23489_v21 = vld [vmem:[%s27114_s18 + $0x50] sm:$0xff]  }
 0xad8   : > { %v7065_v24 = vpop.f32.mrb[21].mxu1  ;;  %22996 = vmatprep.subr.msk.bf16.mxu0 %vm4087_vm2, %v7844_v22  ;;  %v23490_v22 = vld [vmem:[%s27114_s18 + $0x58] sm:$0xff]  }
 0xad9   : > { %v21069_v25 = vpop.f32.mrb[22].mxu1 }
 0xada   : > { %v7143_v26 = vpack.c.bf16 %v21069_v25, %v21068_v23  ;;  %v7068_v28 = vpop.f32.mrb[23].mxu1  ;;  %v23491_v23 = vld [vmem:[%s27114_s18 + $0x60] sm:$0xff]   ;;  %v23493_v25 = vld [vmem:[%s27114_s18 + $0x70] sm:$0xff]  }
 0xadb   : > { %v7142_v29 = vpack.c.bf16 %v7068_v28, %v7065_v24  ;;  %v23492_v24 = vld [vmem:[%s27114_s18 + $0x68] sm:$0xff]   ;;  %v23495_v28 = vld [vmem:[%s27114_s18 + $0x80] sm:$0xff]  }
 0xade   : > { %21145 = vmatmul.mubr.msk.bf16.gmra.mrb[156].mxu0 %vm4074_vm3, %v7139_v10  ;;  %v23480_v10 = vld [vmem:[%s27114_s18 + $0x8] sm:$0xff]  }
 0xadf   : > { %21150 = vmatprep.mubr.msk.bf16.mxu0 %vm4074_vm3, %v7140_v19  ;;  %v21072_v30 = vpop.f32.mrb[24].mxu1  ;;  %v23488_v19 = vld [vmem:[%s27114_s18 + $0x48] sm:$0xff]  }
 0xae0   : > { %v7081_v31 = vpop.f32.mrb[25].mxu1 }
 0xae1   : > { %v21073_v32 = vpop.f32.mrb[26].mxu1 }
 0xae2   : > { %v7145_v33 = vpack.c.bf16 %v21073_v32, %v21072_v30  ;;  %v7084_v34 = vpop.f32.mrb[27].mxu1  ;;  %v23497_v30 = vld [vmem:[%s27114_s18 + $0x90] sm:$0xff]   ;;  %v23499_v32 = vld [vmem:[%s27114_s18 + $0xa0] sm:$0xff]  }
 0xae3   : > { %v7144_v35 = vpack.c.bf16 %v7084_v34, %v7081_v31  ;;  %v23498_v31 = vld [vmem:[%s27114_s18 + $0x98] sm:$0xff]   ;;  %v23501_v34 = vld [vmem:[%s27114_s18 + $0xb0] sm:$0xff]  }
 0xae6   : > { %21151 = vmatmul.mubr.msk.bf16.vlgmr.msra.gmra.mrb[152].mxu0 %vm4074_vm3, %v7141_v17  ;;  %v23486_v17 = vld [vmem:[%s27114_s18 + $0x38] sm:$0xff]  }
 0xae7   : > { %21154 = vmatprep.mubr.msk.bf16.mxu0 %vm4074_vm3, %v7142_v29  ;;  %21159 = vmatpush3.bf16.msra.mxu0 %v7858_v36  ;;  %v21076_v37 = vpop.f32.mrb[28].mxu1  ;;  %v23496_v29 = vld [vmem:[%s27114_s18 + $0x88] sm:$0xff]   ;;  %v23503_v36 = vld [vmem:[%s27114_s18 + $0xc0] sm:$0xff]  }
 0xae8   : > { %v7097_v38 = vpop.f32.mrb[29].mxu1 }
 0xae9   : > { %v21077_v39 = vpop.f32.mrb[30].mxu1 }
 0xaea   : > { %v7147_v40 = vpack.c.bf16 %v21077_v39, %v21076_v37  ;;  %v7100_v41 = vpop.f32.mrb[31].mxu1  ;;  %v23504_v37 = vld [vmem:[%s27114_s18 + $0xc8] sm:$0xff]   ;;  %v23506_v39 = vld [vmem:[%s27114_s18 + $0xd8] sm:$0xff]  }
 0xaeb   : > { %v7146_v42 = vpack.c.bf16 %v7100_v41, %v7097_v38  ;;  %v23505_v38 = vld [vmem:[%s27114_s18 + $0xd0] sm:$0xff]   ;;  %v8686_v41 = vld [vmem:[%s27116_s15 + $0x4] sm:$0xf] }
 0xaec   : > { %22997 = vmatprep.subr.msk.bf16.mxu0 %vm4087_vm2, %v8686_v41 }
 0xaee   : > { %21155 = vmatmul.mubr.msk.bf16.gmra.mrb[156].mxu0 %vm4074_vm3, %v7143_v26  ;;  %v23494_v26 = vld [vmem:[%s27114_s18 + $0x78] sm:$0xff]  }
 0xaef   : > { %21160 = vmatprep.mubr.msk.bf16.mxu0 %vm4074_vm3, %v7144_v35  ;;  %v23502_v35 = vld [vmem:[%s27114_s18 + $0xb8] sm:$0xff]  }
 0xaf6   : > { %21161 = vmatmul.mubr.msk.bf16.vlgmr.msra.gmra.mrb[152].mxu0 %vm4074_vm3, %v7145_v33  ;;  %v23500_v33 = vld [vmem:[%s27114_s18 + $0xa8] sm:$0xff]  }
 0xaf7   : > { %21164 = vmatprep.mubr.msk.bf16.mxu0 %vm4074_vm3, %v7146_v42  ;;  %v8700_v42 = vsel %vm4087_vm2, %v8686_v41, 0 }
 0xaf8   : > { %21249 = vmatpush3.bf16.msra.mxu0 %v8700_v42 }
 0xafe   : > { %21165 = vmatmul.mubr.msk.bf16.gmra.mrb[156].mxu0 %vm4074_vm3, %v7147_v40  ;;  %v23507_v40 = vld [vmem:[%s27114_s18 + $0xe0] sm:$0xff]  }
 0xbc9   : > { %v21162_v46 = vpop.f32.mrb[152].mxu0 }
 0xbca   : > { %v7942_v13 = vadd.f32 %v21162_v46, %v19256_v45  ;;  %v7894_v48 = vpop.f32.mrb[153].mxu0  ;;  %v8685_v46 = vld [vmem:[%s27116_s15] sm:$0xf] }
 0xbcb   : > { %v7940_v49 = vadd.f32 %v19256_v45, %v7894_v48  ;;  %v21163_v6 = vpop.f32.mrb[154].mxu0  ;;  %22998 = vmatprep.subr.msk.bf16.mxu0 %vm4087_vm2, %v8685_v46  ;;  %v23511_v48 = vld [vmem:[%s27114_s18 + $0x100] sm:$0xff]  }
 0xbcc   : > { %v7943_v51 = vadd.f32 %v21163_v6, %v19256_v45  ;;  %v7897_v52 = vpop.f32.mrb[155].mxu0  ;;  %v7950_v54 = vmax.f32 %v7942_v13, 0.0  ;;  %v23510_v13 = vld [vmem:[%s27114_s18 + $0xf8] sm:$0xff]   ;;  %v23513_v6 = vld [vmem:[%s27114_s18 + $0x110] sm:$0xff]  }
 0xbcd   : > { %v7941_v53 = vadd.f32 %v19256_v45, %v7897_v52  ;;  %v7948_v56 = vmax.f32 %v7940_v49, 0.0  ;;  %v23512_v49 = vld [vmem:[%s27114_s18 + $0x108] sm:$0xff]  }
 0xbce   : > { %v7951_v55 = vmax.f32 %v7943_v51, 0.0  ;;  %v23514_v51 = vld [vmem:[%s27114_s18 + $0x118] sm:$0xff]  }
 0xbcf   : > { %v7949_v57 = vmax.f32 %v7941_v53, 0.0 }
 0xbd0   : > { %v7965_v58 = vpack.c.bf16 %v7951_v55, %v7950_v54 }
 0xbd1   : > { %v21166_v59 = vpop.f32.mrb[156].mxu0  ;;  %v7964_v27 = vpack.c.bf16 %v7949_v57, %v7948_v56 }
 0xbd2   : > { %v7946_v60 = vadd.f32 %v21166_v59, %v19256_v45  ;;  %v7910_v61 = vpop.f32.mrb[157].mxu0 }
 0xbd3   : > { %v7944_v63 = vadd.f32 %v19256_v45, %v7910_v61  ;;  %v21167_v1 = vpop.f32.mrb[158].mxu0  ;;  %21168 = vmatprep.subr.bf16.mxu1 %v7964_v27 }
 0xbd4   : > { %v7947_v2 = vadd.f32 %v21167_v1, %v19256_v45  ;;  %v7913_v3 = vpop.f32.mrb[159].mxu0  ;;  %21169 = vmatpush3.bf16.msra.mxu1 %v7964_v27  ;;  %v7954_v5 = vmax.f32 %v7946_v60, 0.0 }
 0xbd5   : > { %v7945_v4 = vadd.f32 %v19256_v45, %v7913_v3  ;;  %21170 = vmatprep.subr.bf16.mxu1 %v7965_v58  ;;  %v7952_v43 = vmax.f32 %v7944_v63, 0.0  ;;  %v23509_v45 = vld [vmem:[%s27114_s18 + $0xf0] sm:$0xff]  }
 0xbd6   : > { %v7955_v0 = vmax.f32 %v7947_v2, 0.0 }
 0xbd7   : > { %v7953_v7 = vmax.f32 %v7945_v4, 0.0 }
 0xbd8   : > { %21171 = vmatpush3.bf16.msra.mxu1 %v7965_v58  ;;  %v7967_v8 = vpack.c.bf16 %v7955_v0, %v7954_v5 }
 0xbd9   : > { %v7966_v9 = vpack.c.bf16 %v7953_v7, %v7952_v43  ;;  %v8780_v43 = vsel %vm4087_vm2, %v8685_v46, 0  ;;  %v8847_v7 = vld [vmem:[%s27116_s15 + $0x8] sm:$0xf] }
 0xbdb   : > { %21172 = vmatprep.subr.bf16.mxu1 %v7966_v9 }
 0xbdc   : > { %21173 = vmatpush3.bf16.msra.mxu1 %v7966_v9 }
 0xbdd   : > { %21174 = vmatprep.subr.bf16.mxu1 %v7967_v8 }
 0xbe0   : > { %21175 = vmatpush3.bf16.msra.mxu1 %v7967_v8 }
 0xbe3   : > { %21177 = vmatmul.mubr.msk.bf16.vlgmr.msra.gmra.mrb[32].mxu1 %vm3606_vm1, %v23480_v10 }
 0xbe4   : > { %21180 = vmatprep.mubr.msk.bf16.mxu1 %vm3606_vm1, %v23481_v11 }
 0xbeb   : > { %21181 = vmatmul.mubr.msk.bf16.gmra.mrb[36].mxu1 %vm3606_vm1, %v23482_v12 }
 0xbec   : > { %21184 = vmatprep.mubr.msk.bf16.mxu1 %vm3606_vm1, %v23483_v14 }
 0xbf3   : > { %21185 = vmatmul.mubr.msk.bf16.gmra.mrb[40].mxu1 %vm3606_vm1, %v23484_v15 }
 0xbf4   : > { %21188 = vmatprep.mubr.msk.bf16.mxu1 %vm3606_vm1, %v23485_v16 }
 0xbfb   : > { %21189 = vmatmul.mubr.msk.bf16.gmra.mrb[44].mxu1 %vm3606_vm1, %v23486_v17 }
 0xbfc   : > { %21192 = vmatprep.mubr.msk.bf16.mxu1 %vm3606_vm1, %v23487_v18 }
 0xc03   : > { %21193 = vmatmul.mubr.msk.bf16.gmra.mrb[48].mxu1 %vm3606_vm1, %v23488_v19 }
 0xc04   : > { %21196 = vmatprep.mubr.msk.bf16.mxu1 %vm3606_vm1, %v23489_v21 }
 0xc0b   : > { %21197 = vmatmul.mubr.msk.bf16.gmra.mrb[52].mxu1 %vm3606_vm1, %v23490_v22  ;;  %v8861_v22 = vsel %vm4087_vm2, %v8847_v7, 0 }
 0xc0c   : > { %21200 = vmatprep.mubr.msk.bf16.mxu1 %vm3606_vm1, %v23491_v23  ;;  %v8936_v23 = vld [vmem:[%s27116_s15 + $0xc] sm:$0xf] }
 0xc13   : > { %21201 = vmatmul.mubr.msk.bf16.gmra.mrb[56].mxu1 %vm3606_vm1, %v23492_v24 }
 0xc14   : > { %21204 = vmatprep.mubr.msk.bf16.mxu1 %vm3606_vm1, %v23493_v25 }
 0xc1b   : > { %21205 = vmatmul.mubr.msk.bf16.gmra.mrb[60].mxu1 %vm3606_vm1, %v23494_v26 }
 0xc1c   : > { %21208 = vmatprep.mubr.msk.bf16.mxu1 %vm3606_vm1, %v23495_v28 }
 0xc23   : > { %21209 = vmatmul.mubr.msk.bf16.gmra.mrb[64].mxu1 %vm3606_vm1, %v23496_v29 }
 0xc24   : > { %21212 = vmatprep.mubr.msk.bf16.mxu1 %vm3606_vm1, %v23497_v30 }
 0xc2b   : > { %21213 = vmatmul.mubr.msk.bf16.gmra.mrb[68].mxu1 %vm3606_vm1, %v23498_v31 }
 0xc2c   : > { %21216 = vmatprep.mubr.msk.bf16.mxu1 %vm3606_vm1, %v23499_v32 }
 0xc33   : > { %21217 = vmatmul.mubr.msk.bf16.gmra.mrb[72].mxu1 %vm3606_vm1, %v23500_v33 }
 0xc34   : > { %21220 = vmatprep.mubr.msk.bf16.mxu1 %vm3606_vm1, %v23501_v34 }
 0xc3b   : > { %21221 = vmatmul.mubr.msk.bf16.gmra.mrb[76].mxu1 %vm3606_vm1, %v23502_v35 }
 0xc3c   : > { %21224 = vmatprep.mubr.msk.bf16.mxu1 %vm3606_vm1, %v23503_v36 }
 0xc43   : > { %21225 = vmatmul.mubr.msk.bf16.gmra.mrb[80].mxu1 %vm3606_vm1, %v23504_v37  ;;  %v8950_v37 = vsel %vm4087_vm2, %v8936_v23, 0 }
 0xc44   : > { %21228 = vmatprep.mubr.msk.bf16.mxu1 %vm3606_vm1, %v23505_v38  ;;  %v9025_v38 = vld [vmem:[%s27116_s15 + $0x10] sm:$0xf] }
 0xc4b   : > { %21229 = vmatmul.mubr.msk.bf16.gmra.mrb[84].mxu1 %vm3606_vm1, %v23506_v39 }
 0xc4c   : > { %21232 = vmatprep.mubr.msk.bf16.mxu1 %vm3606_vm1, %v23507_v40 }
 0xc53   : > { %21233 = vmatmul.mubr.msk.bf16.gmra.mrb[88].mxu1 %vm3606_vm1, %v23508_v44 }
 0xc54   : > { %21236 = vmatprep.mubr.msk.bf16.mxu1 %vm3606_vm1, %v23509_v45 }
 0xc5b   : > { %21237 = vmatmul.mubr.msk.bf16.gmra.mrb[92].mxu1 %vm3606_vm1, %v23510_v13 }
 0xc5c   : > { %21240 = vmatprep.mubr.msk.bf16.mxu1 %vm3606_vm1, %v23511_v48 }
 0xc63   : > { %21241 = vmatmul.mubr.msk.bf16.gmra.mrb[96].mxu1 %vm3606_vm1, %v23512_v49 }
 0xc64   : > { %21244 = vmatprep.mubr.msk.bf16.mxu1 %vm3606_vm1, %v23513_v6 }
 0xc6b   : > { %21245 = vmatmul.mubr.msk.bf16.gmra.mrb[100].mxu1 %vm3606_vm1, %v23514_v51 }
 0xcb6   : > { %v21178_v52 = vpop.f32.mrb[32].mxu1 }
 0xcb7   : > { %v8362_v53 = vpop.f32.mrb[33].mxu1 }
 0xcb8   : > { %v21179_v54 = vpop.f32.mrb[34].mxu1 }
 0xcb9   : > { %v8650_v55 = vpack.c.bf16 %v21179_v54, %v21178_v52  ;;  %v8365_v56 = vpop.f32.mrb[35].mxu1  ;;  %v9039_v52 = vsel %vm4087_vm2, %v9025_v38, 0 }
 0xcba   : > { %v8649_v57 = vpack.c.bf16 %v8365_v56, %v8362_v53  ;;  %v9114_v53 = vld [vmem:[%s27116_s15 + $0x14] sm:$0xf] }
 0xcbe   : > { %v21182_v58 = vpop.f32.mrb[36].mxu1 }
 0xcbf   : > { %v8378_v59 = vpop.f32.mrb[37].mxu1 }
 0xcc0   : > { %v21183_v27 = vpop.f32.mrb[38].mxu1 }
 0xcc1   : > { %v8652_v60 = vpack.c.bf16 %v21183_v27, %v21182_v58  ;;  %v8381_v61 = vpop.f32.mrb[39].mxu1 }
 0xcc2   : > { %v8651_v63 = vpack.c.bf16 %v8381_v61, %v8378_v59 }
 0xcc6   : > { %v21186_v1 = vpop.f32.mrb[40].mxu1 }
 0xcc7   : > { %v8394_v2 = vpop.f32.mrb[41].mxu1 }
 0xcc8   : > { %v21187_v3 = vpop.f32.mrb[42].mxu1 }
 0xcc9   : > { %v8654_v4 = vpack.c.bf16 %v21187_v3, %v21186_v1  ;;  %v8397_v5 = vpop.f32.mrb[43].mxu1  ;;  %v9128_v3 = vsel %vm4087_vm2, %v9114_v53, 0 }
 0xcca   : > { %v8653_v0 = vpack.c.bf16 %v8397_v5, %v8394_v2 }
 0xccc   : > { %21250 = vmatprep.mubr.msk.bf16.mxu0 %vm4074_vm3, %v8653_v0 }
 0xccd   : > { %21251 = vmatmul.mubr.msk.bf16.vlgmr.msra.gmra.mrb[160].mxu0 %vm4074_vm3, %v8654_v4  ;;  %v9203_v4 = vld [vmem:[%s27116_s15 + $0x18] sm:$0xf] }
 0xcce   : > { %v21190_v8 = vpop.f32.mrb[44].mxu1  ;;  %21259 = vmatpush3.bf16.msra.mxu0 %v8780_v43 }
 0xccf   : > { %v8410_v9 = vpop.f32.mrb[45].mxu1  ;;  %22999 = vmatprep.subr.msk.bf16.mxu0 %vm4087_vm2, %v8847_v7 }
 0xcd0   : > { %v21191_v10 = vpop.f32.mrb[46].mxu1 }
 0xcd1   : > { %v8656_v11 = vpack.c.bf16 %v21191_v10, %v21190_v8  ;;  %v8413_v12 = vpop.f32.mrb[47].mxu1 }
 0xcd2   : > { %v8655_v14 = vpack.c.bf16 %v8413_v12, %v8410_v9 }
 0xcd4   : > { %21254 = vmatprep.mubr.msk.bf16.mxu0 %vm4074_vm3, %v8655_v14 }
 0xcd5   : > { %21255 = vmatmul.mubr.msk.bf16.gmra.mrb[164].mxu0 %vm4074_vm3, %v8656_v11 }
 0xcd6   : > { %21260 = vmatprep.mubr.msk.bf16.mxu0 %vm4074_vm3, %v8649_v57  ;;  %v21194_v15 = vpop.f32.mrb[48].mxu1 }
 0xcd7   : > { %v8426_v16 = vpop.f32.mrb[49].mxu1 }
 0xcd8   : > { %v21195_v17 = vpop.f32.mrb[50].mxu1 }
 0xcd9   : > { %v8429_v18 = vpop.f32.mrb[51].mxu1  ;;  %v8658_v19 = vpack.c.bf16 %v21195_v17, %v21194_v15  ;;  %v9217_v17 = vsel %vm4087_vm2, %v9203_v4, 0 }
 0xcda   : > { %v8657_v21 = vpack.c.bf16 %v8429_v18, %v8426_v16  ;;  %v9292_v18 = vld [vmem:[%s27116_s15 + $0x1c] sm:$0xf] }
 0xcdd   : > { %21261 = vmatmul.mubr.msk.bf16.vlgmr.msra.gmra.mrb[160].mxu0 %vm4074_vm3, %v8650_v55 }
 0xcde   : > { %21264 = vmatprep.mubr.msk.bf16.mxu0 %vm4074_vm3, %v8651_v63  ;;  %21269 = vmatpush3.bf16.msra.mxu0 %v8861_v22  ;;  %v21198_v24 = vpop.f32.mrb[52].mxu1 }
 0xcdf   : > { %v8442_v25 = vpop.f32.mrb[53].mxu1  ;;  %23000 = vmatprep.subr.msk.bf16.mxu0 %vm4087_vm2, %v8936_v23 }
 0xce0   : > { %v21199_v26 = vpop.f32.mrb[54].mxu1 }
 0xce1   : > { %v8660_v28 = vpack.c.bf16 %v21199_v26, %v21198_v24  ;;  %v8445_v29 = vpop.f32.mrb[55].mxu1 }
 0xce2   : > { %v8659_v30 = vpack.c.bf16 %v8445_v29, %v8442_v25 }
 0xce5   : > { %21265 = vmatmul.mubr.msk.bf16.gmra.mrb[164].mxu0 %vm4074_vm3, %v8652_v60 }
 0xce6   : > { %21270 = vmatprep.mubr.msk.bf16.mxu0 %vm4074_vm3, %v8657_v21  ;;  %v21202_v31 = vpop.f32.mrb[56].mxu1 }
 0xce7   : > { %v8458_v32 = vpop.f32.mrb[57].mxu1 }
 0xce8   : > { %v21203_v33 = vpop.f32.mrb[58].mxu1 }
 0xce9   : > { %v8662_v34 = vpack.c.bf16 %v21203_v33, %v21202_v31  ;;  %v8461_v35 = vpop.f32.mrb[59].mxu1  ;;  %v9306_v33 = vsel %vm4087_vm2, %v9292_v18, 0 }
 0xcea   : > { %v8661_v36 = vpack.c.bf16 %v8461_v35, %v8458_v32 }
 0xced   : > { %21271 = vmatmul.mubr.msk.bf16.vlgmr.msra.gmra.mrb[160].mxu0 %vm4074_vm3, %v8658_v19 }
 0xcee   : > { %21274 = vmatprep.mubr.msk.bf16.mxu0 %vm4074_vm3, %v8659_v30  ;;  %21279 = vmatpush3.bf16.msra.mxu0 %v8950_v37  ;;  %v21206_v39 = vpop.f32.mrb[60].mxu1 }
 0xcef   : > { %v8474_v40 = vpop.f32.mrb[61].mxu1  ;;  %23001 = vmatprep.subr.msk.bf16.mxu0 %vm4087_vm2, %v9025_v38 }
 0xcf0   : > { %v21207_v41 = vpop.f32.mrb[62].mxu1 }
 0xcf1   : > { %v8664_v42 = vpack.c.bf16 %v21207_v41, %v21206_v39  ;;  %v8477_v44 = vpop.f32.mrb[63].mxu1 }
 0xcf2   : > { %v8663_v45 = vpack.c.bf16 %v8477_v44, %v8474_v40 }
 0xcf5   : > { %21275 = vmatmul.mubr.msk.bf16.gmra.mrb[164].mxu0 %vm4074_vm3, %v8660_v28 }
 0xcf6   : > { %21280 = vmatprep.mubr.msk.bf16.mxu0 %vm4074_vm3, %v8661_v36  ;;  %v21210_v46 = vpop.f32.mrb[64].mxu1 }
 0xcf7   : > { %v8490_v13 = vpop.f32.mrb[65].mxu1 }
 0xcf8   : > { %v21211_v48 = vpop.f32.mrb[66].mxu1 }
 0xcf9   : > { %v8666_v49 = vpack.c.bf16 %v21211_v48, %v21210_v46  ;;  %v8493_v6 = vpop.f32.mrb[67].mxu1 }
 0xcfa   : > { %v8665_v51 = vpack.c.bf16 %v8493_v6, %v8490_v13 }
 0xcfd   : > { %21281 = vmatmul.mubr.msk.bf16.vlgmr.msra.gmra.mrb[160].mxu0 %vm4074_vm3, %v8662_v34  ;;  %v9381_v34 = vld [vmem:[%s27116_s15 + $0x20] sm:$0xf]  ;;  %s24039_s15 = sshll.u32 %s24254_s14, 4  ;;  %s24040_s15 = int_to_ptr.vmem [resolvable:$false] %s24039_s15 }
 0xcfe   : > { %21284 = vmatprep.mubr.msk.bf16.mxu0 %vm4074_vm3, %v8663_v45  ;;  %21289 = vmatpush3.bf16.msra.mxu0 %v9039_v52  ;;  %v21214_v54 = vpop.f32.mrb[68].mxu1  ;;  %v9395_v48 = vsel %vm4087_vm2, %v9381_v34, 0  ;;  %s24041_s16 = scalar_lea.vmem %s24040_s15, 128 }
 0xcff   : > { %v8506_v55 = vpop.f32.mrb[69].mxu1  ;;  %23002 = vmatprep.subr.msk.bf16.mxu0 %vm4087_vm2, %v9114_v53 }
 0xd00   : > { %v21215_v56 = vpop.f32.mrb[70].mxu1 }
 0xd01   : > { %v8668_v57 = vpack.c.bf16 %v21215_v56, %v21214_v54  ;;  %v8509_v58 = vpop.f32.mrb[71].mxu1  ;;  %v19365_v56 = vld [vmem:[%s27117_s11] ss:$0 sm:$0xff]  ;;  %s27120_s11 = sld [smem:[#allocation41_spill]] }
 0xd02   : > { %v8667_v59 = vpack.c.bf16 %v8509_v58, %v8506_v55  ;;  %v24252_v55 = vmov 0.0   ;;  %v7958_v58 = vunpack.c.l.bf16 %v25294_v47 }
 0xd03   : > { %21338 = vmatprep.subr.bf16.mxu1 %v24252_v55  ;;  %21346 = vmatprep.mubr.msk.bf16.mxu1 %vm24253_vm4, %v24252_v55 }
 0xd05   : > { %21285 = vmatmul.mubr.msk.bf16.gmra.mrb[164].mxu0 %vm4074_vm3, %v8664_v42 }
 0xd06   : > { %21290 = vmatprep.mubr.msk.bf16.mxu0 %vm4074_vm3, %v8665_v51  ;;  %v21218_v27 = vpop.f32.mrb[72].mxu1 }
 0xd07   : > { %v8522_v60 = vpop.f32.mrb[73].mxu1 }
 0xd08   : > { %v21219_v61 = vpop.f32.mrb[74].mxu1 }
 0xd09   : > { %v8670_v63 = vpack.c.bf16 %v21219_v61, %v21218_v27  ;;  %v8525_v1 = vpop.f32.mrb[75].mxu1 }
 0xd0a   : > { %v8669_v2 = vpack.c.bf16 %v8525_v1, %v8522_v60  ;;  %v7956_v60 = vunpack.c.l.bf16 %v25297_v50 }
 0xd0d   : > { %21291 = vmatmul.mubr.msk.bf16.vlgmr.msra.gmra.mrb[160].mxu0 %vm4074_vm3, %v8666_v49 }
 0xd0e   : > { %21294 = vmatprep.mubr.msk.bf16.mxu0 %vm4074_vm3, %v8667_v59  ;;  %21299 = vmatpush3.bf16.msra.mxu0 %v9128_v3  ;;  %v21222_v5 = vpop.f32.mrb[76].mxu1 }
 0xd0f   : > { %v8538_v0 = vpop.f32.mrb[77].mxu1  ;;  %23003 = vmatprep.subr.msk.bf16.mxu0 %vm4087_vm2, %v9203_v4 }
 0xd10   : > { %v21223_v43 = vpop.f32.mrb[78].mxu1 }
 0xd11   : > { %v8672_v7 = vpack.c.bf16 %v21223_v43, %v21222_v5  ;;  %v8541_v8 = vpop.f32.mrb[79].mxu1 }
 0xd12   : > { %v8671_v9 = vpack.c.bf16 %v8541_v8, %v8538_v0  ;;  %v7957_v0 = vunpack.c.h.bf16 %v25297_v50 }
 0xd15   : > { %21295 = vmatmul.mubr.msk.bf16.gmra.mrb[164].mxu0 %vm4074_vm3, %v8668_v57 }
 0xd16   : > { %21300 = vmatprep.mubr.msk.bf16.mxu0 %vm4074_vm3, %v8669_v2  ;;  %v21226_v10 = vpop.f32.mrb[80].mxu1  ;;  %v7959_v2 = vunpack.c.h.bf16 %v25294_v47 }
 0xd17   : > { %v8554_v11 = vpop.f32.mrb[81].mxu1 }
 0xd18   : > { %v21227_v12 = vpop.f32.mrb[82].mxu1 }
 0xd19   : > { %v8674_v14 = vpack.c.bf16 %v21227_v12, %v21226_v10  ;;  %v8557_v15 = vpop.f32.mrb[83].mxu1 }
 0xd1a   : > { %v8673_v16 = vpack.c.bf16 %v8557_v15, %v8554_v11 }
 0xd1d   : > { %21301 = vmatmul.mubr.msk.bf16.vlgmr.msra.gmra.mrb[160].mxu0 %vm4074_vm3, %v8670_v63 }
 0xd1e   : > { %21304 = vmatprep.mubr.msk.bf16.mxu0 %vm4074_vm3, %v8671_v9  ;;  %21309 = vmatpush3.bf16.msra.mxu0 %v9217_v17  ;;  %v21230_v19 = vpop.f32.mrb[84].mxu1  ;;  %v7960_v17 = vunpack.c.l.bf16 %v25307_v62 }
 0xd1f   : > { %v8570_v21 = vpop.f32.mrb[85].mxu1  ;;  %23004 = vmatprep.subr.msk.bf16.mxu0 %vm4087_vm2, %v9292_v18 }
 0xd20   : > { %v21231_v22 = vpop.f32.mrb[86].mxu1 }
 0xd21   : > { %v8676_v23 = vpack.c.bf16 %v21231_v22, %v21230_v19  ;;  %v8573_v24 = vpop.f32.mrb[87].mxu1 }
 0xd22   : > { %v8675_v25 = vpack.c.bf16 %v8573_v24, %v8570_v21 }
 0xd25   : > { %21305 = vmatmul.mubr.msk.bf16.gmra.mrb[164].mxu0 %vm4074_vm3, %v8672_v7 }
 0xd26   : > { %21310 = vmatprep.mubr.msk.bf16.mxu0 %vm4074_vm3, %v8673_v16  ;;  %v21234_v26 = vpop.f32.mrb[88].mxu1 }
 0xd27   : > { %v8586_v28 = vpop.f32.mrb[89].mxu1 }
 0xd28   : > { %v21235_v29 = vpop.f32.mrb[90].mxu1 }
 0xd29   : > { %v8678_v30 = vpack.c.bf16 %v21235_v29, %v21234_v26  ;;  %v8589_v31 = vpop.f32.mrb[91].mxu1 }
 0xd2a   : > { %v8677_v32 = vpack.c.bf16 %v8589_v31, %v8586_v28  ;;  %v7961_v28 = vunpack.c.h.bf16 %v25307_v62 }
 0xd2d   : > { %21311 = vmatmul.mubr.msk.bf16.vlgmr.msra.gmra.mrb[160].mxu0 %vm4074_vm3, %v8674_v14  ;;  %v7962_v14 = vunpack.c.l.bf16 %v25305_v20 }
 0xd2e   : > { %21314 = vmatprep.mubr.msk.bf16.mxu0 %vm4074_vm3, %v8675_v25  ;;  %21319 = vmatpush3.bf16.msra.mxu0 %v9306_v33  ;;  %v21238_v35 = vpop.f32.mrb[92].mxu1 }
 0xd2f   : > { %v8602_v36 = vpop.f32.mrb[93].mxu1  ;;  %23005 = vmatprep.subr.msk.bf16.mxu0 %vm4087_vm2, %v9381_v34 }
 0xd30   : > { %v21239_v37 = vpop.f32.mrb[94].mxu1 }
 0xd31   : > { %v8680_v38 = vpack.c.bf16 %v21239_v37, %v21238_v35  ;;  %v8605_v39 = vpop.f32.mrb[95].mxu1  ;;  %v23516_v37 = vld [vmem:[%s27119_s26 + $0x8] sm:$0xff]  }
 0xd32   : > { %v8679_v40 = vpack.c.bf16 %v8605_v39, %v8602_v36  ;;  %v23515_v36 = vld [vmem:[%s27118_s2] sm:$0xff]   ;;  %v23518_v39 = vld [vmem:[%s27119_s26 + $0x18] sm:$0xff]   ;;  %s27123_s2 = sld [smem:[#allocation42_spill]] }
 0xd35   : > { %21315 = vmatmul.mubr.msk.bf16.gmra.mrb[164].mxu0 %vm4074_vm3, %v8676_v23  ;;  %v7963_v23 = vunpack.c.h.bf16 %v25305_v20 }
 0xd36   : > { %21320 = vmatprep.mubr.msk.bf16.mxu0 %vm4074_vm3, %v8677_v32  ;;  %v21242_v41 = vpop.f32.mrb[96].mxu1 }
 0xd37   : > { %v8618_v42 = vpop.f32.mrb[97].mxu1 }
 0xd38   : > { %v21243_v44 = vpop.f32.mrb[98].mxu1 }
 0xd39   : > { %v8682_v45 = vpack.c.bf16 %v21243_v44, %v21242_v41  ;;  %v8621_v46 = vpop.f32.mrb[99].mxu1  ;;  %v23520_v41 = vld [vmem:[%s27119_s26 + $0x28] sm:$0xff]   ;;  %v23522_v44 = vld [vmem:[%s27119_s26 + $0x38] sm:$0xff]  }
 0xd3a   : > { %v8681_v13 = vpack.c.bf16 %v8621_v46, %v8618_v42  ;;  %v23521_v42 = vld [vmem:[%s27119_s26 + $0x30] sm:$0xff]   ;;  %v9718_v46 = vld [vmem:[%s27120_s11 + $0x4] sm:$0xf] }
 0xd3d   : > { %21321 = vmatmul.mubr.msk.bf16.vlgmr.msra.gmra.mrb[160].mxu0 %vm4074_vm3, %v8678_v30 }
 0xd3e   : > { %21324 = vmatprep.mubr.msk.bf16.mxu0 %vm4074_vm3, %v8679_v40  ;;  %21329 = vmatpush3.bf16.msra.mxu0 %v9395_v48  ;;  %v21246_v49 = vpop.f32.mrb[100].mxu1  ;;  %v23519_v40 = vld [vmem:[%s27119_s26 + $0x20] sm:$0xff]   ;;  %v9913_v48 = vld [vmem:[%s27120_s11 + $0x10] sm:$0xf] }
 0xd3f   : > { %v8634_v6 = vpop.f32.mrb[101].mxu1  ;;  %21406 = vmatprep.subr.bf16.mxu0 %v24252_v55 }
 0xd40   : > { %v21247_v51 = vpop.f32.mrb[102].mxu1 }
 0xd41   : > { %v8684_v52 = vpack.c.bf16 %v21247_v51, %v21246_v49  ;;  %v8637_v53 = vpop.f32.mrb[103].mxu1  ;;  %v9918_v49 = vsel %vm4087_vm2, %v9913_v48, 0 }
 0xd42   : > { %v8683_v54 = vpack.c.bf16 %v8637_v53, %v8634_v6 }
 0xd45   : > { %21325 = vmatmul.mubr.msk.bf16.gmra.mrb[164].mxu0 %vm4074_vm3, %v8680_v38  ;;  %v23517_v38 = vld [vmem:[%s27119_s26 + $0x10] sm:$0xff]  }
 0xd46   : > { %21330 = vmatprep.mubr.msk.bf16.mxu0 %vm4074_vm3, %v8681_v13  ;;  %v9723_v13 = vsel %vm4087_vm2, %v9718_v46, 0 }
 0xd4d   : > { %21331 = vmatmul.mubr.msk.bf16.vlgmr.msra.gmra.mrb[160].mxu0 %vm4074_vm3, %v8682_v45  ;;  %v23523_v45 = vld [vmem:[%s27119_s26 + $0x40] sm:$0xff]  }
 0xd4e   : > { %21334 = vmatprep.mubr.msk.bf16.mxu0 %vm4074_vm3, %v8683_v54  ;;  %21407 = vmatpush3.bf16.msra.mxu0 %v9918_v49 }
 0xd4f   : > { %21418 = vmatprep.subr.bf16.mxu0 %v24252_v55 }
 0xd55   : > { %21335 = vmatmul.mubr.msk.bf16.gmra.mrb[164].mxu0 %vm4074_vm3, %v8684_v52 }
 0xd56   : > { %21408 = vmatprep.mubr.msk.bf16.mxu0 %vm24253_vm4, %v24252_v55 }
 0xe20   : > { %v21332_v57 = vpop.f32.mrb[160].mxu0 }
 0xe21   : > { %v9479_v59 = vadd.f32 %v21332_v57, %v19365_v56  ;;  %v9431_v27 = vpop.f32.mrb[161].mxu0  ;;  %v9717_v57 = vld [vmem:[%s27120_s11] sm:$0xf] }
 0xe22   : > { %v9477_v61 = vadd.f32 %v19365_v56, %v9431_v27  ;;  %v21333_v63 = vpop.f32.mrb[162].mxu0 }
 0xe23   : > { %v9487_v1 = vadd.f32 %v9479_v59, %v7958_v58  ;;  %v9480_v3 = vadd.f32 %v21333_v63, %v19365_v56  ;;  %v9434_v4 = vpop.f32.mrb[163].mxu0 }
 0xe24   : > { %v9485_v5 = vadd.f32 %v9477_v61, %v7956_v60  ;;  %v9478_v43 = vadd.f32 %v19365_v56, %v9434_v4  ;;  %v9770_v60 = vsel %vm4087_vm2, %v9717_v57, 0 }
 0xe25   : > { %v9495_v7 = vmax.f32 %v9487_v1, 0.0  ;;  %v9488_v8 = vadd.f32 %v9480_v3, %v7959_v2  ;;  %v9813_v1 = vld [vmem:[%s27120_s11 + $0x8] sm:$0xf] }
 0xe26   : > { %v9493_v9 = vmax.f32 %v9485_v5, 0.0  ;;  %v9486_v10 = vadd.f32 %v9478_v43, %v7957_v0  ;;  %v9818_v5 = vsel %vm4087_vm2, %v9813_v1, 0 }
 0xe27   : > { %9507 = vst.msk [vmem:[%s25594_s10 + $0x10] sm:$0xff] %vm4074_vm3, %v9495_v7  ;;  %v9496_v11 = vmax.f32 %v9488_v8, 0.0 }
 0xe28   : > { %9505 = vst.msk [vmem:[%s25594_s10] sm:$0xff] %vm4074_vm3, %v9493_v9  ;;  %v9494_v47 = vmax.f32 %v9486_v10, 0.0  ;;  %v21336_v12 = vpop.f32.mrb[164].mxu0 }
 0xe29   : > { %9508 = vst.msk [vmem:[%s25594_s10 + $0x18] sm:$0xff] %vm4074_vm3, %v9496_v11  ;;  %v9483_v15 = vadd.f32 %v21336_v12, %v19365_v56  ;;  %v9447_v16 = vpop.f32.mrb[165].mxu0  ;;  %v25604_v50 = vpack.c.bf16 %v9496_v11, %v9495_v7  ;;  %v9863_v7 = vld [vmem:[%s27120_s11 + $0xc] sm:$0xf] }
 0xe2a   : > { %9506 = vst.msk [vmem:[%s25594_s10 + $0x8] sm:$0xff] %vm4074_vm3, %v9494_v47  ;;  %v9481_v18 = vadd.f32 %v19365_v56, %v9447_v16  ;;  %v21337_v19 = vpop.f32.mrb[166].mxu0  ;;  %v25609_v21 = vpack.c.bf16 %v9494_v47, %v9493_v9  ;;  %v9868_v11 = vsel %vm4087_vm2, %v9863_v7, 0  ;;  %v10013_v16 = vld [vmem:[%s27120_s11 + $0x18] sm:$0xf] }
 0xe2b   : > { %v9491_v22 = vadd.f32 %v9483_v15, %v7962_v14  ;;  %v9484_v24 = vadd.f32 %v21337_v19, %v19365_v56  ;;  %v9450_v25 = vpop.f32.mrb[167].mxu0  ;;  %v9963_v14 = vld [vmem:[%s27120_s11 + $0x14] sm:$0xf] }
 0xe2c   : > { %v9489_v26 = vadd.f32 %v9481_v18, %v7960_v17  ;;  %v9482_v29 = vadd.f32 %v19365_v56, %v9450_v25  ;;  %21339 = vmatpush3.bf16.msra.mxu1 %v25609_v21  ;;  %v10063_v25 = vld [vmem:[%s27120_s11 + $0x1c] sm:$0xf] }
 0xe2d   : > { %v9499_v30 = vmax.f32 %v9491_v22, 0.0  ;;  %v9492_v31 = vadd.f32 %v9484_v24, %v7963_v23  ;;  %21340 = vmatprep.subr.bf16.mxu1 %v24252_v55  ;;  %v9968_v22 = vsel %vm4087_vm2, %v9963_v14, 0  ;;  %v10018_v23 = vsel %vm4087_vm2, %v10013_v16, 0 }
 0xe2e   : > { %v9497_v32 = vmax.f32 %v9489_v26, 0.0  ;;  %v9490_v33 = vadd.f32 %v9482_v29, %v7961_v28 }
 0xe2f   : > { %9511 = vst.msk [vmem:[%s25594_s10 + $0x30] sm:$0xff] %vm4074_vm3, %v9499_v30  ;;  %v9500_v20 = vmax.f32 %v9492_v31, 0.0  ;;  %v10068_v31 = vsel %vm4087_vm2, %v10063_v25, 0 }
 0xe30   : > { %9509 = vst.msk [vmem:[%s25594_s10 + $0x20] sm:$0xff] %vm4074_vm3, %v9497_v32  ;;  %v9498_v34 = vmax.f32 %v9490_v33, 0.0  ;;  %21341 = vmatpush3.bf16.msra.mxu1 %v25604_v50  ;;  %v10113_v33 = vld [vmem:[%s27120_s11 + $0x20] sm:$0xf] }
 0xe31   : > { %9512 = vst.msk [vmem:[%s25594_s10 + $0x38] sm:$0xff] %vm4074_vm3, %v9500_v20  ;;  %21342 = vmatprep.subr.bf16.mxu1 %v24252_v55  ;;  %v25623_v62 = vpack.c.bf16 %v9500_v20, %v9499_v30 }
 0xe32   : > { %9510 = vst.msk [vmem:[%s25594_s10 + $0x28] sm:$0xff] %vm4074_vm3, %v9498_v34  ;;  %v25627_v35 = vpack.c.bf16 %v9498_v34, %v9497_v32  ;;  %s27122_s10 = sld [smem:[#allocation44_spill]] }
 0xe34   : > { %21343 = vmatpush3.bf16.msra.mxu1 %v25627_v35 }
 0xe35   : > { %21344 = vmatprep.subr.bf16.mxu1 %v24252_v55 }
 0xe38   : > { %21345 = vmatpush3.bf16.msra.mxu1 %v25623_v62 }
 0xe39   : > { %21382 = vmatprep.subr.bf16.mxu1 %v24252_v55 }
 0xe3b   : > { %21347 = vmatmul.mubr.msk.bf16.vlgmr.msra.gmra.mrb[104].mxu1 %vm3606_vm1, %v23515_v36 }
 0xe3c   : > { %21350 = vmatprep.mubr.msk.bf16.mxu1 %vm24253_vm4, %v24252_v55  ;;  %21383 = vmatpush3.bf16.msra.mxu1 %v9723_v13 }
 0xe3d   : > { %21388 = vmatprep.subr.bf16.mxu1 %v24252_v55 }
 0xe43   : > { %21351 = vmatmul.mubr.msk.bf16.gmra.mrb[108].mxu1 %vm3606_vm1, %v23516_v37 }
 0xe44   : > { %21354 = vmatprep.mubr.msk.bf16.mxu1 %vm24253_vm4, %v24252_v55 }
 0xe4b   : > { %21355 = vmatmul.mubr.msk.bf16.gmra.mrb[112].mxu1 %vm3606_vm1, %v23517_v38  ;;  %v10118_v38 = vsel %vm4087_vm2, %v10113_v33, 0 }
 0xe4c   : > { %21358 = vmatprep.mubr.msk.bf16.mxu1 %vm24253_vm4, %v24252_v55 }
 0xe53   : > { %21359 = vmatmul.mubr.msk.bf16.gmra.mrb[116].mxu1 %vm3606_vm1, %v23518_v39 }
 0xe54   : > { %21362 = vmatprep.mubr.msk.bf16.mxu1 %vm24253_vm4, %v24252_v55 }
 0xe5b   : > { %21363 = vmatmul.mubr.msk.bf16.gmra.mrb[120].mxu1 %vm3606_vm1, %v23519_v40 }
 0xe5c   : > { %21366 = vmatprep.mubr.msk.bf16.mxu1 %vm24253_vm4, %v24252_v55 }
 0xe63   : > { %21367 = vmatmul.mubr.msk.bf16.gmra.mrb[124].mxu1 %vm3606_vm1, %v23520_v41 }
 0xe64   : > { %21370 = vmatprep.mubr.msk.bf16.mxu1 %vm24253_vm4, %v24252_v55 }
 0xe6b   : > { %21371 = vmatmul.mubr.msk.bf16.gmra.mrb[128].mxu1 %vm3606_vm1, %v23521_v42 }
 0xe6c   : > { %21374 = vmatprep.mubr.msk.bf16.mxu1 %vm24253_vm4, %v24252_v55 }
 0xe73   : > { %21375 = vmatmul.mubr.msk.bf16.gmra.mrb[132].mxu1 %vm3606_vm1, %v23522_v44 }
 0xe74   : > { %21378 = vmatprep.mubr.msk.bf16.mxu1 %vm24253_vm4, %v24252_v55 }
 0xe7b   : > { %21379 = vmatmul.mubr.msk.bf16.gmra.mrb[136].mxu1 %vm3606_vm1, %v23523_v45 }
 0xe7c   : > { %21384 = vmatprep.mubr.msk.bf16.mxu1 %vm24253_vm4, %v24252_v55 }
 0xf0e   : > { %v9637_v6 = vpop.f32.mrb[104].mxu1 }
 0xf0f   : > { %v21348_v51 = vpop.f32.mrb[105].mxu1 }
 0xf10   : > { %v9640_v52 = vpop.f32.mrb[106].mxu1 }
 0xf11   : > { %v9708_v53 = vpack.c.bf16 %v9640_v52, %v9637_v6  ;;  %v21349_v54 = vpop.f32.mrb[107].mxu1 }
 0xf16   : > { %v9645_v56 = vpop.f32.mrb[108].mxu1 }
 0xf17   : > { %v21352_v58 = vpop.f32.mrb[109].mxu1 }
 0xf18   : > { %v9648_v59 = vpop.f32.mrb[110].mxu1 }
 0xf19   : > { %v9709_v27 = vpack.c.bf16 %v9648_v59, %v9645_v56  ;;  %v21353_v61 = vpop.f32.mrb[111].mxu1 }
 0xf1b   : > { %21385 = vmatmul.mubr.msk.bf16.vlgmr.msra.gmra.mrb[140].mxu1 %vm4074_vm3, %v9709_v27 }
 0xf1c   : > { %21389 = vmatpush3.bf16.msra.mxu1 %v9770_v60  ;;  %21390 = vmatprep.mubr.msk.bf16.mxu1 %vm24253_vm4, %v24252_v55 }
 0xf1d   : > { %21394 = vmatprep.subr.bf16.mxu1 %v24252_v55 }
 0xf1e   : > { %v9653_v63 = vpop.f32.mrb[112].mxu1 }
 0xf1f   : > { %v21356_v2 = vpop.f32.mrb[113].mxu1 }
 0xf20   : > { %v9656_v3 = vpop.f32.mrb[114].mxu1 }
 0xf21   : > { %v9710_v4 = vpack.c.bf16 %v9656_v3, %v9653_v63  ;;  %v21357_v0 = vpop.f32.mrb[115].mxu1 }
 0xf23   : > { %21391 = vmatmul.mubr.msk.bf16.vlgmr.msra.gmra.mrb[144].mxu1 %vm4074_vm3, %v9708_v53 }
 0xf24   : > { %21395 = vmatpush3.bf16.msra.mxu1 %v9818_v5  ;;  %21396 = vmatprep.mubr.msk.bf16.mxu1 %vm24253_vm4, %v24252_v55 }
 0xf25   : > { %21400 = vmatprep.subr.bf16.mxu1 %v24252_v55 }
 0xf26   : > { %v9661_v43 = vpop.f32.mrb[116].mxu1 }
 0xf27   : > { %v21360_v8 = vpop.f32.mrb[117].mxu1 }
 0xf28   : > { %v9664_v9 = vpop.f32.mrb[118].mxu1 }
 0xf29   : > { %v9711_v10 = vpack.c.bf16 %v9664_v9, %v9661_v43  ;;  %v21361_v47 = vpop.f32.mrb[119].mxu1 }
 0xf2b   : > { %21397 = vmatmul.mubr.msk.bf16.vlgmr.msra.gmra.mrb[148].mxu1 %vm4074_vm3, %v9710_v4 }
 0xf2c   : > { %21401 = vmatpush3.bf16.msra.mxu1 %v9868_v11  ;;  %21402 = vmatprep.mubr.msk.bf16.mxu1 %vm24253_vm4, %v24252_v55 }
 0xf2d   : > { %21412 = vmatprep.subr.bf16.mxu1 %v24252_v55 }
 0xf2e   : > { %v9669_v12 = vpop.f32.mrb[120].mxu1 }
 0xf2f   : > { %v21364_v15 = vpop.f32.mrb[121].mxu1 }
 0xf30   : > { %v9672_v17 = vpop.f32.mrb[122].mxu1 }
 0xf31   : > { %v9712_v18 = vpack.c.bf16 %v9672_v17, %v9669_v12  ;;  %v21365_v19 = vpop.f32.mrb[123].mxu1 }
 0xf33   : > { %21403 = vmatmul.mubr.msk.bf16.vlgmr.msra.gmra.mrb[152].mxu1 %vm4074_vm3, %v9711_v10  ;;  %21409 = vmatmul.mubr.msk.bf16.vlgmr.msra.gmra.mrb[168].mxu0 %vm4074_vm3, %v9712_v18 }
 0xf34   : > { %21413 = vmatpush3.bf16.msra.mxu1 %v9968_v22  ;;  %21414 = vmatprep.mubr.msk.bf16.mxu1 %vm24253_vm4, %v24252_v55 }
 0xf35   : > { %21424 = vmatprep.subr.bf16.mxu1 %v24252_v55  ;;  %21419 = vmatpush3.bf16.msra.mxu0 %v10018_v23 }
 0xf36   : > { %v9677_v24 = vpop.f32.mrb[124].mxu1  ;;  %21420 = vmatprep.mubr.msk.bf16.mxu0 %vm24253_vm4, %v24252_v55  ;;  %21430 = vmatprep.subr.bf16.mxu0 %v24252_v55 }
 0xf37   : > { %v21368_v26 = vpop.f32.mrb[125].mxu1 }
 0xf38   : > { %v9680_v28 = vpop.f32.mrb[126].mxu1 }
 0xf39   : > { %v9713_v29 = vpack.c.bf16 %v9680_v28, %v9677_v24  ;;  %v21369_v30 = vpop.f32.mrb[127].mxu1 }
 0xf3b   : > { %21415 = vmatmul.mubr.msk.bf16.vlgmr.msra.gmra.mrb[156].mxu1 %vm4074_vm3, %v9713_v29 }
 0xf3c   : > { %21425 = vmatpush3.bf16.msra.mxu1 %v10068_v31  ;;  %21426 = vmatprep.mubr.msk.bf16.mxu1 %vm24253_vm4, %v24252_v55 }
 0xf3d   : > { %21436 = vmatprep.subr.bf16.mxu1 %v24252_v55 }
 0xf3e   : > { %v9685_v32 = vpop.f32.mrb[128].mxu1 }
 0xf3f   : > { %v21372_v20 = vpop.f32.mrb[129].mxu1 }
 0xf40   : > { %v9688_v34 = vpop.f32.mrb[130].mxu1 }
 0xf41   : > { %v21373_v36 = vpop.f32.mrb[131].mxu1  ;;  %v9714_v37 = vpack.c.bf16 %v9688_v34, %v9685_v32 }
 0xf42   : > { %v19393_v36 = vld [vmem:[%s27123_s2] ss:$0 sm:$0xff]  ;;  %s27126_s2 = sld [smem:[#allocation47_spill]] }
 0xf43   : > { %21421 = vmatmul.mubr.msk.bf16.vlgmr.msra.gmra.mrb[172].mxu0 %vm4074_vm3, %v9714_v37 }
 0xf44   : > { %21431 = vmatpush3.bf16.msra.mxu0 %v10118_v38  ;;  %21432 = vmatprep.mubr.msk.bf16.mxu0 %vm24253_vm4, %v24252_v55 }
 0xf45   : > { %21448 = vmatprep.subr.bf16.mxu0 %v24252_v55 }
 0xf46   : > { %v9693_v39 = vpop.f32.mrb[132].mxu1 }
 0xf47   : > { %v21376_v40 = vpop.f32.mrb[133].mxu1 }
 0xf48   : > { %v9696_v41 = vpop.f32.mrb[134].mxu1  ;;  %s27127_s4 = smov %s27126_s2 }
 0xf49   : > { %v9715_v42 = vpack.c.bf16 %v9696_v41, %v9693_v39  ;;  %v21377_v44 = vpop.f32.mrb[135].mxu1 }
 0xf4b   : > { %21427 = vmatmul.mubr.msk.bf16.vlgmr.msra.gmra.mrb[160].mxu1 %vm4074_vm3, %v9715_v42 }
 0xf4c   : > { %21437 = vmatpush3.bf16.msra.mxu1 %v25609_v21  ;;  %21444 = vmatprep.mubr.msk.bf16.mxu1 %vm24253_vm4, %v24252_v55  ;;  %v23524_v21 = vld [vmem:[%s27121_s28] sm:$0xff]   ;;  %s27124_s28 = sld [smem:[#allocation46_spill]] }
 0xf4d   : > { %21438 = vmatprep.subr.bf16.mxu1 %v24252_v55 }
 0xf4e   : > { %v9701_v45 = vpop.f32.mrb[136].mxu1 }
 0xf4f   : > { %v21380_v46 = vpop.f32.mrb[137].mxu1 }
 0xf50   : > { %21439 = vmatpush3.bf16.msra.mxu1 %v25604_v50  ;;  %v9704_v13 = vpop.f32.mrb[138].mxu1  ;;  %v10226_v50 = vld [vmem:[%s27122_s10] sm:$0xf] }
 0xf51   : > { %21440 = vmatprep.subr.bf16.mxu1 %v24252_v55  ;;  %v9716_v48 = vpack.c.bf16 %v9704_v13, %v9701_v45  ;;  %v21381_v49 = vpop.f32.mrb[139].mxu1  ;;  %v10238_v6 = vsel %vm4087_vm2, %v10226_v50, 0 }
 0xf52   : > { %s27125_s10 = smov %s27124_s28 }
 0xf53   : > { %21433 = vmatmul.mubr.msk.bf16.vlgmr.msra.gmra.mrb[176].mxu0 %vm4074_vm3, %v9716_v48 }
 0xf54   : > { %21441 = vmatpush3.bf16.msra.mxu1 %v25627_v35  ;;  %21450 = vmatprep.mubr.msk.bf16.mxu0 %vm24253_vm4, %v24252_v55 }
 0xf55   : > { %21442 = vmatprep.subr.bf16.mxu1 %v24252_v55  ;;  %21449 = vmatpush3.bf16.msra.mxu0 %v10238_v6 }
 0xf56   : > { %21454 = vmatprep.subr.bf16.mxu0 %v24252_v55 }
 0xf58   : > { %21443 = vmatpush3.bf16.msra.mxu1 %v25623_v62 }
 0xf59   : > { %21546 = vmatprep.subr.bf16.mxu1 %v24252_v55 }
 0xf5b   : > { %21445 = vmatmul.mubr.msk.bf16.vlgmr.msra.gmra.mrb[164].mxu1 %vm3606_vm1, %v23524_v21 }
 0xf5c   : > { %21548 = vmatprep.mubr.msk.bf16.mxu1 %vm24253_vm4, %v24252_v55 }
 0xfee   : > { %v9759_v35 = vpop.f32.mrb[140].mxu1 }
 0xfef   : > { %v21386_v51 = vpop.f32.mrb[141].mxu1 }
 0xff0   : > { %v9762_v52 = vpop.f32.mrb[142].mxu1  ;;  %v23526_v51 = vld [vmem:[%s27125_s10 + $0x8] sm:$0xff]  }
 0xff1   : > { %v21387_v53 = vpop.f32.mrb[143].mxu1 }
 0xff2   : > { %v23528_v53 = vld [vmem:[%s27125_s10 + $0x18] sm:$0xff]  }
 0xff6   : > { %v9806_v54 = vpop.f32.mrb[144].mxu1 }
 0xff7   : > { %v9807_v56 = vadd.f32 %v9806_v54, %v9759_v35  ;;  %v21392_v62 = vpop.f32.mrb[145].mxu1  ;;  %v23525_v35 = vld [vmem:[%s27124_s28] sm:$0xff]   ;;  %s27128_s28 = sld [smem:[#allocation45_spill]] }
 0xff8   : > { %v9809_v57 = vpop.f32.mrb[146].mxu1  ;;  %v23529_v54 = vld [vmem:[%s27125_s10 + $0x20] sm:$0xff]   ;;  %v23531_v62 = vld [vmem:[%s27125_s10 + $0x30] sm:$0xff]  }
 0xff9   : > { %v9810_v58 = vadd.f32 %v9809_v57, %v9762_v52  ;;  %v21393_v59 = vpop.f32.mrb[147].mxu1  ;;  %v23527_v52 = vld [vmem:[%s27125_s10 + $0x10] sm:$0xff]   ;;  %v23532_v57 = vld [vmem:[%s27125_s10 + $0x38] sm:$0xff]  }
 0xffa   : > { %v23534_v59 = vld [vmem:[%s27126_s2 + $0x8] sm:$0xff]   ;;  %s27129_s2 = sld [smem:[#allocation48_spill]] }
 0xffe   : > { %v9854_v27 = vpop.f32.mrb[148].mxu1 }
 0xfff   : > { %v9861_v60 = vadd.f32 %v9854_v27, %v9807_v56  ;;  %v21398_v61 = vpop.f32.mrb[149].mxu1  ;;  %v23530_v56 = vld [vmem:[%s27125_s10 + $0x28] sm:$0xff]  }
0x1000   : > { %v9857_v63 = vpop.f32.mrb[150].mxu1 }
0x1001   : > { %v9862_v1 = vadd.f32 %v9857_v63, %v9810_v58  ;;  %v21399_v2 = vpop.f32.mrb[151].mxu1  ;;  %v23533_v58 = vld [vmem:[%s27125_s10 + $0x40] sm:$0xff]  }
0x1006   : > { %v9904_v3 = vpop.f32.mrb[152].mxu1  ;;  %v9954_v4 = vpop.f32.mrb[168].mxu0 }
0x1007   : > { %v9911_v5 = vadd.f32 %v9904_v3, %v9861_v60  ;;  %v21404_v0 = vpop.f32.mrb[153].mxu1  ;;  %v21410_v43 = vpop.f32.mrb[169].mxu0 }
0x1008   : > { %v9907_v7 = vpop.f32.mrb[154].mxu1  ;;  %v9957_v8 = vpop.f32.mrb[170].mxu0 }
0x1009   : > { %v9912_v9 = vadd.f32 %v9907_v7, %v9862_v1  ;;  %v21405_v10 = vpop.f32.mrb[155].mxu1  ;;  %v9961_v11 = vadd.f32 %v9954_v4, %v9911_v5  ;;  %v21411_v47 = vpop.f32.mrb[171].mxu0  ;;  %v23535_v5 = vld [vmem:[%s27127_s4] sm:$0xff]  }
0x100a   : > { %v23536_v47 = vld [vmem:[%s27127_s4 + $0x10] sm:$0xff]  }
0x100b   : > { %v9962_v12 = vadd.f32 %v9957_v8, %v9912_v9 }
0x100e   : > { %v10004_v14 = vpop.f32.mrb[156].mxu1 }
0x100f   : > { %v10011_v15 = vadd.f32 %v10004_v14, %v9961_v11  ;;  %v21416_v16 = vpop.f32.mrb[157].mxu1 }
0x1010   : > { %v10007_v17 = vpop.f32.mrb[158].mxu1 }
0x1011   : > { %v10012_v18 = vadd.f32 %v10007_v17, %v9962_v12  ;;  %v21417_v19 = vpop.f32.mrb[159].mxu1 }
0x1016   : > { %v10054_v22 = vpop.f32.mrb[172].mxu0 }
0x1017   : > { %v10061_v23 = vadd.f32 %v10054_v22, %v10011_v15  ;;  %v21422_v24 = vpop.f32.mrb[173].mxu0  ;;  %v23537_v22 = vld [vmem:[%s27127_s4 + $0x18] sm:$0xff]  }
0x1018   : > { %v10057_v25 = vpop.f32.mrb[174].mxu0 }
0x1019   : > { %v10062_v26 = vadd.f32 %v10057_v25, %v10012_v18  ;;  %v21423_v28 = vpop.f32.mrb[175].mxu0 }
0x101e   : > { %v10104_v29 = vpop.f32.mrb[160].mxu1 }
0x101f   : > { %v10111_v30 = vadd.f32 %v10104_v29, %v10061_v23  ;;  %v21428_v31 = vpop.f32.mrb[161].mxu1 }
0x1020   : > { %v10107_v32 = vpop.f32.mrb[162].mxu1 }
0x1021   : > { %v10112_v33 = vadd.f32 %v10107_v32, %v10062_v26  ;;  %v21429_v20 = vpop.f32.mrb[163].mxu1  ;;  %v23538_v32 = vld [vmem:[%s27127_s4 + $0x20] sm:$0xff]  }
0x1026   : > { %v10154_v34 = vpop.f32.mrb[176].mxu0 }
0x1027   : > { %v10161_v37 = vadd.f32 %v10154_v34, %v10111_v30  ;;  %v21434_v38 = vpop.f32.mrb[177].mxu0 }
0x1028   : > { %v10157_v39 = vpop.f32.mrb[178].mxu0 }
0x1029   : > { %v10170_v40 = vadd.f32 %v19393_v36, %v10161_v37  ;;  %v10162_v41 = vadd.f32 %v10157_v39, %v10112_v33  ;;  %v21435_v42 = vpop.f32.mrb[179].mxu0 }
0x102b   : > { %v10171_v44 = vadd.f32 %v19393_v36, %v10162_v41  ;;  %v10172_v45 = vmax.f32 %v10170_v40, 0.0  ;;  %v23539_v40 = vld [vmem:[%s27127_s4 + $0x28] sm:$0xff]  }
0x102d   : > { %v10173_v46 = vmax.f32 %v10171_v44, 0.0 }
0x102e   : > { %v10218_v13 = vpop.f32.mrb[164].mxu1 }
0x102f   : > { %v21446_v48 = vpop.f32.mrb[165].mxu1  ;;  %v10281_v49 = vpack.c.bf16 %v10173_v46, %v10172_v45 }
0x1030   : > { %v10221_v21 = vpop.f32.mrb[166].mxu1 }
0x1031   : > { %v10225_v50 = vpack.c.bf16 %v10221_v21, %v10218_v13  ;;  %v21447_v6 = vpop.f32.mrb[167].mxu1  ;;  %v23540_v21 = vld [vmem:[%s27127_s4 + $0x30] sm:$0xff]  }
0x1032   : > { %v23542_v6 = vld [vmem:[%s27127_s4 + $0x40] sm:$0xff]  }
0x1033   : > { %21451 = vmatmul.mubr.msk.bf16.vlgmr.msra.gmra.mrb[180].mxu0 %vm4074_vm3, %v10225_v50  ;;  %v23541_v50 = vld [vmem:[%s27127_s4 + $0x38] sm:$0xff]  }
0x1034   : > { %21455 = vmatpush3.bf16.msra.mxu0 %v10281_v49  ;;  %21456 = vmatprep.mubr.msk.bf16.mxu0 %vm24253_vm4, %v24252_v55 }
0x1035   : > { %21492 = vmatprep.subr.bf16.mxu0 %v24252_v55 }
0x103b   : > { %21457 = vmatmul.mubr.msk.bf16.vlgmr.msra.gmra.mrb[184].mxu0 %vm10345_vm5, %v23525_v35  ;;  %v19396_v35 = vld [vmem:[%s27128_s28] ss:$0 sm:$0xff]  ;;  %s27131_s28 = sld [smem:[#allocation50_spill]] }
0x103c   : > { %21460 = vmatprep.mubr.msk.bf16.mxu0 %vm24253_vm4, %v24252_v55  ;;  %21493 = vmatpush3.bf16.msra.mxu0 %v23534_v59 }
0x103d   : > { %21498 = vmatprep.subr.bf16.mxu0 %v24252_v55 }
0x1041   : > { %s27132_s4 = smov %s27131_s28 }
0x1043   : > { %21461 = vmatmul.mubr.msk.bf16.gmra.mrb[188].mxu0 %vm10345_vm5, %v23526_v51 }
0x1044   : > { %21464 = vmatprep.mubr.msk.bf16.mxu0 %vm24253_vm4, %v24252_v55 }
0x104b   : > { %21465 = vmatmul.mubr.msk.bf16.gmra.mrb[192].mxu0 %vm10345_vm5, %v23527_v52  ;;  %v19434_v52 = vld [vmem:[%s27129_s2] ss:$0 sm:$0xff]  ;;  %s27133_s2 = sld [smem:[#allocation51_spill]] }
0x104c   : > { %21468 = vmatprep.mubr.msk.bf16.mxu0 %vm24253_vm4, %v24252_v55 }
0x1053   : > { %21469 = vmatmul.mubr.msk.bf16.gmra.mrb[196].mxu0 %vm10345_vm5, %v23528_v53 }
0x1054   : > { %21472 = vmatprep.mubr.msk.bf16.mxu0 %vm24253_vm4, %v24252_v55 }
0x105b   : > { %21473 = vmatmul.mubr.msk.bf16.gmra.mrb[200].mxu0 %vm10345_vm5, %v23529_v54 }
0x105c   : > { %21476 = vmatprep.mubr.msk.bf16.mxu0 %vm24253_vm4, %v24252_v55 }
0x1063   : > { %21477 = vmatmul.mubr.msk.bf16.gmra.mrb[204].mxu0 %vm10345_vm5, %v23530_v56 }
0x1064   : > { %21480 = vmatprep.mubr.msk.bf16.mxu0 %vm24253_vm4, %v24252_v55 }
0x106b   : > { %21481 = vmatmul.mubr.msk.bf16.gmra.mrb[208].mxu0 %vm10345_vm5, %v23531_v62 }
0x106c   : > { %21484 = vmatprep.mubr.msk.bf16.mxu0 %vm24253_vm4, %v24252_v55 }
0x1073   : > { %21485 = vmatmul.mubr.msk.bf16.gmra.mrb[212].mxu0 %vm10345_vm5, %v23532_v57 }
0x1074   : > { %21488 = vmatprep.mubr.msk.bf16.mxu0 %vm24253_vm4, %v24252_v55 }
0x107b   : > { %21489 = vmatmul.mubr.msk.bf16.gmra.mrb[216].mxu0 %vm10345_vm5, %v23533_v58 }
0x107c   : > { %21494 = vmatprep.mubr.msk.bf16.mxu0 %vm24253_vm4, %v24252_v55 }
0x110e   : > { %v10407_v27 = vpop.f32.mrb[184].mxu0 }
0x110f   : > { %v21458_v60 = vpop.f32.mrb[185].mxu0 }
0x1110   : > { %v10410_v61 = vpop.f32.mrb[186].mxu0 }
0x1111   : > { %v10478_v63 = vpack.c.bf16 %v10410_v61, %v10407_v27  ;;  %v21459_v1 = vpop.f32.mrb[187].mxu0 }
0x1112   : > { %v23544_v1 = vld [vmem:[%s27130_s5 + $0x8] sm:$0xff]  }
0x1116   : > { %v10415_v2 = vpop.f32.mrb[188].mxu0 }
0x1117   : > { %v21462_v3 = vpop.f32.mrb[189].mxu0 }
0x1118   : > { %v10418_v4 = vpop.f32.mrb[190].mxu0  ;;  %v23546_v3 = vld [vmem:[%s27130_s5 + $0x18] sm:$0xff]  }
0x1119   : > { %v10479_v0 = vpack.c.bf16 %v10418_v4, %v10415_v2  ;;  %v21463_v43 = vpop.f32.mrb[191].mxu0  ;;  %v23545_v2 = vld [vmem:[%s27130_s5 + $0x10] sm:$0xff]   ;;  %v23547_v4 = vld [vmem:[%s27130_s5 + $0x20] sm:$0xff]  }
0x111a   : > { %v23550_v43 = vld [vmem:[%s27130_s5 + $0x38] sm:$0xff]  }
0x111b   : > { %21495 = vmatmul.mubr.msk.bf16.vlgmr.msra.gmra.mrb[180].mxu0 %vm10345_vm5, %v10479_v0  ;;  %v23549_v0 = vld [vmem:[%s27130_s5 + $0x30] sm:$0xff]  }
0x111c   : > { %21499 = vmatpush3.bf16.msra.mxu0 %v23535_v5  ;;  %21500 = vmatprep.mubr.msk.bf16.mxu0 %vm24253_vm4, %v24252_v55  ;;  %v23548_v5 = vld [vmem:[%s27130_s5 + $0x28] sm:$0xff]  }
0x111d   : > { %21504 = vmatprep.subr.bf16.mxu0 %v24252_v55 }
0x111e   : > { %v10423_v7 = vpop.f32.mrb[192].mxu0 }
0x111f   : > { %v21466_v8 = vpop.f32.mrb[193].mxu0 }
0x1120   : > { %v10426_v9 = vpop.f32.mrb[194].mxu0  ;;  %v23552_v8 = vld [vmem:[%s27131_s28 + $0x8] sm:$0xff]   ;;  %s27134_s28 = sld [smem:[#allocation52_spill]] }
0x1121   : > { %v10480_v10 = vpack.c.bf16 %v10426_v9, %v10423_v7  ;;  %v21467_v11 = vpop.f32.mrb[195].mxu0  ;;  %v23551_v7 = vld [vmem:[%s27130_s5 + $0x40] sm:$0xff]  }
0x1126   : > { %v10431_v12 = vpop.f32.mrb[196].mxu0 }
0x1127   : > { %21501 = vmatmul.mubr.msk.bf16.vlgmr.msra.gmra.mrb[180].mxu0 %vm10345_vm5, %v10478_v63  ;;  %v21470_v14 = vpop.f32.mrb[197].mxu0  ;;  %v23543_v63 = vld [vmem:[%s27130_s5] sm:$0xff]  }
0x1128   : > { %21505 = vmatpush3.bf16.msra.mxu0 %v23536_v47  ;;  %21506 = vmatprep.mubr.msk.bf16.mxu0 %vm24253_vm4, %v24252_v55  ;;  %v10434_v15 = vpop.f32.mrb[198].mxu0 }
0x1129   : > { %21510 = vmatprep.subr.bf16.mxu0 %v24252_v55  ;;  %v10481_v16 = vpack.c.bf16 %v10434_v15, %v10431_v12  ;;  %v21471_v17 = vpop.f32.mrb[199].mxu0 }
0x112a   : > { %v23553_v17 = vld [vmem:[%s27132_s4] sm:$0xff]  }
0x112e   : > { %v10439_v18 = vpop.f32.mrb[200].mxu0 }
0x112f   : > { %v21474_v19 = vpop.f32.mrb[201].mxu0 }
0x1130   : > { %v10442_v23 = vpop.f32.mrb[202].mxu0 }
0x1131   : > { %v10482_v24 = vpack.c.bf16 %v10442_v23, %v10439_v18  ;;  %v21475_v25 = vpop.f32.mrb[203].mxu0 }
0x1132   : > { %v23554_v25 = vld [vmem:[%s27132_s4 + $0x10] sm:$0xff]  }
0x1133   : > { %21507 = vmatmul.mubr.msk.bf16.vlgmr.msra.gmra.mrb[180].mxu0 %vm10345_vm5, %v10480_v10 }
0x1134   : > { %21511 = vmatpush3.bf16.msra.mxu0 %v23537_v22  ;;  %21512 = vmatprep.mubr.msk.bf16.mxu0 %vm24253_vm4, %v24252_v55 }
0x1135   : > { %21516 = vmatprep.subr.bf16.mxu0 %v24252_v55 }
0x1136   : > { %v10447_v26 = vpop.f32.mrb[204].mxu0 }
0x1137   : > { %v21478_v28 = vpop.f32.mrb[205].mxu0 }
0x1138   : > { %v10450_v29 = vpop.f32.mrb[206].mxu0 }
0x1139   : > { %v10483_v30 = vpack.c.bf16 %v10450_v29, %v10447_v26  ;;  %v21479_v31 = vpop.f32.mrb[207].mxu0 }
0x113e   : > { %v10455_v33 = vpop.f32.mrb[208].mxu0 }
0x113f   : > { %21513 = vmatmul.mubr.msk.bf16.vlgmr.msra.gmra.mrb[180].mxu0 %vm10345_vm5, %v10481_v16  ;;  %v21482_v20 = vpop.f32.mrb[209].mxu0 }
0x1140   : > { %21517 = vmatpush3.bf16.msra.mxu0 %v23538_v32  ;;  %21518 = vmatprep.mubr.msk.bf16.mxu0 %vm24253_vm4, %v24252_v55  ;;  %v10458_v34 = vpop.f32.mrb[210].mxu0  ;;  %v23555_v32 = vld [vmem:[%s27132_s4 + $0x18] sm:$0xff]  }
0x1141   : > { %21522 = vmatprep.subr.bf16.mxu0 %v24252_v55  ;;  %v10484_v36 = vpack.c.bf16 %v10458_v34, %v10455_v33  ;;  %v21483_v37 = vpop.f32.mrb[211].mxu0 }
0x1146   : > { %v10463_v38 = vpop.f32.mrb[212].mxu0 }
0x1147   : > { %v21486_v39 = vpop.f32.mrb[213].mxu0 }
0x1148   : > { %v10466_v41 = vpop.f32.mrb[214].mxu0 }
0x1149   : > { %v10485_v42 = vpack.c.bf16 %v10466_v41, %v10463_v38  ;;  %v21487_v44 = vpop.f32.mrb[215].mxu0  ;;  %v23556_v38 = vld [vmem:[%s27132_s4 + $0x20] sm:$0xff]  }
0x114b   : > { %21519 = vmatmul.mubr.msk.bf16.vlgmr.msra.gmra.mrb[180].mxu0 %vm10345_vm5, %v10482_v24 }
0x114c   : > { %21523 = vmatpush3.bf16.msra.mxu0 %v23539_v40  ;;  %21524 = vmatprep.mubr.msk.bf16.mxu0 %vm24253_vm4, %v24252_v55 }
0x114d   : > { %21528 = vmatprep.subr.bf16.mxu0 %v24252_v55 }
0x114e   : > { %v10471_v45 = vpop.f32.mrb[216].mxu0 }
0x114f   : > { %v21490_v46 = vpop.f32.mrb[217].mxu0 }
0x1150   : > { %v10474_v13 = vpop.f32.mrb[218].mxu0 }
0x1151   : > { %v10486_v48 = vpack.c.bf16 %v10474_v13, %v10471_v45  ;;  %v21491_v49 = vpop.f32.mrb[219].mxu0  ;;  %v23557_v45 = vld [vmem:[%s27132_s4 + $0x28] sm:$0xff]  }
0x1157   : > { %21525 = vmatmul.mubr.msk.bf16.vlgmr.msra.gmra.mrb[180].mxu0 %vm10345_vm5, %v10483_v30 }
0x1158   : > { %21529 = vmatpush3.bf16.msra.mxu0 %v23540_v21  ;;  %21530 = vmatprep.mubr.msk.bf16.mxu0 %vm24253_vm4, %v24252_v55 }
0x1159   : > { %21534 = vmatprep.subr.bf16.mxu0 %v24252_v55 }
0x1163   : > { %21531 = vmatmul.mubr.msk.bf16.vlgmr.msra.gmra.mrb[180].mxu0 %vm10345_vm5, %v10484_v36 }
0x1164   : > { %21535 = vmatpush3.bf16.msra.mxu0 %v23541_v50  ;;  %21536 = vmatprep.mubr.msk.bf16.mxu0 %vm24253_vm4, %v24252_v55  ;;  %v23558_v50 = vld [vmem:[%s27132_s4 + $0x30] sm:$0xff]  }
0x1165   : > { %21540 = vmatprep.subr.bf16.mxu0 %v24252_v55 }
0x116f   : > { %21537 = vmatmul.mubr.msk.bf16.vlgmr.msra.gmra.mrb[180].mxu0 %vm10345_vm5, %v10485_v42 }
0x1170   : > { %21541 = vmatpush3.bf16.msra.mxu0 %v23542_v6  ;;  %21542 = vmatprep.mubr.msk.bf16.mxu0 %vm24253_vm4, %v24252_v55 }
0x1171   : > { %21638 = vmatprep.subr.bf16.mxu0 %v24252_v55 }
0x117b   : > { %21543 = vmatmul.mubr.msk.bf16.vlgmr.msra.gmra.mrb[180].mxu0 %vm10345_vm5, %v10486_v48 }
0x117c   : > { %21640 = vmatprep.mubr.msk.bf16.mxu0 %vm24253_vm4, %v24252_v55 }
0x124e   : > { %v10960_v51 = vpop.f32.mrb[180].mxu0 }
0x124f   : > { %v22598_v53 = vadd.f32 %v19396_v35, %v10960_v51  ;;  %v21544_v54 = vpop.f32.mrb[181].mxu0 }
0x1250   : > { %v10963_v56 = vpop.f32.mrb[182].mxu0  ;;  %v23559_v54 = vld [vmem:[%s27132_s4 + $0x38] sm:$0xff]  }
0x1251   : > { %v22599_v62 = vadd.f32 %v22598_v53, %v19434_v52  ;;  %v22600_v57 = vadd.f32 %v19396_v35, %v10963_v56  ;;  %v21545_v58 = vpop.f32.mrb[183].mxu0 }
0x1253   : > { %v22601_v59 = vadd.f32 %v22600_v57, %v19434_v52  ;;  %v10980_v27 = vmax.f32 %v22599_v62, 0.0 }
0x1255   : > { %v10981_v60 = vmax.f32 %v22601_v59, 0.0 }
0x1257   : > { %v25826_v61 = vpack.c.bf16 %v10981_v60, %v10980_v27  ;;  %v23560_v27 = vld [vmem:[%s27132_s4 + $0x40] sm:$0xff]   ;;  %s27135_s4 = smov %s27134_s28 }
0x1259   : > { %21547 = vmatpush3.bf16.msra.mxu1 %v25826_v61 }
0x125a   : > { %21584 = vmatprep.subr.bf16.mxu1 %v24252_v55 }
0x125c   : > { %21549 = vmatmul.mubr.msk.bf16.vlgmr.msra.gmra.mrb[168].mxu1 %vm10345_vm5, %v23543_v63 }
0x125d   : > { %21552 = vmatprep.mubr.msk.bf16.mxu1 %vm24253_vm4, %v24252_v55  ;;  %21585 = vmatpush3.bf16.msra.mxu1 %v23552_v8 }
0x125e   : > { %21590 = vmatprep.subr.bf16.mxu1 %v24252_v55 }
0x1264   : > { %21553 = vmatmul.mubr.msk.bf16.gmra.mrb[172].mxu1 %vm10345_vm5, %v23544_v1 }
0x1265   : > { %21556 = vmatprep.mubr.msk.bf16.mxu1 %vm24253_vm4, %v24252_v55 }
0x126c   : > { %21557 = vmatmul.mubr.msk.bf16.gmra.mrb[176].mxu1 %vm10345_vm5, %v23545_v2 }
0x126d   : > { %21560 = vmatprep.mubr.msk.bf16.mxu1 %vm24253_vm4, %v24252_v55 }
0x1274   : > { %21561 = vmatmul.mubr.msk.bf16.gmra.mrb[180].mxu1 %vm10345_vm5, %v23546_v3 }
0x1275   : > { %21564 = vmatprep.mubr.msk.bf16.mxu1 %vm24253_vm4, %v24252_v55 }
0x127c   : > { %21565 = vmatmul.mubr.msk.bf16.gmra.mrb[184].mxu1 %vm10345_vm5, %v23547_v4 }
0x127d   : > { %21568 = vmatprep.mubr.msk.bf16.mxu1 %vm24253_vm4, %v24252_v55 }
0x1284   : > { %21569 = vmatmul.mubr.msk.bf16.gmra.mrb[188].mxu1 %vm10345_vm5, %v23548_v5 }
0x1285   : > { %21572 = vmatprep.mubr.msk.bf16.mxu1 %vm24253_vm4, %v24252_v55 }
0x128c   : > { %21573 = vmatmul.mubr.msk.bf16.gmra.mrb[192].mxu1 %vm10345_vm5, %v23549_v0 }
0x128d   : > { %21576 = vmatprep.mubr.msk.bf16.mxu1 %vm24253_vm4, %v24252_v55 }
0x1294   : > { %21577 = vmatmul.mubr.msk.bf16.gmra.mrb[196].mxu1 %vm10345_vm5, %v23550_v43 }
0x1295   : > { %21580 = vmatprep.mubr.msk.bf16.mxu1 %vm24253_vm4, %v24252_v55 }
0x129c   : > { %21581 = vmatmul.mubr.msk.bf16.gmra.mrb[200].mxu1 %vm10345_vm5, %v23551_v7 }
0x129d   : > { %21586 = vmatprep.mubr.msk.bf16.mxu1 %vm24253_vm4, %v24252_v55 }
0x132f   : > { %v11107_v9 = vpop.f32.mrb[168].mxu1 }
0x1330   : > { %v21550_v10 = vpop.f32.mrb[169].mxu1 }
0x1331   : > { %v11110_v11 = vpop.f32.mrb[170].mxu1 }
0x1332   : > { %v11178_v47 = vpack.c.bf16 %v11110_v11, %v11107_v9  ;;  %v21551_v12 = vpop.f32.mrb[171].mxu1 }
0x1337   : > { %v11115_v14 = vpop.f32.mrb[172].mxu1 }
0x1338   : > { %v21554_v15 = vpop.f32.mrb[173].mxu1 }
0x1339   : > { %v11118_v16 = vpop.f32.mrb[174].mxu1 }
0x133a   : > { %v11179_v18 = vpack.c.bf16 %v11118_v16, %v11115_v14  ;;  %v21555_v19 = vpop.f32.mrb[175].mxu1 }
0x133c   : > { %21587 = vmatmul.mubr.msk.bf16.vlgmr.msra.gmra.mrb[204].mxu1 %vm10345_vm5, %v11179_v18 }
0x133d   : > { %21591 = vmatpush3.bf16.msra.mxu1 %v23553_v17  ;;  %21592 = vmatprep.mubr.msk.bf16.mxu1 %vm24253_vm4, %v24252_v55 }
0x133e   : > { %21596 = vmatprep.subr.bf16.mxu1 %v24252_v55 }
0x133f   : > { %v11123_v22 = vpop.f32.mrb[176].mxu1 }
0x1340   : > { %v21558_v23 = vpop.f32.mrb[177].mxu1 }
0x1341   : > { %v11126_v24 = vpop.f32.mrb[178].mxu1 }
0x1342   : > { %v11180_v26 = vpack.c.bf16 %v11126_v24, %v11123_v22  ;;  %v21559_v28 = vpop.f32.mrb[179].mxu1 }
0x1344   : > { %21593 = vmatmul.mubr.msk.bf16.vlgmr.msra.gmra.mrb[208].mxu1 %vm10345_vm5, %v11178_v47 }
0x1345   : > { %21597 = vmatpush3.bf16.msra.mxu1 %v23554_v25  ;;  %21598 = vmatprep.mubr.msk.bf16.mxu1 %vm24253_vm4, %v24252_v55 }
0x1346   : > { %21602 = vmatprep.subr.bf16.mxu1 %v24252_v55 }
0x1347   : > { %v11131_v29 = vpop.f32.mrb[180].mxu1 }
0x1348   : > { %v21562_v30 = vpop.f32.mrb[181].mxu1 }
0x1349   : > { %v11134_v31 = vpop.f32.mrb[182].mxu1 }
0x134a   : > { %v11181_v33 = vpack.c.bf16 %v11134_v31, %v11131_v29  ;;  %v21563_v20 = vpop.f32.mrb[183].mxu1 }
0x134c   : > { %21599 = vmatmul.mubr.msk.bf16.vlgmr.msra.gmra.mrb[212].mxu1 %vm10345_vm5, %v11180_v26 }
0x134d   : > { %21603 = vmatpush3.bf16.msra.mxu1 %v23555_v32  ;;  %21604 = vmatprep.mubr.msk.bf16.mxu1 %vm24253_vm4, %v24252_v55 }
0x134e   : > { %21608 = vmatprep.subr.bf16.mxu1 %v24252_v55 }
0x134f   : > { %v11139_v34 = vpop.f32.mrb[184].mxu1 }
0x1350   : > { %v21566_v36 = vpop.f32.mrb[185].mxu1 }
0x1351   : > { %v11142_v37 = vpop.f32.mrb[186].mxu1 }
0x1352   : > { %v11182_v39 = vpack.c.bf16 %v11142_v37, %v11139_v34  ;;  %v21567_v40 = vpop.f32.mrb[187].mxu1 }
0x1354   : > { %21605 = vmatmul.mubr.msk.bf16.vlgmr.msra.gmra.mrb[216].mxu1 %vm10345_vm5, %v11181_v33 }
0x1355   : > { %21609 = vmatpush3.bf16.msra.mxu1 %v23556_v38  ;;  %21610 = vmatprep.mubr.msk.bf16.mxu1 %vm24253_vm4, %v24252_v55 }
0x1356   : > { %21614 = vmatprep.subr.bf16.mxu1 %v24252_v55 }
0x1357   : > { %v11147_v41 = vpop.f32.mrb[188].mxu1 }
0x1358   : > { %v21570_v42 = vpop.f32.mrb[189].mxu1 }
0x1359   : > { %v11150_v44 = vpop.f32.mrb[190].mxu1 }
0x135a   : > { %v11183_v46 = vpack.c.bf16 %v11150_v44, %v11147_v41  ;;  %v21571_v13 = vpop.f32.mrb[191].mxu1 }
0x135c   : > { %21611 = vmatmul.mubr.msk.bf16.vlgmr.msra.gmra.mrb[220].mxu1 %vm10345_vm5, %v11182_v39 }
0x135d   : > { %21615 = vmatpush3.bf16.msra.mxu1 %v23557_v45  ;;  %21616 = vmatprep.mubr.msk.bf16.mxu1 %vm24253_vm4, %v24252_v55 }
0x135e   : > { %21620 = vmatprep.subr.bf16.mxu1 %v24252_v55 }
0x135f   : > { %v11155_v48 = vpop.f32.mrb[192].mxu1 }
0x1360   : > { %v21574_v49 = vpop.f32.mrb[193].mxu1 }
0x1361   : > { %v11158_v21 = vpop.f32.mrb[194].mxu1 }
0x1362   : > { %v11184_v6 = vpack.c.bf16 %v11158_v21, %v11155_v48  ;;  %v21575_v35 = vpop.f32.mrb[195].mxu1 }
0x1364   : > { %21617 = vmatmul.mubr.msk.bf16.vlgmr.msra.gmra.mrb[224].mxu1 %vm10345_vm5, %v11183_v46 }
0x1365   : > { %21621 = vmatpush3.bf16.msra.mxu1 %v23558_v50  ;;  %21622 = vmatprep.mubr.msk.bf16.mxu1 %vm24253_vm4, %v24252_v55  ;;  %v19471_v50 = vld [vmem:[%s27133_s2] ss:$0 sm:$0xff]  ;;  %s27136_s2 = sld [smem:[#allocation53_spill]] }
0x1366   : > { %21626 = vmatprep.subr.bf16.mxu1 %v24252_v55 }
0x1367   : > { %v11163_v51 = vpop.f32.mrb[196].mxu1 }
0x1368   : > { %v21578_v52 = vpop.f32.mrb[197].mxu1 }
0x1369   : > { %v11166_v53 = vpop.f32.mrb[198].mxu1 }
0x136a   : > { %v11185_v56 = vpack.c.bf16 %v11166_v53, %v11163_v51  ;;  %v21579_v62 = vpop.f32.mrb[199].mxu1 }
0x136b   : > { %s27137_s5 = smov %s27136_s2 }
0x136c   : > { %21623 = vmatmul.mubr.msk.bf16.vlgmr.msra.gmra.mrb[228].mxu1 %vm10345_vm5, %v11184_v6 }
0x136d   : > { %21627 = vmatpush3.bf16.msra.mxu1 %v23559_v54  ;;  %21628 = vmatprep.mubr.msk.bf16.mxu1 %vm24253_vm4, %v24252_v55 }
0x136e   : > { %21632 = vmatprep.subr.bf16.mxu1 %v24252_v55 }
0x136f   : > { %v11171_v57 = vpop.f32.mrb[200].mxu1 }
0x1370   : > { %v21582_v58 = vpop.f32.mrb[201].mxu1 }
0x1371   : > { %v11174_v59 = vpop.f32.mrb[202].mxu1 }
0x1372   : > { %v11186_v60 = vpack.c.bf16 %v11174_v59, %v11171_v57  ;;  %v21583_v63 = vpop.f32.mrb[203].mxu1  ;;  %v23561_v59 = vld [vmem:[%s27134_s28] sm:$0xff]   ;;  %s27138_s28 = sld [smem:[#allocation54_spill]] }
0x1373   : > { %v23564_v63 = vld [vmem:[%s27135_s4 + $0x18] sm:$0xff]  }
0x1374   : > { %21629 = vmatmul.mubr.msk.bf16.vlgmr.msra.gmra.mrb[232].mxu1 %vm10345_vm5, %v11185_v56 }
0x1375   : > { %21633 = vmatpush3.bf16.msra.mxu1 %v23560_v27  ;;  %21634 = vmatprep.mubr.msk.bf16.mxu1 %vm24253_vm4, %v24252_v55  ;;  %v23562_v27 = vld [vmem:[%s27135_s4 + $0x8] sm:$0xff]  }
0x1376   : > { %21676 = vmatprep.subr.bf16.mxu1 %v24252_v55 }
0x137c   : > { %21635 = vmatmul.mubr.msk.bf16.vlgmr.msra.gmra.mrb[236].mxu1 %vm10345_vm5, %v11186_v60  ;;  %v23563_v60 = vld [vmem:[%s27135_s4 + $0x10] sm:$0xff]  }
0x137d   : > { %21678 = vmatprep.mubr.msk.bf16.mxu1 %vm24253_vm4, %v24252_v55 }
0x140f   : > { %v11234_v1 = vpop.f32.mrb[204].mxu1 }
0x1410   : > { %v21588_v2 = vpop.f32.mrb[205].mxu1 }
0x1411   : > { %v11237_v3 = vpop.f32.mrb[206].mxu1  ;;  %v23566_v2 = vld [vmem:[%s27135_s4 + $0x28] sm:$0xff]  }
0x1412   : > { %v21589_v4 = vpop.f32.mrb[207].mxu1 }
0x1413   : > { %v23568_v4 = vld [vmem:[%s27135_s4 + $0x38] sm:$0xff]  }
0x1417   : > { %v11284_v5 = vpop.f32.mrb[208].mxu1 }
0x1418   : > { %v11285_v0 = vadd.f32 %v11284_v5, %v11234_v1  ;;  %v21594_v43 = vpop.f32.mrb[209].mxu1  ;;  %v23565_v1 = vld [vmem:[%s27135_s4 + $0x20] sm:$0xff]  }
0x1419   : > { %v11287_v7 = vpop.f32.mrb[210].mxu1  ;;  %v23569_v5 = vld [vmem:[%s27135_s4 + $0x40] sm:$0xff]  }
0x141a   : > { %v11288_v8 = vadd.f32 %v11287_v7, %v11237_v3  ;;  %v21595_v9 = vpop.f32.mrb[211].mxu1  ;;  %v23567_v3 = vld [vmem:[%s27135_s4 + $0x30] sm:$0xff]   ;;  %s27139_s4 = sld [smem:[#allocation55_spill]] }
0x141f   : > { %v11336_v10 = vpop.f32.mrb[212].mxu1 }
0x1420   : > { %v11343_v11 = vadd.f32 %v11336_v10, %v11285_v0  ;;  %v21600_v47 = vpop.f32.mrb[213].mxu1  ;;  %v23570_v0 = vld [vmem:[%s27136_s2 + $0x8] sm:$0xff]   ;;  %s25996_s2 = sand.u32 1, %s24169_s1  }
0x1421   : > { %v11339_v12 = vpop.f32.mrb[214].mxu1  ;;  %21677 = vmatpush3.bf16.msra.mxu1 %v23570_v0 }
0x1422   : > { %v11344_v14 = vadd.f32 %v11339_v12, %v11288_v8  ;;  %v21601_v15 = vpop.f32.mrb[215].mxu1  ;;  %21682 = vmatprep.subr.bf16.mxu1 %v24252_v55 }
0x1427   : > { %v11390_v16 = vpop.f32.mrb[216].mxu1 }
0x1428   : > { %v11397_v17 = vadd.f32 %v11390_v16, %v11343_v11  ;;  %v21606_v18 = vpop.f32.mrb[217].mxu1 }
0x1429   : > { %v11393_v19 = vpop.f32.mrb[218].mxu1 }
0x142a   : > { %v11398_v22 = vadd.f32 %v11393_v19, %v11344_v14  ;;  %v21607_v23 = vpop.f32.mrb[219].mxu1  ;;  %v23571_v14 = vld [vmem:[%s27137_s5] sm:$0xff]  }
0x142f   : > { %v11444_v24 = vpop.f32.mrb[220].mxu1 }
0x1430   : > { %v11451_v25 = vadd.f32 %v11444_v24, %v11397_v17  ;;  %v21612_v26 = vpop.f32.mrb[221].mxu1 }
0x1431   : > { %v11447_v28 = vpop.f32.mrb[222].mxu1 }
0x1432   : > { %v11452_v29 = vadd.f32 %v11447_v28, %v11398_v22  ;;  %v21613_v30 = vpop.f32.mrb[223].mxu1  ;;  %v23572_v22 = vld [vmem:[%s27137_s5 + $0x10] sm:$0xff]  }
0x1437   : > { %v11498_v31 = vpop.f32.mrb[224].mxu1 }
0x1438   : > { %v11505_v32 = vadd.f32 %v11498_v31, %v11451_v25  ;;  %v21618_v33 = vpop.f32.mrb[225].mxu1 }
0x1439   : > { %v11501_v20 = vpop.f32.mrb[226].mxu1 }
0x143a   : > { %v11506_v34 = vadd.f32 %v11501_v20, %v11452_v29  ;;  %v21619_v36 = vpop.f32.mrb[227].mxu1  ;;  %v23573_v29 = vld [vmem:[%s27137_s5 + $0x18] sm:$0xff]  }
0x143f   : > { %v11552_v37 = vpop.f32.mrb[228].mxu1 }
0x1440   : > { %v11559_v38 = vadd.f32 %v11552_v37, %v11505_v32  ;;  %v21624_v39 = vpop.f32.mrb[229].mxu1 }
0x1441   : > { %v11555_v40 = vpop.f32.mrb[230].mxu1 }
0x1442   : > { %v11560_v41 = vadd.f32 %v11555_v40, %v11506_v34  ;;  %v21625_v42 = vpop.f32.mrb[231].mxu1  ;;  %v23574_v34 = vld [vmem:[%s27137_s5 + $0x20] sm:$0xff]  }
0x1447   : > { %v11606_v44 = vpop.f32.mrb[232].mxu1 }
0x1448   : > { %v11613_v45 = vadd.f32 %v11606_v44, %v11559_v38  ;;  %v21630_v46 = vpop.f32.mrb[233].mxu1 }
0x1449   : > { %v11609_v13 = vpop.f32.mrb[234].mxu1 }
0x144a   : > { %v11614_v48 = vadd.f32 %v11609_v13, %v11560_v41  ;;  %v21631_v49 = vpop.f32.mrb[235].mxu1  ;;  %v23575_v41 = vld [vmem:[%s27137_s5 + $0x28] sm:$0xff]  }
0x144f   : > { %v11660_v21 = vpop.f32.mrb[236].mxu1 }
0x1450   : > { %v11667_v6 = vadd.f32 %v11660_v21, %v11613_v45  ;;  %v21636_v35 = vpop.f32.mrb[237].mxu1 }
0x1451   : > { %v11663_v51 = vpop.f32.mrb[238].mxu1 }
0x1452   : > { %v11676_v52 = vadd.f32 %v19471_v50, %v11667_v6  ;;  %v11668_v53 = vadd.f32 %v11663_v51, %v11614_v48  ;;  %v21637_v54 = vpop.f32.mrb[239].mxu1  ;;  %v23576_v48 = vld [vmem:[%s27137_s5 + $0x30] sm:$0xff]   ;;  %v23577_v51 = vld [vmem:[%s27137_s5 + $0x38] sm:$0xff]  }
0x1454   : > { %v11677_v56 = vadd.f32 %v19471_v50, %v11668_v53  ;;  %v11678_v62 = vmax.f32 %v11676_v52, 0.0 }
0x1456   : > { %v11679_v57 = vmax.f32 %v11677_v56, 0.0 }
0x1458   : > { %v11682_v58 = vpack.c.bf16 %v11679_v57, %v11678_v62  ;;  %v23578_v57 = vld [vmem:[%s27137_s5 + $0x40] sm:$0xff]   ;;  %s18793_s5 = sshll.u32 %s25996_s2, 4 }
0x145a   : > { %21639 = vmatpush3.bf16.msra.mxu0 %v11682_v58 }
0x145b   : > { %21730 = vmatprep.subr.bf16.mxu0 %v24252_v55 }
0x145d   : > { %21641 = vmatmul.mubr.msk.bf16.vlgmr.msra.gmra.mrb[220].mxu0 %vm10345_vm5, %v23561_v59 }
0x145e   : > { %21644 = vmatprep.mubr.msk.bf16.mxu0 %vm24253_vm4, %v24252_v55 }
0x1465   : > { %21645 = vmatmul.mubr.msk.bf16.gmra.mrb[224].mxu0 %vm10345_vm5, %v23562_v27 }
0x1466   : > { %21648 = vmatprep.mubr.msk.bf16.mxu0 %vm24253_vm4, %v24252_v55 }
0x146d   : > { %21649 = vmatmul.mubr.msk.bf16.gmra.mrb[228].mxu0 %vm10345_vm5, %v23563_v60 }
0x146e   : > { %21652 = vmatprep.mubr.msk.bf16.mxu0 %vm24253_vm4, %v24252_v55 }
0x1475   : > { %21653 = vmatmul.mubr.msk.bf16.gmra.mrb[232].mxu0 %vm10345_vm5, %v23564_v63 }
0x1476   : > { %21656 = vmatprep.mubr.msk.bf16.mxu0 %vm24253_vm4, %v24252_v55 }
0x147d   : > { %21657 = vmatmul.mubr.msk.bf16.gmra.mrb[236].mxu0 %vm10345_vm5, %v23565_v1 }
0x147e   : > { %21660 = vmatprep.mubr.msk.bf16.mxu0 %vm24253_vm4, %v24252_v55 }
0x1485   : > { %21661 = vmatmul.mubr.msk.bf16.gmra.mrb[240].mxu0 %vm10345_vm5, %v23566_v2 }
0x1486   : > { %21664 = vmatprep.mubr.msk.bf16.mxu0 %vm24253_vm4, %v24252_v55 }
0x148d   : > { %21665 = vmatmul.mubr.msk.bf16.gmra.mrb[244].mxu0 %vm10345_vm5, %v23567_v3 }
0x148e   : > { %21668 = vmatprep.mubr.msk.bf16.mxu0 %vm24253_vm4, %v24252_v55 }
0x1495   : > { %21669 = vmatmul.mubr.msk.bf16.gmra.mrb[248].mxu0 %vm10345_vm5, %v23568_v4 }
0x1496   : > { %21672 = vmatprep.mubr.msk.bf16.mxu0 %vm24253_vm4, %v24252_v55 }
0x149d   : > { %21673 = vmatmul.mubr.msk.bf16.gmra.mrb[252].mxu0 %vm10345_vm5, %v23569_v5 }
0x149e   : > { %21732 = vmatprep.mubr.msk.bf16.mxu0 %vm24253_vm4, %v24252_v55 }
0x1530   : > { %v11807_v43 = vpop.f32.mrb[220].mxu0 }
0x1531   : > { %v21642_v7 = vpop.f32.mrb[221].mxu0 }
0x1532   : > { %v11810_v8 = vpop.f32.mrb[222].mxu0 }
0x1533   : > { %v11878_v9 = vpack.c.bf16 %v11810_v8, %v11807_v43  ;;  %v21643_v10 = vpop.f32.mrb[223].mxu0 }
0x1538   : > { %v11815_v11 = vpop.f32.mrb[224].mxu0 }
0x1539   : > { %v21646_v47 = vpop.f32.mrb[225].mxu0 }
0x153a   : > { %v11818_v12 = vpop.f32.mrb[226].mxu0 }
0x153b   : > { %v11879_v15 = vpack.c.bf16 %v11818_v12, %v11815_v11  ;;  %v21647_v16 = vpop.f32.mrb[227].mxu0 }
0x153d   : > { %21679 = vmatmul.mubr.msk.bf16.vlgmr.msra.gmra.mrb[240].mxu1 %vm10345_vm5, %v11879_v15 }
0x153e   : > { %21683 = vmatpush3.bf16.msra.mxu1 %v23571_v14  ;;  %21684 = vmatprep.mubr.msk.bf16.mxu1 %vm24253_vm4, %v24252_v55 }
0x153f   : > { %21688 = vmatprep.subr.bf16.mxu1 %v24252_v55 }
0x1540   : > { %v11823_v17 = vpop.f32.mrb[228].mxu0 }
0x1541   : > { %v21650_v18 = vpop.f32.mrb[229].mxu0 }
0x1542   : > { %v11826_v19 = vpop.f32.mrb[230].mxu0 }
0x1543   : > { %v11880_v23 = vpack.c.bf16 %v11826_v19, %v11823_v17  ;;  %v21651_v24 = vpop.f32.mrb[231].mxu0 }
0x1545   : > { %21685 = vmatmul.mubr.msk.bf16.vlgmr.msra.gmra.mrb[244].mxu1 %vm10345_vm5, %v11878_v9 }
0x1546   : > { %21689 = vmatpush3.bf16.msra.mxu1 %v23572_v22  ;;  %21690 = vmatprep.mubr.msk.bf16.mxu1 %vm24253_vm4, %v24252_v55 }
0x1547   : > { %21694 = vmatprep.subr.bf16.mxu1 %v24252_v55 }
0x1548   : > { %v11831_v25 = vpop.f32.mrb[232].mxu0 }
0x1549   : > { %v21654_v26 = vpop.f32.mrb[233].mxu0 }
0x154a   : > { %v11834_v28 = vpop.f32.mrb[234].mxu0 }
0x154b   : > { %v11881_v30 = vpack.c.bf16 %v11834_v28, %v11831_v25  ;;  %v21655_v31 = vpop.f32.mrb[235].mxu0 }
0x154d   : > { %21691 = vmatmul.mubr.msk.bf16.vlgmr.msra.gmra.mrb[248].mxu1 %vm10345_vm5, %v11880_v23 }
0x154e   : > { %21695 = vmatpush3.bf16.msra.mxu1 %v23573_v29  ;;  %21696 = vmatprep.mubr.msk.bf16.mxu1 %vm24253_vm4, %v24252_v55 }
0x154f   : > { %21700 = vmatprep.subr.bf16.mxu1 %v24252_v55 }
0x1550   : > { %v11839_v32 = vpop.f32.mrb[236].mxu0 }
0x1551   : > { %v21658_v33 = vpop.f32.mrb[237].mxu0 }
0x1552   : > { %v11842_v20 = vpop.f32.mrb[238].mxu0 }
0x1553   : > { %v11882_v36 = vpack.c.bf16 %v11842_v20, %v11839_v32  ;;  %v21659_v37 = vpop.f32.mrb[239].mxu0 }
0x1555   : > { %21697 = vmatmul.mubr.msk.bf16.vlgmr.msra.gmra.mrb[252].mxu1 %vm10345_vm5, %v11881_v30 }
0x1556   : > { %21701 = vmatpush3.bf16.msra.mxu1 %v23574_v34  ;;  %21702 = vmatprep.mubr.msk.bf16.mxu1 %vm24253_vm4, %v24252_v55 }
0x1557   : > { %21706 = vmatprep.subr.bf16.mxu1 %v24252_v55 }
0x1558   : > { %v11847_v38 = vpop.f32.mrb[240].mxu0 }
0x1559   : > { %v21662_v39 = vpop.f32.mrb[241].mxu0 }
0x155a   : > { %v11850_v40 = vpop.f32.mrb[242].mxu0 }
0x155b   : > { %v11883_v42 = vpack.c.bf16 %v11850_v40, %v11847_v38  ;;  %v21663_v44 = vpop.f32.mrb[243].mxu0 }
0x155d   : > { %21703 = vmatmul.mubr.msk.bf16.vlgmr.msra.gmra.mrb[0].mxu1 %vm10345_vm5, %v11882_v36 }
0x155e   : > { %21707 = vmatpush3.bf16.msra.mxu1 %v23575_v41  ;;  %21708 = vmatprep.mubr.msk.bf16.mxu1 %vm24253_vm4, %v24252_v55 }
0x155f   : > { %21712 = vmatprep.subr.bf16.mxu1 %v24252_v55 }
0x1560   : > { %v11855_v45 = vpop.f32.mrb[244].mxu0 }
0x1561   : > { %v21666_v46 = vpop.f32.mrb[245].mxu0 }
0x1562   : > { %v11858_v13 = vpop.f32.mrb[246].mxu0 }
0x1563   : > { %v11884_v49 = vpack.c.bf16 %v11858_v13, %v11855_v45  ;;  %v21667_v21 = vpop.f32.mrb[247].mxu0 }
0x1565   : > { %21709 = vmatmul.mubr.msk.bf16.vlgmr.msra.gmra.mrb[4].mxu1 %vm10345_vm5, %v11883_v42 }
0x1566   : > { %21713 = vmatpush3.bf16.msra.mxu1 %v23576_v48  ;;  %21714 = vmatprep.mubr.msk.bf16.mxu1 %vm24253_vm4, %v24252_v55  ;;  %v19508_v48 = vld [vmem:[%s27138_s28] ss:$0 sm:$0xff]  ;;  %s26001_s28 = scalar_lea.vmem [#allocation16], %s18793_s5  ;;  %s27141_s5 = sld [smem:[#allocation58_spill]] }
0x1567   : > { %21718 = vmatprep.subr.bf16.mxu1 %v24252_v55 }
0x1568   : > { %v11863_v50 = vpop.f32.mrb[248].mxu0 }
0x1569   : > { %v21670_v6 = vpop.f32.mrb[249].mxu0 }
0x156a   : > { %v11866_v35 = vpop.f32.mrb[250].mxu0  ;;  %v11680_v6 = vunpack.c.l.bf16 %v25826_v61 }
0x156b   : > { %v11885_v52 = vpack.c.bf16 %v11866_v35, %v11863_v50  ;;  %v21671_v53 = vpop.f32.mrb[251].mxu0 }
0x156d   : > { %21715 = vmatmul.mubr.msk.bf16.vlgmr.msra.gmra.mrb[8].mxu1 %vm10345_vm5, %v11884_v49 }
0x156e   : > { %21719 = vmatpush3.bf16.msra.mxu1 %v23577_v51  ;;  %21720 = vmatprep.mubr.msk.bf16.mxu1 %vm24253_vm4, %v24252_v55 }
0x156f   : > { %21724 = vmatprep.subr.bf16.mxu1 %v24252_v55 }
0x1570   : > { %v11871_v54 = vpop.f32.mrb[252].mxu0 }
0x1571   : > { %v21674_v56 = vpop.f32.mrb[253].mxu0 }
0x1572   : > { %v11874_v62 = vpop.f32.mrb[254].mxu0 }
0x1573   : > { %v11886_v58 = vpack.c.bf16 %v11874_v62, %v11871_v54  ;;  %v21675_v59 = vpop.f32.mrb[255].mxu0  ;;  %v11681_v54 = vunpack.c.h.bf16 %v25826_v61  ;;  %v23580_v61 = vld [vmem:[%s27139_s4 + $0x8] sm:$0xff]  }
0x1575   : > { %21721 = vmatmul.mubr.msk.bf16.vlgmr.msra.gmra.mrb[12].mxu1 %vm10345_vm5, %v11885_v52 }
0x1576   : > { %21725 = vmatpush3.bf16.msra.mxu1 %v23578_v57  ;;  %21726 = vmatprep.mubr.msk.bf16.mxu1 %vm24253_vm4, %v24252_v55 }
0x1577   : > { %21752 = vmatprep.subr.bf16.mxu1 %v24252_v55 }
0x157d   : > { %21727 = vmatmul.mubr.msk.bf16.vlgmr.msra.gmra.mrb[16].mxu1 %vm10345_vm5, %v11886_v58 }
0x157e   : > { %21754 = vmatprep.mubr.msk.bf16.mxu1 %vm24253_vm4, %v24252_v55 }
0x1610   : > { %v11934_v27 = vpop.f32.mrb[240].mxu1 }
0x1611   : > { %v21680_v60 = vpop.f32.mrb[241].mxu1 }
0x1612   : > { %v11937_v63 = vpop.f32.mrb[242].mxu1  ;;  %v23581_v60 = vld [vmem:[%s27139_s4 + $0x10] sm:$0xff]  }
0x1613   : > { %v21681_v1 = vpop.f32.mrb[243].mxu1 }
0x1614   : > { %v23583_v1 = vld [vmem:[%s27139_s4 + $0x20] ss:$0 sps:$4 sm:$0xff]  }
0x1618   : > { %v11984_v2 = vpop.f32.mrb[244].mxu1 }
0x1619   : > { %v11985_v3 = vadd.f32 %v11984_v2, %v11934_v27  ;;  %v21686_v4 = vpop.f32.mrb[245].mxu1  ;;  %v23579_v27 = vld [vmem:[%s27139_s4] sm:$0xff]   ;;  %v23584_v2 = vld [vmem:[%s27140_s6 + $0x8] sm:$0xff]  }
0x161a   : > { %v11987_v5 = vpop.f32.mrb[246].mxu1  ;;  %21753 = vmatpush3.bf16.msra.mxu1 %v23584_v2 }
0x161b   : > { %v11988_v0 = vadd.f32 %v11987_v5, %v11937_v63  ;;  %v21687_v43 = vpop.f32.mrb[247].mxu1  ;;  %v23582_v63 = vld [vmem:[%s27139_s4 + $0x18] sm:$0xff]   ;;  %21758 = vmatprep.subr.bf16.mxu1 %v24252_v55  ;;  %s27142_s4 = sld [smem:[#allocation59_spill]] }
0x1620   : > { %v12036_v7 = vpop.f32.mrb[248].mxu1 }
0x1621   : > { %v12043_v8 = vadd.f32 %v12036_v7, %v11985_v3  ;;  %v21692_v9 = vpop.f32.mrb[249].mxu1  ;;  %v23587_v3 = vld [vmem:[%s27140_s6 + $0x28] sm:$0xff]  }
0x1622   : > { %v12039_v10 = vpop.f32.mrb[250].mxu1 }
0x1623   : > { %v12044_v11 = vadd.f32 %v12039_v10, %v11988_v0  ;;  %v21693_v47 = vpop.f32.mrb[251].mxu1 }
0x1628   : > { %v12090_v12 = vpop.f32.mrb[252].mxu1 }
0x1629   : > { %v12097_v14 = vadd.f32 %v12090_v12, %v12043_v8  ;;  %v21698_v15 = vpop.f32.mrb[253].mxu1  ;;  %v23585_v8 = vld [vmem:[%s27140_s6] sm:$0xff]  }
0x162a   : > { %v12093_v16 = vpop.f32.mrb[254].mxu1  ;;  %v23586_v15 = vld [vmem:[%s27140_s6 + $0x10] sm:$0xff]  }
0x162b   : > { %v12098_v17 = vadd.f32 %v12093_v16, %v12044_v11  ;;  %v21699_v18 = vpop.f32.mrb[255].mxu1 }
0x1630   : > { %v12144_v19 = vpop.f32.mrb[0].mxu1 }
0x1631   : > { %v12151_v22 = vadd.f32 %v12144_v19, %v12097_v14  ;;  %v21704_v23 = vpop.f32.mrb[1].mxu1 }
0x1632   : > { %v12147_v24 = vpop.f32.mrb[2].mxu1  ;;  %v23588_v23 = vld [vmem:[%s27140_s6 + $0x38] sm:$0xff]  }
0x1633   : > { %v12152_v25 = vadd.f32 %v12147_v24, %v12098_v17  ;;  %v21705_v26 = vpop.f32.mrb[3].mxu1  ;;  %v23589_v24 = vld [vmem:[%s27140_s6 + $0x18] sm:$0xff]  }
0x1638   : > { %v12198_v28 = vpop.f32.mrb[4].mxu1 }
0x1639   : > { %v12205_v29 = vadd.f32 %v12198_v28, %v12151_v22  ;;  %v21710_v30 = vpop.f32.mrb[5].mxu1 }
0x163a   : > { %v12201_v31 = vpop.f32.mrb[6].mxu1 }
0x163b   : > { %v12206_v32 = vadd.f32 %v12201_v31, %v12152_v25  ;;  %v21711_v33 = vpop.f32.mrb[7].mxu1 }
0x1640   : > { %v12252_v20 = vpop.f32.mrb[8].mxu1 }
0x1641   : > { %v12259_v34 = vadd.f32 %v12252_v20, %v12205_v29  ;;  %v21716_v36 = vpop.f32.mrb[9].mxu1 }
0x1642   : > { %v12255_v37 = vpop.f32.mrb[10].mxu1 }
0x1643   : > { %v12260_v38 = vadd.f32 %v12255_v37, %v12206_v32  ;;  %v21717_v39 = vpop.f32.mrb[11].mxu1  ;;  %v23590_v32 = vld [vmem:[%s27140_s6 + $0x20] sm:$0xff]  }
0x1644   : > { %v23591_v39 = vld [vmem:[%s27140_s6 + $0x30] sm:$0xff]  }
0x1648   : > { %v12306_v40 = vpop.f32.mrb[12].mxu1 }
0x1649   : > { %v12313_v41 = vadd.f32 %v12306_v40, %v12259_v34  ;;  %v21722_v42 = vpop.f32.mrb[13].mxu1  ;;  %v23592_v40 = vld [vmem:[%s27140_s6 + $0x40] sm:$0xff]   ;;  %s27147_s6 = sld [smem:[#allocation63_spill]] }
0x164a   : > { %v12309_v44 = vpop.f32.mrb[14].mxu1  ;;  %v12992_v42 = vld [vmem:[%s27141_s5] sm:$0xf]  ;;  %s27144_s5 = sld [smem:[#allocation61_spill]] }
0x164b   : > { %v12314_v45 = vadd.f32 %v12309_v44, %v12260_v38  ;;  %v21723_v46 = vpop.f32.mrb[15].mxu1 }
0x1650   : > { %v12360_v13 = vpop.f32.mrb[16].mxu1 }
0x1651   : > { %v12367_v49 = vadd.f32 %v12360_v13, %v12313_v41  ;;  %v21728_v21 = vpop.f32.mrb[17].mxu1 }
0x1652   : > { %v12363_v50 = vpop.f32.mrb[18].mxu1 }
0x1653   : > { %v12376_v35 = vadd.f32 %v19508_v48, %v12367_v49  ;;  %v12368_v51 = vadd.f32 %v12363_v50, %v12314_v45  ;;  %v21729_v52 = vpop.f32.mrb[19].mxu1 }
0x1655   : > { %v12378_v53 = vadd.f32 %v12376_v35, %v11680_v6  ;;  %v12377_v56 = vadd.f32 %v19508_v48, %v12368_v51  ;;  %v23598_v48 = vld [vmem:[%s27142_s4] sm:$0xff]   ;;  %s27143_s4 = sld [smem:[#allocation57_spill]] }
0x1657   : > { %v12380_v62 = vmax.f32 %v12378_v53, 0.0  ;;  %v12379_v57 = vadd.f32 %v12377_v56, %v11681_v54 }
0x1659   : > { %v12381_v58 = vmax.f32 %v12379_v57, 0.0  ;;  %12383 = vst.msk [vmem:[%s26001_s28] sm:$0xff] %vm10345_vm5, %v12380_v62 }
0x165b   : > { %v26005_v59 = vpack.c.bf16 %v12381_v58, %v12380_v62  ;;  %12384 = vst.msk [vmem:[%s26001_s28 + $0x8] sm:$0xff] %vm10345_vm5, %v12381_v58 }
0x165d   : > { %21731 = vmatpush3.bf16.msra.mxu0 %v26005_v59 }
0x165e   : > { %21782 = vmatprep.subr.bf16.mxu0 %v24252_v55 }
0x1660   : > { %21733 = vmatmul.mubr.msk.bf16.vlgmr.msra.gmra.mrb[0].mxu0 %vm10345_vm5, %v23579_v27 }
0x1661   : > { %21736 = vmatprep.mubr.msk.bf16.mxu0 %vm24253_vm4, %v24252_v55  ;;  %21783 = vmatpush3.bf16.msra.mxu0 %v23587_v3 }
0x1662   : > { %21794 = vmatprep.subr.bf16.mxu0 %v24252_v55 }
0x1668   : > { %21737 = vmatmul.mubr.msk.bf16.gmra.mrb[4].mxu0 %vm10345_vm5, %v23580_v61 }
0x1669   : > { %21740 = vmatprep.mubr.msk.bf16.mxu0 %vm24253_vm4, %v24252_v55 }
0x1670   : > { %21741 = vmatmul.mubr.msk.bf16.gmra.mrb[8].mxu0 %vm10345_vm5, %v23581_v60 }
0x1671   : > { %21744 = vmatprep.mubr.msk.bf16.mxu0 %vm24253_vm4, %v24252_v55 }
0x1678   : > { %21745 = vmatmul.mubr.msk.bf16.gmra.mrb[12].mxu0 %vm10345_vm5, %v23582_v63 }
0x1679   : > { %21748 = vmatprep.mubr.msk.bf16.mxu0 %vm24253_vm4, %v24252_v55 }
0x1680   : > { %21749 = vmatmul.mubr.msk.bf16.gmra.mrb[16].mxu0 %vm10345_vm5, %v23583_v1 }
0x1681   : > { %21784 = vmatprep.mubr.msk.bf16.mxu0 %vm24253_vm4, %v24252_v55 }
0x1733   : > { %v12466_v4 = vpop.f32.mrb[0].mxu0 }
0x1734   : > { %v21734_v5 = vpop.f32.mrb[1].mxu0 }
0x1735   : > { %v12469_v0 = vpop.f32.mrb[2].mxu0 }
0x1736   : > { %v12504_v43 = vpack.c.bf16 %v12469_v0, %v12466_v4  ;;  %v21735_v7 = vpop.f32.mrb[3].mxu0 }
0x1738   : > { %v12514_v9 = vrot.slane %v12504_v43, 4 }
0x173a   : > { %21755 = vmatmul.mubr.msk.bf16.vlgmr.msra.gmra.mrb[20].mxu1 %vm10345_vm5, %v12514_v9 }
0x173b   : > { %v12474_v10 = vpop.f32.mrb[4].mxu0  ;;  %21759 = vmatpush3.bf16.msra.mxu1 %v23585_v8  ;;  %21760 = vmatprep.mubr.msk.bf16.mxu1 %vm24253_vm4, %v24252_v55 }
0x173c   : > { %v21738_v11 = vpop.f32.mrb[5].mxu0  ;;  %21764 = vmatprep.subr.bf16.mxu1 %v24252_v55 }
0x173d   : > { %v12477_v47 = vpop.f32.mrb[6].mxu0 }
0x173e   : > { %v12505_v12 = vpack.c.bf16 %v12477_v47, %v12474_v10  ;;  %v21739_v14 = vpop.f32.mrb[7].mxu0 }
0x1740   : > { %v12668_v33 = vrot.slane %v12505_v12, 4 }
0x1742   : > { %21761 = vmatmul.mubr.msk.bf16.vlgmr.msra.gmra.mrb[24].mxu1 %vm10345_vm5, %v12504_v43 }
0x1743   : > { %v12482_v16 = vpop.f32.mrb[8].mxu0  ;;  %21765 = vmatpush3.bf16.msra.mxu1 %v23586_v15  ;;  %21766 = vmatprep.mubr.msk.bf16.mxu1 %vm24253_vm4, %v24252_v55 }
0x1744   : > { %v21742_v17 = vpop.f32.mrb[9].mxu0  ;;  %21770 = vmatprep.subr.bf16.mxu1 %v24252_v55 }
0x1745   : > { %v12485_v18 = vpop.f32.mrb[10].mxu0 }
0x1746   : > { %v12506_v19 = vpack.c.bf16 %v12485_v18, %v12482_v16  ;;  %v21743_v22 = vpop.f32.mrb[11].mxu0  ;;  %v19537_v18 = vld [vmem:[%s27143_s4] ss:$0 sm:$0xff]  ;;  %s27145_s4 = sld [smem:[#allocation62_spill]] }
0x1748   : > { %v12774_v25 = vrot.slane %v12506_v19, 4 }
0x174a   : > { %21767 = vmatmul.mubr.msk.bf16.vlgmr.msra.gmra.mrb[28].mxu1 %vm10345_vm5, %v12505_v12  ;;  %21785 = vmatmul.mubr.msk.bf16.vlgmr.msra.gmra.mrb[20].mxu0 %vm10345_vm5, %v12774_v25 }
0x174b   : > { %v12490_v26 = vpop.f32.mrb[12].mxu0  ;;  %21795 = vmatpush3.bf16.msra.mxu0 %v23588_v23  ;;  %21771 = vmatpush3.bf16.msra.mxu1 %v23589_v24 }
0x174c   : > { %v21746_v28 = vpop.f32.mrb[13].mxu0  ;;  %21772 = vmatprep.mubr.msk.bf16.mxu1 %vm24253_vm4, %v24252_v55  ;;  %21796 = vmatprep.mubr.msk.bf16.mxu0 %vm24253_vm4, %v24252_v55 }
0x174d   : > { %v12493_v29 = vpop.f32.mrb[14].mxu0  ;;  %21806 = vmatprep.subr.bf16.mxu0 %v24252_v55  ;;  %21776 = vmatprep.subr.bf16.mxu1 %v24252_v55 }
0x174e   : > { %v12507_v30 = vpack.c.bf16 %v12493_v29, %v12490_v26  ;;  %v21747_v31 = vpop.f32.mrb[15].mxu0 }
0x174f   : > { %v23594_v31 = vld [vmem:[%s27144_s5 + $0x8] sm:$0xff]  }
0x1750   : > { %v12880_v20 = vrot.slane %v12507_v30, 4 }
0x1752   : > { %21773 = vmatmul.mubr.msk.bf16.vlgmr.msra.gmra.mrb[32].mxu1 %vm10345_vm5, %v12668_v33  ;;  %21797 = vmatmul.mubr.msk.bf16.vlgmr.msra.gmra.mrb[24].mxu0 %vm10345_vm5, %v12880_v20  ;;  %v23596_v33 = vld [vmem:[%s27144_s5 + $0x18] sm:$0xff]   ;;  %v23597_v20 = vld [vmem:[%s27144_s5 + $0x20] ss:$0 sps:$4 sm:$0xff]  }
0x1753   : > { %21807 = vmatpush3.bf16.msra.mxu0 %v26005_v59  ;;  %21777 = vmatpush3.bf16.msra.mxu1 %v23590_v32  ;;  %v12498_v34 = vpop.f32.mrb[16].mxu0  ;;  %v23595_v32 = vld [vmem:[%s27144_s5 + $0x10] sm:$0xff]  }
0x1754   : > { %21778 = vmatprep.mubr.msk.bf16.mxu1 %vm24253_vm4, %v24252_v55  ;;  %21788 = vmatprep.subr.bf16.mxu1 %v24252_v55  ;;  %v21750_v36 = vpop.f32.mrb[17].mxu0  ;;  %v12508_v41 = vpack.c.bf16 %v12498_v34, %v12498_v34 }
0x1755   : > { %v12501_v37 = vpop.f32.mrb[18].mxu0  ;;  %21808 = vmatprep.mubr.msk.bf16.mxu0 %vm24253_vm4, %v24252_v55  ;;  %21818 = vmatprep.subr.bf16.mxu0 %v24252_v55 }
0x1756   : > { %v21751_v38 = vpop.f32.mrb[19].mxu0 }
0x175a   : > { %21779 = vmatmul.mubr.msk.bf16.vlgmr.msra.gmra.mrb[36].mxu1 %vm10345_vm5, %v12506_v19  ;;  %21809 = vmatmul.mubr.msk.bf16.vlgmr.msra.gmra.mrb[28].mxu0 %vm10345_vm5, %v12992_v42 }
0x175b   : > { %21789 = vmatpush3.bf16.msra.mxu1 %v23591_v39  ;;  %21790 = vmatprep.mubr.msk.bf16.mxu1 %vm24253_vm4, %v24252_v55 }
0x175c   : > { %21800 = vmatprep.subr.bf16.mxu1 %v24252_v55  ;;  %21820 = vmatprep.mubr.msk.bf16.mxu0 %vm24253_vm4, %v24252_v55 }
0x1762   : > { %21791 = vmatmul.mubr.msk.bf16.vlgmr.msra.gmra.mrb[40].mxu1 %vm10345_vm5, %v12507_v30  ;;  %v23593_v30 = vld [vmem:[%s27144_s5] sm:$0xff]   ;;  %s27146_s5 = sld [smem:[#allocation60_spill]] }
0x1763   : > { %21801 = vmatpush3.bf16.msra.mxu1 %v23592_v40  ;;  %21802 = vmatprep.mubr.msk.bf16.mxu1 %vm24253_vm4, %v24252_v55  ;;  %v23599_v40 = vld [vmem:[%s27145_s4 + $0x10] sm:$0xff]  }
0x1764   : > { %21812 = vmatprep.subr.bf16.mxu1 %v24252_v55 }
0x176a   : > { %21803 = vmatmul.mubr.msk.bf16.vlgmr.msra.gmra.mrb[44].mxu1 %vm10345_vm5, %v12508_v41  ;;  %v23600_v41 = vld [vmem:[%s27145_s4 + $0x18] sm:$0xff]  }
0x176b   : > { %21814 = vmatprep.mubr.msk.bf16.mxu1 %vm24253_vm4, %v24252_v55  ;;  %21813 = vmatpush3.bf16.msra.mxu1 %v23598_v48  ;;  %v23601_v48 = vld [vmem:[%s27145_s4] sm:$0xff]  }
0x176c   : > { %21840 = vmatprep.subr.bf16.mxu1 %v24252_v55 }
0x180d   : > { %v12558_v44 = vpop.f32.mrb[20].mxu1 }
0x180e   : > { %v21756_v45 = vpop.f32.mrb[21].mxu1 }
0x180f   : > { %v12561_v46 = vpop.f32.mrb[22].mxu1 }
0x1810   : > { %v21757_v13 = vpop.f32.mrb[23].mxu1 }
0x1815   : > { %v12607_v49 = vpop.f32.mrb[24].mxu1 }
0x1816   : > { %v12608_v21 = vadd.f32 %v12607_v49, %v12558_v44  ;;  %v21762_v50 = vpop.f32.mrb[25].mxu1 }
0x1817   : > { %v12610_v6 = vpop.f32.mrb[26].mxu1 }
0x1818   : > { %v21763_v35 = vpop.f32.mrb[27].mxu1 }
0x181d   : > { %v12658_v51 = vpop.f32.mrb[28].mxu1  ;;  %v12818_v52 = vpop.f32.mrb[20].mxu0 }
0x181e   : > { %v12664_v53 = vadd.f32 %v12658_v51, %v12608_v21  ;;  %v21768_v54 = vpop.f32.mrb[29].mxu1  ;;  %v21786_v56 = vpop.f32.mrb[21].mxu0  ;;  %v23602_v21 = vld [vmem:[%s27145_s4 + $0x8] sm:$0xff]  }
0x181f   : > { %v12661_v62 = vpop.f32.mrb[30].mxu1  ;;  %v12821_v57 = vpop.f32.mrb[22].mxu0 }
0x1820   : > { %v21769_v58 = vpop.f32.mrb[31].mxu1  ;;  %v21787_v59 = vpop.f32.mrb[23].mxu0 }
0x1821   : > { %v23604_v59 = vld [vmem:[%s27145_s4 + $0x28] sm:$0xff]  }
0x1825   : > { %v12712_v27 = vpop.f32.mrb[32].mxu1  ;;  %v12924_v61 = vpop.f32.mrb[24].mxu0 }
0x1826   : > { %v12718_v60 = vadd.f32 %v12712_v27, %v12664_v53  ;;  %v21774_v63 = vpop.f32.mrb[33].mxu1  ;;  %v21798_v1 = vpop.f32.mrb[25].mxu0  ;;  %v23603_v53 = vld [vmem:[%s27145_s4 + $0x20] sm:$0xff]  }
0x1827   : > { %v12715_v2 = vpop.f32.mrb[34].mxu1  ;;  %v12927_v3 = vpop.f32.mrb[26].mxu0 }
0x1828   : > { %v21775_v4 = vpop.f32.mrb[35].mxu1  ;;  %v21799_v5 = vpop.f32.mrb[27].mxu0  ;;  %v23605_v2 = vld [vmem:[%s27145_s4 + $0x30] sm:$0xff]   ;;  %v23606_v3 = vld [vmem:[%s27145_s4 + $0x38] sm:$0xff]  }
0x182d   : > { %v12764_v0 = vpop.f32.mrb[36].mxu1  ;;  %v13030_v34 = vpop.f32.mrb[28].mxu0 }
0x182e   : > { %v12770_v43 = vadd.f32 %v12764_v0, %v12718_v60  ;;  %v21780_v7 = vpop.f32.mrb[37].mxu1  ;;  %v13036_v36 = vpack.c.bf16 %v13030_v34, %v13030_v34  ;;  %v21810_v37 = vpop.f32.mrb[29].mxu0  ;;  %v23617_v34 = vld [vmem:[%s27147_s6] sm:$0xff]  }
0x182f   : > { %v12767_v8 = vpop.f32.mrb[38].mxu1  ;;  %v13033_v38 = vpop.f32.mrb[30].mxu0  ;;  %v23607_v7 = vld [vmem:[%s27145_s4 + $0x40] sm:$0xff]   ;;  %v23619_v37 = vld [vmem:[%s27147_s6 + $0x10] sm:$0xff]  }
0x1830   : > { %v12824_v9 = vadd.f32 %v12818_v52, %v12770_v43  ;;  %v21781_v10 = vpop.f32.mrb[39].mxu1  ;;  %21815 = vmatmul.mubr.msk.bf16.vlgmr.msra.gmra.mrb[48].mxu1 %vm10345_vm5, %v13036_v36  ;;  %v21811_v39 = vpop.f32.mrb[31].mxu0  ;;  %v23618_v36 = vld [vmem:[%s27147_s6 + $0x8] sm:$0xff]   ;;  %v23620_v38 = vld [vmem:[%s27147_s6 + $0x18] sm:$0xff]  }
0x1831   : > { %21844 = vmatprep.mubr.msk.bf16.mxu1 %vm24253_vm4, %v24252_v55  ;;  %21841 = vmatpush3.bf16.msra.mxu1 %v23599_v40  ;;  %v23609_v10 = vld [vmem:[%s27145_s4 + $0x50] sm:$0xff]   ;;  %v23621_v39 = vld [vmem:[%s27147_s6 + $0x20] ss:$0 sps:$4 sm:$0xff]  }
0x1832   : > { %21842 = vmatprep.subr.bf16.mxu1 %v24252_v55 }
0x1835   : > { %v12870_v11 = vpop.f32.mrb[40].mxu1  ;;  %21843 = vmatpush3.bf16.msra.mxu1 %v23600_v41 }
0x1836   : > { %v12876_v47 = vadd.f32 %v12870_v11, %v12824_v9  ;;  %v21792_v12 = vpop.f32.mrb[41].mxu1  ;;  %21848 = vmatprep.subr.bf16.mxu1 %v24252_v55  ;;  %v23608_v9 = vld [vmem:[%s27145_s4 + $0x48] sm:$0xff]   ;;  %v23610_v11 = vld [vmem:[%s27145_s4 + $0x58] sm:$0xff]  }
0x1837   : > { %v12873_v14 = vpop.f32.mrb[42].mxu1 }
0x1838   : > { %v12930_v15 = vadd.f32 %v12924_v61, %v12876_v47  ;;  %v21793_v16 = vpop.f32.mrb[43].mxu1  ;;  %v23611_v47 = vld [vmem:[%s27145_s4 + $0x60] sm:$0xff]   ;;  %v23612_v14 = vld [vmem:[%s27145_s4 + $0x68] sm:$0xff]  }
0x1839   : > { %v23614_v16 = vld [vmem:[%s27145_s4 + $0x78] sm:$0xff]  }
0x183d   : > { %v12976_v17 = vpop.f32.mrb[44].mxu1 }
0x183e   : > { %v12982_v19 = vadd.f32 %v12976_v17, %v12930_v15  ;;  %v21804_v22 = vpop.f32.mrb[45].mxu1  ;;  %v23613_v15 = vld [vmem:[%s27145_s4 + $0x70] sm:$0xff]   ;;  %v23615_v17 = vld [vmem:[%s27145_s4 + $0x80] sm:$0xff]  }
0x183f   : > { %v12979_v23 = vpop.f32.mrb[46].mxu1 }
0x1840   : > { %v12990_v24 = vadd.f32 %v19537_v18, %v12982_v19  ;;  %v21805_v25 = vpop.f32.mrb[47].mxu1  ;;  %v23616_v19 = vld [vmem:[%s27145_s4 + $0x88] sm:$0xff]   ;;  %v19539_v23 = vld [vmem:[%s27146_s5] ss:$0 sm:$0xff]  ;;  %s27148_s5 = sld [smem:[#allocation64_spill]]  ;;  %s27149_s4 = sld [smem:[#allocation66_spill]] }
0x1841   : > { %v19579_v25 = vld [vmem:[#allocation2] ss:$0 sm:$0xff] }
0x1842   : > { %v12991_v26 = vmax.f32 %v12990_v24, 0.0 }
0x1844   : > { %v13095_v28 = vpack.c.bf16 %v12991_v26, %v12991_v26 }
0x1846   : > { %v13144_v29 = vsel %vm4087_vm2, %v13095_v28, 0  ;;  %v23624_v40 = vld [vmem:[%s27148_s5] sm:$0xff]   ;;  %v23622_v41 = vld [vmem:[%s27148_s5 + $0x10] sm:$0xff]  }
0x1847   : > { %21819 = vmatpush3.bf16.msra.mxu0 %v13144_v29 }
0x1848   : > { %21912 = vmatprep.subr.bf16.mxu0 %v24252_v55 }
0x184a   : > { %21821 = vmatmul.mubr.msk.bf16.vlgmr.msra.gmra.mrb[32].mxu0 %vm4074_vm3, %v23593_v30 }
0x184b   : > { %21824 = vmatprep.mubr.msk.bf16.mxu0 %vm24253_vm4, %v24252_v55 }
0x1852   : > { %21825 = vmatmul.mubr.msk.bf16.gmra.mrb[36].mxu0 %vm4074_vm3, %v23594_v31 }
0x1853   : > { %21828 = vmatprep.mubr.msk.bf16.mxu0 %vm24253_vm4, %v24252_v55 }
0x185a   : > { %21829 = vmatmul.mubr.msk.bf16.gmra.mrb[40].mxu0 %vm4074_vm3, %v23595_v32 }
0x185b   : > { %21832 = vmatprep.mubr.msk.bf16.mxu0 %vm24253_vm4, %v24252_v55 }
0x1862   : > { %21833 = vmatmul.mubr.msk.bf16.gmra.mrb[44].mxu0 %vm4074_vm3, %v23596_v33 }
0x1863   : > { %21836 = vmatprep.mubr.msk.bf16.mxu0 %vm24253_vm4, %v24252_v55 }
0x186a   : > { %21837 = vmatmul.mubr.msk.bf16.gmra.mrb[48].mxu0 %vm4074_vm3, %v23597_v20 }
0x186b   : > { %21914 = vmatprep.mubr.msk.bf16.mxu0 %vm24253_vm4, %v24252_v55 }
0x191d   : > { %v13180_v42 = vpop.f32.mrb[32].mxu0 }
0x191e   : > { %v21822_v44 = vpop.f32.mrb[33].mxu0 }
0x191f   : > { %v13183_v45 = vpop.f32.mrb[34].mxu0  ;;  %v23623_v44 = vld [vmem:[%s27148_s5 + $0x18] sm:$0xff]  }
0x1920   : > { %v13218_v46 = vpack.c.bf16 %v13183_v45, %v13180_v42  ;;  %v21823_v13 = vpop.f32.mrb[35].mxu0  ;;  %v23626_v42 = vld [vmem:[%s27148_s5 + $0x8] sm:$0xff]  }
0x1922   : > { %v13232_v49 = vrot.slane %v13218_v46, 4 }
0x1924   : > { %21845 = vmatmul.mubr.msk.bf16.vlgmr.msra.gmra.mrb[48].mxu1 %vm2275_vm0, %v13232_v49 }
0x1925   : > { %21849 = vmatpush3.bf16.msra.mxu1 %v23601_v48  ;;  %21852 = vmatprep.mubr.msk.bf16.mxu1 %vm24253_vm4, %v24252_v55  ;;  %v13188_v50 = vpop.f32.mrb[36].mxu0  ;;  %v23628_v48 = vld [vmem:[%s27148_s5 + $0x30] sm:$0xff]  }
0x1926   : > { %21850 = vmatprep.subr.bf16.mxu1 %v24252_v55  ;;  %v21826_v6 = vpop.f32.mrb[37].mxu0 }
0x1927   : > { %v13191_v35 = vpop.f32.mrb[38].mxu0 }
0x1928   : > { %v13219_v51 = vpack.c.bf16 %v13191_v35, %v13188_v50  ;;  %v21827_v52 = vpop.f32.mrb[39].mxu0  ;;  %v23625_v50 = vld [vmem:[%s27148_s5 + $0x20] sm:$0xff]   ;;  %v23630_v35 = vld [vmem:[%s27148_s5 + $0x38] sm:$0xff]  }
0x1929   : > { %21851 = vmatpush3.bf16.msra.mxu1 %v23602_v21  ;;  %v23627_v52 = vld [vmem:[%s27148_s5 + $0x28] sm:$0xff]  }
0x192a   : > { %21856 = vmatprep.subr.bf16.mxu1 %v24252_v55  ;;  %v13408_v8 = vrot.slane %v13219_v51, 4 }
0x192d   : > { %v13196_v54 = vpop.f32.mrb[40].mxu0 }
0x192e   : > { %v21830_v56 = vpop.f32.mrb[41].mxu0 }
0x192f   : > { %v13199_v62 = vpop.f32.mrb[42].mxu0 }
0x1930   : > { %21853 = vmatmul.mubr.msk.bf16.vlgmr.msra.gmra.mrb[48].mxu1 %vm2275_vm0, %v13218_v46  ;;  %v13220_v57 = vpack.c.bf16 %v13199_v62, %v13196_v54  ;;  %v21831_v58 = vpop.f32.mrb[43].mxu0 }
0x1931   : > { %21857 = vmatpush3.bf16.msra.mxu1 %v23603_v53  ;;  %21860 = vmatprep.mubr.msk.bf16.mxu1 %vm24253_vm4, %v24252_v55 }
0x1932   : > { %21858 = vmatprep.subr.bf16.mxu1 %v24252_v55  ;;  %v13530_v12 = vrot.slane %v13220_v57, 4 }
0x1935   : > { %21859 = vmatpush3.bf16.msra.mxu1 %v23604_v59  ;;  %v13204_v27 = vpop.f32.mrb[44].mxu0  ;;  %v23632_v59 = vld [vmem:[%s27148_s5 + $0x50] sm:$0xff]  }
0x1936   : > { %21864 = vmatprep.subr.bf16.mxu1 %v24252_v55  ;;  %v21834_v61 = vpop.f32.mrb[45].mxu0 }
0x1937   : > { %v13207_v60 = vpop.f32.mrb[46].mxu0  ;;  %v23631_v61 = vld [vmem:[%s27148_s5 + $0x48] sm:$0xff]  }
0x1938   : > { %v13221_v63 = vpack.c.bf16 %v13207_v60, %v13204_v27  ;;  %v21835_v1 = vpop.f32.mrb[47].mxu0 }
0x193a   : > { %v13652_v18 = vrot.slane %v13221_v63, 4 }
0x193c   : > { %21861 = vmatmul.mubr.msk.bf16.vlgmr.msra.gmra.mrb[48].mxu1 %vm2275_vm0, %v13219_v51 }
0x193d   : > { %21865 = vmatpush3.bf16.msra.mxu1 %v23605_v2  ;;  %21868 = vmatprep.mubr.msk.bf16.mxu1 %vm24253_vm4, %v24252_v55  ;;  %v13212_v4 = vpop.f32.mrb[48].mxu0 }
0x193e   : > { %21866 = vmatprep.subr.bf16.mxu1 %v24252_v55  ;;  %v21838_v5 = vpop.f32.mrb[49].mxu0  ;;  %v13222_v22 = vpack.c.bf16 %v13212_v4, %v13212_v4  ;;  %v23633_v4 = vld [vmem:[%s27148_s5 + $0x60] sm:$0xff]  }
0x193f   : > { %v13215_v0 = vpop.f32.mrb[50].mxu0 }
0x1940   : > { %v21839_v43 = vpop.f32.mrb[51].mxu0  ;;  %v23636_v0 = vld [vmem:[%s27148_s5 + $0x70] sm:$0xff]  }
0x1941   : > { %21867 = vmatpush3.bf16.msra.mxu1 %v23606_v3 }
0x1942   : > { %21872 = vmatprep.subr.bf16.mxu1 %v24252_v55 }
0x1948   : > { %21869 = vmatmul.mubr.msk.bf16.vlgmr.msra.gmra.mrb[48].mxu1 %vm2275_vm0, %v13408_v8 }
0x1949   : > { %21873 = vmatpush3.bf16.msra.mxu1 %v23607_v7  ;;  %21876 = vmatprep.mubr.msk.bf16.mxu1 %vm24253_vm4, %v24252_v55  ;;  %v23635_v7 = vld [vmem:[%s27148_s5 + $0x68] sm:$0xff]  }
0x194a   : > { %21874 = vmatprep.subr.bf16.mxu1 %v24252_v55 }
0x194d   : > { %21875 = vmatpush3.bf16.msra.mxu1 %v23608_v9 }
0x194e   : > { %21880 = vmatprep.subr.bf16.mxu1 %v24252_v55 }
0x1954   : > { %21877 = vmatmul.mubr.msk.bf16.vlgmr.msra.gmra.mrb[48].mxu1 %vm2275_vm0, %v13220_v57  ;;  %v23629_v57 = vld [vmem:[%s27148_s5 + $0x40] sm:$0xff]  }
0x1955   : > { %21881 = vmatpush3.bf16.msra.mxu1 %v23609_v10  ;;  %21884 = vmatprep.mubr.msk.bf16.mxu1 %vm24253_vm4, %v24252_v55  ;;  %v23638_v10 = vld [vmem:[%s27148_s5 + $0x78] sm:$0xff]  }
0x1956   : > { %21882 = vmatprep.subr.bf16.mxu1 %v24252_v55 }
0x1959   : > { %21883 = vmatpush3.bf16.msra.mxu1 %v23610_v11 }
0x195a   : > { %21888 = vmatprep.subr.bf16.mxu1 %v24252_v55 }
0x1960   : > { %21885 = vmatmul.mubr.msk.bf16.vlgmr.msra.gmra.mrb[48].mxu1 %vm2275_vm0, %v13530_v12  ;;  %v23637_v12 = vld [vmem:[%s27148_s5 + $0x80] sm:$0xff]  }
0x1961   : > { %21889 = vmatpush3.bf16.msra.mxu1 %v23611_v47  ;;  %21892 = vmatprep.mubr.msk.bf16.mxu1 %vm24253_vm4, %v24252_v55 }
0x1962   : > { %21890 = vmatprep.subr.bf16.mxu1 %v24252_v55 }
0x1965   : > { %21891 = vmatpush3.bf16.msra.mxu1 %v23612_v14 }
0x1966   : > { %21896 = vmatprep.subr.bf16.mxu1 %v24252_v55 }
0x196c   : > { %21893 = vmatmul.mubr.msk.bf16.vlgmr.msra.gmra.mrb[48].mxu1 %vm2275_vm0, %v13221_v63  ;;  %v23634_v63 = vld [vmem:[%s27148_s5 + $0x58] sm:$0xff]  }
0x196d   : > { %21897 = vmatpush3.bf16.msra.mxu1 %v23613_v15  ;;  %21900 = vmatprep.mubr.msk.bf16.mxu1 %vm24253_vm4, %v24252_v55 }
0x196e   : > { %21898 = vmatprep.subr.bf16.mxu1 %v24252_v55 }
0x1971   : > { %21899 = vmatpush3.bf16.msra.mxu1 %v23614_v16  ;;  %v23639_v16 = vld [vmem:[%s27148_s5 + $0x88] sm:$0xff]   ;;  %s27150_s5 = sld [smem:[#allocation67_spill]] }
0x1972   : > { %21904 = vmatprep.subr.bf16.mxu1 %v24252_v55 }
0x1978   : > { %21901 = vmatmul.mubr.msk.bf16.vlgmr.msra.gmra.mrb[48].mxu1 %vm2275_vm0, %v13652_v18 }
0x1979   : > { %21905 = vmatpush3.bf16.msra.mxu1 %v23615_v17  ;;  %21908 = vmatprep.mubr.msk.bf16.mxu1 %vm24253_vm4, %v24252_v55 }
0x197a   : > { %21906 = vmatprep.subr.bf16.mxu1 %v24252_v55 }
0x197d   : > { %21907 = vmatpush3.bf16.msra.mxu1 %v23616_v19 }
0x197e   : > { %21934 = vmatprep.subr.bf16.mxu1 %v24252_v55 }
0x1984   : > { %21909 = vmatmul.mubr.msk.bf16.vlgmr.msra.gmra.mrb[48].mxu1 %vm2275_vm0, %v13222_v22 }
0x1985   : > { %21938 = vmatprep.mubr.msk.bf16.mxu1 %vm24253_vm4, %v24252_v55  ;;  %21935 = vmatpush3.bf16.msra.mxu1 %v23622_v41 }
0x1986   : > { %21936 = vmatprep.subr.bf16.mxu1 %v24252_v55 }
0x1989   : > { %21937 = vmatpush3.bf16.msra.mxu1 %v23623_v44 }
0x198a   : > { %21950 = vmatprep.subr.bf16.mxu1 %v24252_v55 }
0x1a57   : > { %v13762_v24 = vpop.f32.mrb[48].mxu1 }
0x1a58   : > { %v22602_v26 = vadd.f32 %v19539_v23, %v13762_v24  ;;  %v21910_v28 = vpop.f32.mrb[49].mxu1 }
0x1a59   : > { %v13765_v29 = vpop.f32.mrb[50].mxu1 }
0x1a5a   : > { %v22603_v30 = vadd.f32 %v22602_v26, %v19579_v25  ;;  %v21911_v31 = vpop.f32.mrb[51].mxu1 }
0x1a5c   : > { %v13778_v32 = vmax.f32 %v22603_v30, 0.0 }
0x1a5e   : > { %v26174_v33 = vpack.c.bf16 %v13778_v32, %v13778_v32 }
0x1a60   : > { %v13828_v20 = vsel %vm4087_vm2, %v26174_v33, 0 }
0x1a61   : > { %21913 = vmatpush3.bf16.msra.mxu0 %v13828_v20 }
0x1a62   : > { %21942 = vmatprep.subr.bf16.mxu0 %v24252_v55 }
0x1a64   : > { %21915 = vmatmul.mubr.msk.bf16.vlgmr.msra.gmra.mrb[52].mxu0 %vm4074_vm3, %v23617_v34 }
0x1a65   : > { %21918 = vmatprep.mubr.msk.bf16.mxu0 %vm24253_vm4, %v24252_v55  ;;  %21943 = vmatpush3.bf16.msra.mxu0 %v23624_v40 }
0x1a66   : > { %21944 = vmatprep.subr.bf16.mxu0 %v24252_v55 }
0x1a69   : > { %21945 = vmatpush3.bf16.msra.mxu0 %v23626_v42 }
0x1a6a   : > { %21958 = vmatprep.subr.bf16.mxu0 %v24252_v55 }
0x1a6c   : > { %21919 = vmatmul.mubr.msk.bf16.gmra.mrb[56].mxu0 %vm4074_vm3, %v23618_v36 }
0x1a6d   : > { %21922 = vmatprep.mubr.msk.bf16.mxu0 %vm24253_vm4, %v24252_v55 }
0x1a74   : > { %21923 = vmatmul.mubr.msk.bf16.gmra.mrb[60].mxu0 %vm4074_vm3, %v23619_v37 }
0x1a75   : > { %21926 = vmatprep.mubr.msk.bf16.mxu0 %vm24253_vm4, %v24252_v55 }
0x1a7c   : > { %21927 = vmatmul.mubr.msk.bf16.gmra.mrb[64].mxu0 %vm4074_vm3, %v23620_v38 }
0x1a7d   : > { %21930 = vmatprep.mubr.msk.bf16.mxu0 %vm24253_vm4, %v24252_v55 }
0x1a84   : > { %21931 = vmatmul.mubr.msk.bf16.gmra.mrb[68].mxu0 %vm4074_vm3, %v23621_v39 }
0x1a85   : > { %21946 = vmatprep.mubr.msk.bf16.mxu0 %vm24253_vm4, %v24252_v55 }
0x1b37   : > { %v13864_v45 = vpop.f32.mrb[52].mxu0 }
0x1b38   : > { %v21916_v46 = vpop.f32.mrb[53].mxu0 }
0x1b39   : > { %v13867_v13 = vpop.f32.mrb[54].mxu0 }
0x1b3a   : > { %v13902_v49 = vpack.c.bf16 %v13867_v13, %v13864_v45  ;;  %v21917_v21 = vpop.f32.mrb[55].mxu0 }
0x1b3c   : > { %v13916_v6 = vrot.slane %v13902_v49, 4  ;;  %21947 = vmatmul.mubr.msk.bf16.vlgmr.msra.gmra.mrb[72].mxu0 %vm2275_vm0, %v13902_v49 }
0x1b3d   : > { %21959 = vmatpush3.bf16.msra.mxu0 %v23628_v48  ;;  %21962 = vmatprep.mubr.msk.bf16.mxu0 %vm24253_vm4, %v24252_v55 }
0x1b3e   : > { %21939 = vmatmul.mubr.msk.bf16.vlgmr.msra.gmra.mrb[52].mxu1 %vm2275_vm0, %v13916_v6  ;;  %21960 = vmatprep.subr.bf16.mxu0 %v24252_v55 }
0x1b3f   : > { %21951 = vmatpush3.bf16.msra.mxu1 %v23625_v50  ;;  %v13872_v51 = vpop.f32.mrb[56].mxu0  ;;  %21954 = vmatprep.mubr.msk.bf16.mxu1 %vm24253_vm4, %v24252_v55 }
0x1b40   : > { %v21920_v53 = vpop.f32.mrb[57].mxu0  ;;  %21952 = vmatprep.subr.bf16.mxu1 %v24252_v55 }
0x1b41   : > { %v13875_v54 = vpop.f32.mrb[58].mxu0  ;;  %21961 = vmatpush3.bf16.msra.mxu0 %v23630_v35 }
0x1b42   : > { %v13903_v56 = vpack.c.bf16 %v13875_v54, %v13872_v51  ;;  %v21921_v62 = vpop.f32.mrb[59].mxu0  ;;  %21974 = vmatprep.subr.bf16.mxu0 %v24252_v55 }
0x1b43   : > { %21953 = vmatpush3.bf16.msra.mxu1 %v23627_v52 }
0x1b44   : > { %v14092_v58 = vrot.slane %v13903_v56, 4  ;;  %21966 = vmatprep.subr.bf16.mxu1 %v24252_v55 }
0x1b46   : > { %21955 = vmatmul.mubr.msk.bf16.vlgmr.msra.gmra.mrb[56].mxu1 %vm2275_vm0, %v13903_v56  ;;  %21963 = vmatmul.mubr.msk.bf16.vlgmr.msra.gmra.mrb[76].mxu0 %vm2275_vm0, %v14092_v58 }
0x1b47   : > { %21967 = vmatpush3.bf16.msra.mxu1 %v23629_v57  ;;  %v13880_v27 = vpop.f32.mrb[60].mxu0  ;;  %21970 = vmatprep.mubr.msk.bf16.mxu1 %vm24253_vm4, %v24252_v55 }
0x1b48   : > { %v21924_v60 = vpop.f32.mrb[61].mxu0  ;;  %21968 = vmatprep.subr.bf16.mxu1 %v24252_v55  ;;  %21975 = vmatpush3.bf16.msra.mxu0 %v23632_v59 }
0x1b49   : > { %v13883_v1 = vpop.f32.mrb[62].mxu0  ;;  %21976 = vmatprep.subr.bf16.mxu0 %v24252_v55  ;;  %21978 = vmatprep.mubr.msk.bf16.mxu0 %vm24253_vm4, %v24252_v55 }
0x1b4a   : > { %v13904_v2 = vpack.c.bf16 %v13883_v1, %v13880_v27  ;;  %v21925_v3 = vpop.f32.mrb[63].mxu0 }
0x1b4b   : > { %21969 = vmatpush3.bf16.msra.mxu1 %v23631_v61 }
0x1b4c   : > { %v14214_v5 = vrot.slane %v13904_v2, 4  ;;  %21982 = vmatprep.subr.bf16.mxu1 %v24252_v55  ;;  %21977 = vmatpush3.bf16.msra.mxu0 %v23634_v63  ;;  %v19617_v63 = vld [vmem:[#allocation5] ss:$0 sm:$0xff] }
0x1b4d   : > { %21990 = vmatprep.subr.bf16.mxu0 %v24252_v55 }
0x1b4e   : > { %21971 = vmatmul.mubr.msk.bf16.vlgmr.msra.gmra.mrb[60].mxu1 %vm2275_vm0, %v13904_v2 }
0x1b4f   : > { %21983 = vmatpush3.bf16.msra.mxu1 %v23633_v4  ;;  %v13888_v43 = vpop.f32.mrb[64].mxu0  ;;  %21979 = vmatmul.mubr.msk.bf16.vlgmr.msra.gmra.mrb[80].mxu0 %vm2275_vm0, %v14214_v5 }
0x1b50   : > { %v21928_v8 = vpop.f32.mrb[65].mxu0  ;;  %21984 = vmatprep.subr.bf16.mxu1 %v24252_v55  ;;  %21986 = vmatprep.mubr.msk.bf16.mxu1 %vm24253_vm4, %v24252_v55 }
0x1b51   : > { %v13891_v9 = vpop.f32.mrb[66].mxu0  ;;  %21991 = vmatpush3.bf16.msra.mxu0 %v23636_v0  ;;  %21994 = vmatprep.mubr.msk.bf16.mxu0 %vm24253_vm4, %v24252_v55  ;;  %v23640_v8 = vld [vmem:[%s27149_s4] sm:$0xff]  }
0x1b52   : > { %v13905_v11 = vpack.c.bf16 %v13891_v9, %v13888_v43  ;;  %21992 = vmatprep.subr.bf16.mxu0 %v24252_v55  ;;  %v21929_v47 = vpop.f32.mrb[67].mxu0  ;;  %v23641_v9 = vld [vmem:[%s27149_s4 + $0x8] sm:$0xff]  }
0x1b53   : > { %21985 = vmatpush3.bf16.msra.mxu1 %v23635_v7  ;;  %v23644_v47 = vld [vmem:[%s27149_s4 + $0x20] ss:$0 sps:$4 sm:$0xff]  }
0x1b54   : > { %v14336_v14 = vrot.slane %v13905_v11, 4  ;;  %21998 = vmatprep.subr.bf16.mxu1 %v24252_v55 }
0x1b55   : > { %21993 = vmatpush3.bf16.msra.mxu0 %v23638_v10  ;;  %v23642_v10 = vld [vmem:[%s27149_s4 + $0x10] sm:$0xff]  }
0x1b56   : > { %21987 = vmatmul.mubr.msk.bf16.vlgmr.msra.gmra.mrb[64].mxu1 %vm2275_vm0, %v13905_v11  ;;  %22006 = vmatprep.subr.bf16.mxu0 %v24252_v55  ;;  %v23643_v11 = vld [vmem:[%s27149_s4 + $0x18] sm:$0xff]   ;;  %s27151_s4 = sld [smem:[#allocation69_spill]] }
0x1b57   : > { %21999 = vmatpush3.bf16.msra.mxu1 %v23637_v12  ;;  %v13896_v15 = vpop.f32.mrb[68].mxu0  ;;  %22002 = vmatprep.mubr.msk.bf16.mxu1 %vm24253_vm4, %v24252_v55  ;;  %v23645_v12 = vld [vmem:[%s27150_s5 + $0x10] sm:$0xff]  }
0x1b58   : > { %22000 = vmatprep.subr.bf16.mxu1 %v24252_v55  ;;  %21995 = vmatmul.mubr.msk.bf16.vlgmr.msra.gmra.mrb[84].mxu0 %vm2275_vm0, %v14336_v14  ;;  %v21932_v17 = vpop.f32.mrb[69].mxu0  ;;  %v13906_v19 = vpack.c.bf16 %v13896_v15, %v13896_v15  ;;  %v23646_v14 = vld [vmem:[%s27150_s5 + $0x18] sm:$0xff]   ;;  %v23655_v15 = vld [vmem:[%s27150_s5 + $0x50] sm:$0xff]  }
0x1b59   : > { %v13899_v18 = vpop.f32.mrb[70].mxu0  ;;  %22008 = vmatprep.mubr.msk.bf16.mxu0 %vm24253_vm4, %v24252_v55 }
0x1b5a   : > { %v21933_v22 = vpop.f32.mrb[71].mxu0 }
0x1b5b   : > { %22001 = vmatpush3.bf16.msra.mxu1 %v23639_v16  ;;  %v23657_v16 = vld [vmem:[%s27150_s5 + $0x58] sm:$0xff]  }
0x1b5c   : > { %22028 = vmatprep.subr.bf16.mxu1 %v24252_v55 }
0x1b5e   : > { %22003 = vmatmul.mubr.msk.bf16.vlgmr.msra.gmra.mrb[68].mxu1 %vm2275_vm0, %v13906_v19 }
0x1b5f   : > { %22032 = vmatprep.mubr.msk.bf16.mxu1 %vm24253_vm4, %v24252_v55  ;;  %22029 = vmatpush3.bf16.msra.mxu1 %v23645_v12 }
0x1b60   : > { %22030 = vmatprep.subr.bf16.mxu1 %v24252_v55 }
0x1b63   : > { %22031 = vmatpush3.bf16.msra.mxu1 %v23646_v14 }
0x1b64   : > { %22036 = vmatprep.subr.bf16.mxu1 %v24252_v55 }
0x1c0f   : > { %v14021_v23 = vpop.f32.mrb[72].mxu0 }
0x1c10   : > { %v21948_v24 = vpop.f32.mrb[73].mxu0 }
0x1c11   : > { %v13966_v25 = vpop.f32.mrb[52].mxu1  ;;  %v14024_v26 = vpop.f32.mrb[74].mxu0  ;;  %v23647_v24 = vld [vmem:[%s27150_s5] sm:$0xff]  }
0x1c12   : > { %v21940_v28 = vpop.f32.mrb[53].mxu1  ;;  %v14022_v29 = vadd.f32 %v14021_v23, %v13966_v25  ;;  %v21949_v30 = vpop.f32.mrb[75].mxu0  ;;  %v23648_v26 = vld [vmem:[%s27150_s5 + $0x8] sm:$0xff]  }
0x1c13   : > { %v13969_v31 = vpop.f32.mrb[54].mxu1 }
0x1c14   : > { %v21941_v32 = vpop.f32.mrb[55].mxu1 }
0x1c19   : > { %v14080_v20 = vpop.f32.mrb[56].mxu1  ;;  %v14142_v34 = vpop.f32.mrb[76].mxu0 }
0x1c1a   : > { %v14086_v36 = vadd.f32 %v14080_v20, %v14022_v29  ;;  %v21956_v37 = vpop.f32.mrb[57].mxu1  ;;  %v21964_v38 = vpop.f32.mrb[77].mxu0  ;;  %v23649_v20 = vld [vmem:[%s27150_s5 + $0x20] sm:$0xff]  }
0x1c1b   : > { %v14083_v39 = vpop.f32.mrb[58].mxu1  ;;  %v14145_v40 = vpop.f32.mrb[78].mxu0 }
0x1c1c   : > { %v14148_v41 = vadd.f32 %v14142_v34, %v14086_v36  ;;  %v21957_v42 = vpop.f32.mrb[59].mxu1  ;;  %v21965_v44 = vpop.f32.mrb[79].mxu0  ;;  %v23650_v34 = vld [vmem:[%s27150_s5 + $0x28] sm:$0xff]  }
0x1c1d   : > { %v23659_v44 = vld [vmem:[%s27150_s5 + $0x70] sm:$0xff]  }
0x1c21   : > { %v14202_v45 = vpop.f32.mrb[60].mxu1 }
0x1c22   : > { %v14208_v46 = vadd.f32 %v14202_v45, %v14148_v41  ;;  %v21972_v13 = vpop.f32.mrb[61].mxu1  ;;  %v14264_v48 = vpop.f32.mrb[80].mxu0  ;;  %v23651_v41 = vld [vmem:[%s27150_s5 + $0x30] sm:$0xff]   ;;  %v23652_v45 = vld [vmem:[%s27150_s5 + $0x38] sm:$0xff]  }
0x1c23   : > { %v14205_v49 = vpop.f32.mrb[62].mxu1  ;;  %v21980_v21 = vpop.f32.mrb[81].mxu0 }
0x1c24   : > { %v14270_v50 = vadd.f32 %v14264_v48, %v14208_v46  ;;  %v21973_v6 = vpop.f32.mrb[63].mxu1  ;;  %v14267_v35 = vpop.f32.mrb[82].mxu0  ;;  %v23661_v48 = vld [vmem:[%s27150_s5 + $0x78] sm:$0xff]  }
0x1c25   : > { %v21981_v51 = vpop.f32.mrb[83].mxu0  ;;  %v23653_v6 = vld [vmem:[%s27150_s5 + $0x40] sm:$0xff]  }
0x1c29   : > { %v14324_v52 = vpop.f32.mrb[64].mxu1 }
0x1c2a   : > { %v14330_v53 = vadd.f32 %v14324_v52, %v14270_v50  ;;  %v21988_v54 = vpop.f32.mrb[65].mxu1  ;;  %v23654_v52 = vld [vmem:[%s27150_s5 + $0x48] sm:$0xff]  }
0x1c2b   : > { %v14327_v56 = vpop.f32.mrb[66].mxu1  ;;  %v14386_v62 = vpop.f32.mrb[84].mxu0 }
0x1c2c   : > { %v14392_v57 = vadd.f32 %v14386_v62, %v14330_v53  ;;  %v21989_v58 = vpop.f32.mrb[67].mxu1  ;;  %v21996_v59 = vpop.f32.mrb[85].mxu0 }
0x1c2d   : > { %v14389_v27 = vpop.f32.mrb[86].mxu0  ;;  %v23658_v58 = vld [vmem:[%s27150_s5 + $0x68] sm:$0xff]   ;;  %v23660_v59 = vld [vmem:[%s27150_s5 + $0x80] sm:$0xff]  }
0x1c2e   : > { %v21997_v61 = vpop.f32.mrb[87].mxu0  ;;  %v23662_v27 = vld [vmem:[%s27150_s5 + $0x88] sm:$0xff]  }
0x1c31   : > { %v14446_v60 = vpop.f32.mrb[68].mxu1 }
0x1c32   : > { %v14452_v1 = vadd.f32 %v14446_v60, %v14392_v57  ;;  %v22004_v2 = vpop.f32.mrb[69].mxu1  ;;  %v23656_v57 = vld [vmem:[%s27150_s5 + $0x60] sm:$0xff]   ;;  %s18794_s5 = sshll.u32 %s25996_s2, 2 }
0x1c33   : > { %v14449_v3 = vpop.f32.mrb[70].mxu1  ;;  %s26349_s6 = scalar_lea.vmem [#allocation17], %s18794_s5  ;;  %s27153_s5 = sld [smem:[#allocation72_spill]] }
0x1c34   : > { %v14460_v4 = vadd.f32 %v19617_v63, %v14452_v1  ;;  %v22005_v5 = vpop.f32.mrb[71].mxu1  ;;  %s18476_s11 = sshll.u32 %s26349_s6, 4  ;;  %s26859_s11 = int_to_ptr.vmem [resolvable:$true] %s18476_s11 }
0x1c35   : > { %p24042_p2 = scmp.lt.s32.totalorder %s26859_s11, %s24040_s15 }
0x1c36   : > { %v14461_v0 = vmax.f32 %v14460_v4, 0.0 }
0x1c38   : > { %v14463_v43 = vpack.c.bf16 %v14461_v0, %v14461_v0 }
0x1c3a   : > { %v14512_v7 = vsel %vm4087_vm2, %v14463_v43, 0 }
0x1c3b   : > { %22007 = vmatpush3.bf16.msra.mxu0 %v14512_v7 }
0x1c3c   : > { %22068 = vmatprep.subr.bf16.mxu0 %v24252_v55 }
0x1c3e   : > { %22009 = vmatmul.mubr.msk.bf16.vlgmr.msra.gmra.mrb[88].mxu0 %vm4074_vm3, %v23640_v8 }
0x1c3f   : > { %22012 = vmatprep.mubr.msk.bf16.mxu0 %vm24253_vm4, %v24252_v55  ;;  %22069 = vmatpush3.bf16.msra.mxu0 %v23655_v15 }
0x1c40   : > { %22070 = vmatprep.subr.bf16.mxu0 %v24252_v55 }
0x1c43   : > { %22071 = vmatpush3.bf16.msra.mxu0 %v23657_v16 }
0x1c44   : > { %22084 = vmatprep.subr.bf16.mxu0 %v24252_v55 }
0x1c46   : > { %22013 = vmatmul.mubr.msk.bf16.gmra.mrb[92].mxu0 %vm4074_vm3, %v23641_v9 }
0x1c47   : > { %22016 = vmatprep.mubr.msk.bf16.mxu0 %vm24253_vm4, %v24252_v55 }
0x1c4e   : > { %22017 = vmatmul.mubr.msk.bf16.gmra.mrb[96].mxu0 %vm4074_vm3, %v23642_v10 }
0x1c4f   : > { %22020 = vmatprep.mubr.msk.bf16.mxu0 %vm24253_vm4, %v24252_v55 }
0x1c56   : > { %22021 = vmatmul.mubr.msk.bf16.gmra.mrb[100].mxu0 %vm4074_vm3, %v23643_v11 }
0x1c57   : > { %22024 = vmatprep.mubr.msk.bf16.mxu0 %vm24253_vm4, %v24252_v55 }
0x1c5e   : > { %22025 = vmatmul.mubr.msk.bf16.gmra.mrb[104].mxu0 %vm4074_vm3, %v23644_v47 }
0x1c5f   : > { %22072 = vmatprep.mubr.msk.bf16.mxu0 %vm24253_vm4, %v24252_v55 }
0x1d11   : > { %v14548_v17 = vpop.f32.mrb[88].mxu0 }
0x1d12   : > { %v22010_v18 = vpop.f32.mrb[89].mxu0 }
0x1d13   : > { %v14551_v19 = vpop.f32.mrb[90].mxu0 }
0x1d14   : > { %v14586_v22 = vpack.c.bf16 %v14551_v19, %v14548_v17  ;;  %v22011_v23 = vpop.f32.mrb[91].mxu0 }
0x1d16   : > { %v14600_v25 = vrot.slane %v14586_v22, 4 }
0x1d18   : > { %22033 = vmatmul.mubr.msk.bf16.vlgmr.msra.gmra.mrb[72].mxu1 %vm2275_vm0, %v14600_v25 }
0x1d19   : > { %22037 = vmatpush3.bf16.msra.mxu1 %v23647_v24  ;;  %22040 = vmatprep.mubr.msk.bf16.mxu1 %vm24253_vm4, %v24252_v55  ;;  %v14556_v28 = vpop.f32.mrb[92].mxu0 }
0x1d1a   : > { %22038 = vmatprep.subr.bf16.mxu1 %v24252_v55  ;;  %v22014_v29 = vpop.f32.mrb[93].mxu0 }
0x1d1b   : > { %v14559_v30 = vpop.f32.mrb[94].mxu0 }
0x1d1c   : > { %v14587_v31 = vpack.c.bf16 %v14559_v30, %v14556_v28  ;;  %v22015_v32 = vpop.f32.mrb[95].mxu0 }
0x1d1d   : > { %22039 = vmatpush3.bf16.msra.mxu1 %v23648_v26 }
0x1d1e   : > { %22044 = vmatprep.subr.bf16.mxu1 %v24252_v55  ;;  %v14776_v35 = vrot.slane %v14587_v31, 4 }
0x1d20   : > { %22041 = vmatmul.mubr.msk.bf16.vlgmr.msra.gmra.mrb[76].mxu1 %vm2275_vm0, %v14586_v22 }
0x1d21   : > { %22045 = vmatpush3.bf16.msra.mxu1 %v23649_v20  ;;  %22048 = vmatprep.mubr.msk.bf16.mxu1 %vm24253_vm4, %v24252_v55  ;;  %v14564_v36 = vpop.f32.mrb[96].mxu0 }
0x1d22   : > { %22046 = vmatprep.subr.bf16.mxu1 %v24252_v55  ;;  %v22018_v37 = vpop.f32.mrb[97].mxu0 }
0x1d23   : > { %v14567_v38 = vpop.f32.mrb[98].mxu0 }
0x1d24   : > { %v14588_v39 = vpack.c.bf16 %v14567_v38, %v14564_v36  ;;  %v22019_v40 = vpop.f32.mrb[99].mxu0 }
0x1d25   : > { %22047 = vmatpush3.bf16.msra.mxu1 %v23650_v34 }
0x1d26   : > { %22052 = vmatprep.subr.bf16.mxu1 %v24252_v55  ;;  %v14898_v42 = vrot.slane %v14588_v39, 4 }
0x1d28   : > { %22049 = vmatmul.mubr.msk.bf16.vlgmr.msra.gmra.mrb[80].mxu1 %vm2275_vm0, %v14587_v31  ;;  %22073 = vmatmul.mubr.msk.bf16.vlgmr.msra.gmra.mrb[108].mxu0 %vm2275_vm0, %v14898_v42  ;;  %v19655_v42 = vld [vmem:[#allocation7] ss:$0 sm:$0xff] }
0x1d29   : > { %22053 = vmatpush3.bf16.msra.mxu1 %v23651_v41  ;;  %22056 = vmatprep.mubr.msk.bf16.mxu1 %vm24253_vm4, %v24252_v55  ;;  %v14572_v46 = vpop.f32.mrb[100].mxu0 }
0x1d2a   : > { %22054 = vmatprep.subr.bf16.mxu1 %v24252_v55  ;;  %v22022_v13 = vpop.f32.mrb[101].mxu0  ;;  %22085 = vmatpush3.bf16.msra.mxu0 %v23659_v44 }
0x1d2b   : > { %v14575_v49 = vpop.f32.mrb[102].mxu0  ;;  %22086 = vmatprep.subr.bf16.mxu0 %v24252_v55  ;;  %22088 = vmatprep.mubr.msk.bf16.mxu0 %vm24253_vm4, %v24252_v55  ;;  %v14462_v13 = vunpack.c.l.bf16 %v26174_v33  ;;  %v23664_v33 = vld [vmem:[%s27151_s4 + $0x8] sm:$0xff]  }
0x1d2c   : > { %v14589_v21 = vpack.c.bf16 %v14575_v49, %v14572_v46  ;;  %v22023_v50 = vpop.f32.mrb[103].mxu0 }
0x1d2d   : > { %22055 = vmatpush3.bf16.msra.mxu1 %v23652_v45 }
0x1d2e   : > { %22060 = vmatprep.subr.bf16.mxu1 %v24252_v55  ;;  %v15020_v51 = vrot.slane %v14589_v21, 4  ;;  %22087 = vmatpush3.bf16.msra.mxu0 %v23661_v48 }
0x1d2f   : > { %22100 = vmatprep.subr.bf16.mxu0 %v24252_v55 }
0x1d30   : > { %22057 = vmatmul.mubr.msk.bf16.vlgmr.msra.gmra.mrb[84].mxu1 %vm2275_vm0, %v14776_v35 }
0x1d31   : > { %22061 = vmatpush3.bf16.msra.mxu1 %v23653_v6  ;;  %22064 = vmatprep.mubr.msk.bf16.mxu1 %vm24253_vm4, %v24252_v55  ;;  %v14580_v53 = vpop.f32.mrb[104].mxu0 }
0x1d32   : > { %22062 = vmatprep.subr.bf16.mxu1 %v24252_v55  ;;  %22089 = vmatmul.mubr.msk.bf16.vlgmr.msra.gmra.mrb[112].mxu0 %vm2275_vm0, %v15020_v51  ;;  %v22026_v54 = vpop.f32.mrb[105].mxu0  ;;  %v14590_v61 = vpack.c.bf16 %v14580_v53, %v14580_v53  ;;  %v23663_v51 = vld [vmem:[%s27151_s4] sm:$0xff]   ;;  %v23666_v53 = vld [vmem:[%s27151_s4 + $0x18] sm:$0xff]  }
0x1d33   : > { %v14583_v56 = vpop.f32.mrb[106].mxu0  ;;  %22102 = vmatprep.mubr.msk.bf16.mxu0 %vm24253_vm4, %v24252_v55  ;;  %v23667_v54 = vld [vmem:[%s27151_s4 + $0x20] ss:$0 sps:$4 sm:$0xff]  }
0x1d34   : > { %v22027_v62 = vpop.f32.mrb[107].mxu0  ;;  %v23668_v56 = vld [vmem:[%s27152_s9 + $0x10] sm:$0xff]  }
0x1d35   : > { %22063 = vmatpush3.bf16.msra.mxu1 %v23654_v52  ;;  %v23665_v52 = vld [vmem:[%s27151_s4 + $0x10] sm:$0xff]   ;;  %v23669_v62 = vld [vmem:[%s27152_s9 + $0x18] sm:$0xff]   ;;  %s27154_s4 = sld [smem:[#allocation73_spill]] }
0x1d36   : > { %22076 = vmatprep.subr.bf16.mxu1 %v24252_v55 }
0x1d38   : > { %22065 = vmatmul.mubr.msk.bf16.vlgmr.msra.gmra.mrb[88].mxu1 %vm2275_vm0, %v14588_v39 }
0x1d39   : > { %22077 = vmatpush3.bf16.msra.mxu1 %v23656_v57  ;;  %22080 = vmatprep.mubr.msk.bf16.mxu1 %vm24253_vm4, %v24252_v55  ;;  %v23672_v57 = vld [vmem:[%s27152_s9 + $0x50] sm:$0xff]  }
0x1d3a   : > { %22078 = vmatprep.subr.bf16.mxu1 %v24252_v55 }
0x1d3d   : > { %22079 = vmatpush3.bf16.msra.mxu1 %v23658_v58  ;;  %v23674_v58 = vld [vmem:[%s27152_s9 + $0x58] sm:$0xff]  }
0x1d3e   : > { %22092 = vmatprep.subr.bf16.mxu1 %v24252_v55 }
0x1d40   : > { %22081 = vmatmul.mubr.msk.bf16.vlgmr.msra.gmra.mrb[92].mxu1 %vm2275_vm0, %v14589_v21 }
0x1d41   : > { %22093 = vmatpush3.bf16.msra.mxu1 %v23660_v59  ;;  %22096 = vmatprep.mubr.msk.bf16.mxu1 %vm24253_vm4, %v24252_v55 }
0x1d42   : > { %22094 = vmatprep.subr.bf16.mxu1 %v24252_v55 }
0x1d45   : > { %22095 = vmatpush3.bf16.msra.mxu1 %v23662_v27 }
0x1d46   : > { %22122 = vmatprep.subr.bf16.mxu1 %v24252_v55 }
0x1d48   : > { %22097 = vmatmul.mubr.msk.bf16.vlgmr.msra.gmra.mrb[96].mxu1 %vm2275_vm0, %v14590_v61 }
0x1d49   : > { %22126 = vmatprep.mubr.msk.bf16.mxu1 %vm24253_vm4, %v24252_v55  ;;  %22123 = vmatpush3.bf16.msra.mxu1 %v23668_v56 }
0x1d4a   : > { %22124 = vmatprep.subr.bf16.mxu1 %v24252_v55 }
0x1d4d   : > { %22125 = vmatpush3.bf16.msra.mxu1 %v23669_v62 }
0x1d4e   : > { %22130 = vmatprep.subr.bf16.mxu1 %v24252_v55 }
0x1deb   : > { %v14650_v60 = vpop.f32.mrb[72].mxu1 }
0x1dec   : > { %v22034_v63 = vpop.f32.mrb[73].mxu1 }
0x1ded   : > { %v14653_v1 = vpop.f32.mrb[74].mxu1 }
0x1dee   : > { %v22035_v2 = vpop.f32.mrb[75].mxu1  ;;  %v23670_v1 = vld [vmem:[%s27152_s9] sm:$0xff]  }
0x1df3   : > { %v14705_v3 = vpop.f32.mrb[76].mxu1 }
0x1df4   : > { %v14706_v4 = vadd.f32 %v14705_v3, %v14650_v60  ;;  %v22042_v5 = vpop.f32.mrb[77].mxu1 }
0x1df5   : > { %v14708_v0 = vpop.f32.mrb[78].mxu1 }
0x1df6   : > { %v22043_v43 = vpop.f32.mrb[79].mxu1 }
0x1dfb   : > { %v14764_v7 = vpop.f32.mrb[80].mxu1  ;;  %v14948_v8 = vpop.f32.mrb[108].mxu0 }
0x1dfc   : > { %v14770_v9 = vadd.f32 %v14764_v7, %v14706_v4  ;;  %v22050_v10 = vpop.f32.mrb[81].mxu1  ;;  %v22074_v11 = vpop.f32.mrb[109].mxu0  ;;  %v23671_v4 = vld [vmem:[%s27152_s9 + $0x8] sm:$0xff]  }
0x1dfd   : > { %v14767_v47 = vpop.f32.mrb[82].mxu1  ;;  %v14951_v12 = vpop.f32.mrb[110].mxu0  ;;  %v23675_v10 = vld [vmem:[%s27152_s9 + $0x28] sm:$0xff]  }
0x1dfe   : > { %v22051_v14 = vpop.f32.mrb[83].mxu1  ;;  %v22075_v15 = vpop.f32.mrb[111].mxu0 }
0x1dff   : > { %v23676_v15 = vld [vmem:[%s27152_s9 + $0x70] sm:$0xff]  }
0x1e03   : > { %v14826_v16 = vpop.f32.mrb[84].mxu1 }
0x1e04   : > { %v14832_v17 = vadd.f32 %v14826_v16, %v14770_v9  ;;  %v22058_v18 = vpop.f32.mrb[85].mxu1  ;;  %v23677_v16 = vld [vmem:[%s27152_s9 + $0x30] sm:$0xff]  }
0x1e05   : > { %v14829_v19 = vpop.f32.mrb[86].mxu1  ;;  %v15070_v22 = vpop.f32.mrb[112].mxu0 }
0x1e06   : > { %v22059_v23 = vpop.f32.mrb[87].mxu1  ;;  %v22090_v24 = vpop.f32.mrb[113].mxu0  ;;  %v23678_v19 = vld [vmem:[%s27152_s9 + $0x78] sm:$0xff]  }
0x1e07   : > { %v15073_v25 = vpop.f32.mrb[114].mxu0 }
0x1e08   : > { %v22091_v26 = vpop.f32.mrb[115].mxu0 }
0x1e0b   : > { %v14886_v28 = vpop.f32.mrb[88].mxu1 }
0x1e0c   : > { %v14892_v29 = vadd.f32 %v14886_v28, %v14832_v17  ;;  %v22066_v30 = vpop.f32.mrb[89].mxu1  ;;  %v23680_v28 = vld [vmem:[%s27152_s9 + $0x40] sm:$0xff]  }
0x1e0d   : > { %v14889_v31 = vpop.f32.mrb[90].mxu1 }
0x1e0e   : > { %v14954_v32 = vadd.f32 %v14948_v8, %v14892_v29  ;;  %v22067_v20 = vpop.f32.mrb[91].mxu1  ;;  %v23673_v8 = vld [vmem:[%s27152_s9 + $0x20] sm:$0xff]   ;;  %v23681_v31 = vld [vmem:[%s27152_s9 + $0x48] sm:$0xff]  }
0x1e13   : > { %v15008_v34 = vpop.f32.mrb[92].mxu1 }
0x1e14   : > { %v15014_v36 = vadd.f32 %v15008_v34, %v14954_v32  ;;  %v22082_v37 = vpop.f32.mrb[93].mxu1 }
0x1e15   : > { %v15011_v38 = vpop.f32.mrb[94].mxu1  ;;  %v23682_v37 = vld [vmem:[%s27152_s9 + $0x60] sm:$0xff]  }
0x1e16   : > { %v15076_v39 = vadd.f32 %v15070_v22, %v15014_v36  ;;  %v22083_v40 = vpop.f32.mrb[95].mxu1  ;;  %v23679_v22 = vld [vmem:[%s27152_s9 + $0x38] sm:$0xff]   ;;  %v23683_v38 = vld [vmem:[%s27152_s9 + $0x68] sm:$0xff]  }
0x1e17   : > { %v23685_v40 = vld [vmem:[%s27152_s9 + $0x88] sm:$0xff]  }
0x1e1b   : > { %v15130_v41 = vpop.f32.mrb[96].mxu1 }
0x1e1c   : > { %v15136_v44 = vadd.f32 %v15130_v41, %v15076_v39  ;;  %v22098_v45 = vpop.f32.mrb[97].mxu1  ;;  %v23684_v39 = vld [vmem:[%s27152_s9 + $0x80] sm:$0xff]   ;;  %s27158_s9 = sld [smem:[#allocation78_spill]] }
0x1e1d   : > { %v15133_v46 = vpop.f32.mrb[98].mxu1  ;;  %v23692_v45 = vld [vmem:[%s27154_s4 + $0x8] sm:$0xff]  }
0x1e1e   : > { %v15144_v48 = vadd.f32 %v19655_v42, %v15136_v44  ;;  %v22099_v49 = vpop.f32.mrb[99].mxu1  ;;  %v15832_v42 = vld [vmem:[%s27153_s5] sm:$0xf]  ;;  %s27155_s5 = sld [smem:[#allocation74_spill]] }
0x1e1f   : > { %v23691_v44 = vld [vmem:[%s27154_s4] sm:$0xff]   ;;  %s27156_s4 = sld [smem:[#allocation75_spill]] }
0x1e20   : > { %v15145_v21 = vadd.f32 %v15144_v48, %v14462_v13 }
0x1e22   : > { %v15146_v50 = vmax.f32 %v15145_v21, 0.0 }
0x1e24   : > { %v15147_v6 = vpack.c.bf16 %v15146_v50, %v15146_v50  ;;  %15149 = vst.msk [vmem:[%s26349_s6] sm:$0xf] %vm15148_vm6, %v15146_v50 }
0x1e26   : > { %v26353_v35 = vsel %vm4087_vm2, %v15147_v6, 0 }
0x1e27   : > { %22101 = vmatpush3.bf16.msra.mxu0 %v26353_v35 }
0x1e28   : > { %22162 = vmatprep.subr.bf16.mxu0 %v24252_v55 }
0x1e2a   : > { %22103 = vmatmul.mubr.msk.bf16.vlgmr.msra.gmra.mrb[116].mxu0 %vm4074_vm3, %v23663_v51 }
0x1e2b   : > { %22106 = vmatprep.mubr.msk.bf16.mxu0 %vm24253_vm4, %v24252_v55  ;;  %22163 = vmatpush3.bf16.msra.mxu0 %v23672_v57 }
0x1e2c   : > { %22164 = vmatprep.subr.bf16.mxu0 %v24252_v55 }
0x1e2f   : > { %22165 = vmatpush3.bf16.msra.mxu0 %v23674_v58 }
0x1e30   : > { %22178 = vmatprep.subr.bf16.mxu0 %v24252_v55 }
0x1e32   : > { %22107 = vmatmul.mubr.msk.bf16.gmra.mrb[120].mxu0 %vm4074_vm3, %v23664_v33 }
0x1e33   : > { %22110 = vmatprep.mubr.msk.bf16.mxu0 %vm24253_vm4, %v24252_v55 }
0x1e3a   : > { %22111 = vmatmul.mubr.msk.bf16.gmra.mrb[124].mxu0 %vm4074_vm3, %v23665_v52 }
0x1e3b   : > { %22114 = vmatprep.mubr.msk.bf16.mxu0 %vm24253_vm4, %v24252_v55 }
0x1e42   : > { %22115 = vmatmul.mubr.msk.bf16.gmra.mrb[128].mxu0 %vm4074_vm3, %v23666_v53 }
0x1e43   : > { %22118 = vmatprep.mubr.msk.bf16.mxu0 %vm24253_vm4, %v24252_v55 }
0x1e4a   : > { %22119 = vmatmul.mubr.msk.bf16.gmra.mrb[132].mxu0 %vm4074_vm3, %v23667_v54 }
0x1e4b   : > { %22166 = vmatprep.mubr.msk.bf16.mxu0 %vm24253_vm4, %v24252_v55 }
0x1efd   : > { %v15234_v59 = vpop.f32.mrb[116].mxu0 }
0x1efe   : > { %v22104_v27 = vpop.f32.mrb[117].mxu0 }
0x1eff   : > { %v15237_v61 = vpop.f32.mrb[118].mxu0 }
0x1f00   : > { %v15272_v60 = vpack.c.bf16 %v15237_v61, %v15234_v59  ;;  %v22105_v63 = vpop.f32.mrb[119].mxu0 }
0x1f02   : > { %v15286_v2 = vrot.slane %v15272_v60, 4 }
0x1f04   : > { %22127 = vmatmul.mubr.msk.bf16.vlgmr.msra.gmra.mrb[100].mxu1 %vm2275_vm0, %v15286_v2 }
0x1f05   : > { %22131 = vmatpush3.bf16.msra.mxu1 %v23670_v1  ;;  %v15242_v3 = vpop.f32.mrb[120].mxu0  ;;  %22134 = vmatprep.mubr.msk.bf16.mxu1 %vm24253_vm4, %v24252_v55 }
0x1f06   : > { %22132 = vmatprep.subr.bf16.mxu1 %v24252_v55  ;;  %v22108_v5 = vpop.f32.mrb[121].mxu0 }
0x1f07   : > { %v15245_v0 = vpop.f32.mrb[122].mxu0 }
0x1f08   : > { %v15273_v43 = vpack.c.bf16 %v15245_v0, %v15242_v3  ;;  %v22109_v7 = vpop.f32.mrb[123].mxu0 }
0x1f09   : > { %22133 = vmatpush3.bf16.msra.mxu1 %v23671_v4 }
0x1f0a   : > { %22138 = vmatprep.subr.bf16.mxu1 %v24252_v55  ;;  %v15462_v29 = vrot.slane %v15273_v43, 4 }
0x1f0c   : > { %22135 = vmatmul.mubr.msk.bf16.vlgmr.msra.gmra.mrb[104].mxu1 %vm2275_vm0, %v15272_v60 }
0x1f0d   : > { %v15250_v9 = vpop.f32.mrb[124].mxu0  ;;  %22139 = vmatpush3.bf16.msra.mxu1 %v23673_v8  ;;  %22142 = vmatprep.mubr.msk.bf16.mxu1 %vm24253_vm4, %v24252_v55 }
0x1f0e   : > { %v22112_v11 = vpop.f32.mrb[125].mxu0  ;;  %22140 = vmatprep.subr.bf16.mxu1 %v24252_v55 }
0x1f0f   : > { %v15253_v47 = vpop.f32.mrb[126].mxu0 }
0x1f10   : > { %v15274_v12 = vpack.c.bf16 %v15253_v47, %v15250_v9  ;;  %v22113_v14 = vpop.f32.mrb[127].mxu0 }
0x1f11   : > { %22141 = vmatpush3.bf16.msra.mxu1 %v23675_v10 }
0x1f12   : > { %v15584_v17 = vrot.slane %v15274_v12, 4  ;;  %22146 = vmatprep.subr.bf16.mxu1 %v24252_v55 }
0x1f14   : > { %22143 = vmatmul.mubr.msk.bf16.vlgmr.msra.gmra.mrb[108].mxu1 %vm2275_vm0, %v15273_v43  ;;  %22167 = vmatmul.mubr.msk.bf16.vlgmr.msra.gmra.mrb[136].mxu0 %vm2275_vm0, %v15584_v17 }
0x1f15   : > { %22179 = vmatpush3.bf16.msra.mxu0 %v23676_v15  ;;  %v15258_v18 = vpop.f32.mrb[128].mxu0  ;;  %22147 = vmatpush3.bf16.msra.mxu1 %v23677_v16 }
0x1f16   : > { %v22116_v23 = vpop.f32.mrb[129].mxu0  ;;  %22180 = vmatprep.subr.bf16.mxu0 %v24252_v55  ;;  %22148 = vmatprep.subr.bf16.mxu1 %v24252_v55 }
0x1f17   : > { %v15261_v24 = vpop.f32.mrb[130].mxu0  ;;  %22150 = vmatprep.mubr.msk.bf16.mxu1 %vm24253_vm4, %v24252_v55  ;;  %22182 = vmatprep.mubr.msk.bf16.mxu0 %vm24253_vm4, %v24252_v55 }
0x1f18   : > { %v15275_v25 = vpack.c.bf16 %v15261_v24, %v15258_v18  ;;  %v22117_v26 = vpop.f32.mrb[131].mxu0  ;;  %v19693_v18 = vld [vmem:[#allocation8] ss:$0 sm:$0xff] }
0x1f19   : > { %22181 = vmatpush3.bf16.msra.mxu0 %v23678_v19  ;;  %22149 = vmatpush3.bf16.msra.mxu1 %v23679_v22 }
0x1f1a   : > { %v15706_v30 = vrot.slane %v15275_v25, 4  ;;  %22194 = vmatprep.subr.bf16.mxu0 %v24252_v55  ;;  %22154 = vmatprep.subr.bf16.mxu1 %v24252_v55 }
0x1f1c   : > { %22151 = vmatmul.mubr.msk.bf16.vlgmr.msra.gmra.mrb[112].mxu1 %vm2275_vm0, %v15462_v29  ;;  %22183 = vmatmul.mubr.msk.bf16.vlgmr.msra.gmra.mrb[140].mxu0 %vm2275_vm0, %v15706_v30  ;;  %v23686_v30 = vld [vmem:[%s27155_s5] sm:$0xff]  }
0x1f1d   : > { %22195 = vmatpush3.bf16.msra.mxu0 %v26353_v35  ;;  %22155 = vmatpush3.bf16.msra.mxu1 %v23680_v28  ;;  %v15266_v32 = vpop.f32.mrb[132].mxu0 }
0x1f1e   : > { %22156 = vmatprep.subr.bf16.mxu1 %v24252_v55  ;;  %22158 = vmatprep.mubr.msk.bf16.mxu1 %vm24253_vm4, %v24252_v55  ;;  %v22120_v20 = vpop.f32.mrb[133].mxu0  ;;  %v15276_v41 = vpack.c.bf16 %v15266_v32, %v15266_v32  ;;  %v23688_v32 = vld [vmem:[%s27155_s5 + $0x10] sm:$0xff]  }
0x1f1f   : > { %v15269_v34 = vpop.f32.mrb[134].mxu0  ;;  %22196 = vmatprep.mubr.msk.bf16.mxu0 %vm24253_vm4, %v24252_v55  ;;  %22208 = vmatprep.subr.bf16.mxu0 %v24252_v55  ;;  %v23689_v20 = vld [vmem:[%s27155_s5 + $0x18] sm:$0xff]  }
0x1f20   : > { %v22121_v36 = vpop.f32.mrb[135].mxu0  ;;  %v23690_v34 = vld [vmem:[%s27155_s5 + $0x20] ss:$0 sps:$4 sm:$0xff]  }
0x1f21   : > { %22157 = vmatpush3.bf16.msra.mxu1 %v23681_v31  ;;  %v23687_v31 = vld [vmem:[%s27155_s5 + $0x8] sm:$0xff]   ;;  %s27157_s5 = sld [smem:[#allocation77_spill]] }
0x1f22   : > { %22170 = vmatprep.subr.bf16.mxu1 %v24252_v55 }
0x1f24   : > { %22159 = vmatmul.mubr.msk.bf16.vlgmr.msra.gmra.mrb[116].mxu1 %vm2275_vm0, %v15274_v12  ;;  %22197 = vmatmul.mubr.msk.bf16.vlgmr.msra.gmra.mrb[144].mxu0 %vm4074_vm3, %v15832_v42  ;;  %v23694_v42 = vld [vmem:[%s27156_s4 + $0x28] sm:$0xff]  }
0x1f25   : > { %22171 = vmatpush3.bf16.msra.mxu1 %v23682_v37  ;;  %22174 = vmatprep.mubr.msk.bf16.mxu1 %vm24253_vm4, %v24252_v55  ;;  %v23693_v37 = vld [vmem:[%s27156_s4 + $0x20] sm:$0xff]  }
0x1f26   : > { %22172 = vmatprep.subr.bf16.mxu1 %v24252_v55  ;;  %22210 = vmatprep.mubr.msk.bf16.mxu0 %vm24253_vm4, %v24252_v55 }
0x1f29   : > { %22173 = vmatpush3.bf16.msra.mxu1 %v23683_v38 }
0x1f2a   : > { %22186 = vmatprep.subr.bf16.mxu1 %v24252_v55 }
0x1f2c   : > { %22175 = vmatmul.mubr.msk.bf16.vlgmr.msra.gmra.mrb[120].mxu1 %vm2275_vm0, %v15275_v25 }
0x1f2d   : > { %22187 = vmatpush3.bf16.msra.mxu1 %v23684_v39  ;;  %22190 = vmatprep.mubr.msk.bf16.mxu1 %vm24253_vm4, %v24252_v55 }
0x1f2e   : > { %22188 = vmatprep.subr.bf16.mxu1 %v24252_v55 }
0x1f31   : > { %22189 = vmatpush3.bf16.msra.mxu1 %v23685_v40 }
0x1f32   : > { %22200 = vmatprep.subr.bf16.mxu1 %v24252_v55 }
0x1f34   : > { %22191 = vmatmul.mubr.msk.bf16.vlgmr.msra.gmra.mrb[124].mxu1 %vm2275_vm0, %v15276_v41 }
0x1f35   : > { %22204 = vmatprep.mubr.msk.bf16.mxu1 %vm24253_vm4, %v24252_v55  ;;  %22201 = vmatpush3.bf16.msra.mxu1 %v23691_v44  ;;  %v23695_v44 = vld [vmem:[%s27156_s4 + $0x30] sm:$0xff]  }
0x1f36   : > { %22202 = vmatprep.subr.bf16.mxu1 %v24252_v55 }
0x1f39   : > { %22203 = vmatpush3.bf16.msra.mxu1 %v23692_v45  ;;  %v23696_v45 = vld [vmem:[%s27156_s4 + $0x38] sm:$0xff]  }
0x1f3a   : > { %22230 = vmatprep.subr.bf16.mxu1 %v24252_v55 }
0x1fd7   : > { %v15336_v46 = vpop.f32.mrb[100].mxu1 }
0x1fd8   : > { %v22128_v13 = vpop.f32.mrb[101].mxu1 }
0x1fd9   : > { %v15339_v48 = vpop.f32.mrb[102].mxu1 }
0x1fda   : > { %v22129_v49 = vpop.f32.mrb[103].mxu1 }
0x1fdf   : > { %v15391_v21 = vpop.f32.mrb[104].mxu1 }
0x1fe0   : > { %v15392_v50 = vadd.f32 %v15391_v21, %v15336_v46  ;;  %v22136_v6 = vpop.f32.mrb[105].mxu1 }
0x1fe1   : > { %v15394_v35 = vpop.f32.mrb[106].mxu1 }
0x1fe2   : > { %v22137_v51 = vpop.f32.mrb[107].mxu1  ;;  %v23698_v35 = vld [vmem:[%s27156_s4 + $0x8] sm:$0xff]  }
0x1fe7   : > { %v15450_v33 = vpop.f32.mrb[108].mxu1  ;;  %v15634_v52 = vpop.f32.mrb[136].mxu0 }
0x1fe8   : > { %v15456_v53 = vadd.f32 %v15450_v33, %v15392_v50  ;;  %v22144_v54 = vpop.f32.mrb[109].mxu1  ;;  %v22168_v56 = vpop.f32.mrb[137].mxu0  ;;  %v23697_v50 = vld [vmem:[%s27156_s4] sm:$0xff]  }
0x1fe9   : > { %v15453_v62 = vpop.f32.mrb[110].mxu1  ;;  %v15637_v57 = vpop.f32.mrb[138].mxu0  ;;  %v23699_v56 = vld [vmem:[%s27156_s4 + $0x10] sm:$0xff]  }
0x1fea   : > { %v22145_v58 = vpop.f32.mrb[111].mxu1  ;;  %v22169_v59 = vpop.f32.mrb[139].mxu0  ;;  %v23700_v62 = vld [vmem:[%s27156_s4 + $0x18] sm:$0xff]  }
0x1fef   : > { %v15512_v27 = vpop.f32.mrb[112].mxu1  ;;  %v15756_v61 = vpop.f32.mrb[140].mxu0 }
0x1ff0   : > { %v15518_v60 = vadd.f32 %v15512_v27, %v15456_v53  ;;  %v22152_v63 = vpop.f32.mrb[113].mxu1  ;;  %v22184_v1 = vpop.f32.mrb[141].mxu0 }
0x1ff1   : > { %v15515_v2 = vpop.f32.mrb[114].mxu1  ;;  %v15759_v3 = vpop.f32.mrb[142].mxu0  ;;  %v23702_v63 = vld [vmem:[%s27156_s4 + $0x48] sm:$0xff]  }
0x1ff2   : > { %v22153_v4 = vpop.f32.mrb[115].mxu1  ;;  %v22185_v5 = vpop.f32.mrb[143].mxu0 }
0x1ff7   : > { %v15572_v0 = vpop.f32.mrb[116].mxu1  ;;  %v15870_v36 = vpop.f32.mrb[144].mxu0 }
0x1ff8   : > { %v15578_v43 = vadd.f32 %v15572_v0, %v15518_v60  ;;  %v22160_v7 = vpop.f32.mrb[117].mxu1  ;;  %v15876_v38 = vpack.c.bf16 %v15870_v36, %v15870_v36  ;;  %v22198_v39 = vpop.f32.mrb[145].mxu0  ;;  %v23701_v60 = vld [vmem:[%s27156_s4 + $0x40] sm:$0xff]   ;;  %v23703_v0 = vld [vmem:[%s27156_s4 + $0x50] sm:$0xff]   ;;  %v23724_v36 = vld [vmem:[%s27156_s4 + $0xf8] sm:$0xff]  }
0x1ff9   : > { %v15575_v8 = vpop.f32.mrb[118].mxu1  ;;  %v15873_v40 = vpop.f32.mrb[146].mxu0  ;;  %v23726_v39 = vld [vmem:[%s27156_s4 + $0x108] sm:$0xff]  }
0x1ffa   : > { %v15640_v9 = vadd.f32 %v15634_v52, %v15578_v43  ;;  %v22161_v10 = vpop.f32.mrb[119].mxu1  ;;  %22205 = vmatmul.mubr.msk.bf16.vlgmr.msra.gmra.mrb[128].mxu1 %vm2275_vm0, %v15876_v38  ;;  %v22199_v41 = vpop.f32.mrb[147].mxu0  ;;  %v23704_v43 = vld [vmem:[%s27156_s4 + $0x58] sm:$0xff]   ;;  %v23727_v40 = vld [vmem:[%s27156_s4 + $0x110] sm:$0xff]  }
0x1ffb   : > { %22231 = vmatpush3.bf16.msra.mxu1 %v23693_v37  ;;  %22238 = vmatprep.mubr.msk.bf16.mxu1 %vm24253_vm4, %v24252_v55  ;;  %v23725_v37 = vld [vmem:[%s27156_s4 + $0x100] sm:$0xff]   ;;  %v23728_v41 = vld [vmem:[%s27156_s4 + $0x118] sm:$0xff]  }
0x1ffc   : > { %22232 = vmatprep.subr.bf16.mxu1 %v24252_v55 }
0x1fff   : > { %v15694_v11 = vpop.f32.mrb[120].mxu1  ;;  %22233 = vmatpush3.bf16.msra.mxu1 %v23694_v42 }
0x2000   : > { %v15700_v47 = vadd.f32 %v15694_v11, %v15640_v9  ;;  %v22176_v12 = vpop.f32.mrb[121].mxu1  ;;  %22234 = vmatprep.subr.bf16.mxu1 %v24252_v55  ;;  %v23705_v11 = vld [vmem:[%s27156_s4 + $0x60] sm:$0xff]  }
0x2001   : > { %v15697_v14 = vpop.f32.mrb[122].mxu1  ;;  %v23707_v12 = vld [vmem:[%s27156_s4 + $0x70] sm:$0xff]  }
0x2002   : > { %v15762_v15 = vadd.f32 %v15756_v61, %v15700_v47  ;;  %v22177_v16 = vpop.f32.mrb[123].mxu1  ;;  %v23706_v47 = vld [vmem:[%s27156_s4 + $0x68] sm:$0xff]   ;;  %v23708_v14 = vld [vmem:[%s27156_s4 + $0x78] sm:$0xff]  }
0x2003   : > { %22235 = vmatpush3.bf16.msra.mxu1 %v23695_v44  ;;  %v19695_v44 = vld [vmem:[#allocation10] ss:$0 sm:$0xff] }
0x2004   : > { %22236 = vmatprep.subr.bf16.mxu1 %v24252_v55 }
0x2007   : > { %v15816_v17 = vpop.f32.mrb[124].mxu1  ;;  %22237 = vmatpush3.bf16.msra.mxu1 %v23696_v45 }
0x2008   : > { %v15822_v19 = vadd.f32 %v15816_v17, %v15762_v15  ;;  %v22192_v22 = vpop.f32.mrb[125].mxu1  ;;  %22242 = vmatprep.subr.bf16.mxu1 %v24252_v55  ;;  %v23709_v15 = vld [vmem:[%s27156_s4 + $0x80] sm:$0xff]   ;;  %v23710_v17 = vld [vmem:[%s27156_s4 + $0x88] sm:$0xff]  }
0x2009   : > { %v15819_v23 = vpop.f32.mrb[126].mxu1  ;;  %v23713_v22 = vld [vmem:[%s27156_s4 + $0xa0] sm:$0xff]  }
0x200a   : > { %v15830_v24 = vadd.f32 %v19693_v18, %v15822_v19  ;;  %v22193_v25 = vpop.f32.mrb[127].mxu1  ;;  %v23711_v18 = vld [vmem:[%s27156_s4 + $0x90] sm:$0xff]   ;;  %v23712_v19 = vld [vmem:[%s27156_s4 + $0x98] sm:$0xff]   ;;  %v23714_v23 = vld [vmem:[%s27156_s4 + $0xa8] sm:$0xff]  }
0x200b   : > { %v23716_v25 = vld [vmem:[%s27156_s4 + $0xb8] sm:$0xff]  }
0x200c   : > { %v15831_v26 = vmax.f32 %v15830_v24, 0.0  ;;  %v23715_v24 = vld [vmem:[%s27156_s4 + $0xb0] sm:$0xff]  }
0x200e   : > { %v15943_v28 = vpack.c.bf16 %v15831_v26, %v15831_v26  ;;  %v23717_v26 = vld [vmem:[%s27156_s4 + $0xc0] sm:$0xff]  }
0x2010   : > { %v15992_v29 = vsel %vm4087_vm2, %v15943_v28, 0 }
0x2011   : > { %22209 = vmatpush3.bf16.msra.mxu0 %v15992_v29  ;;  %v23718_v29 = vld [vmem:[%s27156_s4 + $0xc8] sm:$0xff]  }
0x2012   : > { %22338 = vmatprep.subr.bf16.mxu0 %v24252_v55 }
0x2014   : > { %22211 = vmatmul.mubr.msk.bf16.vlgmr.msra.gmra.mrb[148].mxu0 %vm4074_vm3, %v23686_v30  ;;  %v23719_v30 = vld [vmem:[%s27156_s4 + $0xd0] sm:$0xff]  }
0x2015   : > { %22214 = vmatprep.mubr.msk.bf16.mxu0 %vm24253_vm4, %v24252_v55 }
0x201c   : > { %22215 = vmatmul.mubr.msk.bf16.gmra.mrb[152].mxu0 %vm4074_vm3, %v23687_v31  ;;  %v23720_v31 = vld [vmem:[%s27156_s4 + $0xd8] sm:$0xff]  }
0x201d   : > { %22218 = vmatprep.mubr.msk.bf16.mxu0 %vm24253_vm4, %v24252_v55 }
0x2024   : > { %22219 = vmatmul.mubr.msk.bf16.gmra.mrb[156].mxu0 %vm4074_vm3, %v23688_v32  ;;  %v23721_v32 = vld [vmem:[%s27156_s4 + $0xe0] sm:$0xff]  }
0x2025   : > { %22222 = vmatprep.mubr.msk.bf16.mxu0 %vm24253_vm4, %v24252_v55 }
0x202c   : > { %22223 = vmatmul.mubr.msk.bf16.gmra.mrb[160].mxu0 %vm4074_vm3, %v23689_v20  ;;  %v23722_v20 = vld [vmem:[%s27156_s4 + $0xe8] sm:$0xff]  }
0x202d   : > { %22226 = vmatprep.mubr.msk.bf16.mxu0 %vm24253_vm4, %v24252_v55 }
0x2034   : > { %22227 = vmatmul.mubr.msk.bf16.gmra.mrb[164].mxu0 %vm4074_vm3, %v23690_v34  ;;  %v23723_v34 = vld [vmem:[%s27156_s4 + $0xf0] sm:$0xff]   ;;  %s27159_s4 = sld [smem:[#allocation80_spill]] }
0x2035   : > { %22340 = vmatprep.mubr.msk.bf16.mxu0 %vm24253_vm4, %v24252_v55 }
0x20e7   : > { %v16028_v46 = vpop.f32.mrb[148].mxu0 }
0x20e8   : > { %v22212_v13 = vpop.f32.mrb[149].mxu0 }
0x20e9   : > { %v16031_v48 = vpop.f32.mrb[150].mxu0 }
0x20ea   : > { %v16066_v49 = vpack.c.bf16 %v16031_v48, %v16028_v46  ;;  %v22213_v21 = vpop.f32.mrb[151].mxu0  ;;  %v19754_v46 = vld [vmem:[#allocation11] ss:$0 sm:$0xff] }
0x20ec   : > { %v16088_v6 = vrot.slane %v16066_v49, 4 }
0x20ee   : > { %22239 = vmatmul.mubr.msk.bf16.vlgmr.msra.gmra.mrb[128].mxu1 %vm3606_vm1, %v16088_v6 }
0x20ef   : > { %22243 = vmatpush3.bf16.msra.mxu1 %v23697_v50  ;;  %22250 = vmatprep.mubr.msk.bf16.mxu1 %vm24253_vm4, %v24252_v55  ;;  %v16036_v51 = vpop.f32.mrb[152].mxu0 }
0x20f0   : > { %22244 = vmatprep.subr.bf16.mxu1 %v24252_v55  ;;  %v22216_v33 = vpop.f32.mrb[153].mxu0 }
0x20f1   : > { %v16039_v52 = vpop.f32.mrb[154].mxu0  ;;  %v23729_v33 = vld [vmem:[%s27157_s5] sm:$0xff]  }
0x20f2   : > { %v16067_v53 = vpack.c.bf16 %v16039_v52, %v16036_v51  ;;  %v22217_v54 = vpop.f32.mrb[155].mxu0  ;;  %v23734_v52 = vld [vmem:[%s27158_s9 + $0x20] sm:$0xff]  }
0x20f3   : > { %22245 = vmatpush3.bf16.msra.mxu1 %v23698_v35  ;;  %v23730_v54 = vld [vmem:[%s27157_s5 + $0x8] sm:$0xff]  }
0x20f4   : > { %22246 = vmatprep.subr.bf16.mxu1 %v24252_v55  ;;  %v16308_v16 = vrot.slane %v16067_v53, 4 }
0x20f7   : > { %22247 = vmatpush3.bf16.msra.mxu1 %v23699_v56  ;;  %v16044_v57 = vpop.f32.mrb[156].mxu0  ;;  %v23736_v56 = vld [vmem:[%s27158_s9 + $0x30] sm:$0xff]  }
0x20f8   : > { %22248 = vmatprep.subr.bf16.mxu1 %v24252_v55  ;;  %v22220_v58 = vpop.f32.mrb[157].mxu0 }
0x20f9   : > { %v16047_v59 = vpop.f32.mrb[158].mxu0  ;;  %v23733_v58 = vld [vmem:[%s27157_s5 + $0x20] ss:$0 sps:$4 sm:$0xff]  }
0x20fa   : > { %v26493_v27 = vpack.c.bf16 %v16047_v59, %v16044_v57  ;;  %v22221_v61 = vpop.f32.mrb[159].mxu0  ;;  %v23732_v57 = vld [vmem:[%s27157_s5 + $0x18] sm:$0xff]  }
0x20fb   : > { %22249 = vmatpush3.bf16.msra.mxu1 %v23700_v62  ;;  %v23731_v62 = vld [vmem:[%s27157_s5 + $0x10] sm:$0xff]   ;;  %v23737_v59 = vld [vmem:[%s27158_s9 + $0x38] sm:$0xff]   ;;  %v23756_v61 = vld [vmem:[%s27158_s9 + $0xa8] sm:$0xff]   ;;  %s27160_s5 = sld [smem:[#allocation79_spill]] }
0x20fc   : > { %22254 = vmatprep.subr.bf16.mxu1 %v24252_v55  ;;  %v16462_v28 = vrot.slane %v26493_v27, 4 }
0x20fe   : > { %22251 = vmatmul.mubr.msk.bf16.vlgmr.msra.gmra.mrb[128].mxu1 %vm3606_vm1, %v16066_v49 }
0x20ff   : > { %22255 = vmatpush3.bf16.msra.mxu1 %v23701_v60  ;;  %22262 = vmatprep.mubr.msk.bf16.mxu1 %vm24253_vm4, %v24252_v55  ;;  %v16052_v1 = vpop.f32.mrb[160].mxu0  ;;  %v23758_v60 = vld [vmem:[%s27158_s9 + $0xb0] sm:$0xff]  }
0x2100   : > { %22256 = vmatprep.subr.bf16.mxu1 %v24252_v55  ;;  %v22224_v2 = vpop.f32.mrb[161].mxu0 }
0x2101   : > { %v16055_v3 = vpop.f32.mrb[162].mxu0 }
0x2102   : > { %v26502_v4 = vpack.c.bf16 %v16055_v3, %v16052_v1  ;;  %v22225_v5 = vpop.f32.mrb[163].mxu0 }
0x2103   : > { %22257 = vmatpush3.bf16.msra.mxu1 %v23702_v63  ;;  %v23760_v63 = vld [vmem:[%s27158_s9 + $0xb8] sm:$0xff]  }
0x2104   : > { %22258 = vmatprep.subr.bf16.mxu1 %v24252_v55  ;;  %v16616_v38 = vrot.slane %v26502_v4, 4 }
0x2107   : > { %22259 = vmatpush3.bf16.msra.mxu1 %v23703_v0  ;;  %v26507_v7 = vpop.f32.mrb[164].mxu0  ;;  %v23738_v0 = vld [vmem:[%s27158_s9] sm:$0xff]  }
0x2108   : > { %22260 = vmatprep.subr.bf16.mxu1 %v24252_v55  ;;  %v22228_v8 = vpop.f32.mrb[165].mxu0  ;;  %v16070_v42 = vpack.c.bf16 %v26507_v7, %v26507_v7  ;;  %v23739_v7 = vld [vmem:[%s27158_s9 + $0x8] sm:$0xff]  }
0x2109   : > { %v16063_v9 = vpop.f32.mrb[166].mxu0 }
0x210a   : > { %v22229_v10 = vpop.f32.mrb[167].mxu0 }
0x210b   : > { %22261 = vmatpush3.bf16.msra.mxu1 %v23704_v43 }
0x210c   : > { %22266 = vmatprep.subr.bf16.mxu1 %v24252_v55 }
0x210e   : > { %22263 = vmatmul.mubr.msk.bf16.vlgmr.msra.gmra.mrb[128].mxu1 %vm3606_vm1, %v16067_v53  ;;  %v23735_v53 = vld [vmem:[%s27158_s9 + $0x28] sm:$0xff]  }
0x210f   : > { %22267 = vmatpush3.bf16.msra.mxu1 %v23705_v11  ;;  %22274 = vmatprep.mubr.msk.bf16.mxu1 %vm24253_vm4, %v24252_v55 }
0x2110   : > { %22268 = vmatprep.subr.bf16.mxu1 %v24252_v55 }
0x2113   : > { %22269 = vmatpush3.bf16.msra.mxu1 %v23706_v47 }
0x2114   : > { %22270 = vmatprep.subr.bf16.mxu1 %v24252_v55 }
0x2117   : > { %22271 = vmatpush3.bf16.msra.mxu1 %v23707_v12  ;;  %v23740_v12 = vld [vmem:[%s27158_s9 + $0x10] sm:$0xff]  }
0x2118   : > { %22272 = vmatprep.subr.bf16.mxu1 %v24252_v55 }
0x211b   : > { %22273 = vmatpush3.bf16.msra.mxu1 %v23708_v14  ;;  %v23741_v14 = vld [vmem:[%s27158_s9 + $0x18] sm:$0xff]  }
0x211c   : > { %22278 = vmatprep.subr.bf16.mxu1 %v24252_v55 }
0x211e   : > { %22275 = vmatmul.mubr.msk.bf16.vlgmr.msra.gmra.mrb[128].mxu1 %vm3606_vm1, %v16308_v16 }
0x211f   : > { %22279 = vmatpush3.bf16.msra.mxu1 %v23709_v15  ;;  %22286 = vmatprep.mubr.msk.bf16.mxu1 %vm24253_vm4, %v24252_v55 }
0x2120   : > { %22280 = vmatprep.subr.bf16.mxu1 %v24252_v55 }
0x2123   : > { %22281 = vmatpush3.bf16.msra.mxu1 %v23710_v17 }
0x2124   : > { %22282 = vmatprep.subr.bf16.mxu1 %v24252_v55 }
0x2127   : > { %22283 = vmatpush3.bf16.msra.mxu1 %v23711_v18 }
0x2128   : > { %22284 = vmatprep.subr.bf16.mxu1 %v24252_v55 }
0x212b   : > { %22285 = vmatpush3.bf16.msra.mxu1 %v23712_v19 }
0x212c   : > { %22290 = vmatprep.subr.bf16.mxu1 %v24252_v55 }
0x212e   : > { %22287 = vmatmul.mubr.msk.bf16.vlgmr.msra.gmra.mrb[128].mxu1 %vm3606_vm1, %v26493_v27  ;;  %v23754_v27 = vld [vmem:[%s27158_s9 + $0xa0] sm:$0xff]  }
0x212f   : > { %22291 = vmatpush3.bf16.msra.mxu1 %v23713_v22  ;;  %22298 = vmatprep.mubr.msk.bf16.mxu1 %vm24253_vm4, %v24252_v55  ;;  %v23742_v22 = vld [vmem:[%s27158_s9 + $0x40] sm:$0xff]  }
0x2130   : > { %22292 = vmatprep.subr.bf16.mxu1 %v24252_v55 }
0x2133   : > { %22293 = vmatpush3.bf16.msra.mxu1 %v23714_v23 }
0x2134   : > { %22294 = vmatprep.subr.bf16.mxu1 %v24252_v55 }
0x2137   : > { %22295 = vmatpush3.bf16.msra.mxu1 %v23715_v24  ;;  %v23762_v24 = vld [vmem:[%s27158_s9 + $0xe0] sm:$0xff]  }
0x2138   : > { %22296 = vmatprep.subr.bf16.mxu1 %v24252_v55 }
0x213b   : > { %22297 = vmatpush3.bf16.msra.mxu1 %v23716_v25  ;;  %v23743_v25 = vld [vmem:[%s27158_s9 + $0x48] sm:$0xff]  }
0x213c   : > { %22302 = vmatprep.subr.bf16.mxu1 %v24252_v55 }
0x213e   : > { %22299 = vmatmul.mubr.msk.bf16.vlgmr.msra.gmra.mrb[128].mxu1 %vm3606_vm1, %v16462_v28 }
0x213f   : > { %22303 = vmatpush3.bf16.msra.mxu1 %v23717_v26  ;;  %22310 = vmatprep.mubr.msk.bf16.mxu1 %vm24253_vm4, %v24252_v55 }
0x2140   : > { %22304 = vmatprep.subr.bf16.mxu1 %v24252_v55 }
0x2143   : > { %22305 = vmatpush3.bf16.msra.mxu1 %v23718_v29  ;;  %v23764_v29 = vld [vmem:[%s27158_s9 + $0xe8] sm:$0xff]  }
0x2144   : > { %22306 = vmatprep.subr.bf16.mxu1 %v24252_v55 }
0x2147   : > { %22307 = vmatpush3.bf16.msra.mxu1 %v23719_v30 }
0x2148   : > { %22308 = vmatprep.subr.bf16.mxu1 %v24252_v55 }
0x214b   : > { %22309 = vmatpush3.bf16.msra.mxu1 %v23720_v31 }
0x214c   : > { %22314 = vmatprep.subr.bf16.mxu1 %v24252_v55 }
0x214e   : > { %22311 = vmatmul.mubr.msk.bf16.vlgmr.msra.gmra.mrb[128].mxu1 %vm3606_vm1, %v26502_v4 }
0x214f   : > { %22315 = vmatpush3.bf16.msra.mxu1 %v23721_v32  ;;  %22322 = vmatprep.mubr.msk.bf16.mxu1 %vm24253_vm4, %v24252_v55 }
0x2150   : > { %22316 = vmatprep.subr.bf16.mxu1 %v24252_v55 }
0x2153   : > { %22317 = vmatpush3.bf16.msra.mxu1 %v23722_v20  ;;  %v23744_v20 = vld [vmem:[%s27158_s9 + $0x50] sm:$0xff]  }
0x2154   : > { %22318 = vmatprep.subr.bf16.mxu1 %v24252_v55 }
0x2157   : > { %22319 = vmatpush3.bf16.msra.mxu1 %v23723_v34  ;;  %v23766_v34 = vld [vmem:[%s27158_s9 + $0xf0] sm:$0xff]  }
0x2158   : > { %22320 = vmatprep.subr.bf16.mxu1 %v24252_v55 }
0x215b   : > { %22321 = vmatpush3.bf16.msra.mxu1 %v23724_v36  ;;  %v23745_v36 = vld [vmem:[%s27158_s9 + $0x58] sm:$0xff]  }
0x215c   : > { %22326 = vmatprep.subr.bf16.mxu1 %v24252_v55 }
0x215e   : > { %22323 = vmatmul.mubr.msk.bf16.vlgmr.msra.gmra.mrb[128].mxu1 %vm3606_vm1, %v16616_v38  ;;  %v23768_v38 = vld [vmem:[%s27158_s9 + $0xf8] sm:$0xff]  }
0x215f   : > { %22327 = vmatpush3.bf16.msra.mxu1 %v23725_v37  ;;  %22334 = vmatprep.mubr.msk.bf16.mxu1 %vm24253_vm4, %v24252_v55 }
0x2160   : > { %22328 = vmatprep.subr.bf16.mxu1 %v24252_v55 }
0x2163   : > { %22329 = vmatpush3.bf16.msra.mxu1 %v23726_v39 }
0x2164   : > { %22330 = vmatprep.subr.bf16.mxu1 %v24252_v55 }
0x2167   : > { %22331 = vmatpush3.bf16.msra.mxu1 %v23727_v40 }
0x2168   : > { %22332 = vmatprep.subr.bf16.mxu1 %v24252_v55 }
0x216b   : > { %22333 = vmatpush3.bf16.msra.mxu1 %v23728_v41 }
0x216c   : > { %22420 = vmatprep.subr.bf16.mxu1 %v24252_v55 }
0x216e   : > { %22335 = vmatmul.mubr.msk.bf16.vlgmr.msra.gmra.mrb[128].mxu1 %vm3606_vm1, %v16070_v42  ;;  %v23746_v42 = vld [vmem:[%s27158_s9 + $0x60] sm:$0xff]  }
0x216f   : > { %22428 = vmatprep.mubr.msk.bf16.mxu1 %vm24253_vm4, %v24252_v55  ;;  %22421 = vmatpush3.bf16.msra.mxu1 %v23754_v27 }
0x2170   : > { %22422 = vmatprep.subr.bf16.mxu1 %v24252_v55 }
0x2173   : > { %22423 = vmatpush3.bf16.msra.mxu1 %v23756_v61 }
0x2174   : > { %22424 = vmatprep.subr.bf16.mxu1 %v24252_v55 }
0x2177   : > { %22425 = vmatpush3.bf16.msra.mxu1 %v23758_v60 }
0x2178   : > { %22426 = vmatprep.subr.bf16.mxu1 %v24252_v55 }
0x217b   : > { %22427 = vmatpush3.bf16.msra.mxu1 %v23760_v63  ;;  %v23775_v63 = vld [vmem:[%s27159_s4 + $0x20] sm:$0xff]  }
0x217c   : > { %22444 = vmatprep.subr.bf16.mxu1 %v24252_v55 }
0x2241   : > { %v16754_v45 = vpop.f32.mrb[128].mxu1 }
0x2242   : > { %v22604_v13 = vadd.f32 %v19695_v44, %v16754_v45  ;;  %v22336_v48 = vpop.f32.mrb[129].mxu1  ;;  %v23747_v45 = vld [vmem:[%s27158_s9 + $0x68] sm:$0xff]  }
0x2243   : > { %v16757_v49 = vpop.f32.mrb[130].mxu1  ;;  %v23750_v48 = vld [vmem:[%s27158_s9 + $0x80] sm:$0xff]  }
0x2244   : > { %v22605_v21 = vadd.f32 %v22604_v13, %v19754_v46  ;;  %v22337_v50 = vpop.f32.mrb[131].mxu1  ;;  %v23748_v46 = vld [vmem:[%s27158_s9 + $0x70] sm:$0xff]   ;;  %v23749_v13 = vld [vmem:[%s27158_s9 + $0x78] sm:$0xff]  }
0x2245   : > { %v23752_v50 = vld [vmem:[%s27158_s9 + $0x90] sm:$0xff]  }
0x2246   : > { %v16770_v6 = vmax.f32 %v22605_v21, 0.0  ;;  %v23751_v21 = vld [vmem:[%s27158_s9 + $0x88] sm:$0xff]  }
0x2248   : > { %v26586_v35 = vpack.c.bf16 %v16770_v6, %v16770_v6  ;;  %v23753_v6 = vld [vmem:[%s27158_s9 + $0x98] sm:$0xff]  }
0x224a   : > { %v16820_v51 = vsel %vm4087_vm2, %v26586_v35, 0 }
0x224b   : > { %22339 = vmatpush3.bf16.msra.mxu0 %v16820_v51  ;;  %v23755_v51 = vld [vmem:[%s27158_s9 + $0xc0] sm:$0xff]  }
0x224c   : > { %22360 = vmatprep.subr.bf16.mxu0 %v24252_v55 }
0x224e   : > { %22341 = vmatmul.mubr.msk.bf16.vlgmr.msra.gmra.mrb[168].mxu0 %vm4074_vm3, %v23729_v33  ;;  %v23757_v33 = vld [vmem:[%s27158_s9 + $0xc8] sm:$0xff]  }
0x224f   : > { %22344 = vmatprep.mubr.msk.bf16.mxu0 %vm24253_vm4, %v24252_v55  ;;  %22361 = vmatpush3.bf16.msra.mxu0 %v23734_v52  ;;  %v23759_v52 = vld [vmem:[%s27158_s9 + $0xd0] sm:$0xff]  }
0x2250   : > { %22362 = vmatprep.subr.bf16.mxu0 %v24252_v55 }
0x2253   : > { %22363 = vmatpush3.bf16.msra.mxu0 %v23735_v53  ;;  %v23761_v53 = vld [vmem:[%s27158_s9 + $0xd8] sm:$0xff]  }
0x2254   : > { %22364 = vmatprep.subr.bf16.mxu0 %v24252_v55 }
0x2256   : > { %22345 = vmatmul.mubr.msk.bf16.gmra.mrb[172].mxu0 %vm4074_vm3, %v23730_v54  ;;  %v23763_v54 = vld [vmem:[%s27158_s9 + $0x100] sm:$0xff]  }
0x2257   : > { %22348 = vmatprep.mubr.msk.bf16.mxu0 %vm24253_vm4, %v24252_v55  ;;  %22365 = vmatpush3.bf16.msra.mxu0 %v23736_v56  ;;  %v23765_v56 = vld [vmem:[%s27158_s9 + $0x108] sm:$0xff]  }
0x2258   : > { %22366 = vmatprep.subr.bf16.mxu0 %v24252_v55 }
0x225b   : > { %22367 = vmatpush3.bf16.msra.mxu0 %v23737_v59 }
0x225c   : > { %22372 = vmatprep.subr.bf16.mxu0 %v24252_v55 }
0x225e   : > { %22349 = vmatmul.mubr.msk.bf16.gmra.mrb[176].mxu0 %vm4074_vm3, %v23731_v62  ;;  %v23767_v62 = vld [vmem:[%s27158_s9 + $0x110] sm:$0xff]  }
0x225f   : > { %22352 = vmatprep.mubr.msk.bf16.mxu0 %vm24253_vm4, %v24252_v55 }
0x2266   : > { %22353 = vmatmul.mubr.msk.bf16.gmra.mrb[184].mxu0 %vm4074_vm3, %v23732_v57  ;;  %v23769_v57 = vld [vmem:[%s27158_s9 + $0x118] sm:$0xff]   ;;  %s19871_s9 = sshll.u32 %s24610_s0, 6 }
0x2267   : > { %22356 = vmatprep.mubr.msk.bf16.mxu0 %vm24253_vm4, %v24252_v55  ;;  %s26856_s10 = scalar_lea.hbm %s24582_s19, %s19871_s9 }
0x226e   : > { %22357 = vmatmul.mubr.msk.bf16.gmra.mrb[188].mxu0 %vm4074_vm3, %v23733_v58 }
0x226f   : > { %22368 = vmatprep.mubr.msk.bf16.mxu0 %vm24253_vm4, %v24252_v55 }
0x2321   : > { %v16856_v1 = vpop.f32.mrb[168].mxu0 }
0x2322   : > { %v22342_v2 = vpop.f32.mrb[169].mxu0 }
0x2323   : > { %v16859_v3 = vpop.f32.mrb[170].mxu0 }
0x2324   : > { %v16894_v4 = vpack.c.bf16 %v16859_v3, %v16856_v1  ;;  %v22343_v5 = vpop.f32.mrb[171].mxu0  ;;  %v23776_v1 = vld [vmem:[%s27159_s4 + $0x28] sm:$0xff]  }
0x2326   : > { %v16916_v43 = vrot.slane %v16894_v4, 4 }
0x2328   : > { %22369 = vmatmul.mubr.msk.bf16.vlgmr.msra.gmra.mrb[192].mxu0 %vm3606_vm1, %v16916_v43 }
0x2329   : > { %22373 = vmatpush3.bf16.msra.mxu0 %v23738_v0  ;;  %22380 = vmatprep.mubr.msk.bf16.mxu0 %vm24253_vm4, %v24252_v55  ;;  %v16864_v8 = vpop.f32.mrb[172].mxu0 }
0x232a   : > { %22374 = vmatprep.subr.bf16.mxu0 %v24252_v55  ;;  %v22346_v9 = vpop.f32.mrb[173].mxu0 }
0x232b   : > { %v16867_v10 = vpop.f32.mrb[174].mxu0 }
0x232c   : > { %v26633_v11 = vpack.c.bf16 %v16867_v10, %v16864_v8  ;;  %v22347_v47 = vpop.f32.mrb[175].mxu0  ;;  %v23777_v10 = vld [vmem:[%s27159_s4 + $0x30] sm:$0xff]  }
0x232d   : > { %22375 = vmatpush3.bf16.msra.mxu0 %v23739_v7 }
0x232e   : > { %22376 = vmatprep.subr.bf16.mxu0 %v24252_v55  ;;  %v17136_v49 = vrot.slane %v26633_v11, 4 }
0x2331   : > { %22377 = vmatpush3.bf16.msra.mxu0 %v23740_v12  ;;  %v16872_v15 = vpop.f32.mrb[176].mxu0 }
0x2332   : > { %22378 = vmatprep.subr.bf16.mxu0 %v24252_v55  ;;  %v22350_v16 = vpop.f32.mrb[177].mxu0 }
0x2333   : > { %v16875_v17 = vpop.f32.mrb[178].mxu0 }
0x2334   : > { %v26639_v18 = vpack.c.bf16 %v16875_v17, %v16872_v15  ;;  %v22351_v19 = vpop.f32.mrb[179].mxu0 }
0x2335   : > { %22379 = vmatpush3.bf16.msra.mxu0 %v23741_v14 }
0x2336   : > { %22384 = vmatprep.subr.bf16.mxu0 %v24252_v55  ;;  %v17290_v23 = vrot.slane %v26639_v18, 4 }
0x2338   : > { %22381 = vmatmul.mubr.msk.bf16.vlgmr.msra.gmra.mrb[196].mxu0 %vm3606_vm1, %v16894_v4  ;;  %22429 = vmatmul.mubr.msk.bf16.vlgmr.msra.gmra.mrb[132].mxu1 %vm3606_vm1, %v17290_v23 }
0x2339   : > { %22385 = vmatpush3.bf16.msra.mxu0 %v23742_v22  ;;  %22392 = vmatprep.mubr.msk.bf16.mxu0 %vm24253_vm4, %v24252_v55  ;;  %v16880_v26 = vpop.f32.mrb[184].mxu0 }
0x233a   : > { %22386 = vmatprep.subr.bf16.mxu0 %v24252_v55  ;;  %v22354_v28 = vpop.f32.mrb[185].mxu0  ;;  %22445 = vmatpush3.bf16.msra.mxu1 %v23762_v24 }
0x233b   : > { %v16883_v30 = vpop.f32.mrb[186].mxu0  ;;  %22446 = vmatprep.subr.bf16.mxu1 %v24252_v55  ;;  %22452 = vmatprep.mubr.msk.bf16.mxu1 %vm24253_vm4, %v24252_v55 }
0x233c   : > { %v26655_v31 = vpack.c.bf16 %v16883_v30, %v16880_v26  ;;  %v22355_v32 = vpop.f32.mrb[187].mxu0 }
0x233d   : > { %22387 = vmatpush3.bf16.msra.mxu0 %v23743_v25 }
0x233e   : > { %22388 = vmatprep.subr.bf16.mxu0 %v24252_v55  ;;  %22447 = vmatpush3.bf16.msra.mxu1 %v23764_v29  ;;  %v17444_v44 = vrot.slane %v26655_v31, 4 }
0x233f   : > { %22448 = vmatprep.subr.bf16.mxu1 %v24252_v55 }
0x2341   : > { %22389 = vmatpush3.bf16.msra.mxu0 %v23744_v20  ;;  %v26662_v37 = vpop.f32.mrb[188].mxu0 }
0x2342   : > { %22390 = vmatprep.subr.bf16.mxu0 %v24252_v55  ;;  %22449 = vmatpush3.bf16.msra.mxu1 %v23766_v34  ;;  %v22358_v39 = vpop.f32.mrb[189].mxu0  ;;  %v16898_v58 = vpack.c.bf16 %v26662_v37, %v26662_v37 }
0x2343   : > { %22450 = vmatprep.subr.bf16.mxu1 %v24252_v55  ;;  %v16891_v40 = vpop.f32.mrb[190].mxu0 }
0x2344   : > { %v22359_v41 = vpop.f32.mrb[191].mxu0 }
0x2345   : > { %22391 = vmatpush3.bf16.msra.mxu0 %v23745_v36 }
0x2346   : > { %22396 = vmatprep.subr.bf16.mxu0 %v24252_v55  ;;  %22451 = vmatpush3.bf16.msra.mxu1 %v23768_v38 }
0x2347   : > { %22468 = vmatprep.subr.bf16.mxu1 %v24252_v55 }
0x2348   : > { %22393 = vmatmul.mubr.msk.bf16.vlgmr.msra.gmra.mrb[200].mxu0 %vm3606_vm1, %v26633_v11 }
0x2349   : > { %22397 = vmatpush3.bf16.msra.mxu0 %v23746_v42  ;;  %22404 = vmatprep.mubr.msk.bf16.mxu0 %vm24253_vm4, %v24252_v55  ;;  %v19810_v42 = vld [vmem:[#allocation13] ss:$0 sm:$0xff] }
0x234a   : > { %22398 = vmatprep.subr.bf16.mxu0 %v24252_v55  ;;  %22453 = vmatmul.mubr.msk.bf16.vlgmr.msra.gmra.mrb[136].mxu1 %vm3606_vm1, %v17444_v44 }
0x234b   : > { %22470 = vmatprep.mubr.msk.bf16.mxu1 %vm24253_vm4, %v24252_v55 }
0x234d   : > { %22399 = vmatpush3.bf16.msra.mxu0 %v23747_v45 }
0x234e   : > { %22400 = vmatprep.subr.bf16.mxu0 %v24252_v55 }
0x2351   : > { %22401 = vmatpush3.bf16.msra.mxu0 %v23748_v46 }
0x2352   : > { %22402 = vmatprep.subr.bf16.mxu0 %v24252_v55 }
0x2355   : > { %22403 = vmatpush3.bf16.msra.mxu0 %v23749_v13 }
0x2356   : > { %22408 = vmatprep.subr.bf16.mxu0 %v24252_v55 }
0x2358   : > { %22405 = vmatmul.mubr.msk.bf16.vlgmr.msra.gmra.mrb[204].mxu0 %vm3606_vm1, %v17136_v49 }
0x2359   : > { %22409 = vmatpush3.bf16.msra.mxu0 %v23750_v48  ;;  %22416 = vmatprep.mubr.msk.bf16.mxu0 %vm24253_vm4, %v24252_v55 }
0x235a   : > { %22410 = vmatprep.subr.bf16.mxu0 %v24252_v55 }
0x235d   : > { %22411 = vmatpush3.bf16.msra.mxu0 %v23751_v21 }
0x235e   : > { %22412 = vmatprep.subr.bf16.mxu0 %v24252_v55 }
0x2361   : > { %22413 = vmatpush3.bf16.msra.mxu0 %v23752_v50 }
0x2362   : > { %22414 = vmatprep.subr.bf16.mxu0 %v24252_v55 }
0x2365   : > { %22415 = vmatpush3.bf16.msra.mxu0 %v23753_v6  ;;  %v23770_v6 = vld [vmem:[%s27160_s5] sm:$0xff]  }
0x2366   : > { %22432 = vmatprep.subr.bf16.mxu0 %v24252_v55 }
0x2368   : > { %22417 = vmatmul.mubr.msk.bf16.vlgmr.msra.gmra.mrb[208].mxu0 %vm3606_vm1, %v26639_v18 }
0x2369   : > { %22433 = vmatpush3.bf16.msra.mxu0 %v23755_v51  ;;  %22440 = vmatprep.mubr.msk.bf16.mxu0 %vm24253_vm4, %v24252_v55  ;;  %v23771_v51 = vld [vmem:[%s27160_s5 + $0x8] sm:$0xff]  }
0x236a   : > { %22434 = vmatprep.subr.bf16.mxu0 %v24252_v55 }
0x236d   : > { %22435 = vmatpush3.bf16.msra.mxu0 %v23757_v33  ;;  %v23772_v33 = vld [vmem:[%s27160_s5 + $0x10] sm:$0xff]  }
0x236e   : > { %22436 = vmatprep.subr.bf16.mxu0 %v24252_v55 }
0x2371   : > { %22437 = vmatpush3.bf16.msra.mxu0 %v23759_v52  ;;  %v23773_v52 = vld [vmem:[%s27160_s5 + $0x18] sm:$0xff]  }
0x2372   : > { %22438 = vmatprep.subr.bf16.mxu0 %v24252_v55 }
0x2375   : > { %22439 = vmatpush3.bf16.msra.mxu0 %v23761_v53  ;;  %v23774_v53 = vld [vmem:[%s27160_s5 + $0x20] ss:$0 sps:$4 sm:$0xff]   ;;  %s18439_s5 = sand.u32 1, %s24610_s0  }
0x2376   : > { %22456 = vmatprep.subr.bf16.mxu0 %v24252_v55  ;;  %s26862_s13 = scalar_lea.sflag [#allocation18], %s18439_s5 }
0x2378   : > { %22441 = vmatmul.mubr.msk.bf16.vlgmr.msra.gmra.mrb[212].mxu0 %vm3606_vm1, %v26655_v31 }
0x2379   : > { %22457 = vmatpush3.bf16.msra.mxu0 %v23763_v54  ;;  %22464 = vmatprep.mubr.msk.bf16.mxu0 %vm24253_vm4, %v24252_v55  ;;  %v23778_v54 = vld [vmem:[%s27159_s4 + $0x38] sm:$0xff]  }
0x237a   : > { %22458 = vmatprep.subr.bf16.mxu0 %v24252_v55 }
0x237d   : > { %22459 = vmatpush3.bf16.msra.mxu0 %v23765_v56  ;;  %v23780_v56 = vld [vmem:[%s27159_s4 + $0x40] sm:$0xff]  }
0x237e   : > { %22460 = vmatprep.subr.bf16.mxu0 %v24252_v55 }
0x2381   : > { %22461 = vmatpush3.bf16.msra.mxu0 %v23767_v62  ;;  %v23782_v62 = vld [vmem:[%s27159_s4 + $0x48] sm:$0xff]  }
0x2382   : > { %22462 = vmatprep.subr.bf16.mxu0 %v24252_v55 }
0x2385   : > { %22463 = vmatpush3.bf16.msra.mxu0 %v23769_v57  ;;  %v23784_v57 = vld [vmem:[%s27159_s4 + $0x50] sm:$0xff]  }
0x2386   : > { %22490 = vmatprep.subr.bf16.mxu0 %v24252_v55 }
0x2388   : > { %22465 = vmatmul.mubr.msk.bf16.vlgmr.msra.gmra.mrb[216].mxu0 %vm3606_vm1, %v16898_v58  ;;  %v23786_v58 = vld [vmem:[%s27159_s4 + $0x58] sm:$0xff]  }
0x2389   : > { %22498 = vmatprep.mubr.msk.bf16.mxu0 %vm24253_vm4, %v24252_v55  ;;  %22491 = vmatpush3.bf16.msra.mxu0 %v23775_v63 }
0x238a   : > { %22492 = vmatprep.subr.bf16.mxu0 %v24252_v55 }
0x238d   : > { %22493 = vmatpush3.bf16.msra.mxu0 %v23776_v1  ;;  %v23779_v1 = vld [vmem:[%s27159_s4] sm:$0xff]  }
0x238e   : > { %22494 = vmatprep.subr.bf16.mxu0 %v24252_v55 }
0x2391   : > { %22495 = vmatpush3.bf16.msra.mxu0 %v23777_v10  ;;  %v23790_v10 = vld [vmem:[%s27159_s4 + $0x88] sm:$0xff]  }
0x2392   : > { %22496 = vmatprep.subr.bf16.mxu0 %v24252_v55 }
0x2395   : > { %22497 = vmatpush3.bf16.msra.mxu0 %v23778_v54 }
0x2396   : > { %22502 = vmatprep.subr.bf16.mxu0 %v24252_v55 }
0x23fb   : > { %v16978_v59 = vpop.f32.mrb[192].mxu0 }
0x23fc   : > { %v22370_v27 = vpop.f32.mrb[193].mxu0 }
0x23fd   : > { %v16981_v61 = vpop.f32.mrb[194].mxu0 }
0x23fe   : > { %v22371_v60 = vpop.f32.mrb[195].mxu0 }
0x240b   : > { %v17045_v2 = vpop.f32.mrb[196].mxu0  ;;  %v17352_v3 = vpop.f32.mrb[132].mxu1 }
0x240c   : > { %v17046_v4 = vadd.f32 %v17045_v2, %v16978_v59  ;;  %v22382_v5 = vpop.f32.mrb[197].mxu0  ;;  %v22430_v0 = vpop.f32.mrb[133].mxu1 }
0x240d   : > { %v17048_v43 = vpop.f32.mrb[198].mxu0  ;;  %v17355_v7 = vpop.f32.mrb[134].mxu1 }
0x240e   : > { %v22383_v8 = vpop.f32.mrb[199].mxu0  ;;  %v22431_v9 = vpop.f32.mrb[135].mxu1  ;;  %v23788_v43 = vld [vmem:[%s27159_s4 + $0x80] sm:$0xff]  }
0x240f   : > { %v23783_v9 = vld [vmem:[%s27159_s4 + $0x10] sm:$0xff]  }
0x241b   : > { %v17120_v11 = vpop.f32.mrb[200].mxu0 }
0x241c   : > { %v17126_v47 = vadd.f32 %v17120_v11, %v17046_v4  ;;  %v22394_v12 = vpop.f32.mrb[201].mxu0  ;;  %v23785_v11 = vld [vmem:[%s27159_s4 + $0x18] sm:$0xff]  }
0x241d   : > { %v17123_v14 = vpop.f32.mrb[202].mxu0  ;;  %v17506_v15 = vpop.f32.mrb[136].mxu1 }
0x241e   : > { %v22395_v16 = vpop.f32.mrb[203].mxu0  ;;  %v22454_v17 = vpop.f32.mrb[137].mxu1  ;;  %v23792_v14 = vld [vmem:[%s27159_s4 + $0x90] sm:$0xff]  }
0x241f   : > { %v17509_v18 = vpop.f32.mrb[138].mxu1 }
0x2420   : > { %v22455_v19 = vpop.f32.mrb[139].mxu1  ;;  %v23787_v18 = vld [vmem:[%s27159_s4 + $0x60] sm:$0xff]  }
0x2421   : > { %v23794_v19 = vld [vmem:[%s27159_s4 + $0x98] sm:$0xff]  }
0x242b   : > { %v17198_v22 = vpop.f32.mrb[204].mxu0 }
0x242c   : > { %v17204_v23 = vadd.f32 %v17198_v22, %v17126_v47  ;;  %v22406_v24 = vpop.f32.mrb[205].mxu0  ;;  %v23789_v22 = vld [vmem:[%s27159_s4 + $0x68] sm:$0xff]  }
0x242d   : > { %v17201_v25 = vpop.f32.mrb[206].mxu0 }
0x242e   : > { %v22407_v26 = vpop.f32.mrb[207].mxu0  ;;  %v23796_v25 = vld [vmem:[%s27159_s4 + $0xc0] sm:$0xff]  }
0x243b   : > { %v17274_v28 = vpop.f32.mrb[208].mxu0 }
0x243c   : > { %v17280_v29 = vadd.f32 %v17274_v28, %v17204_v23  ;;  %v22418_v30 = vpop.f32.mrb[209].mxu0 }
0x243d   : > { %v17277_v31 = vpop.f32.mrb[210].mxu0  ;;  %v23791_v30 = vld [vmem:[%s27159_s4 + $0x70] sm:$0xff]  }
0x243e   : > { %v17358_v32 = vadd.f32 %v17352_v3, %v17280_v29  ;;  %v22419_v20 = vpop.f32.mrb[211].mxu0  ;;  %v23781_v3 = vld [vmem:[%s27159_s4 + $0x8] sm:$0xff]  }
0x243f   : > { %v23798_v31 = vld [vmem:[%s27159_s4 + $0xc8] sm:$0xff]  }
0x244b   : > { %v17428_v34 = vpop.f32.mrb[212].mxu0 }
0x244c   : > { %v17434_v36 = vadd.f32 %v17428_v34, %v17358_v32  ;;  %v22442_v37 = vpop.f32.mrb[213].mxu0  ;;  %v23793_v32 = vld [vmem:[%s27159_s4 + $0x78] sm:$0xff]  }
0x244d   : > { %v17431_v38 = vpop.f32.mrb[214].mxu0 }
0x244e   : > { %v17512_v39 = vadd.f32 %v17506_v15, %v17434_v36  ;;  %v22443_v40 = vpop.f32.mrb[215].mxu0  ;;  %v23800_v36 = vld [vmem:[%s27159_s4 + $0xd0] sm:$0xff]  }
0x245b   : > { %v17582_v41 = vpop.f32.mrb[216].mxu0 }
0x245c   : > { %v17588_v44 = vadd.f32 %v17582_v41, %v17512_v39  ;;  %v22466_v45 = vpop.f32.mrb[217].mxu0  ;;  %v23795_v39 = vld [vmem:[%s27159_s4 + $0xa0] sm:$0xff]   ;;  %v23802_v41 = vld [vmem:[%s27159_s4 + $0xd8] sm:$0xff]  }
0x245d   : > { %v17585_v46 = vpop.f32.mrb[218].mxu0  ;;  %v23799_v45 = vld [vmem:[%s27159_s4 + $0xb0] sm:$0xff]  }
0x245e   : > { %v17596_v13 = vadd.f32 %v19810_v42, %v17588_v44  ;;  %v22467_v48 = vpop.f32.mrb[219].mxu0  ;;  %v23797_v42 = vld [vmem:[%s27159_s4 + $0xa8] sm:$0xff]   ;;  %v23804_v44 = vld [vmem:[%s27159_s4 + $0x100] sm:$0xff]  }
0x245f   : > { %v23806_v46 = vld [vmem:[%s27159_s4 + $0x108] sm:$0xff]   ;;  %v23808_v48 = vld [vmem:[%s27159_s4 + $0x110] sm:$0xff]  }
0x2460   : > { %v17597_v49 = vmax.f32 %v17596_v13, 0.0  ;;  %v23801_v13 = vld [vmem:[%s27159_s4 + $0xb8] sm:$0xff]  }
0x2462   : > { %v17599_v21 = vpack.c.bf16 %v17597_v49, %v17597_v49  ;;  %v23803_v49 = vld [vmem:[%s27159_s4 + $0xe0] sm:$0xff]  }
0x2464   : > { %v17648_v50 = vsel %vm4087_vm2, %v17599_v21, 0 }
0x2465   : > { %22469 = vmatpush3.bf16.msra.mxu1 %v17648_v50  ;;  %v23810_v50 = vld [vmem:[%s27159_s4 + $0x118] sm:$0xff]  }
0x2466   : > { %22514 = vmatprep.subr.bf16.mxu1 %v24252_v55 }
0x2468   : > { %22471 = vmatmul.mubr.msk.bf16.vlgmr.msra.gmra.mrb[140].mxu1 %vm4074_vm3, %v23770_v6  ;;  %v23805_v6 = vld [vmem:[%s27159_s4 + $0xe8] sm:$0xff]  }
0x2469   : > { %22474 = vmatprep.mubr.msk.bf16.mxu1 %vm24253_vm4, %v24252_v55  ;;  %22515 = vmatpush3.bf16.msra.mxu1 %v23780_v56 }
0x246a   : > { %22516 = vmatprep.subr.bf16.mxu1 %v24252_v55 }
0x246d   : > { %22517 = vmatpush3.bf16.msra.mxu1 %v23782_v62 }
0x246e   : > { %22518 = vmatprep.subr.bf16.mxu1 %v24252_v55 }
0x2470   : > { %22475 = vmatmul.mubr.msk.bf16.gmra.mrb[144].mxu1 %vm4074_vm3, %v23771_v51 }
0x2471   : > { %22478 = vmatprep.mubr.msk.bf16.mxu1 %vm24253_vm4, %v24252_v55  ;;  %22519 = vmatpush3.bf16.msra.mxu1 %v23784_v57 }
0x2472   : > { %22520 = vmatprep.subr.bf16.mxu1 %v24252_v55 }
0x2475   : > { %22521 = vmatpush3.bf16.msra.mxu1 %v23786_v58 }
0x2476   : > { %22538 = vmatprep.subr.bf16.mxu1 %v24252_v55 }
0x2478   : > { %22479 = vmatmul.mubr.msk.bf16.gmra.mrb[148].mxu1 %vm4074_vm3, %v23772_v33  ;;  %v23807_v33 = vld [vmem:[%s27159_s4 + $0xf0] sm:$0xff]  }
0x2479   : > { %22482 = vmatprep.mubr.msk.bf16.mxu1 %vm24253_vm4, %v24252_v55 }
0x2480   : > { %22483 = vmatmul.mubr.msk.bf16.gmra.mrb[152].mxu1 %vm4074_vm3, %v23773_v52  ;;  %v23809_v52 = vld [vmem:[%s27159_s4 + $0xf8] sm:$0xff]   ;;  %s24035_s4 = scalar_lea.vmem %s26859_s11, 64 }
0x2481   : > { %22486 = vmatprep.mubr.msk.bf16.mxu1 %vm24253_vm4, %v24252_v55  ;;  %p24036_p8 = scmp.ne.s32.totalorder %s26859_s11, %s24035_s4  ;;  %p24043_p0 = scmp.lt.s32.totalorder %s24041_s16, %s24035_s4 }
0x2483   : > { %p24037_p13 = pnand %p24036_p8, %p27161_p11  ;;  %p24044_p3 = por %p24043_p0, %p24042_p2 }
0x2485   : > { %p24038_p1 = pneg %p24037_p13 }
0x2487   : > { %p24045_p4 = pnand %p24044_p3, %p24038_p1 }
0x2488   : > { %22487 = vmatmul.mubr.msk.bf16.gmra.mrb[156].mxu1 %vm4074_vm3, %v23774_v53 }
0x2489   : > { %22522 = vmatprep.mubr.msk.bf16.mxu1 %vm24253_vm4, %v24252_v55 }
0x253b   : > { %v17684_v59 = vpop.f32.mrb[140].mxu1 }
0x253c   : > { %v22472_v27 = vpop.f32.mrb[141].mxu1 }
0x253d   : > { %v17687_v61 = vpop.f32.mrb[142].mxu1 }
0x253e   : > { %v17722_v60 = vpack.c.bf16 %v17687_v61, %v17684_v59  ;;  %v22473_v63 = vpop.f32.mrb[143].mxu1 }
0x2540   : > { %v17744_v2 = vrot.slane %v17722_v60, 4 }
0x2542   : > { %22499 = vmatmul.mubr.msk.bf16.vlgmr.msra.gmra.mrb[180].mxu0 %vm3606_vm1, %v17744_v2 }
0x2543   : > { %22503 = vmatpush3.bf16.msra.mxu0 %v23779_v1  ;;  %v17692_v4 = vpop.f32.mrb[144].mxu1  ;;  %22510 = vmatprep.mubr.msk.bf16.mxu0 %vm24253_vm4, %v24252_v55 }
0x2544   : > { %22504 = vmatprep.subr.bf16.mxu0 %v24252_v55  ;;  %v22476_v5 = vpop.f32.mrb[145].mxu1 }
0x2545   : > { %v17695_v0 = vpop.f32.mrb[146].mxu1 }
0x2546   : > { %v26771_v7 = vpack.c.bf16 %v17695_v0, %v17692_v4  ;;  %v22477_v8 = vpop.f32.mrb[147].mxu1 }
0x2547   : > { %22505 = vmatpush3.bf16.msra.mxu0 %v23781_v3 }
0x2548   : > { %22506 = vmatprep.subr.bf16.mxu0 %v24252_v55  ;;  %22523 = vmatmul.mubr.msk.bf16.vlgmr.msra.gmra.mrb[160].mxu1 %vm3606_vm1, %v26771_v7  ;;  %v17964_v40 = vrot.slane %v26771_v7, 4 }
0x2549   : > { %22539 = vmatpush3.bf16.msra.mxu1 %v23788_v43  ;;  %22546 = vmatprep.mubr.msk.bf16.mxu1 %vm24253_vm4, %v24252_v55 }
0x254a   : > { %22540 = vmatprep.subr.bf16.mxu1 %v24252_v55 }
0x254b   : > { %22507 = vmatpush3.bf16.msra.mxu0 %v23783_v9  ;;  %v17700_v47 = vpop.f32.mrb[148].mxu1 }
0x254c   : > { %22508 = vmatprep.subr.bf16.mxu0 %v24252_v55  ;;  %v22480_v12 = vpop.f32.mrb[149].mxu1 }
0x254d   : > { %22541 = vmatpush3.bf16.msra.mxu1 %v23790_v10  ;;  %v17703_v15 = vpop.f32.mrb[150].mxu1 }
0x254e   : > { %22542 = vmatprep.subr.bf16.mxu1 %v24252_v55  ;;  %v26785_v16 = vpack.c.bf16 %v17703_v15, %v17700_v47  ;;  %v22481_v17 = vpop.f32.mrb[151].mxu1 }
0x254f   : > { %22509 = vmatpush3.bf16.msra.mxu0 %v23785_v11 }
0x2550   : > { %22526 = vmatprep.subr.bf16.mxu0 %v24252_v55  ;;  %v18118_v21 = vrot.slane %v26785_v16, 4 }
0x2551   : > { %22543 = vmatpush3.bf16.msra.mxu1 %v23792_v14 }
0x2552   : > { %22511 = vmatmul.mubr.msk.bf16.vlgmr.msra.gmra.mrb[220].mxu0 %vm3606_vm1, %v17722_v60  ;;  %22544 = vmatprep.subr.bf16.mxu1 %v24252_v55 }
0x2553   : > { %22527 = vmatpush3.bf16.msra.mxu0 %v23787_v18  ;;  %22534 = vmatprep.mubr.msk.bf16.mxu0 %vm24253_vm4, %v24252_v55  ;;  %v17708_v23 = vpop.f32.mrb[152].mxu1 }
0x2554   : > { %22528 = vmatprep.subr.bf16.mxu0 %v24252_v55  ;;  %v22484_v24 = vpop.f32.mrb[153].mxu1 }
0x2555   : > { %22545 = vmatpush3.bf16.msra.mxu1 %v23794_v19  ;;  %v17711_v26 = vpop.f32.mrb[154].mxu1 }
0x2556   : > { %22562 = vmatprep.subr.bf16.mxu1 %v24252_v55  ;;  %v26798_v28 = vpack.c.bf16 %v17711_v26, %v17708_v23  ;;  %v22485_v29 = vpop.f32.mrb[155].mxu1 }
0x2557   : > { %22529 = vmatpush3.bf16.msra.mxu0 %v23789_v22 }
0x2558   : > { %22530 = vmatprep.subr.bf16.mxu0 %v24252_v55  ;;  %22547 = vmatmul.mubr.msk.bf16.vlgmr.msra.gmra.mrb[164].mxu1 %vm3606_vm1, %v26785_v16  ;;  %v18272_v53 = vrot.slane %v26798_v28, 4 }
0x2559   : > { %22563 = vmatpush3.bf16.msra.mxu1 %v23796_v25  ;;  %22570 = vmatprep.mubr.msk.bf16.mxu1 %vm24253_vm4, %v24252_v55 }
0x255a   : > { %22564 = vmatprep.subr.bf16.mxu1 %v24252_v55 }
0x255b   : > { %22531 = vmatpush3.bf16.msra.mxu0 %v23791_v30  ;;  %v17716_v20 = vpop.f32.mrb[156].mxu1 }
0x255c   : > { %22532 = vmatprep.subr.bf16.mxu0 %v24252_v55  ;;  %v22488_v34 = vpop.f32.mrb[157].mxu1  ;;  %v17726_v51 = vpack.c.bf16 %v17716_v20, %v17716_v20 }
0x255d   : > { %22565 = vmatpush3.bf16.msra.mxu1 %v23798_v31  ;;  %v17719_v37 = vpop.f32.mrb[158].mxu1 }
0x255e   : > { %22566 = vmatprep.subr.bf16.mxu1 %v24252_v55  ;;  %v22489_v38 = vpop.f32.mrb[159].mxu1 }
0x255f   : > { %22533 = vmatpush3.bf16.msra.mxu0 %v23793_v32 }
0x2560   : > { %22550 = vmatprep.subr.bf16.mxu0 %v24252_v55 }
0x2561   : > { %22567 = vmatpush3.bf16.msra.mxu1 %v23800_v36 }
0x2562   : > { %22535 = vmatmul.mubr.msk.bf16.vlgmr.msra.gmra.mrb[224].mxu0 %vm3606_vm1, %v17964_v40  ;;  %22568 = vmatprep.subr.bf16.mxu1 %v24252_v55 }
0x2563   : > { %22551 = vmatpush3.bf16.msra.mxu0 %v23795_v39  ;;  %22558 = vmatprep.mubr.msk.bf16.mxu0 %vm24253_vm4, %v24252_v55 }
0x2564   : > { %22552 = vmatprep.subr.bf16.mxu0 %v24252_v55 }
0x2565   : > { %22569 = vmatpush3.bf16.msra.mxu1 %v23802_v41 }
0x2566   : > { %22586 = vmatprep.subr.bf16.mxu1 %v24252_v55 }
0x2567   : > { %22553 = vmatpush3.bf16.msra.mxu0 %v23797_v42 }
0x2568   : > { %22554 = vmatprep.subr.bf16.mxu0 %v24252_v55  ;;  %22571 = vmatmul.mubr.msk.bf16.vlgmr.msra.gmra.mrb[168].mxu1 %vm3606_vm1, %v26798_v28 }
0x2569   : > { %22587 = vmatpush3.bf16.msra.mxu1 %v23804_v44  ;;  %22594 = vmatprep.mubr.msk.bf16.mxu1 %vm24253_vm4, %v24252_v55 }
0x256a   : > { %22588 = vmatprep.subr.bf16.mxu1 %v24252_v55 }
0x256b   : > { %22555 = vmatpush3.bf16.msra.mxu0 %v23799_v45 }
0x256c   : > { %22556 = vmatprep.subr.bf16.mxu0 %v24252_v55 }
0x256d   : > { %22589 = vmatpush3.bf16.msra.mxu1 %v23806_v46 }
0x256e   : > { %22590 = vmatprep.subr.bf16.mxu1 %v24252_v55 }
0x256f   : > { %22557 = vmatpush3.bf16.msra.mxu0 %v23801_v13 }
0x2570   : > { %22574 = vmatprep.subr.bf16.mxu0 %v24252_v55 }
0x2571   : > { %22591 = vmatpush3.bf16.msra.mxu1 %v23808_v48 }
0x2572   : > { %22559 = vmatmul.mubr.msk.bf16.vlgmr.msra.gmra.mrb[228].mxu0 %vm3606_vm1, %v18118_v21  ;;  %22592 = vmatprep.subr.bf16.mxu1 %v24252_v55 }
0x2573   : > { %22575 = vmatpush3.bf16.msra.mxu0 %v23803_v49  ;;  %22582 = vmatprep.mubr.msk.bf16.mxu0 %vm24253_vm4, %v24252_v55 }
0x2574   : > { %22576 = vmatprep.subr.bf16.mxu0 %v24252_v55 }
0x2575   : > { %22593 = vmatpush3.bf16.msra.mxu1 %v23810_v50 }
0x2577   : > { %22577 = vmatpush3.bf16.msra.mxu0 %v23805_v6 }
0x2578   : > { %22578 = vmatprep.subr.bf16.mxu0 %v24252_v55  ;;  %22595 = vmatmul.mubr.msk.bf16.vlgmr.msra.gmra.mrb[172].mxu1 %vm3606_vm1, %v17726_v51 }
0x257b   : > { %22579 = vmatpush3.bf16.msra.mxu0 %v23807_v33 }
0x257c   : > { %22580 = vmatprep.subr.bf16.mxu0 %v24252_v55 }
0x257f   : > { %22581 = vmatpush3.bf16.msra.mxu0 %v23809_v52 }
0x2582   : > { %22583 = vmatmul.mubr.msk.bf16.vlgmr.msra.gmra.mrb[232].mxu0 %vm3606_vm1, %v18272_v53 }
0x2583   : > { %24048 = shalt.err (!%p24045_p4)
}
0x2584   : > { %s24049_s9 = scalar_lea.hbm %s26856_s10, 64  ;;  %s24053_s14 = scalar_lea.hbm %s24582_s19, 128 }
0x2585   : > { %p24050_p12 = scmp.ne.s32.totalorder %s26856_s10, %s24049_s9  ;;  %p24054_p9 = scmp.lt.u32.totalorder %s26856_s10, %s24582_s19 }
0x2586   : > { %p24055_p10 = scmp.lt.u32.totalorder %s24053_s14, %s24049_s9  ;;  %p24057_p8 = scmp.lt.u32.totalorder %s24049_s9, %s26856_s10 }
0x2587   : > { %p24051_p5 = pnand %p24050_p12, %p27161_p11 }
0x2588   : > { %p24056_p7 = por %p24055_p10, %p24054_p9 }
0x2589   : > { %p24052_p6 = pneg %p24051_p5 }
0x258a   : > { %p24058_p13 = por %p24057_p8, %p24056_p7 }
0x258c   : > { %p24059_p1 = pnand %p24058_p13, %p24052_p6 }
0x258e   : > { %24062 = shalt.err (!%p24059_p1)
}
0x258f   : > { %23039 = dma.vmem_to_hbm [thread:$0]  (%p27161_p11), %s26859_s11, 64, %s26856_s10, %s26862_s13  }
0x2590   : > { %s26885_s6 = scalar_lea.hbm %s24577_s8, %s19877_s12  ;;  %s18460_s16 = sshll.u32 %s26001_s28, 4  ;;  %s26888_s16 = int_to_ptr.vmem [resolvable:$true] %s18460_s16 }
0x2591   : > { %s18435_s15 = scalar_lea.sflag [#allocation4], %s25996_s2  ;;  %s24063_s4 = scalar_lea.vmem %s26888_s16, 256 }
0x2592   : > { %p24064_p2 = scmp.ne.s32.totalorder %s26888_s16, %s24063_s4  ;;  %s24255_s5 = smov [#allocation16]  }
0x2593   : > { %s24067_s9 = sshll.u32 %s24255_s5, 4  ;;  %s24068_s9 = int_to_ptr.vmem [resolvable:$false] %s24067_s9 }
0x2594   : > { %p24065_p0 = pnand %p24064_p2, %p27161_p11  ;;  %s24069_s14 = scalar_lea.vmem %s24068_s9, 512 }
0x2595   : > { %p24070_p4 = scmp.lt.s32.totalorder %s26888_s16, %s24068_s9  ;;  %p24071_p12 = scmp.lt.s32.totalorder %s24069_s14, %s24063_s4 }
0x2596   : > { %p24066_p3 = pneg %p24065_p0 }
0x2597   : > { %p24072_p5 = por %p24071_p12, %p24070_p4 }
0x2599   : > { %p24073_p6 = pnand %p24072_p5, %p24066_p3 }
0x259b   : > { %24076 = shalt.err (!%p24073_p6)
}
0x259c   : > { %s24077_s12 = scalar_lea.hbm %s26885_s6, 256  ;;  %s24081_s11 = scalar_lea.hbm %s24577_s8, 512 }
0x259d   : > { %p24078_p9 = scmp.ne.s32.totalorder %s26885_s6, %s24077_s12  ;;  %p24082_p8 = scmp.lt.u32.totalorder %s26885_s6, %s24577_s8 }
0x259e   : > { %p24083_p13 = scmp.lt.u32.totalorder %s24081_s11, %s24077_s12  ;;  %p24085_p2 = scmp.lt.u32.totalorder %s24077_s12, %s26885_s6 }
0x259f   : > { %p24079_p10 = pnand %p24078_p9, %p27161_p11 }
0x25a0   : > { %p24084_p1 = por %p24083_p13, %p24082_p8 }
0x25a1   : > { %p24080_p7 = pneg %p24079_p10 }
0x25a2   : > { %p24086_p0 = por %p24085_p2, %p24084_p1 }
0x25a4   : > { %p24087_p3 = pnand %p24086_p0, %p24080_p7 }
0x25a6   : > { %24090 = shalt.err (!%p24087_p3)
}
0x25a7   : > { %s24256_s10 = smov 128   ;;  %s24257_s28 = smov 8   ;;  %v19866_v20 = vld [vmem:[#allocation14] ss:$0 sm:$0xff]  ;;  %v17598_v38 = vunpack.c.l.bf16 %v26586_v35  ;;  %vm18427_vm7 = vcmask 516096  }
0x25a8   : > { %23038 = dma.vmem_to_hbm [thread:$0]  (%p27161_p11), %s26888_s16, 256, %s26885_s6, %s18435_s15, %s24256_s10, %s24256_s10, %s24257_s28  }
0x25a9   : > { %s19872_s6 = sshll.u32 %s24610_s0, 4  ;;  %s2000_s16 = scalar_lea.vmem [#allocation19], %s25996_s2 }
0x25aa   : > { %s18489_s15 = sshll.u32 %s2000_s16, 4  ;;  %s26914_s4 = scalar_lea.hbm %s24587_s3, %s19872_s6  ;;  %s18490_s15 = int_to_ptr.vmem [resolvable:$true] %s18489_s15 }
0x25ab   : > { %s24091_s5 = scalar_lea.vmem %s18490_s15, 16  ;;  %s24258_s9 = smov [#allocation19]  }
0x25ac   : > { %p24092_p4 = scmp.ne.s32.totalorder %s18490_s15, %s24091_s5  ;;  %s24095_s14 = sshll.u32 %s24258_s9, 4  ;;  %s24096_s14 = int_to_ptr.vmem [resolvable:$false] %s24095_s14 }
0x25ad   : > { %s24097_s12 = scalar_lea.vmem %s24096_s14, 32  ;;  %p24098_p6 = scmp.lt.s32.totalorder %s18490_s15, %s24096_s14 }
0x25ae   : > { %p24093_p12 = pnand %p24092_p4, %p27161_p11  ;;  %p24099_p9 = scmp.lt.s32.totalorder %s24097_s12, %s24091_s5 }
0x25b0   : > { %p24094_p5 = pneg %p24093_p12  ;;  %p24100_p10 = por %p24099_p9, %p24098_p6 }
0x25b2   : > { %p24101_p7 = pnand %p24100_p10, %p24094_p5 }
0x2615   : > { %v17806_v55 = vpop.f32.mrb[180].mxu0 }
0x2616   : > { %v22500_v54 = vpop.f32.mrb[181].mxu0 }
0x2617   : > { %v17809_v56 = vpop.f32.mrb[182].mxu0 }
0x2618   : > { %v22501_v62 = vpop.f32.mrb[183].mxu0 }
0x261b   : > { %v17948_v57 = vpop.f32.mrb[160].mxu1 }
0x261c   : > { %v22524_v58 = vpop.f32.mrb[161].mxu1 }
0x261d   : > { %v17951_v59 = vpop.f32.mrb[162].mxu1 }
0x261e   : > { %v22525_v27 = vpop.f32.mrb[163].mxu1 }
0x2625   : > { %v17873_v61 = vpop.f32.mrb[220].mxu0 }
0x2626   : > { %v17874_v60 = vadd.f32 %v17873_v61, %v17806_v55  ;;  %v22512_v63 = vpop.f32.mrb[221].mxu0 }
0x2627   : > { %v17876_v1 = vpop.f32.mrb[222].mxu0 }
0x2628   : > { %v17954_v2 = vadd.f32 %v17948_v57, %v17874_v60  ;;  %v22513_v3 = vpop.f32.mrb[223].mxu0 }
0x262b   : > { %v18102_v4 = vpop.f32.mrb[164].mxu1 }
0x262c   : > { %v22548_v5 = vpop.f32.mrb[165].mxu1 }
0x262d   : > { %v18105_v0 = vpop.f32.mrb[166].mxu1 }
0x262e   : > { %v22549_v43 = vpop.f32.mrb[167].mxu1 }
0x2635   : > { %v18026_v7 = vpop.f32.mrb[224].mxu0 }
0x2636   : > { %v18032_v8 = vadd.f32 %v18026_v7, %v17954_v2  ;;  %v22536_v9 = vpop.f32.mrb[225].mxu0 }
0x2637   : > { %v18029_v10 = vpop.f32.mrb[226].mxu0 }
0x2638   : > { %v18108_v11 = vadd.f32 %v18102_v4, %v18032_v8  ;;  %v22537_v47 = vpop.f32.mrb[227].mxu0 }
0x263b   : > { %v18256_v12 = vpop.f32.mrb[168].mxu1 }
0x263c   : > { %v22572_v14 = vpop.f32.mrb[169].mxu1 }
0x263d   : > { %v18259_v15 = vpop.f32.mrb[170].mxu1 }
0x263e   : > { %v22573_v16 = vpop.f32.mrb[171].mxu1 }
0x2645   : > { %v18180_v17 = vpop.f32.mrb[228].mxu0 }
0x2646   : > { %v18186_v18 = vadd.f32 %v18180_v17, %v18108_v11  ;;  %v22560_v19 = vpop.f32.mrb[229].mxu0 }
0x2647   : > { %v18183_v22 = vpop.f32.mrb[230].mxu0 }
0x2648   : > { %v18262_v23 = vadd.f32 %v18256_v12, %v18186_v18  ;;  %v22561_v24 = vpop.f32.mrb[231].mxu0 }
0x264b   : > { %v18410_v25 = vpop.f32.mrb[172].mxu1 }
0x264c   : > { %v22596_v26 = vpop.f32.mrb[173].mxu1 }
0x264d   : > { %v18413_v28 = vpop.f32.mrb[174].mxu1 }
0x264e   : > { %v22597_v29 = vpop.f32.mrb[175].mxu1 }
0x2655   : > { %v18334_v30 = vpop.f32.mrb[232].mxu0 }
0x2656   : > { %v18340_v31 = vadd.f32 %v18334_v30, %v18262_v23  ;;  %v22584_v32 = vpop.f32.mrb[233].mxu0 }
0x2657   : > { %v18337_v34 = vpop.f32.mrb[234].mxu0 }
0x2658   : > { %v18416_v36 = vadd.f32 %v18410_v25, %v18340_v31  ;;  %v22585_v37 = vpop.f32.mrb[235].mxu0 }
0x265a   : > { %v18424_v39 = vadd.f32 %v19866_v20, %v18416_v36 }
0x265c   : > { %v18425_v40 = vadd.f32 %v18424_v39, %v17598_v38 }
0x265e   : > { %v18426_v41 = vmax.f32 %v18425_v40, 0.0 }
0x2660   : > { %18428 = vst.msk [vmem:[%s2000_s16] sm:$0x1] %vm18427_vm7, %v18426_v41 }
0x2661   : > { %24104 = shalt.err (!%p24101_p7)
}
0x2662   : > { %s24105_s0 = scalar_lea.hbm %s26914_s4, 16  ;;  %s24109_s2 = scalar_lea.hbm %s24587_s3, 32 }
0x2663   : > { %p24106_p8 = scmp.ne.s32.totalorder %s26914_s4, %s24105_s0  ;;  %p24110_p2 = scmp.lt.u32.totalorder %s26914_s4, %s24587_s3 }
0x2664   : > { %p24111_p0 = scmp.lt.u32.totalorder %s24109_s2, %s24105_s0  ;;  %p24113_p4 = scmp.lt.u32.totalorder %s24105_s0, %s26914_s4 }
0x2665   : > { %p24107_p13 = pnand %p24106_p8, %p27161_p11 }
0x2666   : > { %p24112_p3 = por %p24111_p0, %p24110_p2 }
0x2667   : > { %p24108_p1 = pneg %p24107_p13 }
0x2668   : > { %p24114_p12 = por %p24113_p4, %p24112_p3 }
0x266a   : > { %p24115_p5 = pnand %p24114_p12, %p24108_p1 }
0x266c   : > { %24118 = shalt.err (!%p24115_p5)
}
0x266d   : > { %23040 = dma.vmem_to_hbm [thread:$0]  (%p27161_p11), %s18490_s15, 16, %s26914_s4, %s26862_s13  }
0x266e PF: > { %s27162_s11 = sld [smem:[#allocation82_spill]]  ;;  %s27163_s10 = sld [smem:[#allocation86_spill]] }
0x266f   : > { %p23095_p6 = scmp.ge.s32.totalorder %s24177_s7, 2 }
0x2674   : > { %s18509_s28 = sand.u32 1, %s27162_s11   ;;  %p27164_p9 = scmp.ne.s32.totalorder %s27163_s10, 0 }
0x2675   : > { %s18510_s6 = scalar_lea.sflag [#allocation4], %s18509_s28 }
0x2676   : > { %p23070_p10 = pnand %p23095_p6, %p27164_p9 }
0x2678   : > { %24156 = dma.done.wait (!%p23070_p10), %s18510_s6, 256  }
0x2679   : > { %24158 = vsyncadd (!%p23070_p10), %s18510_s6, 4294967040  ;;  %s27165_s16 = sadd.s32 4294967294, %s24177_s7  }
0x267a   : > { %s18518_s5 = sand.u32 1, %s27165_s16  }
0x267b   : > { %s18519_s9 = scalar_lea.sflag [#allocation18], %s18518_s5 }
0x267c   : > { %24160 = dma.done.wait (!%p23070_p10), %s18519_s9, 80  }
0x267d   : > { %24162 = vsyncadd (!%p23070_p10), %s18519_s9, 4294967216  ;;  %s27166_s7 = sld [smem:[#allocation84_spill]]  ;;  %s27167_s13 = sld [smem:[#allocation83_spill]] }
0x267e   : > { %s27168_s2 = sld [smem:[#allocation85_spill]]  ;;  %s27169_s28 = smov %s24169_s1 }
0x2683   : > { %p148_p11 = scmp.ge.s32.totalorder %s27166_s7, 4   ;;  %s27170_s1 = smov %s27167_s13 }
0x2685   :  { %150 = sbr.rel (!%p148_p11) target bundleno = 143 (0x8f), region = 440 }
0x268c   :  { %18532 = vsyncpa [#allocation3], 1 }
0x268d   :  { %18534 = vsyncpa [#allocation3 + $0x1], 1 }
0x268e   :  { %18535 = vsyncpa [#allocation6], 1 }
0x268f   :  { %18536 = vsyncpa [#allocation9], 1 }
0x2690   :  { %18537 = vsyncpa [#allocation12], 1 }
0x2691   :  { %18538 = vsyncpa [#allocation15], 1 }
0x2692   :  { %18539 = vsyncpa [#allocation4], 1 }
0x2693   :  { %18541 = vsyncpa [#allocation4 + $0x1], 1 }
0x2694   :  { %18542 = vsyncpa [#allocation18], 1 }
0x2695   :  { %18544 = vsyncpa [#allocation18 + $0x1], 1 }

</bundles_post_ra>
